<compile_context>
chip_gen: v7x
topology: tpu7x:2x2x1
jax: 0.10.0
libtpu: 0.0.40
codegen_flags: <defaults>
</compile_context>

<pallas_src>
import functools

import jax
import jax.numpy as jnp
from jax.experimental import pallas as pl
from jax.experimental.pallas import tpu as pltpu

BN_EPS = 1e-5


# ---------------------------------------------------------------------------
# Fused kernel: [prev-layer BN + ReLU] -> 3x3 conv (in-VMEM taps, bf16 MXU)
#               -> conv bias -> per-image BN partial statistics.
# ---------------------------------------------------------------------------
def _conv_stats_kernel(a_ref, scale_ref, shift_ref, w_ref, b_ref,
                       y_ref, sum_ref, ssq_ref, pad_ref,
                       *, apply_input_act):
    H, W = a_ref.shape[1], a_ref.shape[2]
    cin = a_ref.shape[3]
    cout = y_ref.shape[3]

    a = a_ref[0]                                            # (H, W, Cin) f32
    if apply_input_act:
        # Previous layer's BatchNorm affine + ReLU, fused on the fresh tile.
        a = jnp.maximum(a * scale_ref[0] + shift_ref[0], 0.0)

    # Zero padding (= Conv2d padding=1) built in VMEM; re-zeroed every step so
    # correctness holds when the grid is sharded across TensorCores.
    pad_ref[...] = jnp.zeros_like(pad_ref)
    pad_ref[1:H + 1, 1:W + 1, :] = a

    # 3x3 conv as 9 accumulating MXU matmuls over in-VMEM shifted views
    # (no im2col materialization in HBM). bf16 operands, f32 accumulation.
    acc = jnp.zeros((H * W, cout), jnp.float32)
    for dh in range(3):
        for dw in range(3):
            lhs = pad_ref[dh:dh + H, dw:dw + W, :].reshape(H * W, cin)
            acc = acc + jnp.dot(lhs.astype(jnp.bfloat16),
                                w_ref[dh * 3 + dw],
                                preferred_element_type=jnp.float32)
    acc = acc + b_ref[...]                                  # conv bias

    y_ref[0] = acc.reshape(H, W, cout)                      # pre-BN conv output
    # Single-pass partial stats for training-mode BatchNorm (finalized in JAX).
    sum_ref[0] = jnp.sum(acc, axis=0, keepdims=True)
    ssq_ref[0] = jnp.sum(acc * acc, axis=0, keepdims=True)


def conv_bn_stats(a, scale, shift, w_taps, bias, *, apply_input_act):
    """a: (N,H,W,Cin) f32; w_taps: (9,Cin,Cout) bf16; bias/scale/shift: (1,C)."""
    N, H, W, Cin = a.shape
    Cout = w_taps.shape[-1]
    kern = functools.partial(_conv_stats_kernel, apply_input_act=apply_input_act)
    return pl.pallas_call(
        kern,
        out_shape=(
            jax.ShapeDtypeStruct((N, H, W, Cout), jnp.float32),  # pre-BN conv
            jax.ShapeDtypeStruct((N, 1, Cout), jnp.float32),     # per-image sum
            jax.ShapeDtypeStruct((N, 1, Cout), jnp.float32),     # per-image sumsq
        ),
        grid=(N,),
        in_specs=[
            pl.BlockSpec((1, H, W, Cin), lambda n: (n, 0, 0, 0)),
            pl.BlockSpec((1, Cin), lambda n: (0, 0)),
            pl.BlockSpec((1, Cin), lambda n: (0, 0)),
            pl.BlockSpec((9, Cin, Cout), lambda n: (0, 0, 0)),
            pl.BlockSpec((1, Cout), lambda n: (0, 0)),
        ],
        out_specs=(
            pl.BlockSpec((1, H, W, Cout), lambda n: (n, 0, 0, 0)),
            pl.BlockSpec((1, 1, Cout), lambda n: (n, 0, 0)),
            pl.BlockSpec((1, 1, Cout), lambda n: (n, 0, 0)),
        ),
        scratch_shapes=[pltpu.VMEM((H + 2, W + 2, Cin), jnp.float32)],
        compiler_params=pltpu.CompilerParams(
            dimension_semantics=("parallel",),
            vmem_limit_bytes=32 * 1024 * 1024),
    )(a, scale, shift, w_taps, bias)


# ---------------------------------------------------------------------------
# Tail kernel: apply the LAST layer's BatchNorm affine + ReLU (lane-dense C).
# ---------------------------------------------------------------------------
def _bn_relu_kernel(y_ref, scale_ref, shift_ref, o_ref):
    o_ref[0] = jnp.maximum(y_ref[0] * scale_ref[0] + shift_ref[0], 0.0)


def bn_relu(y, scale, shift):
    N, H, W, C = y.shape
    return pl.pallas_call(
        _bn_relu_kernel,
        out_shape=jax.ShapeDtypeStruct((N, H, W, C), jnp.float32),
        grid=(N,),
        in_specs=[
            pl.BlockSpec((1, H, W, C), lambda n: (n, 0, 0, 0)),
            pl.BlockSpec((1, C), lambda n: (0, 0)),
            pl.BlockSpec((1, C), lambda n: (0, 0)),
        ],
        out_specs=pl.BlockSpec((1, H, W, C), lambda n: (n, 0, 0, 0)),
        compiler_params=pltpu.CompilerParams(dimension_semantics=("parallel",)),
    )(y, scale, shift)


# ---------------------------------------------------------------------------
# Parameters and forward pass
# ---------------------------------------------------------------------------
def init_params(key, layers):
    """Deterministic init mirroring nn.Conv2d / nn.BatchNorm2d defaults."""
    specs = [(2, 64)] + [(64, 64)] * layers + [(64, 2)]
    params = []
    for cin, cout in specs:
        key, kw, kb = jax.random.split(key, 3)
        bound = 1.0 / float(jnp.sqrt(cin * 9.0))
        w = jax.random.uniform(kw, (3, 3, cin, cout), jnp.float32, -bound, bound)
        b = jax.random.uniform(kb, (cout,), jnp.float32, -bound, bound)
        params.append((w, b, jnp.ones((cout,), jnp.float32),
                       jnp.zeros((cout,), jnp.float32)))
    return params


def parts_forward(x_nchw, params):
    """Full `parts` forward. Accepts/returns NCHW like the PyTorch module."""
    x = jnp.transpose(x_nchw, (0, 2, 3, 1)).astype(jnp.float32)  # NCHW -> NHWC
    N, H, W, _ = x.shape
    count = float(N * H * W)

    a = x
    scale = jnp.ones((1, a.shape[-1]), jnp.float32)   # unused on layer 0
    shift = jnp.zeros((1, a.shape[-1]), jnp.float32)
    apply_act = False
    last_cout = a.shape[-1]

    for (w, b, gamma, beta) in params:
        cin, cout = w.shape[2], w.shape[3]
        # Lane-dense output: pad the tiny final Cout (=2) up to 128 lanes.
        cout_p = 128 if cout < 8 else cout
        pad_c = cout_p - cout
        w_p = jnp.pad(w, ((0, 0), (0, 0), (0, 0), (0, pad_c)))
        w_taps = w_p.reshape(9, cin, cout_p).astype(jnp.bfloat16)
        b_p = jnp.pad(b, (0, pad_c)).reshape(1, cout_p)
        gamma_p = jnp.pad(gamma, (0, pad_c))
        beta_p = jnp.pad(beta, (0, pad_c))

        y, s, ss = conv_bn_stats(a, scale, shift, w_taps, b_p,
                                 apply_input_act=apply_act)

        # Finalize GLOBAL training-mode BatchNorm stats (biased var, eps=1e-5)
        # from the per-image partial sums -- tiny (C,)-sized math.
        mean = jnp.sum(s, axis=(0, 1)) / count
        var = jnp.maximum(jnp.sum(ss, axis=(0, 1)) / count - mean * mean, 0.0)
        inv = gamma_p * jax.lax.rsqrt(var + BN_EPS)
        scale = inv.reshape(1, cout_p)
        shift = (beta_p - mean * inv).reshape(1, cout_p)

        a = y
        apply_act = True
        last_cout = cout

    out = bn_relu(a, scale, shift)[..., :last_cout]    # last BN + ReLU, unpad C
    return jnp.transpose(out, (0, 3, 1, 2))            # NHWC -> NCHW


def _ref_forward(x_nchw, params):
    """Pure-JAX reference mirroring the kernel's MXU precision
    (bf16 conv operands, f32 accumulation and BatchNorm math)."""
    x = jnp.transpose(x_nchw, (0, 2, 3, 1)).astype(jnp.float32)
    for w, b, gamma, beta in params:
        y = jax.lax.conv_general_dilated(
            x.astype(jnp.bfloat16), w.astype(jnp.bfloat16),
            window_strides=(1, 1), padding="SAME",
            dimension_numbers=("NHWC", "HWIO", "NHWC"),
            preferred_element_type=jnp.float32) + b
        mean = jnp.mean(y, axis=(0, 1, 2), keepdims=True)
        var = jnp.mean(jnp.square(y - mean), axis=(0, 1, 2), keepdims=True)
        x = jnp.maximum((y - mean) * jax.lax.rsqrt(var + BN_EPS) * gamma + beta,
                        0.0)
    return jnp.transpose(x, (0, 3, 1, 2))


if __name__ == "__main__":
    key = jax.random.PRNGKey(0)
    k_x, k_p = jax.random.split(key)

    layers = 2
    # Input matches Conv2d(2, ...) first layer: (N=2, C=2, H=16, W=16), NCHW.
    x = jax.random.normal(k_x, (2, 2, 16, 16), dtype=jnp.float32)
    params = init_params(k_p, layers)

    fwd = jax.jit(parts_forward)
    out = jax.block_until_ready(fwd(x, params))
    ref = jax.block_until_ready(_ref_forward(x, params))

    assert out.shape == (2, 2, 16, 16)
    # bf16 matmul operands => compare against the precision-matched reference.
    assert jnp.allclose(out, ref, rtol=2e-2, atol=2e-2), float(
        jnp.max(jnp.abs(out - ref)))

    print("KERNEL_OK")
</pallas_src>

<mosaic_0001>
module attributes {stable_mosaic.version = 11 : i64} {
  func.func @_conv_stats_kernel(%arg0: i32, %arg1: memref<1x16x16x2xf32, #tpu.memory_space<vmem>>, %arg2: memref<1x2xf32, #tpu.memory_space<vmem>>, %arg3: memref<1x2xf32, #tpu.memory_space<vmem>>, %arg4: memref<9x2x64xbf16, #tpu.memory_space<vmem>>, %arg5: memref<1x64xf32, #tpu.memory_space<vmem>>, %arg6: memref<1x16x16x64xf32, #tpu.memory_space<vmem>>, %arg7: memref<1x1x64xf32, #tpu.memory_space<vmem>>, %arg8: memref<1x1x64xf32, #tpu.memory_space<vmem>>, %arg9: memref<18x18x2xf32, #tpu.memory_space<vmem>>) attributes {dimension_semantics = [#tpu.dimension_semantics<parallel>], iteration_bounds = array<i64: 2>, scalar_prefetch = 0 : i64, scratch_operands = 1 : i64, tpu.core_type = #tpu.core_type<tc>, window_params = [{transform_indices = @transform_0, window_bounds = array<i64: 1, 16, 16, 2>}, {pipeline_mode = #tpu.pipeline_mode<synchronous>, transform_indices = @transform_1, window_bounds = array<i64: 1, 2>}, {pipeline_mode = #tpu.pipeline_mode<synchronous>, transform_indices = @transform_2, window_bounds = array<i64: 1, 2>}, {pipeline_mode = #tpu.pipeline_mode<synchronous>, transform_indices = @transform_3, window_bounds = array<i64: 9, 2, 64>}, {pipeline_mode = #tpu.pipeline_mode<synchronous>, transform_indices = @transform_4, window_bounds = array<i64: 1, 64>}, {transform_indices = @transform_5, window_bounds = array<i64: 1, 16, 16, 64>}, {transform_indices = @transform_6, window_bounds = array<i64: 1, 1, 64>}, {transform_indices = @transform_7, window_bounds = array<i64: 1, 1, 64>}]} {
    %c0 = arith.constant 0 : index
    %c0_0 = arith.constant 0 : index
    %c0_1 = arith.constant 0 : index
    %c0_2 = arith.constant 0 : index
    %0 = vector.load %arg1[%c0, %c0_0, %c0_1, %c0_2] : memref<1x16x16x2xf32, #tpu.memory_space<vmem>>, vector<1x16x16x2xf32>
    %1 = vector.shape_cast %0 : vector<1x16x16x2xf32> to vector<16x16x2xf32>
    %cst = arith.constant 0.000000e+00 : f32
    %2 = vector.broadcast %cst : f32 to vector<18x18x2xf32>
    %c0_3 = arith.constant 0 : index
    %c0_4 = arith.constant 0 : index
    %c0_5 = arith.constant 0 : index
    %3 = vector.load %arg9[%c0_3, %c0_4, %c0_5] : memref<18x18x2xf32, #tpu.memory_space<vmem>>, vector<18x18x2xf32>
    tpu.vector_store %arg9[%c0_3, %c0_4, %c0_5], %2 {strides = array<i32>} : memref<18x18x2xf32, #tpu.memory_space<vmem>>, vector<18x18x2xf32>,
    %c1 = arith.constant 1 : index
    %c1_6 = arith.constant 1 : index
    %c0_7 = arith.constant 0 : index
    %4 = vector.load %arg9[%c1, %c1_6, %c0_7] : memref<18x18x2xf32, #tpu.memory_space<vmem>>, vector<16x16x2xf32>
    tpu.vector_store %arg9[%c1, %c1_6, %c0_7], %1 {strides = array<i32>} : memref<18x18x2xf32, #tpu.memory_space<vmem>>, vector<16x16x2xf32>,
    %cst_8 = arith.constant 0.000000e+00 : f32
    %5 = vector.broadcast %cst_8 : f32 to vector<256x64xf32>
    %c0_9 = arith.constant 0 : index
    %c0_10 = arith.constant 0 : index
    %c0_11 = arith.constant 0 : index
    %6 = vector.load %arg9[%c0_9, %c0_10, %c0_11] : memref<18x18x2xf32, #tpu.memory_space<vmem>>, vector<16x16x2xf32>
    %7 = vector.shape_cast %6 : vector<16x16x2xf32> to vector<256x2xf32>
    %8 = arith.truncf %7 : vector<256x2xf32> to vector<256x2xbf16>
    %c0_12 = arith.constant 0 : index
    %c0_13 = arith.constant 0 : index
    %c0_14 = arith.constant 0 : index
    %9 = vector.load %arg4[%c0_12, %c0_13, %c0_14] : memref<9x2x64xbf16, #tpu.memory_space<vmem>>, vector<1x2x64xbf16>
    %10 = vector.shape_cast %9 : vector<1x2x64xbf16> to vector<2x64xbf16>
    %cst_15 = arith.constant dense<0.000000e+00> : vector<256x64xf32>
    %11 = tpu.matmul %8, %10, %cst_15 {dimension_numbers = #tpu.dot_dimension_numbers<[1], [0], [0], [1], [0, 0, 1, 1], [], []>} : vector<256x2xbf16>, vector<2x64xbf16>, vector<256x64xf32> -> vector<256x64xf32>
    %12 = arith.addf %5, %11 : vector<256x64xf32>
    %c0_16 = arith.constant 0 : index
    %c1_17 = arith.constant 1 : index
    %c0_18 = arith.constant 0 : index
    %13 = vector.load %arg9[%c0_16, %c1_17, %c0_18] : memref<18x18x2xf32, #tpu.memory_space<vmem>>, vector<16x16x2xf32>
    %14 = vector.shape_cast %13 : vector<16x16x2xf32> to vector<256x2xf32>
    %15 = arith.truncf %14 : vector<256x2xf32> to vector<256x2xbf16>
    %c1_19 = arith.constant 1 : index
    %c0_20 = arith.constant 0 : index
    %c0_21 = arith.constant 0 : index
    %16 = vector.load %arg4[%c1_19, %c0_20, %c0_21] : memref<9x2x64xbf16, #tpu.memory_space<vmem>>, vector<1x2x64xbf16>
    %17 = vector.shape_cast %16 : vector<1x2x64xbf16> to vector<2x64xbf16>
    %cst_22 = arith.constant dense<0.000000e+00> : vector<256x64xf32>
    %18 = tpu.matmul %15, %17, %cst_22 {dimension_numbers = #tpu.dot_dimension_numbers<[1], [0], [0], [1], [0, 0, 1, 1], [], []>} : vector<256x2xbf16>, vector<2x64xbf16>, vector<256x64xf32> -> vector<256x64xf32>
    %19 = arith.addf %12, %18 : vector<256x64xf32>
    %c0_23 = arith.constant 0 : index
    %c2 = arith.constant 2 : index
    %c0_24 = arith.constant 0 : index
    %20 = vector.load %arg9[%c0_23, %c2, %c0_24] : memref<18x18x2xf32, #tpu.memory_space<vmem>>, vector<16x16x2xf32>
    %21 = vector.shape_cast %20 : vector<16x16x2xf32> to vector<256x2xf32>
    %22 = arith.truncf %21 : vector<256x2xf32> to vector<256x2xbf16>
    %c2_25 = arith.constant 2 : index
    %c0_26 = arith.constant 0 : index
    %c0_27 = arith.constant 0 : index
    %23 = vector.load %arg4[%c2_25, %c0_26, %c0_27] : memref<9x2x64xbf16, #tpu.memory_space<vmem>>, vector<1x2x64xbf16>
    %24 = vector.shape_cast %23 : vector<1x2x64xbf16> to vector<2x64xbf16>
    %cst_28 = arith.constant dense<0.000000e+00> : vector<256x64xf32>
    %25 = tpu.matmul %22, %24, %cst_28 {dimension_numbers = #tpu.dot_dimension_numbers<[1], [0], [0], [1], [0, 0, 1, 1], [], []>} : vector<256x2xbf16>, vector<2x64xbf16>, vector<256x64xf32> -> vector<256x64xf32>
    %26 = arith.addf %19, %25 : vector<256x64xf32>
    %c1_29 = arith.constant 1 : index
    %c0_30 = arith.constant 0 : index
    %c0_31 = arith.constant 0 : index
    %27 = vector.load %arg9[%c1_29, %c0_30, %c0_31] : memref<18x18x2xf32, #tpu.memory_space<vmem>>, vector<16x16x2xf32>
    %28 = vector.shape_cast %27 : vector<16x16x2xf32> to vector<256x2xf32>
    %29 = arith.truncf %28 : vector<256x2xf32> to vector<256x2xbf16>
    %c3 = arith.constant 3 : index
    %c0_32 = arith.constant 0 : index
    %c0_33 = arith.constant 0 : index
    %30 = vector.load %arg4[%c3, %c0_32, %c0_33] : memref<9x2x64xbf16, #tpu.memory_space<vmem>>, vector<1x2x64xbf16>
    %31 = vector.shape_cast %30 : vector<1x2x64xbf16> to vector<2x64xbf16>
    %cst_34 = arith.constant dense<0.000000e+00> : vector<256x64xf32>
    %32 = tpu.matmul %29, %31, %cst_34 {dimension_numbers = #tpu.dot_dimension_numbers<[1], [0], [0], [1], [0, 0, 1, 1], [], []>} : vector<256x2xbf16>, vector<2x64xbf16>, vector<256x64xf32> -> vector<256x64xf32>
    %33 = arith.addf %26, %32 : vector<256x64xf32>
    %c1_35 = arith.constant 1 : index
    %c1_36 = arith.constant 1 : index
    %c0_37 = arith.constant 0 : index
    %34 = vector.load %arg9[%c1_35, %c1_36, %c0_37] : memref<18x18x2xf32, #tpu.memory_space<vmem>>, vector<16x16x2xf32>
    %35 = vector.shape_cast %34 : vector<16x16x2xf32> to vector<256x2xf32>
    %36 = arith.truncf %35 : vector<256x2xf32> to vector<256x2xbf16>
    %c4 = arith.constant 4 : index
    %c0_38 = arith.constant 0 : index
    %c0_39 = arith.constant 0 : index
    %37 = vector.load %arg4[%c4, %c0_38, %c0_39] : memref<9x2x64xbf16, #tpu.memory_space<vmem>>, vector<1x2x64xbf16>
    %38 = vector.shape_cast %37 : vector<1x2x64xbf16> to vector<2x64xbf16>
    %cst_40 = arith.constant dense<0.000000e+00> : vector<256x64xf32>
    %39 = tpu.matmul %36, %38, %cst_40 {dimension_numbers = #tpu.dot_dimension_numbers<[1], [0], [0], [1], [0, 0, 1, 1], [], []>} : vector<256x2xbf16>, vector<2x64xbf16>, vector<256x64xf32> -> vector<256x64xf32>
    %40 = arith.addf %33, %39 : vector<256x64xf32>
    %c1_41 = arith.constant 1 : index
    %c2_42 = arith.constant 2 : index
    %c0_43 = arith.constant 0 : index
    %41 = vector.load %arg9[%c1_41, %c2_42, %c0_43] : memref<18x18x2xf32, #tpu.memory_space<vmem>>, vector<16x16x2xf32>
    %42 = vector.shape_cast %41 : vector<16x16x2xf32> to vector<256x2xf32>
    %43 = arith.truncf %42 : vector<256x2xf32> to vector<256x2xbf16>
    %c5 = arith.constant 5 : index
    %c0_44 = arith.constant 0 : index
    %c0_45 = arith.constant 0 : index
    %44 = vector.load %arg4[%c5, %c0_44, %c0_45] : memref<9x2x64xbf16, #tpu.memory_space<vmem>>, vector<1x2x64xbf16>
    %45 = vector.shape_cast %44 : vector<1x2x64xbf16> to vector<2x64xbf16>
    %cst_46 = arith.constant dense<0.000000e+00> : vector<256x64xf32>
    %46 = tpu.matmul %43, %45, %cst_46 {dimension_numbers = #tpu.dot_dimension_numbers<[1], [0], [0], [1], [0, 0, 1, 1], [], []>} : vector<256x2xbf16>, vector<2x64xbf16>, vector<256x64xf32> -> vector<256x64xf32>
    %47 = arith.addf %40, %46 : vector<256x64xf32>
    %c2_47 = arith.constant 2 : index
    %c0_48 = arith.constant 0 : index
    %c0_49 = arith.constant 0 : index
    %48 = vector.load %arg9[%c2_47, %c0_48, %c0_49] : memref<18x18x2xf32, #tpu.memory_space<vmem>>, vector<16x16x2xf32>
    %49 = vector.shape_cast %48 : vector<16x16x2xf32> to vector<256x2xf32>
    %50 = arith.truncf %49 : vector<256x2xf32> to vector<256x2xbf16>
    %c6 = arith.constant 6 : index
    %c0_50 = arith.constant 0 : index
    %c0_51 = arith.constant 0 : index
    %51 = vector.load %arg4[%c6, %c0_50, %c0_51] : memref<9x2x64xbf16, #tpu.memory_space<vmem>>, vector<1x2x64xbf16>
    %52 = vector.shape_cast %51 : vector<1x2x64xbf16> to vector<2x64xbf16>
    %cst_52 = arith.constant dense<0.000000e+00> : vector<256x64xf32>
    %53 = tpu.matmul %50, %52, %cst_52 {dimension_numbers = #tpu.dot_dimension_numbers<[1], [0], [0], [1], [0, 0, 1, 1], [], []>} : vector<256x2xbf16>, vector<2x64xbf16>, vector<256x64xf32> -> vector<256x64xf32>
    %54 = arith.addf %47, %53 : vector<256x64xf32>
    %c2_53 = arith.constant 2 : index
    %c1_54 = arith.constant 1 : index
    %c0_55 = arith.constant 0 : index
    %55 = vector.load %arg9[%c2_53, %c1_54, %c0_55] : memref<18x18x2xf32, #tpu.memory_space<vmem>>, vector<16x16x2xf32>
    %56 = vector.shape_cast %55 : vector<16x16x2xf32> to vector<256x2xf32>
    %57 = arith.truncf %56 : vector<256x2xf32> to vector<256x2xbf16>
    %c7 = arith.constant 7 : index
    %c0_56 = arith.constant 0 : index
    %c0_57 = arith.constant 0 : index
    %58 = vector.load %arg4[%c7, %c0_56, %c0_57] : memref<9x2x64xbf16, #tpu.memory_space<vmem>>, vector<1x2x64xbf16>
    %59 = vector.shape_cast %58 : vector<1x2x64xbf16> to vector<2x64xbf16>
    %cst_58 = arith.constant dense<0.000000e+00> : vector<256x64xf32>
    %60 = tpu.matmul %57, %59, %cst_58 {dimension_numbers = #tpu.dot_dimension_numbers<[1], [0], [0], [1], [0, 0, 1, 1], [], []>} : vector<256x2xbf16>, vector<2x64xbf16>, vector<256x64xf32> -> vector<256x64xf32>
    %61 = arith.addf %54, %60 : vector<256x64xf32>
    %c2_59 = arith.constant 2 : index
    %c2_60 = arith.constant 2 : index
    %c0_61 = arith.constant 0 : index
    %62 = vector.load %arg9[%c2_59, %c2_60, %c0_61] : memref<18x18x2xf32, #tpu.memory_space<vmem>>, vector<16x16x2xf32>
    %63 = vector.shape_cast %62 : vector<16x16x2xf32> to vector<256x2xf32>
    %64 = arith.truncf %63 : vector<256x2xf32> to vector<256x2xbf16>
    %c8 = arith.constant 8 : index
    %c0_62 = arith.constant 0 : index
    %c0_63 = arith.constant 0 : index
    %65 = vector.load %arg4[%c8, %c0_62, %c0_63] : memref<9x2x64xbf16, #tpu.memory_space<vmem>>, vector<1x2x64xbf16>
    %66 = vector.shape_cast %65 : vector<1x2x64xbf16> to vector<2x64xbf16>
    %cst_64 = arith.constant dense<0.000000e+00> : vector<256x64xf32>
    %67 = tpu.matmul %64, %66, %cst_64 {dimension_numbers = #tpu.dot_dimension_numbers<[1], [0], [0], [1], [0, 0, 1, 1], [], []>} : vector<256x2xbf16>, vector<2x64xbf16>, vector<256x64xf32> -> vector<256x64xf32>
    %68 = arith.addf %61, %67 : vector<256x64xf32>
    %c0_65 = arith.constant 0 : index
    %c0_66 = arith.constant 0 : index
    %69 = vector.load %arg5[%c0_65, %c0_66] : memref<1x64xf32, #tpu.memory_space<vmem>>, vector<1x64xf32>
    %70 = vector.broadcast %69 : vector<1x64xf32> to vector<256x64xf32>
    %71 = arith.addf %68, %70 : vector<256x64xf32>
    %72 = vector.shape_cast %71 : vector<256x64xf32> to vector<16x16x64xf32>
    %c0_67 = arith.constant 0 : index
    %c0_68 = arith.constant 0 : index
    %c0_69 = arith.constant 0 : index
    %c0_70 = arith.constant 0 : index
    %73 = vector.load %arg6[%c0_67, %c0_68, %c0_69, %c0_70] : memref<1x16x16x64xf32, #tpu.memory_space<vmem>>, vector<1x16x16x64xf32>
    %74 = vector.shape_cast %73 : vector<1x16x16x64xf32> to vector<16x16x64xf32>
    %75 = vector.shape_cast %72 : vector<16x16x64xf32> to vector<1x16x16x64xf32>
    tpu.vector_store %arg6[%c0_67, %c0_68, %c0_69, %c0_70], %75 {strides = array<i32>} : memref<1x16x16x64xf32, #tpu.memory_space<vmem>>, vector<1x16x16x64xf32>,
    %cst_71 = arith.constant dense<0.000000e+00> : vector<64xf32>
    %76 = vector.multi_reduction <add>, %71, %cst_71 [0] : vector<256x64xf32> to vector<64xf32>
    %77 = vector.shape_cast %76 : vector<64xf32> to vector<1x64xf32>
    %c0_72 = arith.constant 0 : index
    %c0_73 = arith.constant 0 : index
    %c0_74 = arith.constant 0 : index
    %78 = vector.load %arg7[%c0_72, %c0_73, %c0_74] : memref<1x1x64xf32, #tpu.memory_space<vmem>>, vector<1x1x64xf32>
    %79 = vector.shape_cast %78 : vector<1x1x64xf32> to vector<1x64xf32>
    %80 = vector.shape_cast %77 : vector<1x64xf32> to vector<1x1x64xf32>
    tpu.vector_store %arg7[%c0_72, %c0_73, %c0_74], %80 {strides = array<i32>} : memref<1x1x64xf32, #tpu.memory_space<vmem>>, vector<1x1x64xf32>,
    %81 = arith.mulf %71, %71 : vector<256x64xf32>
    %cst_75 = arith.constant dense<0.000000e+00> : vector<64xf32>
    %82 = vector.multi_reduction <add>, %81, %cst_75 [0] : vector<256x64xf32> to vector<64xf32>
    %83 = vector.shape_cast %82 : vector<64xf32> to vector<1x64xf32>
    %c0_76 = arith.constant 0 : index
    %c0_77 = arith.constant 0 : index
    %c0_78 = arith.constant 0 : index
    %84 = vector.load %arg8[%c0_76, %c0_77, %c0_78] : memref<1x1x64xf32, #tpu.memory_space<vmem>>, vector<1x1x64xf32>
    %85 = vector.shape_cast %84 : vector<1x1x64xf32> to vector<1x64xf32>
    %86 = vector.shape_cast %83 : vector<1x64xf32> to vector<1x1x64xf32>
    tpu.vector_store %arg8[%c0_76, %c0_77, %c0_78], %86 {strides = array<i32>} : memref<1x1x64xf32, #tpu.memory_space<vmem>>, vector<1x1x64xf32>,
    return
  }
  func.func @transform_0(%arg0: i32) -> (i32, i32, i32, i32) {
    %c0_i32 = arith.constant 0 : i32
    %c0_i32_0 = arith.constant 0 : i32
    %c0_i32_1 = arith.constant 0 : i32
    %c0_i32_2 = arith.constant 0 : i32
    return %arg0, %c0_i32, %c0_i32_0, %c0_i32_1 : i32, i32, i32, i32
  }
  func.func @transform_1(%arg0: i32) -> (i32, i32) {
    %c0_i32 = arith.constant 0 : i32
    %c0_i32_0 = arith.constant 0 : i32
    %c0_i32_1 = arith.constant 0 : i32
    return %c0_i32, %c0_i32_0 : i32, i32
  }
  func.func @transform_2(%arg0: i32) -> (i32, i32) {
    %c0_i32 = arith.constant 0 : i32
    %c0_i32_0 = arith.constant 0 : i32
    %c0_i32_1 = arith.constant 0 : i32
    return %c0_i32, %c0_i32_0 : i32, i32
  }
  func.func @transform_3(%arg0: i32) -> (i32, i32, i32) {
    %c0_i32 = arith.constant 0 : i32
    %c0_i32_0 = arith.constant 0 : i32
    %c0_i32_1 = arith.constant 0 : i32
    %c0_i32_2 = arith.constant 0 : i32
    return %c0_i32, %c0_i32_0, %c0_i32_1 : i32, i32, i32
  }
  func.func @transform_4(%arg0: i32) -> (i32, i32) {
    %c0_i32 = arith.constant 0 : i32
    %c0_i32_0 = arith.constant 0 : i32
    %c0_i32_1 = arith.constant 0 : i32
    return %c0_i32, %c0_i32_0 : i32, i32
  }
  func.func @transform_5(%arg0: i32) -> (i32, i32, i32, i32) {
    %c0_i32 = arith.constant 0 : i32
    %c0_i32_0 = arith.constant 0 : i32
    %c0_i32_1 = arith.constant 0 : i32
    %c0_i32_2 = arith.constant 0 : i32
    return %arg0, %c0_i32, %c0_i32_0, %c0_i32_1 : i32, i32, i32, i32
  }
  func.func @transform_6(%arg0: i32) -> (i32, i32, i32) {
    %c0_i32 = arith.constant 0 : i32
    %c0_i32_0 = arith.constant 0 : i32
    %c0_i32_1 = arith.constant 0 : i32
    return %arg0, %c0_i32, %c0_i32_0 : i32, i32, i32
  }
  func.func @transform_7(%arg0: i32) -> (i32, i32, i32) {
    %c0_i32 = arith.constant 0 : i32
    %c0_i32_0 = arith.constant 0 : i32
    %c0_i32_1 = arith.constant 0 : i32
    return %arg0, %c0_i32, %c0_i32_0 : i32, i32, i32
  }
}

module attributes {stable_mosaic.version = 11 : i64} {
  func.func @_conv_stats_kernel(%arg0: i32, %arg1: memref<1x16x16x64xf32, #tpu.memory_space<vmem>>, %arg2: memref<1x64xf32, #tpu.memory_space<vmem>>, %arg3: memref<1x64xf32, #tpu.memory_space<vmem>>, %arg4: memref<9x64x64xbf16, #tpu.memory_space<vmem>>, %arg5: memref<1x64xf32, #tpu.memory_space<vmem>>, %arg6: memref<1x16x16x64xf32, #tpu.memory_space<vmem>>, %arg7: memref<1x1x64xf32, #tpu.memory_space<vmem>>, %arg8: memref<1x1x64xf32, #tpu.memory_space<vmem>>, %arg9: memref<18x18x64xf32, #tpu.memory_space<vmem>>) attributes {dimension_semantics = [#tpu.dimension_semantics<parallel>], iteration_bounds = array<i64: 2>, scalar_prefetch = 0 : i64, scratch_operands = 1 : i64, tpu.core_type = #tpu.core_type<tc>, window_params = [{transform_indices = @transform_0, window_bounds = array<i64: 1, 16, 16, 64>}, {pipeline_mode = #tpu.pipeline_mode<synchronous>, transform_indices = @transform_1, window_bounds = array<i64: 1, 64>}, {pipeline_mode = #tpu.pipeline_mode<synchronous>, transform_indices = @transform_2, window_bounds = array<i64: 1, 64>}, {pipeline_mode = #tpu.pipeline_mode<synchronous>, transform_indices = @transform_3, window_bounds = array<i64: 9, 64, 64>}, {pipeline_mode = #tpu.pipeline_mode<synchronous>, transform_indices = @transform_4, window_bounds = array<i64: 1, 64>}, {transform_indices = @transform_5, window_bounds = array<i64: 1, 16, 16, 64>}, {transform_indices = @transform_6, window_bounds = array<i64: 1, 1, 64>}, {transform_indices = @transform_7, window_bounds = array<i64: 1, 1, 64>}]} {
    %c0 = arith.constant 0 : index
    %c0_0 = arith.constant 0 : index
    %c0_1 = arith.constant 0 : index
    %c0_2 = arith.constant 0 : index
    %0 = vector.load %arg1[%c0, %c0_0, %c0_1, %c0_2] : memref<1x16x16x64xf32, #tpu.memory_space<vmem>>, vector<1x16x16x64xf32>
    %1 = vector.shape_cast %0 : vector<1x16x16x64xf32> to vector<16x16x64xf32>
    %c0_3 = arith.constant 0 : index
    %c0_4 = arith.constant 0 : index
    %2 = vector.load %arg2[%c0_3, %c0_4] : memref<1x64xf32, #tpu.memory_space<vmem>>, vector<1x64xf32>
    %3 = vector.shape_cast %2 : vector<1x64xf32> to vector<64xf32>
    %4 = vector.shape_cast %3 : vector<64xf32> to vector<1x1x64xf32>
    %5 = vector.broadcast %4 : vector<1x1x64xf32> to vector<16x16x64xf32>
    %6 = arith.mulf %1, %5 : vector<16x16x64xf32>
    %c0_5 = arith.constant 0 : index
    %c0_6 = arith.constant 0 : index
    %7 = vector.load %arg3[%c0_5, %c0_6] : memref<1x64xf32, #tpu.memory_space<vmem>>, vector<1x64xf32>
    %8 = vector.shape_cast %7 : vector<1x64xf32> to vector<64xf32>
    %9 = vector.shape_cast %8 : vector<64xf32> to vector<1x1x64xf32>
    %10 = vector.broadcast %9 : vector<1x1x64xf32> to vector<16x16x64xf32>
    %11 = arith.addf %6, %10 : vector<16x16x64xf32>
    %cst = arith.constant 0.000000e+00 : f32
    %12 = vector.broadcast %cst : f32 to vector<16x16x64xf32>
    %13 = arith.maximumf %11, %12 : vector<16x16x64xf32>
    %cst_7 = arith.constant 0.000000e+00 : f32
    %14 = vector.broadcast %cst_7 : f32 to vector<18x18x64xf32>
    %c0_8 = arith.constant 0 : index
    %c0_9 = arith.constant 0 : index
    %c0_10 = arith.constant 0 : index
    %15 = vector.load %arg9[%c0_8, %c0_9, %c0_10] : memref<18x18x64xf32, #tpu.memory_space<vmem>>, vector<18x18x64xf32>
    tpu.vector_store %arg9[%c0_8, %c0_9, %c0_10], %14 {strides = array<i32>} : memref<18x18x64xf32, #tpu.memory_space<vmem>>, vector<18x18x64xf32>,
    %c1 = arith.constant 1 : index
    %c1_11 = arith.constant 1 : index
    %c0_12 = arith.constant 0 : index
    %16 = vector.load %arg9[%c1, %c1_11, %c0_12] : memref<18x18x64xf32, #tpu.memory_space<vmem>>, vector<16x16x64xf32>
    tpu.vector_store %arg9[%c1, %c1_11, %c0_12], %13 {strides = array<i32>} : memref<18x18x64xf32, #tpu.memory_space<vmem>>, vector<16x16x64xf32>,
    %cst_13 = arith.constant 0.000000e+00 : f32
    %17 = vector.broadcast %cst_13 : f32 to vector<256x64xf32>
    %c0_14 = arith.constant 0 : index
    %c0_15 = arith.constant 0 : index
    %c0_16 = arith.constant 0 : index
    %18 = vector.load %arg9[%c0_14, %c0_15, %c0_16] : memref<18x18x64xf32, #tpu.memory_space<vmem>>, vector<16x16x64xf32>
    %19 = vector.shape_cast %18 : vector<16x16x64xf32> to vector<256x64xf32>
    %20 = arith.truncf %19 : vector<256x64xf32> to vector<256x64xbf16>
    %c0_17 = arith.constant 0 : index
    %c0_18 = arith.constant 0 : index
    %c0_19 = arith.constant 0 : index
    %21 = vector.load %arg4[%c0_17, %c0_18, %c0_19] : memref<9x64x64xbf16, #tpu.memory_space<vmem>>, vector<1x64x64xbf16>
    %22 = vector.shape_cast %21 : vector<1x64x64xbf16> to vector<64x64xbf16>
    %cst_20 = arith.constant dense<0.000000e+00> : vector<256x64xf32>
    %23 = tpu.matmul %20, %22, %cst_20 {dimension_numbers = #tpu.dot_dimension_numbers<[1], [0], [0], [1], [0, 0, 1, 1], [], []>} : vector<256x64xbf16>, vector<64x64xbf16>, vector<256x64xf32> -> vector<256x64xf32>
    %24 = arith.addf %17, %23 : vector<256x64xf32>
    %c0_21 = arith.constant 0 : index
    %c1_22 = arith.constant 1 : index
    %c0_23 = arith.constant 0 : index
    %25 = vector.load %arg9[%c0_21, %c1_22, %c0_23] : memref<18x18x64xf32, #tpu.memory_space<vmem>>, vector<16x16x64xf32>
    %26 = vector.shape_cast %25 : vector<16x16x64xf32> to vector<256x64xf32>
    %27 = arith.truncf %26 : vector<256x64xf32> to vector<256x64xbf16>
    %c1_24 = arith.constant 1 : index
    %c0_25 = arith.constant 0 : index
    %c0_26 = arith.constant 0 : index
    %28 = vector.load %arg4[%c1_24, %c0_25, %c0_26] : memref<9x64x64xbf16, #tpu.memory_space<vmem>>, vector<1x64x64xbf16>
    %29 = vector.shape_cast %28 : vector<1x64x64xbf16> to vector<64x64xbf16>
    %cst_27 = arith.constant dense<0.000000e+00> : vector<256x64xf32>
    %30 = tpu.matmul %27, %29, %cst_27 {dimension_numbers = #tpu.dot_dimension_numbers<[1], [0], [0], [1], [0, 0, 1, 1], [], []>} : vector<256x64xbf16>, vector<64x64xbf16>, vector<256x64xf32> -> vector<256x64xf32>
    %31 = arith.addf %24, %30 : vector<256x64xf32>
    %c0_28 = arith.constant 0 : index
    %c2 = arith.constant 2 : index
    %c0_29 = arith.constant 0 : index
    %32 = vector.load %arg9[%c0_28, %c2, %c0_29] : memref<18x18x64xf32, #tpu.memory_space<vmem>>, vector<16x16x64xf32>
    %33 = vector.shape_cast %32 : vector<16x16x64xf32> to vector<256x64xf32>
    %34 = arith.truncf %33 : vector<256x64xf32> to vector<256x64xbf16>
    %c2_30 = arith.constant 2 : index
    %c0_31 = arith.constant 0 : index
    %c0_32 = arith.constant 0 : index
    %35 = vector.load %arg4[%c2_30, %c0_31, %c0_32] : memref<9x64x64xbf16, #tpu.memory_space<vmem>>, vector<1x64x64xbf16>
    %36 = vector.shape_cast %35 : vector<1x64x64xbf16> to vector<64x64xbf16>
    %cst_33 = arith.constant dense<0.000000e+00> : vector<256x64xf32>
    %37 = tpu.matmul %34, %36, %cst_33 {dimension_numbers = #tpu.dot_dimension_numbers<[1], [0], [0], [1], [0, 0, 1, 1], [], []>} : vector<256x64xbf16>, vector<64x64xbf16>, vector<256x64xf32> -> vector<256x64xf32>
    %38 = arith.addf %31, %37 : vector<256x64xf32>
    %c1_34 = arith.constant 1 : index
    %c0_35 = arith.constant 0 : index
    %c0_36 = arith.constant 0 : index
    %39 = vector.load %arg9[%c1_34, %c0_35, %c0_36] : memref<18x18x64xf32, #tpu.memory_space<vmem>>, vector<16x16x64xf32>
    %40 = vector.shape_cast %39 : vector<16x16x64xf32> to vector<256x64xf32>
    %41 = arith.truncf %40 : vector<256x64xf32> to vector<256x64xbf16>
    %c3 = arith.constant 3 : index
    %c0_37 = arith.constant 0 : index
    %c0_38 = arith.constant 0 : index
    %42 = vector.load %arg4[%c3, %c0_37, %c0_38] : memref<9x64x64xbf16, #tpu.memory_space<vmem>>, vector<1x64x64xbf16>
    %43 = vector.shape_cast %42 : vector<1x64x64xbf16> to vector<64x64xbf16>
    %cst_39 = arith.constant dense<0.000000e+00> : vector<256x64xf32>
    %44 = tpu.matmul %41, %43, %cst_39 {dimension_numbers = #tpu.dot_dimension_numbers<[1], [0], [0], [1], [0, 0, 1, 1], [], []>} : vector<256x64xbf16>, vector<64x64xbf16>, vector<256x64xf32> -> vector<256x64xf32>
    %45 = arith.addf %38, %44 : vector<256x64xf32>
    %c1_40 = arith.constant 1 : index
    %c1_41 = arith.constant 1 : index
    %c0_42 = arith.constant 0 : index
    %46 = vector.load %arg9[%c1_40, %c1_41, %c0_42] : memref<18x18x64xf32, #tpu.memory_space<vmem>>, vector<16x16x64xf32>
    %47 = vector.shape_cast %46 : vector<16x16x64xf32> to vector<256x64xf32>
    %48 = arith.truncf %47 : vector<256x64xf32> to vector<256x64xbf16>
    %c4 = arith.constant 4 : index
    %c0_43 = arith.constant 0 : index
    %c0_44 = arith.constant 0 : index
    %49 = vector.load %arg4[%c4, %c0_43, %c0_44] : memref<9x64x64xbf16, #tpu.memory_space<vmem>>, vector<1x64x64xbf16>
    %50 = vector.shape_cast %49 : vector<1x64x64xbf16> to vector<64x64xbf16>
    %cst_45 = arith.constant dense<0.000000e+00> : vector<256x64xf32>
    %51 = tpu.matmul %48, %50, %cst_45 {dimension_numbers = #tpu.dot_dimension_numbers<[1], [0], [0], [1], [0, 0, 1, 1], [], []>} : vector<256x64xbf16>, vector<64x64xbf16>, vector<256x64xf32> -> vector<256x64xf32>
    %52 = arith.addf %45, %51 : vector<256x64xf32>
    %c1_46 = arith.constant 1 : index
    %c2_47 = arith.constant 2 : index
    %c0_48 = arith.constant 0 : index
    %53 = vector.load %arg9[%c1_46, %c2_47, %c0_48] : memref<18x18x64xf32, #tpu.memory_space<vmem>>, vector<16x16x64xf32>
    %54 = vector.shape_cast %53 : vector<16x16x64xf32> to vector<256x64xf32>
    %55 = arith.truncf %54 : vector<256x64xf32> to vector<256x64xbf16>
    %c5 = arith.constant 5 : index
    %c0_49 = arith.constant 0 : index
    %c0_50 = arith.constant 0 : index
    %56 = vector.load %arg4[%c5, %c0_49, %c0_50] : memref<9x64x64xbf16, #tpu.memory_space<vmem>>, vector<1x64x64xbf16>
    %57 = vector.shape_cast %56 : vector<1x64x64xbf16> to vector<64x64xbf16>
    %cst_51 = arith.constant dense<0.000000e+00> : vector<256x64xf32>
    %58 = tpu.matmul %55, %57, %cst_51 {dimension_numbers = #tpu.dot_dimension_numbers<[1], [0], [0], [1], [0, 0, 1, 1], [], []>} : vector<256x64xbf16>, vector<64x64xbf16>, vector<256x64xf32> -> vector<256x64xf32>
    %59 = arith.addf %52, %58 : vector<256x64xf32>
    %c2_52 = arith.constant 2 : index
    %c0_53 = arith.constant 0 : index
    %c0_54 = arith.constant 0 : index
    %60 = vector.load %arg9[%c2_52, %c0_53, %c0_54] : memref<18x18x64xf32, #tpu.memory_space<vmem>>, vector<16x16x64xf32>
    %61 = vector.shape_cast %60 : vector<16x16x64xf32> to vector<256x64xf32>
    %62 = arith.truncf %61 : vector<256x64xf32> to vector<256x64xbf16>
    %c6 = arith.constant 6 : index
    %c0_55 = arith.constant 0 : index
    %c0_56 = arith.constant 0 : index
    %63 = vector.load %arg4[%c6, %c0_55, %c0_56] : memref<9x64x64xbf16, #tpu.memory_space<vmem>>, vector<1x64x64xbf16>
    %64 = vector.shape_cast %63 : vector<1x64x64xbf16> to vector<64x64xbf16>
    %cst_57 = arith.constant dense<0.000000e+00> : vector<256x64xf32>
    %65 = tpu.matmul %62, %64, %cst_57 {dimension_numbers = #tpu.dot_dimension_numbers<[1], [0], [0], [1], [0, 0, 1, 1], [], []>} : vector<256x64xbf16>, vector<64x64xbf16>, vector<256x64xf32> -> vector<256x64xf32>
    %66 = arith.addf %59, %65 : vector<256x64xf32>
    %c2_58 = arith.constant 2 : index
    %c1_59 = arith.constant 1 : index
    %c0_60 = arith.constant 0 : index
    %67 = vector.load %arg9[%c2_58, %c1_59, %c0_60] : memref<18x18x64xf32, #tpu.memory_space<vmem>>, vector<16x16x64xf32>
    %68 = vector.shape_cast %67 : vector<16x16x64xf32> to vector<256x64xf32>
    %69 = arith.truncf %68 : vector<256x64xf32> to vector<256x64xbf16>
    %c7 = arith.constant 7 : index
    %c0_61 = arith.constant 0 : index
    %c0_62 = arith.constant 0 : index
    %70 = vector.load %arg4[%c7, %c0_61, %c0_62] : memref<9x64x64xbf16, #tpu.memory_space<vmem>>, vector<1x64x64xbf16>
    %71 = vector.shape_cast %70 : vector<1x64x64xbf16> to vector<64x64xbf16>
    %cst_63 = arith.constant dense<0.000000e+00> : vector<256x64xf32>
    %72 = tpu.matmul %69, %71, %cst_63 {dimension_numbers = #tpu.dot_dimension_numbers<[1], [0], [0], [1], [0, 0, 1, 1], [], []>} : vector<256x64xbf16>, vector<64x64xbf16>, vector<256x64xf32> -> vector<256x64xf32>
    %73 = arith.addf %66, %72 : vector<256x64xf32>
    %c2_64 = arith.constant 2 : index
    %c2_65 = arith.constant 2 : index
    %c0_66 = arith.constant 0 : index
    %74 = vector.load %arg9[%c2_64, %c2_65, %c0_66] : memref<18x18x64xf32, #tpu.memory_space<vmem>>, vector<16x16x64xf32>
    %75 = vector.shape_cast %74 : vector<16x16x64xf32> to vector<256x64xf32>
    %76 = arith.truncf %75 : vector<256x64xf32> to vector<256x64xbf16>
    %c8 = arith.constant 8 : index
    %c0_67 = arith.constant 0 : index
    %c0_68 = arith.constant 0 : index
    %77 = vector.load %arg4[%c8, %c0_67, %c0_68] : memref<9x64x64xbf16, #tpu.memory_space<vmem>>, vector<1x64x64xbf16>
    %78 = vector.shape_cast %77 : vector<1x64x64xbf16> to vector<64x64xbf16>
    %cst_69 = arith.constant dense<0.000000e+00> : vector<256x64xf32>
    %79 = tpu.matmul %76, %78, %cst_69 {dimension_numbers = #tpu.dot_dimension_numbers<[1], [0], [0], [1], [0, 0, 1, 1], [], []>} : vector<256x64xbf16>, vector<64x64xbf16>, vector<256x64xf32> -> vector<256x64xf32>
    %80 = arith.addf %73, %79 : vector<256x64xf32>
    %c0_70 = arith.constant 0 : index
    %c0_71 = arith.constant 0 : index
    %81 = vector.load %arg5[%c0_70, %c0_71] : memref<1x64xf32, #tpu.memory_space<vmem>>, vector<1x64xf32>
    %82 = vector.broadcast %81 : vector<1x64xf32> to vector<256x64xf32>
    %83 = arith.addf %80, %82 : vector<256x64xf32>
    %84 = vector.shape_cast %83 : vector<256x64xf32> to vector<16x16x64xf32>
    %c0_72 = arith.constant 0 : index
    %c0_73 = arith.constant 0 : index
    %c0_74 = arith.constant 0 : index
    %c0_75 = arith.constant 0 : index
    %85 = vector.load %arg6[%c0_72, %c0_73, %c0_74, %c0_75] : memref<1x16x16x64xf32, #tpu.memory_space<vmem>>, vector<1x16x16x64xf32>
    %86 = vector.shape_cast %85 : vector<1x16x16x64xf32> to vector<16x16x64xf32>
    %87 = vector.shape_cast %84 : vector<16x16x64xf32> to vector<1x16x16x64xf32>
    tpu.vector_store %arg6[%c0_72, %c0_73, %c0_74, %c0_75], %87 {strides = array<i32>} : memref<1x16x16x64xf32, #tpu.memory_space<vmem>>, vector<1x16x16x64xf32>,
    %cst_76 = arith.constant dense<0.000000e+00> : vector<64xf32>
    %88 = vector.multi_reduction <add>, %83, %cst_76 [0] : vector<256x64xf32> to vector<64xf32>
    %89 = vector.shape_cast %88 : vector<64xf32> to vector<1x64xf32>
    %c0_77 = arith.constant 0 : index
    %c0_78 = arith.constant 0 : index
    %c0_79 = arith.constant 0 : index
    %90 = vector.load %arg7[%c0_77, %c0_78, %c0_79] : memref<1x1x64xf32, #tpu.memory_space<vmem>>, vector<1x1x64xf32>
    %91 = vector.shape_cast %90 : vector<1x1x64xf32> to vector<1x64xf32>
    %92 = vector.shape_cast %89 : vector<1x64xf32> to vector<1x1x64xf32>
    tpu.vector_store %arg7[%c0_77, %c0_78, %c0_79], %92 {strides = array<i32>} : memref<1x1x64xf32, #tpu.memory_space<vmem>>, vector<1x1x64xf32>,
    %93 = arith.mulf %83, %83 : vector<256x64xf32>
    %cst_80 = arith.constant dense<0.000000e+00> : vector<64xf32>
    %94 = vector.multi_reduction <add>, %93, %cst_80 [0] : vector<256x64xf32> to vector<64xf32>
    %95 = vector.shape_cast %94 : vector<64xf32> to vector<1x64xf32>
    %c0_81 = arith.constant 0 : index
    %c0_82 = arith.constant 0 : index
    %c0_83 = arith.constant 0 : index
    %96 = vector.load %arg8[%c0_81, %c0_82, %c0_83] : memref<1x1x64xf32, #tpu.memory_space<vmem>>, vector<1x1x64xf32>
    %97 = vector.shape_cast %96 : vector<1x1x64xf32> to vector<1x64xf32>
    %98 = vector.shape_cast %95 : vector<1x64xf32> to vector<1x1x64xf32>
    tpu.vector_store %arg8[%c0_81, %c0_82, %c0_83], %98 {strides = array<i32>} : memref<1x1x64xf32, #tpu.memory_space<vmem>>, vector<1x1x64xf32>,
    return
  }
  func.func @transform_0(%arg0: i32) -> (i32, i32, i32, i32) {
    %c0_i32 = arith.constant 0 : i32
    %c0_i32_0 = arith.constant 0 : i32
    %c0_i32_1 = arith.constant 0 : i32
    %c0_i32_2 = arith.constant 0 : i32
    return %arg0, %c0_i32, %c0_i32_0, %c0_i32_1 : i32, i32, i32, i32
  }
  func.func @transform_1(%arg0: i32) -> (i32, i32) {
    %c0_i32 = arith.constant 0 : i32
    %c0_i32_0 = arith.constant 0 : i32
    %c0_i32_1 = arith.constant 0 : i32
    return %c0_i32, %c0_i32_0 : i32, i32
  }
  func.func @transform_2(%arg0: i32) -> (i32, i32) {
    %c0_i32 = arith.constant 0 : i32
    %c0_i32_0 = arith.constant 0 : i32
    %c0_i32_1 = arith.constant 0 : i32
    return %c0_i32, %c0_i32_0 : i32, i32
  }
  func.func @transform_3(%arg0: i32) -> (i32, i32, i32) {
    %c0_i32 = arith.constant 0 : i32
    %c0_i32_0 = arith.constant 0 : i32
    %c0_i32_1 = arith.constant 0 : i32
    %c0_i32_2 = arith.constant 0 : i32
    return %c0_i32, %c0_i32_0, %c0_i32_1 : i32, i32, i32
  }
  func.func @transform_4(%arg0: i32) -> (i32, i32) {
    %c0_i32 = arith.constant 0 : i32
    %c0_i32_0 = arith.constant 0 : i32
    %c0_i32_1 = arith.constant 0 : i32
    return %c0_i32, %c0_i32_0 : i32, i32
  }
  func.func @transform_5(%arg0: i32) -> (i32, i32, i32, i32) {
    %c0_i32 = arith.constant 0 : i32
    %c0_i32_0 = arith.constant 0 : i32
    %c0_i32_1 = arith.constant 0 : i32
    %c0_i32_2 = arith.constant 0 : i32
    return %arg0, %c0_i32, %c0_i32_0, %c0_i32_1 : i32, i32, i32, i32
  }
  func.func @transform_6(%arg0: i32) -> (i32, i32, i32) {
    %c0_i32 = arith.constant 0 : i32
    %c0_i32_0 = arith.constant 0 : i32
    %c0_i32_1 = arith.constant 0 : i32
    return %arg0, %c0_i32, %c0_i32_0 : i32, i32, i32
  }
  func.func @transform_7(%arg0: i32) -> (i32, i32, i32) {
    %c0_i32 = arith.constant 0 : i32
    %c0_i32_0 = arith.constant 0 : i32
    %c0_i32_1 = arith.constant 0 : i32
    return %arg0, %c0_i32, %c0_i32_0 : i32, i32, i32
  }
}

module attributes {stable_mosaic.version = 11 : i64} {
  func.func @_conv_stats_kernel(%arg0: i32, %arg1: memref<1x16x16x64xf32, #tpu.memory_space<vmem>>, %arg2: memref<1x64xf32, #tpu.memory_space<vmem>>, %arg3: memref<1x64xf32, #tpu.memory_space<vmem>>, %arg4: memref<9x64x128xbf16, #tpu.memory_space<vmem>>, %arg5: memref<1x128xf32, #tpu.memory_space<vmem>>, %arg6: memref<1x16x16x128xf32, #tpu.memory_space<vmem>>, %arg7: memref<1x1x128xf32, #tpu.memory_space<vmem>>, %arg8: memref<1x1x128xf32, #tpu.memory_space<vmem>>, %arg9: memref<18x18x64xf32, #tpu.memory_space<vmem>>) attributes {dimension_semantics = [#tpu.dimension_semantics<parallel>], iteration_bounds = array<i64: 2>, scalar_prefetch = 0 : i64, scratch_operands = 1 : i64, tpu.core_type = #tpu.core_type<tc>, window_params = [{transform_indices = @transform_0, window_bounds = array<i64: 1, 16, 16, 64>}, {pipeline_mode = #tpu.pipeline_mode<synchronous>, transform_indices = @transform_1, window_bounds = array<i64: 1, 64>}, {pipeline_mode = #tpu.pipeline_mode<synchronous>, transform_indices = @transform_2, window_bounds = array<i64: 1, 64>}, {pipeline_mode = #tpu.pipeline_mode<synchronous>, transform_indices = @transform_3, window_bounds = array<i64: 9, 64, 128>}, {pipeline_mode = #tpu.pipeline_mode<synchronous>, transform_indices = @transform_4, window_bounds = array<i64: 1, 128>}, {transform_indices = @transform_5, window_bounds = array<i64: 1, 16, 16, 128>}, {transform_indices = @transform_6, window_bounds = array<i64: 1, 1, 128>}, {transform_indices = @transform_7, window_bounds = array<i64: 1, 1, 128>}]} {
    %c0 = arith.constant 0 : index
    %c0_0 = arith.constant 0 : index
    %c0_1 = arith.constant 0 : index
    %c0_2 = arith.constant 0 : index
    %0 = vector.load %arg1[%c0, %c0_0, %c0_1, %c0_2] : memref<1x16x16x64xf32, #tpu.memory_space<vmem>>, vector<1x16x16x64xf32>
    %1 = vector.shape_cast %0 : vector<1x16x16x64xf32> to vector<16x16x64xf32>
    %c0_3 = arith.constant 0 : index
    %c0_4 = arith.constant 0 : index
    %2 = vector.load %arg2[%c0_3, %c0_4] : memref<1x64xf32, #tpu.memory_space<vmem>>, vector<1x64xf32>
    %3 = vector.shape_cast %2 : vector<1x64xf32> to vector<64xf32>
    %4 = vector.shape_cast %3 : vector<64xf32> to vector<1x1x64xf32>
    %5 = vector.broadcast %4 : vector<1x1x64xf32> to vector<16x16x64xf32>
    %6 = arith.mulf %1, %5 : vector<16x16x64xf32>
    %c0_5 = arith.constant 0 : index
    %c0_6 = arith.constant 0 : index
    %7 = vector.load %arg3[%c0_5, %c0_6] : memref<1x64xf32, #tpu.memory_space<vmem>>, vector<1x64xf32>
    %8 = vector.shape_cast %7 : vector<1x64xf32> to vector<64xf32>
    %9 = vector.shape_cast %8 : vector<64xf32> to vector<1x1x64xf32>
    %10 = vector.broadcast %9 : vector<1x1x64xf32> to vector<16x16x64xf32>
    %11 = arith.addf %6, %10 : vector<16x16x64xf32>
    %cst = arith.constant 0.000000e+00 : f32
    %12 = vector.broadcast %cst : f32 to vector<16x16x64xf32>
    %13 = arith.maximumf %11, %12 : vector<16x16x64xf32>
    %cst_7 = arith.constant 0.000000e+00 : f32
    %14 = vector.broadcast %cst_7 : f32 to vector<18x18x64xf32>
    %c0_8 = arith.constant 0 : index
    %c0_9 = arith.constant 0 : index
    %c0_10 = arith.constant 0 : index
    %15 = vector.load %arg9[%c0_8, %c0_9, %c0_10] : memref<18x18x64xf32, #tpu.memory_space<vmem>>, vector<18x18x64xf32>
    tpu.vector_store %arg9[%c0_8, %c0_9, %c0_10], %14 {strides = array<i32>} : memref<18x18x64xf32, #tpu.memory_space<vmem>>, vector<18x18x64xf32>,
    %c1 = arith.constant 1 : index
    %c1_11 = arith.constant 1 : index
    %c0_12 = arith.constant 0 : index
    %16 = vector.load %arg9[%c1, %c1_11, %c0_12] : memref<18x18x64xf32, #tpu.memory_space<vmem>>, vector<16x16x64xf32>
    tpu.vector_store %arg9[%c1, %c1_11, %c0_12], %13 {strides = array<i32>} : memref<18x18x64xf32, #tpu.memory_space<vmem>>, vector<16x16x64xf32>,
    %cst_13 = arith.constant 0.000000e+00 : f32
    %17 = vector.broadcast %cst_13 : f32 to vector<256x128xf32>
    %c0_14 = arith.constant 0 : index
    %c0_15 = arith.constant 0 : index
    %c0_16 = arith.constant 0 : index
    %18 = vector.load %arg9[%c0_14, %c0_15, %c0_16] : memref<18x18x64xf32, #tpu.memory_space<vmem>>, vector<16x16x64xf32>
    %19 = vector.shape_cast %18 : vector<16x16x64xf32> to vector<256x64xf32>
    %20 = arith.truncf %19 : vector<256x64xf32> to vector<256x64xbf16>
    %c0_17 = arith.constant 0 : index
    %c0_18 = arith.constant 0 : index
    %c0_19 = arith.constant 0 : index
    %21 = vector.load %arg4[%c0_17, %c0_18, %c0_19] : memref<9x64x128xbf16, #tpu.memory_space<vmem>>, vector<1x64x128xbf16>
    %22 = vector.shape_cast %21 : vector<1x64x128xbf16> to vector<64x128xbf16>
    %cst_20 = arith.constant dense<0.000000e+00> : vector<256x128xf32>
    %23 = tpu.matmul %20, %22, %cst_20 {dimension_numbers = #tpu.dot_dimension_numbers<[1], [0], [0], [1], [0, 0, 1, 1], [], []>} : vector<256x64xbf16>, vector<64x128xbf16>, vector<256x128xf32> -> vector<256x128xf32>
    %24 = arith.addf %17, %23 : vector<256x128xf32>
    %c0_21 = arith.constant 0 : index
    %c1_22 = arith.constant 1 : index
    %c0_23 = arith.constant 0 : index
    %25 = vector.load %arg9[%c0_21, %c1_22, %c0_23] : memref<18x18x64xf32, #tpu.memory_space<vmem>>, vector<16x16x64xf32>
    %26 = vector.shape_cast %25 : vector<16x16x64xf32> to vector<256x64xf32>
    %27 = arith.truncf %26 : vector<256x64xf32> to vector<256x64xbf16>
    %c1_24 = arith.constant 1 : index
    %c0_25 = arith.constant 0 : index
    %c0_26 = arith.constant 0 : index
    %28 = vector.load %arg4[%c1_24, %c0_25, %c0_26] : memref<9x64x128xbf16, #tpu.memory_space<vmem>>, vector<1x64x128xbf16>
    %29 = vector.shape_cast %28 : vector<1x64x128xbf16> to vector<64x128xbf16>
    %cst_27 = arith.constant dense<0.000000e+00> : vector<256x128xf32>
    %30 = tpu.matmul %27, %29, %cst_27 {dimension_numbers = #tpu.dot_dimension_numbers<[1], [0], [0], [1], [0, 0, 1, 1], [], []>} : vector<256x64xbf16>, vector<64x128xbf16>, vector<256x128xf32> -> vector<256x128xf32>
    %31 = arith.addf %24, %30 : vector<256x128xf32>
    %c0_28 = arith.constant 0 : index
    %c2 = arith.constant 2 : index
    %c0_29 = arith.constant 0 : index
    %32 = vector.load %arg9[%c0_28, %c2, %c0_29] : memref<18x18x64xf32, #tpu.memory_space<vmem>>, vector<16x16x64xf32>
    %33 = vector.shape_cast %32 : vector<16x16x64xf32> to vector<256x64xf32>
    %34 = arith.truncf %33 : vector<256x64xf32> to vector<256x64xbf16>
    %c2_30 = arith.constant 2 : index
    %c0_31 = arith.constant 0 : index
    %c0_32 = arith.constant 0 : index
    %35 = vector.load %arg4[%c2_30, %c0_31, %c0_32] : memref<9x64x128xbf16, #tpu.memory_space<vmem>>, vector<1x64x128xbf16>
    %36 = vector.shape_cast %35 : vector<1x64x128xbf16> to vector<64x128xbf16>
    %cst_33 = arith.constant dense<0.000000e+00> : vector<256x128xf32>
    %37 = tpu.matmul %34, %36, %cst_33 {dimension_numbers = #tpu.dot_dimension_numbers<[1], [0], [0], [1], [0, 0, 1, 1], [], []>} : vector<256x64xbf16>, vector<64x128xbf16>, vector<256x128xf32> -> vector<256x128xf32>
    %38 = arith.addf %31, %37 : vector<256x128xf32>
    %c1_34 = arith.constant 1 : index
    %c0_35 = arith.constant 0 : index
    %c0_36 = arith.constant 0 : index
    %39 = vector.load %arg9[%c1_34, %c0_35, %c0_36] : memref<18x18x64xf32, #tpu.memory_space<vmem>>, vector<16x16x64xf32>
    %40 = vector.shape_cast %39 : vector<16x16x64xf32> to vector<256x64xf32>
    %41 = arith.truncf %40 : vector<256x64xf32> to vector<256x64xbf16>
    %c3 = arith.constant 3 : index
    %c0_37 = arith.constant 0 : index
    %c0_38 = arith.constant 0 : index
    %42 = vector.load %arg4[%c3, %c0_37, %c0_38] : memref<9x64x128xbf16, #tpu.memory_space<vmem>>, vector<1x64x128xbf16>
    %43 = vector.shape_cast %42 : vector<1x64x128xbf16> to vector<64x128xbf16>
    %cst_39 = arith.constant dense<0.000000e+00> : vector<256x128xf32>
    %44 = tpu.matmul %41, %43, %cst_39 {dimension_numbers = #tpu.dot_dimension_numbers<[1], [0], [0], [1], [0, 0, 1, 1], [], []>} : vector<256x64xbf16>, vector<64x128xbf16>, vector<256x128xf32> -> vector<256x128xf32>
    %45 = arith.addf %38, %44 : vector<256x128xf32>
    %c1_40 = arith.constant 1 : index
    %c1_41 = arith.constant 1 : index
    %c0_42 = arith.constant 0 : index
    %46 = vector.load %arg9[%c1_40, %c1_41, %c0_42] : memref<18x18x64xf32, #tpu.memory_space<vmem>>, vector<16x16x64xf32>
    %47 = vector.shape_cast %46 : vector<16x16x64xf32> to vector<256x64xf32>
    %48 = arith.truncf %47 : vector<256x64xf32> to vector<256x64xbf16>
    %c4 = arith.constant 4 : index
    %c0_43 = arith.constant 0 : index
    %c0_44 = arith.constant 0 : index
    %49 = vector.load %arg4[%c4, %c0_43, %c0_44] : memref<9x64x128xbf16, #tpu.memory_space<vmem>>, vector<1x64x128xbf16>
    %50 = vector.shape_cast %49 : vector<1x64x128xbf16> to vector<64x128xbf16>
    %cst_45 = arith.constant dense<0.000000e+00> : vector<256x128xf32>
    %51 = tpu.matmul %48, %50, %cst_45 {dimension_numbers = #tpu.dot_dimension_numbers<[1], [0], [0], [1], [0, 0, 1, 1], [], []>} : vector<256x64xbf16>, vector<64x128xbf16>, vector<256x128xf32> -> vector<256x128xf32>
    %52 = arith.addf %45, %51 : vector<256x128xf32>
    %c1_46 = arith.constant 1 : index
    %c2_47 = arith.constant 2 : index
    %c0_48 = arith.constant 0 : index
    %53 = vector.load %arg9[%c1_46, %c2_47, %c0_48] : memref<18x18x64xf32, #tpu.memory_space<vmem>>, vector<16x16x64xf32>
    %54 = vector.shape_cast %53 : vector<16x16x64xf32> to vector<256x64xf32>
    %55 = arith.truncf %54 : vector<256x64xf32> to vector<256x64xbf16>
    %c5 = arith.constant 5 : index
    %c0_49 = arith.constant 0 : index
    %c0_50 = arith.constant 0 : index
    %56 = vector.load %arg4[%c5, %c0_49, %c0_50] : memref<9x64x128xbf16, #tpu.memory_space<vmem>>, vector<1x64x128xbf16>
    %57 = vector.shape_cast %56 : vector<1x64x128xbf16> to vector<64x128xbf16>
    %cst_51 = arith.constant dense<0.000000e+00> : vector<256x128xf32>
    %58 = tpu.matmul %55, %57, %cst_51 {dimension_numbers = #tpu.dot_dimension_numbers<[1], [0], [0], [1], [0, 0, 1, 1], [], []>} : vector<256x64xbf16>, vector<64x128xbf16>, vector<256x128xf32> -> vector<256x128xf32>
    %59 = arith.addf %52, %58 : vector<256x128xf32>
    %c2_52 = arith.constant 2 : index
    %c0_53 = arith.constant 0 : index
    %c0_54 = arith.constant 0 : index
    %60 = vector.load %arg9[%c2_52, %c0_53, %c0_54] : memref<18x18x64xf32, #tpu.memory_space<vmem>>, vector<16x16x64xf32>
    %61 = vector.shape_cast %60 : vector<16x16x64xf32> to vector<256x64xf32>
    %62 = arith.truncf %61 : vector<256x64xf32> to vector<256x64xbf16>
    %c6 = arith.constant 6 : index
    %c0_55 = arith.constant 0 : index
    %c0_56 = arith.constant 0 : index
    %63 = vector.load %arg4[%c6, %c0_55, %c0_56] : memref<9x64x128xbf16, #tpu.memory_space<vmem>>, vector<1x64x128xbf16>
    %64 = vector.shape_cast %63 : vector<1x64x128xbf16> to vector<64x128xbf16>
    %cst_57 = arith.constant dense<0.000000e+00> : vector<256x128xf32>
    %65 = tpu.matmul %62, %64, %cst_57 {dimension_numbers = #tpu.dot_dimension_numbers<[1], [0], [0], [1], [0, 0, 1, 1], [], []>} : vector<256x64xbf16>, vector<64x128xbf16>, vector<256x128xf32> -> vector<256x128xf32>
    %66 = arith.addf %59, %65 : vector<256x128xf32>
    %c2_58 = arith.constant 2 : index
    %c1_59 = arith.constant 1 : index
    %c0_60 = arith.constant 0 : index
    %67 = vector.load %arg9[%c2_58, %c1_59, %c0_60] : memref<18x18x64xf32, #tpu.memory_space<vmem>>, vector<16x16x64xf32>
    %68 = vector.shape_cast %67 : vector<16x16x64xf32> to vector<256x64xf32>
    %69 = arith.truncf %68 : vector<256x64xf32> to vector<256x64xbf16>
    %c7 = arith.constant 7 : index
    %c0_61 = arith.constant 0 : index
    %c0_62 = arith.constant 0 : index
    %70 = vector.load %arg4[%c7, %c0_61, %c0_62] : memref<9x64x128xbf16, #tpu.memory_space<vmem>>, vector<1x64x128xbf16>
    %71 = vector.shape_cast %70 : vector<1x64x128xbf16> to vector<64x128xbf16>
    %cst_63 = arith.constant dense<0.000000e+00> : vector<256x128xf32>
    %72 = tpu.matmul %69, %71, %cst_63 {dimension_numbers = #tpu.dot_dimension_numbers<[1], [0], [0], [1], [0, 0, 1, 1], [], []>} : vector<256x64xbf16>, vector<64x128xbf16>, vector<256x128xf32> -> vector<256x128xf32>
    %73 = arith.addf %66, %72 : vector<256x128xf32>
    %c2_64 = arith.constant 2 : index
    %c2_65 = arith.constant 2 : index
    %c0_66 = arith.constant 0 : index
    %74 = vector.load %arg9[%c2_64, %c2_65, %c0_66] : memref<18x18x64xf32, #tpu.memory_space<vmem>>, vector<16x16x64xf32>
    %75 = vector.shape_cast %74 : vector<16x16x64xf32> to vector<256x64xf32>
    %76 = arith.truncf %75 : vector<256x64xf32> to vector<256x64xbf16>
    %c8 = arith.constant 8 : index
    %c0_67 = arith.constant 0 : index
    %c0_68 = arith.constant 0 : index
    %77 = vector.load %arg4[%c8, %c0_67, %c0_68] : memref<9x64x128xbf16, #tpu.memory_space<vmem>>, vector<1x64x128xbf16>
    %78 = vector.shape_cast %77 : vector<1x64x128xbf16> to vector<64x128xbf16>
    %cst_69 = arith.constant dense<0.000000e+00> : vector<256x128xf32>
    %79 = tpu.matmul %76, %78, %cst_69 {dimension_numbers = #tpu.dot_dimension_numbers<[1], [0], [0], [1], [0, 0, 1, 1], [], []>} : vector<256x64xbf16>, vector<64x128xbf16>, vector<256x128xf32> -> vector<256x128xf32>
    %80 = arith.addf %73, %79 : vector<256x128xf32>
    %c0_70 = arith.constant 0 : index
    %c0_71 = arith.constant 0 : index
    %81 = vector.load %arg5[%c0_70, %c0_71] : memref<1x128xf32, #tpu.memory_space<vmem>>, vector<1x128xf32>
    %82 = vector.broadcast %81 : vector<1x128xf32> to vector<256x128xf32>
    %83 = arith.addf %80, %82 : vector<256x128xf32>
    %84 = vector.shape_cast %83 : vector<256x128xf32> to vector<16x16x128xf32>
    %c0_72 = arith.constant 0 : index
    %c0_73 = arith.constant 0 : index
    %c0_74 = arith.constant 0 : index
    %c0_75 = arith.constant 0 : index
    %85 = vector.load %arg6[%c0_72, %c0_73, %c0_74, %c0_75] : memref<1x16x16x128xf32, #tpu.memory_space<vmem>>, vector<1x16x16x128xf32>
    %86 = vector.shape_cast %85 : vector<1x16x16x128xf32> to vector<16x16x128xf32>
    %87 = vector.shape_cast %84 : vector<16x16x128xf32> to vector<1x16x16x128xf32>
    tpu.vector_store %arg6[%c0_72, %c0_73, %c0_74, %c0_75], %87 {strides = array<i32>} : memref<1x16x16x128xf32, #tpu.memory_space<vmem>>, vector<1x16x16x128xf32>,
    %cst_76 = arith.constant dense<0.000000e+00> : vector<128xf32>
    %88 = vector.multi_reduction <add>, %83, %cst_76 [0] : vector<256x128xf32> to vector<128xf32>
    %89 = vector.shape_cast %88 : vector<128xf32> to vector<1x128xf32>
    %c0_77 = arith.constant 0 : index
    %c0_78 = arith.constant 0 : index
    %c0_79 = arith.constant 0 : index
    %90 = vector.load %arg7[%c0_77, %c0_78, %c0_79] : memref<1x1x128xf32, #tpu.memory_space<vmem>>, vector<1x1x128xf32>
    %91 = vector.shape_cast %90 : vector<1x1x128xf32> to vector<1x128xf32>
    %92 = vector.shape_cast %89 : vector<1x128xf32> to vector<1x1x128xf32>
    tpu.vector_store %arg7[%c0_77, %c0_78, %c0_79], %92 {strides = array<i32>} : memref<1x1x128xf32, #tpu.memory_space<vmem>>, vector<1x1x128xf32>,
    %93 = arith.mulf %83, %83 : vector<256x128xf32>
    %cst_80 = arith.constant dense<0.000000e+00> : vector<128xf32>
    %94 = vector.multi_reduction <add>, %93, %cst_80 [0] : vector<256x128xf32> to vector<128xf32>
    %95 = vector.shape_cast %94 : vector<128xf32> to vector<1x128xf32>
    %c0_81 = arith.constant 0 : index
    %c0_82 = arith.constant 0 : index
    %c0_83 = arith.constant 0 : index
    %96 = vector.load %arg8[%c0_81, %c0_82, %c0_83] : memref<1x1x128xf32, #tpu.memory_space<vmem>>, vector<1x1x128xf32>
    %97 = vector.shape_cast %96 : vector<1x1x128xf32> to vector<1x128xf32>
    %98 = vector.shape_cast %95 : vector<1x128xf32> to vector<1x1x128xf32>
    tpu.vector_store %arg8[%c0_81, %c0_82, %c0_83], %98 {strides = array<i32>} : memref<1x1x128xf32, #tpu.memory_space<vmem>>, vector<1x1x128xf32>,
    return
  }
  func.func @transform_0(%arg0: i32) -> (i32, i32, i32, i32) {
    %c0_i32 = arith.constant 0 : i32
    %c0_i32_0 = arith.constant 0 : i32
    %c0_i32_1 = arith.constant 0 : i32
    %c0_i32_2 = arith.constant 0 : i32
    return %arg0, %c0_i32, %c0_i32_0, %c0_i32_1 : i32, i32, i32, i32
  }
  func.func @transform_1(%arg0: i32) -> (i32, i32) {
    %c0_i32 = arith.constant 0 : i32
    %c0_i32_0 = arith.constant 0 : i32
    %c0_i32_1 = arith.constant 0 : i32
    return %c0_i32, %c0_i32_0 : i32, i32
  }
  func.func @transform_2(%arg0: i32) -> (i32, i32) {
    %c0_i32 = arith.constant 0 : i32
    %c0_i32_0 = arith.constant 0 : i32
    %c0_i32_1 = arith.constant 0 : i32
    return %c0_i32, %c0_i32_0 : i32, i32
  }
  func.func @transform_3(%arg0: i32) -> (i32, i32, i32) {
    %c0_i32 = arith.constant 0 : i32
    %c0_i32_0 = arith.constant 0 : i32
    %c0_i32_1 = arith.constant 0 : i32
    %c0_i32_2 = arith.constant 0 : i32
    return %c0_i32, %c0_i32_0, %c0_i32_1 : i32, i32, i32
  }
  func.func @transform_4(%arg0: i32) -> (i32, i32) {
    %c0_i32 = arith.constant 0 : i32
    %c0_i32_0 = arith.constant 0 : i32
    %c0_i32_1 = arith.constant 0 : i32
    return %c0_i32, %c0_i32_0 : i32, i32
  }
  func.func @transform_5(%arg0: i32) -> (i32, i32, i32, i32) {
    %c0_i32 = arith.constant 0 : i32
    %c0_i32_0 = arith.constant 0 : i32
    %c0_i32_1 = arith.constant 0 : i32
    %c0_i32_2 = arith.constant 0 : i32
    return %arg0, %c0_i32, %c0_i32_0, %c0_i32_1 : i32, i32, i32, i32
  }
  func.func @transform_6(%arg0: i32) -> (i32, i32, i32) {
    %c0_i32 = arith.constant 0 : i32
    %c0_i32_0 = arith.constant 0 : i32
    %c0_i32_1 = arith.constant 0 : i32
    return %arg0, %c0_i32, %c0_i32_0 : i32, i32, i32
  }
  func.func @transform_7(%arg0: i32) -> (i32, i32, i32) {
    %c0_i32 = arith.constant 0 : i32
    %c0_i32_0 = arith.constant 0 : i32
    %c0_i32_1 = arith.constant 0 : i32
    return %arg0, %c0_i32, %c0_i32_0 : i32, i32, i32
  }
}

module attributes {stable_mosaic.version = 11 : i64} {
  func.func @_bn_relu_kernel(%arg0: i32, %arg1: memref<1x16x16x128xf32, #tpu.memory_space<vmem>>, %arg2: memref<1x128xf32, #tpu.memory_space<vmem>>, %arg3: memref<1x128xf32, #tpu.memory_space<vmem>>, %arg4: memref<1x16x16x128xf32, #tpu.memory_space<vmem>>) attributes {dimension_semantics = [#tpu.dimension_semantics<parallel>], iteration_bounds = array<i64: 2>, scalar_prefetch = 0 : i64, scratch_operands = 0 : i64, tpu.core_type = #tpu.core_type<tc>, window_params = [{transform_indices = @transform_0, window_bounds = array<i64: 1, 16, 16, 128>}, {pipeline_mode = #tpu.pipeline_mode<synchronous>, transform_indices = @transform_1, window_bounds = array<i64: 1, 128>}, {pipeline_mode = #tpu.pipeline_mode<synchronous>, transform_indices = @transform_2, window_bounds = array<i64: 1, 128>}, {transform_indices = @transform_3, window_bounds = array<i64: 1, 16, 16, 128>}]} {
    %c0 = arith.constant 0 : index
    %c0_0 = arith.constant 0 : index
    %c0_1 = arith.constant 0 : index
    %c0_2 = arith.constant 0 : index
    %0 = vector.load %arg1[%c0, %c0_0, %c0_1, %c0_2] : memref<1x16x16x128xf32, #tpu.memory_space<vmem>>, vector<1x16x16x128xf32>
    %1 = vector.shape_cast %0 : vector<1x16x16x128xf32> to vector<16x16x128xf32>
    %c0_3 = arith.constant 0 : index
    %c0_4 = arith.constant 0 : index
    %2 = vector.load %arg2[%c0_3, %c0_4] : memref<1x128xf32, #tpu.memory_space<vmem>>, vector<1x128xf32>
    %3 = vector.shape_cast %2 : vector<1x128xf32> to vector<128xf32>
    %4 = vector.shape_cast %3 : vector<128xf32> to vector<1x1x128xf32>
    %5 = vector.broadcast %4 : vector<1x1x128xf32> to vector<16x16x128xf32>
    %6 = arith.mulf %1, %5 : vector<16x16x128xf32>
    %c0_5 = arith.constant 0 : index
    %c0_6 = arith.constant 0 : index
    %7 = vector.load %arg3[%c0_5, %c0_6] : memref<1x128xf32, #tpu.memory_space<vmem>>, vector<1x128xf32>
    %8 = vector.shape_cast %7 : vector<1x128xf32> to vector<128xf32>
    %9 = vector.shape_cast %8 : vector<128xf32> to vector<1x1x128xf32>
    %10 = vector.broadcast %9 : vector<1x1x128xf32> to vector<16x16x128xf32>
    %11 = arith.addf %6, %10 : vector<16x16x128xf32>
    %cst = arith.constant 0.000000e+00 : f32
    %12 = vector.broadcast %cst : f32 to vector<16x16x128xf32>
    %13 = arith.maximumf %11, %12 : vector<16x16x128xf32>
    %c0_7 = arith.constant 0 : index
    %c0_8 = arith.constant 0 : index
    %c0_9 = arith.constant 0 : index
    %c0_10 = arith.constant 0 : index
    %14 = vector.load %arg4[%c0_7, %c0_8, %c0_9, %c0_10] : memref<1x16x16x128xf32, #tpu.memory_space<vmem>>, vector<1x16x16x128xf32>
    %15 = vector.shape_cast %14 : vector<1x16x16x128xf32> to vector<16x16x128xf32>
    %16 = vector.shape_cast %13 : vector<16x16x128xf32> to vector<1x16x16x128xf32>
    tpu.vector_store %arg4[%c0_7, %c0_8, %c0_9, %c0_10], %16 {strides = array<i32>} : memref<1x16x16x128xf32, #tpu.memory_space<vmem>>, vector<1x16x16x128xf32>,
    return
  }
  func.func @transform_0(%arg0: i32) -> (i32, i32, i32, i32) {
    %c0_i32 = arith.constant 0 : i32
    %c0_i32_0 = arith.constant 0 : i32
    %c0_i32_1 = arith.constant 0 : i32
    %c0_i32_2 = arith.constant 0 : i32
    return %arg0, %c0_i32, %c0_i32_0, %c0_i32_1 : i32, i32, i32, i32
  }
  func.func @transform_1(%arg0: i32) -> (i32, i32) {
    %c0_i32 = arith.constant 0 : i32
    %c0_i32_0 = arith.constant 0 : i32
    %c0_i32_1 = arith.constant 0 : i32
    return %c0_i32, %c0_i32_0 : i32, i32
  }
  func.func @transform_2(%arg0: i32) -> (i32, i32) {
    %c0_i32 = arith.constant 0 : i32
    %c0_i32_0 = arith.constant 0 : i32
    %c0_i32_1 = arith.constant 0 : i32
    return %c0_i32, %c0_i32_0 : i32, i32
  }
  func.func @transform_3(%arg0: i32) -> (i32, i32, i32, i32) {
    %c0_i32 = arith.constant 0 : i32
    %c0_i32_0 = arith.constant 0 : i32
    %c0_i32_1 = arith.constant 0 : i32
    %c0_i32_2 = arith.constant 0 : i32
    return %arg0, %c0_i32, %c0_i32_0, %c0_i32_1 : i32, i32, i32, i32
  }
}

</mosaic_0001>

<bundles_post_ra>
// kernel: parts_forward.9
= control target key start
LH: loop header
LB: loop body
LE: loop exit
PB: predicated region body
PF: predicated region fallthrough
CT: control target
= control target key end

     0   :  { %s451_s12 = smov 0   ;;  %s610_s0 = inlined_call_operand.vmem [shape: f32[2,16,16,128], index: 0, kind: input, shape index: {}]   ;;  %s611_s1 = inlined_call_operand.vmem [shape: f32[1,128], index: 1, kind: input, shape index: {}]   ;;  %s612_s2 = inlined_call_operand.vmem [shape: f32[1,128], index: 2, kind: input, shape index: {}]   ;;  %s613_s3 = inlined_call_operand.vmem [shape: f32[2,16,16,128], index: 3, kind: output, shape index: {}]  }
   0x1 LB: > { %s400_s13 = sadd.s32 4294967295, %s429_s12   ;;  %p404_p0 = scmp.ge.s32.totalorder %s429_s12, 1  ;;  %s429_s12 = sphi %s451_s12, %s13_s12  }
   0x2   : > { %p137_p1 = scmp.lt.s32.totalorder %s429_s12, 3 }
   0x4   : > { %p138_p2 = pnand %p404_p0, %p137_p1 }
   0x5   : > { %p161_p3 = scmp.lt.s32.totalorder (!%p138_p2), %s400_s13, 1  ;;  %v462_v0 = vld [vmem:[%s611_s1] ss:$0 sm:$0xff] (!%p138_p2) }
   0x6   : > { %141 = sbr.rel (%p138_p2) target bundleno = 46 (0x2e), region = 32  ;;  %v472_v1 = vld [vmem:[%s612_s2] ss:$0 sm:$0xff] (!%p138_p2) }
   0xd   : > { %s615_s13 = smov (!%p161_p3, %s400_s13), 1 }
   0xe   : > { %s413_s14 = sshll.u32 %s615_s13, 8 }
   0xf   : > { %s467_s19 = scalar_lea.vmem %s610_s0, %s413_s14  ;;  %s495_s24 = scalar_lea.vmem %s613_s3, %s413_s14 }
  0x10   : > { %v171_v2 = vld [vmem:[%s467_s19] sm:$0xff]  ;;  %v172_v3 = vld [vmem:[%s467_s19 + $0x8] sm:$0xff]  ;;  %v173_v4 = vld [vmem:[%s467_s19 + $0x10] sm:$0xff] }
  0x11   : > { %v210_v5 = vmul.f32 %v462_v0, %v171_v2  ;;  %v211_v6 = vmul.f32 %v462_v0, %v172_v3  ;;  %v212_v7 = vmul.f32 %v462_v0, %v173_v4  ;;  %v174_v8 = vld [vmem:[%s467_s19 + $0x18] sm:$0xff]  ;;  %v175_v9 = vld [vmem:[%s467_s19 + $0x20] sm:$0xff]  ;;  %v176_v10 = vld [vmem:[%s467_s19 + $0x28] sm:$0xff] }
  0x12   : > { %v213_v11 = vmul.f32 %v462_v0, %v174_v8  ;;  %v214_v12 = vmul.f32 %v462_v0, %v175_v9  ;;  %v215_v13 = vmul.f32 %v462_v0, %v176_v10  ;;  %v177_v14 = vld [vmem:[%s467_s19 + $0x30] sm:$0xff]  ;;  %v178_v15 = vld [vmem:[%s467_s19 + $0x38] sm:$0xff]  ;;  %v179_v24 = vld [vmem:[%s467_s19 + $0x40] sm:$0xff] }
  0x13   : > { %v249_v16 = vadd.f32 %v472_v1, %v210_v5  ;;  %v250_v17 = vadd.f32 %v472_v1, %v211_v6  ;;  %v251_v18 = vadd.f32 %v472_v1, %v212_v7  ;;  %v216_v19 = vmul.f32 %v462_v0, %v177_v14  ;;  %v180_v25 = vld [vmem:[%s467_s19 + $0x48] sm:$0xff]  ;;  %v181_v26 = vld [vmem:[%s467_s19 + $0x50] sm:$0xff]  ;;  %v182_v31 = vld [vmem:[%s467_s19 + $0x58] sm:$0xff] }
  0x14   : > { %v252_v20 = vadd.f32 %v472_v1, %v213_v11  ;;  %v253_v21 = vadd.f32 %v472_v1, %v214_v12  ;;  %v254_v22 = vadd.f32 %v472_v1, %v215_v13  ;;  %v217_v23 = vmul.f32 %v462_v0, %v178_v15  ;;  %v183_v32 = vld [vmem:[%s467_s19 + $0x60] sm:$0xff]  ;;  %v184_v33 = vld [vmem:[%s467_s19 + $0x68] sm:$0xff]  ;;  %v185_v38 = vld [vmem:[%s467_s19 + $0x70] sm:$0xff] }
  0x15   : > { %v281_v27 = vmax.f32 %v249_v16, 0.0  ;;  %v282_v28 = vmax.f32 %v250_v17, 0.0  ;;  %v283_v29 = vmax.f32 %v251_v18, 0.0  ;;  %v255_v30 = vadd.f32 %v472_v1, %v216_v19  ;;  %v186_v43 = vld [vmem:[%s467_s19 + $0x78] sm:$0xff]  ;;  %v187_v56 = vld [vmem:[%s467_s19 + $0x80] sm:$0xff]  ;;  %v188_v57 = vld [vmem:[%s467_s19 + $0x88] sm:$0xff] }
  0x16   : > { %v284_v34 = vmax.f32 %v252_v20, 0.0  ;;  %v285_v35 = vmax.f32 %v253_v21, 0.0  ;;  %v286_v36 = vmax.f32 %v254_v22, 0.0  ;;  %v256_v37 = vadd.f32 %v472_v1, %v217_v23  ;;  %v189_v58 = vld [vmem:[%s467_s19 + $0x90] sm:$0xff]  ;;  %v190_v63 = vld [vmem:[%s467_s19 + $0x98] sm:$0xff]  ;;  %v191_v2 = vld [vmem:[%s467_s19 + $0xa0] sm:$0xff] }
  0x17   : > { %313 = vst [vmem:[%s495_s24] sm:$0xff] %v281_v27  ;;  %314 = vst [vmem:[%s495_s24 + $0x8] sm:$0xff] %v282_v28  ;;  %v287_v39 = vmax.f32 %v255_v30, 0.0  ;;  %v218_v40 = vmul.f32 %v462_v0, %v179_v24  ;;  %v219_v41 = vmul.f32 %v462_v0, %v180_v25  ;;  %v220_v42 = vmul.f32 %v462_v0, %v181_v26  ;;  %v192_v3 = vld [vmem:[%s467_s19 + $0xa8] sm:$0xff]  ;;  %v193_v8 = vld [vmem:[%s467_s19 + $0xb0] sm:$0xff] }
  0x18   : > { %315 = vst [vmem:[%s495_s24 + $0x10] sm:$0xff] %v283_v29  ;;  %316 = vst [vmem:[%s495_s24 + $0x18] sm:$0xff] %v284_v34  ;;  %v288_v44 = vmax.f32 %v256_v37, 0.0  ;;  %v221_v45 = vmul.f32 %v462_v0, %v182_v31  ;;  %v222_v46 = vmul.f32 %v462_v0, %v183_v32  ;;  %v223_v47 = vmul.f32 %v462_v0, %v184_v33  ;;  %v194_v13 = vld [vmem:[%s467_s19 + $0xb8] sm:$0xff]  ;;  %v195_v26 = vld [vmem:[%s467_s19 + $0xc0] sm:$0xff] }
  0x19   : > { %317 = vst [vmem:[%s495_s24 + $0x20] sm:$0xff] %v285_v35  ;;  %318 = vst [vmem:[%s495_s24 + $0x28] sm:$0xff] %v286_v36  ;;  %v257_v48 = vadd.f32 %v472_v1, %v218_v40  ;;  %v258_v49 = vadd.f32 %v472_v1, %v219_v41  ;;  %v259_v50 = vadd.f32 %v472_v1, %v220_v42  ;;  %v196_v27 = vld [vmem:[%s467_s19 + $0xc8] sm:$0xff]  ;;  %v197_v28 = vld [vmem:[%s467_s19 + $0xd0] sm:$0xff] }
  0x1a   : > { %319 = vst [vmem:[%s495_s24 + $0x30] sm:$0xff] %v287_v39  ;;  %v224_v51 = vmul.f32 %v462_v0, %v185_v38  ;;  %320 = vst [vmem:[%s495_s24 + $0x38] sm:$0xff] %v288_v44  ;;  %v260_v52 = vadd.f32 %v472_v1, %v221_v45  ;;  %v261_v53 = vadd.f32 %v472_v1, %v222_v46  ;;  %v198_v33 = vld [vmem:[%s467_s19 + $0xd8] sm:$0xff]  ;;  %v199_v34 = vld [vmem:[%s467_s19 + $0xe0] sm:$0xff] }
  0x1b   : > { %v262_v54 = vadd.f32 %v472_v1, %v223_v47  ;;  %v225_v55 = vmul.f32 %v462_v0, %v186_v43  ;;  %v289_v59 = vmax.f32 %v257_v48, 0.0  ;;  %v290_v60 = vmax.f32 %v258_v49, 0.0  ;;  %v200_v35 = vld [vmem:[%s467_s19 + $0xe8] sm:$0xff]  ;;  %v201_v40 = vld [vmem:[%s467_s19 + $0xf0] sm:$0xff]  ;;  %v202_v45 = vld [vmem:[%s467_s19 + $0xf8] sm:$0xff] }
  0x1c   : > { %v291_v61 = vmax.f32 %v259_v50, 0.0  ;;  %v263_v62 = vadd.f32 %v472_v1, %v224_v51  ;;  %v292_v4 = vmax.f32 %v260_v52, 0.0  ;;  %v293_v5 = vmax.f32 %v261_v53, 0.0 }
  0x1d   : > { %v294_v6 = vmax.f32 %v262_v54, 0.0  ;;  %v264_v7 = vadd.f32 %v472_v1, %v225_v55  ;;  %321 = vst [vmem:[%s495_s24 + $0x40] sm:$0xff] %v289_v59  ;;  %322 = vst [vmem:[%s495_s24 + $0x48] sm:$0xff] %v290_v60  ;;  %v226_v10 = vmul.f32 %v462_v0, %v187_v56  ;;  %v227_v11 = vmul.f32 %v462_v0, %v188_v57 }
  0x1e   : > { %323 = vst [vmem:[%s495_s24 + $0x50] sm:$0xff] %v291_v61  ;;  %v295_v9 = vmax.f32 %v263_v62, 0.0  ;;  %v228_v12 = vmul.f32 %v462_v0, %v189_v58  ;;  %324 = vst [vmem:[%s495_s24 + $0x58] sm:$0xff] %v292_v4  ;;  %v229_v15 = vmul.f32 %v462_v0, %v190_v63  ;;  %v230_v16 = vmul.f32 %v462_v0, %v191_v2 }
  0x1f   : > { %325 = vst [vmem:[%s495_s24 + $0x60] sm:$0xff] %v293_v5  ;;  %326 = vst [vmem:[%s495_s24 + $0x68] sm:$0xff] %v294_v6  ;;  %v296_v14 = vmax.f32 %v264_v7, 0.0  ;;  %v231_v17 = vmul.f32 %v462_v0, %v192_v3  ;;  %v265_v18 = vadd.f32 %v472_v1, %v226_v10  ;;  %v266_v19 = vadd.f32 %v472_v1, %v227_v11 }
  0x20   : > { %327 = vst [vmem:[%s495_s24 + $0x70] sm:$0xff] %v295_v9  ;;  %v267_v20 = vadd.f32 %v472_v1, %v228_v12  ;;  %v232_v21 = vmul.f32 %v462_v0, %v193_v8  ;;  %v268_v22 = vadd.f32 %v472_v1, %v229_v15  ;;  %v269_v23 = vadd.f32 %v472_v1, %v230_v16 }
  0x21   : > { %328 = vst [vmem:[%s495_s24 + $0x78] sm:$0xff] %v296_v14  ;;  %v270_v24 = vadd.f32 %v472_v1, %v231_v17  ;;  %v233_v25 = vmul.f32 %v462_v0, %v194_v13  ;;  %v297_v29 = vmax.f32 %v265_v18, 0.0  ;;  %v298_v30 = vmax.f32 %v266_v19, 0.0 }
  0x22   : > { %v299_v31 = vmax.f32 %v267_v20, 0.0  ;;  %v271_v32 = vadd.f32 %v472_v1, %v232_v21  ;;  %v300_v36 = vmax.f32 %v268_v22, 0.0  ;;  %v301_v37 = vmax.f32 %v269_v23, 0.0 }
  0x23   : > { %v302_v38 = vmax.f32 %v270_v24, 0.0  ;;  %v272_v39 = vadd.f32 %v472_v1, %v233_v25  ;;  %329 = vst [vmem:[%s495_s24 + $0x80] sm:$0xff] %v297_v29  ;;  %330 = vst [vmem:[%s495_s24 + $0x88] sm:$0xff] %v298_v30  ;;  %v234_v42 = vmul.f32 %v462_v0, %v195_v26  ;;  %v235_v43 = vmul.f32 %v462_v0, %v196_v27 }
  0x24   : > { %331 = vst [vmem:[%s495_s24 + $0x90] sm:$0xff] %v299_v31  ;;  %v303_v41 = vmax.f32 %v271_v32, 0.0  ;;  %v236_v44 = vmul.f32 %v462_v0, %v197_v28  ;;  %332 = vst [vmem:[%s495_s24 + $0x98] sm:$0xff] %v300_v36  ;;  %v237_v47 = vmul.f32 %v462_v0, %v198_v33  ;;  %v238_v48 = vmul.f32 %v462_v0, %v199_v34 }
  0x25   : > { %333 = vst [vmem:[%s495_s24 + $0xa0] sm:$0xff] %v301_v37  ;;  %334 = vst [vmem:[%s495_s24 + $0xa8] sm:$0xff] %v302_v38  ;;  %v304_v46 = vmax.f32 %v272_v39, 0.0  ;;  %v239_v49 = vmul.f32 %v462_v0, %v200_v35  ;;  %v273_v50 = vadd.f32 %v472_v1, %v234_v42  ;;  %v274_v51 = vadd.f32 %v472_v1, %v235_v43 }
  0x26   : > { %335 = vst [vmem:[%s495_s24 + $0xb0] sm:$0xff] %v303_v41  ;;  %v275_v52 = vadd.f32 %v472_v1, %v236_v44  ;;  %v240_v53 = vmul.f32 %v462_v0, %v201_v40  ;;  %v276_v54 = vadd.f32 %v472_v1, %v237_v47  ;;  %v277_v55 = vadd.f32 %v472_v1, %v238_v48 }
  0x27   : > { %336 = vst [vmem:[%s495_s24 + $0xb8] sm:$0xff] %v304_v46  ;;  %v278_v56 = vadd.f32 %v472_v1, %v239_v49  ;;  %v241_v57 = vmul.f32 %v462_v0, %v202_v45  ;;  %v305_v58 = vmax.f32 %v273_v50, 0.0  ;;  %v306_v59 = vmax.f32 %v274_v51, 0.0 }
  0x28   : > { %v307_v60 = vmax.f32 %v275_v52, 0.0  ;;  %v279_v61 = vadd.f32 %v472_v1, %v240_v53  ;;  %v308_v62 = vmax.f32 %v276_v54, 0.0  ;;  %v309_v63 = vmax.f32 %v277_v55, 0.0 }
  0x29   : > { %v310_v2 = vmax.f32 %v278_v56, 0.0  ;;  %v280_v3 = vadd.f32 %v472_v1, %v241_v57  ;;  %337 = vst [vmem:[%s495_s24 + $0xc0] sm:$0xff] %v305_v58  ;;  %338 = vst [vmem:[%s495_s24 + $0xc8] sm:$0xff] %v306_v59 }
  0x2a   : > { %339 = vst [vmem:[%s495_s24 + $0xd0] sm:$0xff] %v307_v60  ;;  %v311_v4 = vmax.f32 %v279_v61, 0.0  ;;  %340 = vst [vmem:[%s495_s24 + $0xd8] sm:$0xff] %v308_v62 }
  0x2b   : > { %341 = vst [vmem:[%s495_s24 + $0xe0] sm:$0xff] %v309_v63  ;;  %342 = vst [vmem:[%s495_s24 + $0xe8] sm:$0xff] %v310_v2  ;;  %v312_v0 = vmax.f32 %v280_v3, 0.0 }
  0x2c   : > { %343 = vst [vmem:[%s495_s24 + $0xf0] sm:$0xff] %v311_v4 }
  0x2d   : > { %344 = vst [vmem:[%s495_s24 + $0xf8] sm:$0xff] %v312_v0 }
  0x2e PF: > { %s13_s12 = sadd.s32 1, %s429_s12  }
  0x2f   : > { %p10_p4 = scmp.ge.s32.totalorder %s13_s12, 4  }
  0x31   :  { %12 = sbr.rel (!%p10_p4) target bundleno = 1 (0x1), region = 62 }

// kernel: parts_forward.5
= control target key start
LH: loop header
LB: loop body
LE: loop exit
PB: predicated region body
PF: predicated region fallthrough
CT: control target
= control target key end

     0   :  { %s4302_s24 = smov 0   ;;  %s5100_s0 = inlined_call_operand.vmem [shape: f32[2,16,16,2], index: 0, kind: input, shape index: {}]   ;;  %s5101_s1 = inlined_call_operand.vmem [shape: f32[1,2], index: 1, kind: input, shape index: {}]   ;;  %s5102_s2 = inlined_call_operand.vmem [shape: f32[1,2], index: 2, kind: input, shape index: {}]   ;;  %s5103_s3 = inlined_call_operand.vmem [shape: bf16[9,2,64], index: 3, kind: input, shape index: {}]   ;;  %s5104_s4 = inlined_call_operand.vmem [shape: f32[1,64], index: 4, kind: input, shape index: {}]   ;;  %s5105_s5 = inlined_call_operand.vmem [shape: f32[2,16,16,64], index: 5, kind: output, shape index: {0}]   ;;  %s5106_s6 = inlined_call_operand.vmem [shape: f32[2,1,64], index: 6, kind: output, shape index: {1}]   ;;  %s5107_s7 = inlined_call_operand.vmem [shape: f32[2,1,64], index: 7, kind: output, shape index: {2}]  }
   0x1 LB: > { %s3351_s1 = sadd.s32 4294967295, %s4259_s24   ;;  %p3355_p0 = scmp.ge.s32.totalorder %s4259_s24, 1  ;;  %s4259_s24 = sphi %s4302_s24, %s18_s24  }
   0x2   : > { %p242_p1 = scmp.lt.s32.totalorder %s4259_s24, 3 }
   0x4   : > { %p243_p2 = pnand %p3355_p0, %p242_p1 }
   0x5   : > { %v3360_v0 = vld [vmem:[%s5103_s3 + $0x1] sm:$0x1] (!%p243_p2)  ;;  %vm565_vm0 = vcmask (!%p243_p2), 1040384   ;;  %v4316_v1 = vld [vmem:[%s5103_s3 + $0x4] sm:$0x1] (!%p243_p2)  ;;  %vm329_vm1 = vcmask (!%p243_p2), 15360  }
   0x6   : > { %246 = sbr.rel (%p243_p2) target bundleno = 566 (0x236), region = 40  ;;  %4234 = vmatprep.subr.msk.bf16.mxu1 (!%p243_p2), %vm565_vm0, %v3360_v0  ;;  %4238 = vmatprep.subr.msk.bf16.mxu0 (!%p243_p2), %vm565_vm0, %v4316_v1  ;;  %v567_v2 = vsel (!%p243_p2), %vm565_vm0, %v3360_v0, 0  ;;  %v4324_v3 = vsel (!%p243_p2), %vm565_vm0, %v4316_v1, 0  ;;  %vm332_vm2 = vcmask (!%p243_p2), 9216   ;;  %p4328_p3 = scmp.lt.s32.totalorder (!%p243_p2), %s3351_s1, 1  ;;  %v4261_v4 = vmov (!%p243_p2), 0.0  }
   0x7   : > { %3671 = vmatpush3.bf16.msra.mxu1 (!%p243_p2), %v567_v2  ;;  %3807 = vmatpush3.bf16.msra.mxu0 (!%p243_p2), %v4324_v3  ;;  %330 = vst.msk [vmem:[#allocation2] sm:$0xff] (!%p243_p2), %vm329_vm1, %v4261_v4  ;;  %331 = vst.msk [vmem:[#allocation2 + $0x8] sm:$0xff] (!%p243_p2), %vm329_vm1, %v4261_v4  ;;  %v466_v5 = vld [vmem:[%s5103_s3] sm:$0x1] (!%p243_p2)  ;;  %v4393_v6 = vld [vmem:[%s5103_s3 + $0x5] sm:$0x1] (!%p243_p2) }
   0x8   : > { %333 = vst.msk [vmem:[#allocation2 + $0x10] sm:$0x3] (!%p243_p2), %vm332_vm2, %v4261_v4  ;;  %336 = vst.msk [vmem:[#allocation2 + $0x28] sm:$0x3] (!%p243_p2), %vm332_vm2, %v4261_v4  ;;  %4235 = vmatprep.subr.msk.bf16.mxu1 (!%p243_p2), %vm565_vm0, %v466_v5  ;;  %4240 = vmatprep.subr.msk.bf16.mxu0 (!%p243_p2), %vm565_vm0, %v4393_v6  ;;  %v779_v36 = vsel (!%p243_p2), %vm565_vm0, %v466_v5, 0  ;;  %v1923_v41 = vsel (!%p243_p2), %vm565_vm0, %v4393_v6, 0 }
   0x9   : > { %334 = vst.msk [vmem:[#allocation2 + $0x18] sm:$0xff] (!%p243_p2), %vm329_vm1, %v4261_v4  ;;  %335 = vst.msk [vmem:[#allocation2 + $0x20] sm:$0xff] (!%p243_p2), %vm329_vm1, %v4261_v4  ;;  %v4469_v43 = vld [vmem:[%s5103_s3 + $0x6] sm:$0x1] (!%p243_p2)  ;;  %v4476_v44 = vld [vmem:[%s5103_s3 + $0x2] sm:$0x1] (!%p243_p2) }
   0xa   : > { %337 = vst.msk [vmem:[#allocation2 + $0x30] sm:$0xff] (!%p243_p2), %vm329_vm1, %v4261_v4  ;;  %338 = vst.msk [vmem:[#allocation2 + $0x38] sm:$0xff] (!%p243_p2), %vm329_vm1, %v4261_v4  ;;  %vm3040_vm3 = vcmask (!%p243_p2), 523264   ;;  %vm3142_vm4 = vcmask (!%p243_p2), 516096  }
   0xb   : > { %339 = vst.msk [vmem:[#allocation2 + $0x40] sm:$0x3] (!%p243_p2), %vm332_vm2, %v4261_v4  ;;  %342 = vst.msk [vmem:[#allocation2 + $0x58] sm:$0x3] (!%p243_p2), %vm332_vm2, %v4261_v4 }
   0xc   : > { %340 = vst.msk [vmem:[#allocation2 + $0x48] sm:$0xff] (!%p243_p2), %vm329_vm1, %v4261_v4  ;;  %341 = vst.msk [vmem:[#allocation2 + $0x50] sm:$0xff] (!%p243_p2), %vm329_vm1, %v4261_v4 }
   0xd   : > { %343 = vst.msk [vmem:[#allocation2 + $0x60] sm:$0xff] %vm329_vm1, %v4261_v4  ;;  %344 = vst.msk [vmem:[#allocation2 + $0x68] sm:$0xff] %vm329_vm1, %v4261_v4  ;;  %s5110_s1 = smov (!%p4328_p3, %s3351_s1), 1 }
   0xe   : > { %345 = vst.msk [vmem:[#allocation2 + $0x70] sm:$0x3] %vm332_vm2, %v4261_v4  ;;  %348 = vst.msk [vmem:[#allocation2 + $0x88] sm:$0x3] %vm332_vm2, %v4261_v4  ;;  %s3515_s10 = sshll.u32 %s5110_s1, 8  ;;  %v467_v13 = vld [vmem:[#allocation2 + $0x1] sm:$0xff]  ;;  %s292_s8 = scalar_lea.vmem %s5106_s6, %s5110_s1 }
   0xf   : > { %346 = vst.msk [vmem:[#allocation2 + $0x78] sm:$0xff] %vm329_vm1, %v4261_v4  ;;  %347 = vst.msk [vmem:[#allocation2 + $0x80] sm:$0xff] %vm329_vm1, %v4261_v4  ;;  %s4410_s13 = scalar_lea.vmem %s5100_s0, %s3515_s10  ;;  %v468_v14 = vld [vmem:[#allocation2 + $0x9] sm:$0xff]  ;;  %s4919_s28 = scalar_lea.vmem %s5105_s5, %s3515_s10 }
  0x10   : > { %349 = vst.msk [vmem:[#allocation2 + $0x90] sm:$0xff] %vm329_vm1, %v4261_v4  ;;  %350 = vst.msk [vmem:[#allocation2 + $0x98] sm:$0xff] %vm329_vm1, %v4261_v4  ;;  %v297_v7 = vld [vmem:[%s4410_s13] sm:$0xff]  ;;  %v298_v8 = vld [vmem:[%s4410_s13 + $0x8] sm:$0xff]  ;;  %v499_v16 = vpack.c.bf16 %v468_v14, %v467_v13  ;;  %s295_s11 = scalar_lea.vmem %s5107_s7, %s5110_s1 }
  0x11   : > { %351 = vst.msk [vmem:[#allocation2 + $0xa0] sm:$0x3] %vm332_vm2, %v4261_v4  ;;  %354 = vst.msk [vmem:[#allocation2 + $0xb8] sm:$0x3] %vm332_vm2, %v4261_v4  ;;  %v299_v9 = vld [vmem:[%s4410_s13 + $0x10] sm:$0xff]  ;;  %v300_v10 = vld [vmem:[%s4410_s13 + $0x18] sm:$0xff] }
  0x12   : > { %352 = vst.msk [vmem:[#allocation2 + $0xa8] sm:$0xff] %vm329_vm1, %v4261_v4  ;;  %353 = vst.msk [vmem:[#allocation2 + $0xb0] sm:$0xff] %vm329_vm1, %v4261_v4  ;;  %v301_v11 = vld [vmem:[%s4410_s13 + $0x20] sm:$0xff]  ;;  %v302_v12 = vld [vmem:[%s4410_s13 + $0x28] sm:$0xff]  ;;  %3672 = vmatprep.mubr.msk.bf16.mxu1 %vm329_vm1, %v499_v16 }
  0x13   : > { %355 = vst.msk [vmem:[#allocation2 + $0xc0] sm:$0xff] %vm329_vm1, %v4261_v4  ;;  %356 = vst.msk [vmem:[#allocation2 + $0xc8] sm:$0xff] %vm329_vm1, %v4261_v4  ;;  %v303_v15 = vld [vmem:[%s4410_s13 + $0x30] sm:$0xff]  ;;  %v304_v17 = vld [vmem:[%s4410_s13 + $0x38] sm:$0xff] }
  0x14   : > { %357 = vst.msk [vmem:[#allocation2 + $0xd0] sm:$0x3] %vm332_vm2, %v4261_v4  ;;  %360 = vst.msk [vmem:[#allocation2 + $0xe8] sm:$0x3] %vm332_vm2, %v4261_v4  ;;  %v305_v18 = vld [vmem:[%s4410_s13 + $0x40] sm:$0xff]  ;;  %v306_v19 = vld [vmem:[%s4410_s13 + $0x48] sm:$0xff] }
  0x15   : > { %358 = vst.msk [vmem:[#allocation2 + $0xd8] sm:$0xff] %vm329_vm1, %v4261_v4  ;;  %359 = vst.msk [vmem:[#allocation2 + $0xe0] sm:$0xff] %vm329_vm1, %v4261_v4  ;;  %v307_v20 = vld [vmem:[%s4410_s13 + $0x50] sm:$0xff]  ;;  %v308_v21 = vld [vmem:[%s4410_s13 + $0x58] sm:$0xff] }
  0x16   : > { %361 = vst.msk [vmem:[#allocation2 + $0xf0] sm:$0xff] %vm329_vm1, %v4261_v4  ;;  %362 = vst.msk [vmem:[#allocation2 + $0xf8] sm:$0xff] %vm329_vm1, %v4261_v4  ;;  %v309_v22 = vld [vmem:[%s4410_s13 + $0x60] sm:$0xff]  ;;  %v310_v23 = vld [vmem:[%s4410_s13 + $0x68] sm:$0xff] }
  0x17   : > { %363 = vst.msk [vmem:[#allocation2 + $0x100] sm:$0x3] %vm332_vm2, %v4261_v4  ;;  %366 = vst.msk [vmem:[#allocation2 + $0x118] sm:$0x3] %vm332_vm2, %v4261_v4  ;;  %v311_v24 = vld [vmem:[%s4410_s13 + $0x70] sm:$0xff]  ;;  %v312_v25 = vld [vmem:[%s4410_s13 + $0x78] sm:$0xff] }
  0x18   : > { %364 = vst.msk [vmem:[#allocation2 + $0x108] sm:$0xff] %vm329_vm1, %v4261_v4  ;;  %365 = vst.msk [vmem:[#allocation2 + $0x110] sm:$0xff] %vm329_vm1, %v4261_v4  ;;  %v313_v26 = vld [vmem:[%s4410_s13 + $0x80] sm:$0xff]  ;;  %v314_v27 = vld [vmem:[%s4410_s13 + $0x88] sm:$0xff] }
  0x19   : > { %367 = vst.msk [vmem:[#allocation2 + $0x120] sm:$0xff] %vm329_vm1, %v4261_v4  ;;  %368 = vst.msk [vmem:[#allocation2 + $0x128] sm:$0xff] %vm329_vm1, %v4261_v4  ;;  %v315_v28 = vld [vmem:[%s4410_s13 + $0x90] sm:$0xff]  ;;  %v316_v29 = vld [vmem:[%s4410_s13 + $0x98] sm:$0xff] }
  0x1a   : > { %369 = vst.msk [vmem:[#allocation2 + $0x130] sm:$0x3] %vm332_vm2, %v4261_v4  ;;  %372 = vst.msk [vmem:[#allocation2 + $0x148] sm:$0x3] %vm332_vm2, %v4261_v4  ;;  %v317_v30 = vld [vmem:[%s4410_s13 + $0xa0] sm:$0xff]  ;;  %v318_v31 = vld [vmem:[%s4410_s13 + $0xa8] sm:$0xff] }
  0x1b   : > { %370 = vst.msk [vmem:[#allocation2 + $0x138] sm:$0xff] %vm329_vm1, %v4261_v4  ;;  %371 = vst.msk [vmem:[#allocation2 + $0x140] sm:$0xff] %vm329_vm1, %v4261_v4  ;;  %v319_v51 = vld [vmem:[%s4410_s13 + $0xb0] sm:$0xff]  ;;  %v320_v52 = vld [vmem:[%s4410_s13 + $0xb8] sm:$0xff] }
  0x1c   : > { %373 = vst.msk [vmem:[#allocation2 + $0x150] sm:$0xff] %vm329_vm1, %v4261_v4  ;;  %374 = vst.msk [vmem:[#allocation2 + $0x158] sm:$0xff] %vm329_vm1, %v4261_v4  ;;  %v321_v53 = vld [vmem:[%s4410_s13 + $0xc0] sm:$0xff]  ;;  %v322_v54 = vld [vmem:[%s4410_s13 + $0xc8] sm:$0xff] }
  0x1d   : > { %375 = vst.msk [vmem:[#allocation2 + $0x160] sm:$0x3] %vm332_vm2, %v4261_v4  ;;  %378 = vst.msk [vmem:[#allocation2 + $0x178] sm:$0x3] %vm332_vm2, %v4261_v4  ;;  %v323_v57 = vld [vmem:[%s4410_s13 + $0xd0] sm:$0xff]  ;;  %v324_v58 = vld [vmem:[%s4410_s13 + $0xd8] sm:$0xff] }
  0x1e   : > { %376 = vst.msk [vmem:[#allocation2 + $0x168] sm:$0xff] %vm329_vm1, %v4261_v4  ;;  %377 = vst.msk [vmem:[#allocation2 + $0x170] sm:$0xff] %vm329_vm1, %v4261_v4  ;;  %v325_v59 = vld [vmem:[%s4410_s13 + $0xe0] sm:$0xff]  ;;  %v326_v60 = vld [vmem:[%s4410_s13 + $0xe8] sm:$0xff] }
  0x1f   : > { %379 = vst.msk [vmem:[#allocation2 + $0x180] sm:$0xff] %vm329_vm1, %v4261_v4  ;;  %380 = vst.msk [vmem:[#allocation2 + $0x188] sm:$0xff] %vm329_vm1, %v4261_v4  ;;  %v328_v13 = vld [vmem:[%s4410_s13 + $0xf8] sm:$0xff] }
  0x20   : > { %381 = vst.msk [vmem:[#allocation2 + $0x190] sm:$0x3] %vm332_vm2, %v4261_v4  ;;  %384 = vst.msk [vmem:[#allocation2 + $0x1a8] sm:$0x3] %vm332_vm2, %v4261_v4 }
  0x21   : > { %382 = vst.msk [vmem:[#allocation2 + $0x198] sm:$0xff] %vm329_vm1, %v4261_v4  ;;  %383 = vst.msk [vmem:[#allocation2 + $0x1a0] sm:$0xff] %vm329_vm1, %v4261_v4 }
  0x22   : > { %386 = vst.msk [vmem:[#allocation2 + $0x19] sm:$0xff] %vm329_vm1, %v297_v7  ;;  %387 = vst.msk [vmem:[#allocation2 + $0x21] sm:$0xff] %vm329_vm1, %v298_v8 }
  0x23   : > { %388 = vst.msk [vmem:[#allocation2 + $0x31] sm:$0xff] %vm329_vm1, %v299_v9  ;;  %389 = vst.msk [vmem:[#allocation2 + $0x39] sm:$0xff] %vm329_vm1, %v300_v10 }
  0x24   : > { %390 = vst.msk [vmem:[#allocation2 + $0x49] sm:$0xff] %vm329_vm1, %v301_v11  ;;  %391 = vst.msk [vmem:[#allocation2 + $0x51] sm:$0xff] %vm329_vm1, %v302_v12  ;;  %v327_v12 = vld [vmem:[%s4410_s13 + $0xf0] sm:$0xff] }
  0x25   : > { %392 = vst.msk [vmem:[#allocation2 + $0x61] sm:$0xff] %vm329_vm1, %v303_v15  ;;  %393 = vst.msk [vmem:[#allocation2 + $0x69] sm:$0xff] %vm329_vm1, %v304_v17 }
  0x26   : > { %394 = vst.msk [vmem:[#allocation2 + $0x79] sm:$0xff] %vm329_vm1, %v305_v18  ;;  %395 = vst.msk [vmem:[#allocation2 + $0x81] sm:$0xff] %vm329_vm1, %v306_v19 }
  0x27   : > { %396 = vst.msk [vmem:[#allocation2 + $0x91] sm:$0xff] %vm329_vm1, %v307_v20  ;;  %397 = vst.msk [vmem:[#allocation2 + $0x99] sm:$0xff] %vm329_vm1, %v308_v21 }
  0x28   : > { %398 = vst.msk [vmem:[#allocation2 + $0xa9] sm:$0xff] %vm329_vm1, %v309_v22  ;;  %399 = vst.msk [vmem:[#allocation2 + $0xb1] sm:$0xff] %vm329_vm1, %v310_v23  ;;  %v2218_v23 = vsel %vm565_vm0, %v4469_v43, 0 }
  0x29   : > { %400 = vst.msk [vmem:[#allocation2 + $0xc1] sm:$0xff] %vm329_vm1, %v311_v24  ;;  %401 = vst.msk [vmem:[#allocation2 + $0xc9] sm:$0xff] %vm329_vm1, %v312_v25  ;;  %v469_v32 = vld [vmem:[#allocation2 + $0x19] sm:$0xff]  ;;  %v470_v33 = vld [vmem:[#allocation2 + $0x21] sm:$0xff] }
  0x2a   : > { %402 = vst.msk [vmem:[#allocation2 + $0xd9] sm:$0xff] %vm329_vm1, %v313_v26  ;;  %403 = vst.msk [vmem:[#allocation2 + $0xe1] sm:$0xff] %vm329_vm1, %v314_v27  ;;  %v1532_v34 = vld [vmem:[#allocation2 + $0x31] sm:$0xff]  ;;  %v500_v35 = vpack.c.bf16 %v470_v33, %v469_v32  ;;  %v1533_v37 = vld [vmem:[#allocation2 + $0x39] sm:$0xff] }
  0x2b   : > { %404 = vst.msk [vmem:[#allocation2 + $0xf1] sm:$0xff] %vm329_vm1, %v315_v28  ;;  %405 = vst.msk [vmem:[#allocation2 + $0xf9] sm:$0xff] %vm329_vm1, %v316_v29  ;;  %v473_v38 = vld [vmem:[#allocation2 + $0x49] sm:$0xff]  ;;  %v474_v39 = vld [vmem:[#allocation2 + $0x51] sm:$0xff]  ;;  %v4458_v40 = vpack.c.bf16 %v1533_v37, %v1532_v34 }
  0x2c   : > { %406 = vst.msk [vmem:[#allocation2 + $0x109] sm:$0xff] %vm329_vm1, %v317_v30  ;;  %407 = vst.msk [vmem:[#allocation2 + $0x111] sm:$0xff] %vm329_vm1, %v318_v31  ;;  %v4462_v42 = vpack.c.bf16 %v474_v39, %v473_v38  ;;  %3673 = vmatmul.mubr.msk.bf16.vlgmr.msra.gmra.mrb[0].mxu1 %vm329_vm1, %v500_v35  ;;  %3808 = vmatprep.mubr.msk.bf16.mxu0 %vm329_vm1, %v500_v35  ;;  %v1536_v45 = vld [vmem:[#allocation2 + $0x61] sm:$0xff]  ;;  %v1537_v46 = vld [vmem:[#allocation2 + $0x69] sm:$0xff] }
  0x2d   : > { %3705 = vmatpush3.bf16.msra.mxu1 %v779_v36  ;;  %3809 = vmatmul.mubr.msk.bf16.vlgmr.msra.gmra.mrb[0].mxu0 %vm329_vm1, %v4458_v40  ;;  %v477_v47 = vld [vmem:[#allocation2 + $0x79] sm:$0xff]  ;;  %v478_v48 = vld [vmem:[#allocation2 + $0x81] sm:$0xff]  ;;  %v4486_v49 = vpack.c.bf16 %v1537_v46, %v1536_v45  ;;  %408 = vst.msk [vmem:[#allocation2 + $0x121] sm:$0xff] %vm329_vm1, %v319_v51  ;;  %409 = vst.msk [vmem:[#allocation2 + $0x129] sm:$0xff] %vm329_vm1, %v320_v52 }
  0x2e   : > { %3841 = vmatpush3.bf16.msra.mxu0 %v1923_v41  ;;  %3676 = vmatprep.mubr.msk.bf16.mxu1 %vm329_vm1, %v4458_v40  ;;  %v4488_v50 = vpack.c.bf16 %v478_v48, %v477_v47  ;;  %410 = vst.msk [vmem:[#allocation2 + $0x139] sm:$0xff] %vm329_vm1, %v321_v53  ;;  %v1540_v55 = vld [vmem:[#allocation2 + $0x91] sm:$0xff]  ;;  %v1541_v56 = vld [vmem:[#allocation2 + $0x99] sm:$0xff]  ;;  %411 = vst.msk [vmem:[#allocation2 + $0x141] sm:$0xff] %vm329_vm1, %v322_v54 }
  0x2f   : > { %3812 = vmatprep.mubr.msk.bf16.mxu0 %vm329_vm1, %v4462_v42  ;;  %4241 = vmatprep.subr.msk.bf16.mxu0 %vm565_vm0, %v4469_v43  ;;  %412 = vst.msk [vmem:[#allocation2 + $0x151] sm:$0xff] %vm329_vm1, %v323_v57  ;;  %v481_v61 = vld [vmem:[#allocation2 + $0xa9] sm:$0xff]  ;;  %v482_v62 = vld [vmem:[#allocation2 + $0xb1] sm:$0xff]  ;;  %413 = vst.msk [vmem:[#allocation2 + $0x159] sm:$0xff] %vm329_vm1, %v324_v58  ;;  %v4514_v63 = vpack.c.bf16 %v1541_v56, %v1540_v55 }
  0x30   : > { %4236 = vmatprep.subr.msk.bf16.mxu1 %vm565_vm0, %v4476_v44  ;;  %414 = vst.msk [vmem:[#allocation2 + $0x169] sm:$0xff] %vm329_vm1, %v325_v59  ;;  %415 = vst.msk [vmem:[#allocation2 + $0x171] sm:$0xff] %vm329_vm1, %v326_v60  ;;  %v4516_v0 = vpack.c.bf16 %v482_v62, %v481_v61  ;;  %v1544_v2 = vld [vmem:[#allocation2 + $0xc1] sm:$0xff]  ;;  %v1545_v4 = vld [vmem:[#allocation2 + $0xc9] sm:$0xff] }
  0x31   : > { %v1824_v5 = vld [vmem:[#allocation2 + $0x1a] sm:$0xff]  ;;  %v1825_v6 = vld [vmem:[#allocation2 + $0x22] sm:$0xff]  ;;  %v4526_v7 = vpack.c.bf16 %v1545_v4, %v1544_v2  ;;  %v1826_v11 = vld [vmem:[#allocation2 + $0x32] sm:$0xff]  ;;  %416 = vst.msk [vmem:[#allocation2 + $0x181] sm:$0xff] %vm329_vm1, %v327_v12 }
  0x32   : > { %v4528_v8 = vpack.c.bf16 %v1825_v6, %v1824_v5  ;;  %v485_v9 = vld [vmem:[#allocation2 + $0xd9] sm:$0xff]  ;;  %v486_v10 = vld [vmem:[#allocation2 + $0xe1] sm:$0xff]  ;;  %v487_v15 = vld [vmem:[#allocation2 + $0xf1] sm:$0xff]  ;;  %417 = vst.msk [vmem:[#allocation2 + $0x189] sm:$0xff] %vm329_vm1, %v328_v13 }
  0x33   : > { %v1827_v14 = vld [vmem:[#allocation2 + $0x3a] sm:$0xff]  ;;  %v1828_v17 = vld [vmem:[#allocation2 + $0x4a] sm:$0xff]  ;;  %v1829_v18 = vld [vmem:[#allocation2 + $0x52] sm:$0xff]  ;;  %v4542_v19 = vpack.c.bf16 %v486_v10, %v485_v9 }
  0x34   : > { %3677 = vmatmul.mubr.msk.bf16.gmra.mrb[4].mxu1 %vm329_vm1, %v4462_v42  ;;  %v488_v16 = vld [vmem:[#allocation2 + $0xf9] sm:$0xff]  ;;  %v4544_v20 = vpack.c.bf16 %v1827_v14, %v1826_v11  ;;  %v4548_v22 = vpack.c.bf16 %v1829_v18, %v1828_v17  ;;  %v4557_v24 = vld [vmem:[%s5103_s3 + $0x7] sm:$0x1]  ;;  %v489_v25 = vld [vmem:[#allocation2 + $0x109] sm:$0xff]  ;;  %v1041_v18 = vsel %vm565_vm0, %v4476_v44, 0 }
  0x35   : > { %3813 = vmatmul.mubr.msk.bf16.gmra.mrb[4].mxu0 %vm329_vm1, %v4486_v49  ;;  %3680 = vmatprep.mubr.msk.bf16.mxu1 %vm329_vm1, %v4486_v49  ;;  %v4546_v21 = vpack.c.bf16 %v488_v16, %v487_v15  ;;  %v490_v26 = vld [vmem:[#allocation2 + $0x111] sm:$0xff]  ;;  %v1830_v27 = vld [vmem:[#allocation2 + $0x62] sm:$0xff]  ;;  %v1832_v31 = vld [vmem:[#allocation2 + $0x7a] sm:$0xff] }
  0x36   : > { %3816 = vmatprep.mubr.msk.bf16.mxu0 %vm329_vm1, %v4488_v50  ;;  %v1831_v28 = vld [vmem:[#allocation2 + $0x6a] sm:$0xff]  ;;  %v491_v29 = vld [vmem:[#allocation2 + $0x121] sm:$0xff]  ;;  %v4567_v33 = vpack.c.bf16 %v490_v26, %v489_v25  ;;  %v493_v37 = vld [vmem:[#allocation2 + $0x139] sm:$0xff] }
  0x37   : > { %v492_v30 = vld [vmem:[#allocation2 + $0x129] sm:$0xff]  ;;  %v4569_v34 = vpack.c.bf16 %v1831_v28, %v1830_v27  ;;  %v494_v38 = vld [vmem:[#allocation2 + $0x141] sm:$0xff]  ;;  %v1834_v39 = vld [vmem:[#allocation2 + $0x92] sm:$0xff] }
  0x38   : > { %v1833_v32 = vld [vmem:[#allocation2 + $0x82] sm:$0xff]  ;;  %v4571_v35 = vpack.c.bf16 %v492_v30, %v491_v29  ;;  %v1835_v41 = vld [vmem:[#allocation2 + $0x9a] sm:$0xff]  ;;  %v495_v43 = vld [vmem:[#allocation2 + $0x151] sm:$0xff]  ;;  %v4583_v48 = vpack.c.bf16 %v494_v38, %v493_v37 }
  0x39   : > { %v4573_v36 = vpack.c.bf16 %v1833_v32, %v1832_v31  ;;  %v496_v45 = vld [vmem:[#allocation2 + $0x159] sm:$0xff]  ;;  %v1836_v46 = vld [vmem:[#allocation2 + $0xaa] sm:$0xff]  ;;  %v4585_v51 = vpack.c.bf16 %v1835_v41, %v1834_v39  ;;  %v1838_v56 = vld [vmem:[#allocation2 + $0xc2] sm:$0xff] }
  0x3a   : > { %v1837_v47 = vld [vmem:[#allocation2 + $0xb2] sm:$0xff]  ;;  %v4587_v52 = vpack.c.bf16 %v496_v45, %v495_v43  ;;  %v497_v54 = vld [vmem:[#allocation2 + $0x169] sm:$0xff]  ;;  %v418_v58 = vld [vmem:[#allocation2] sm:$0xff] }
  0x3b   : > { %v4589_v53 = vpack.c.bf16 %v1837_v47, %v1836_v46  ;;  %v498_v55 = vld [vmem:[#allocation2 + $0x171] sm:$0xff]  ;;  %v419_v59 = vld [vmem:[#allocation2 + $0x8] sm:$0xff]  ;;  %v1840_v60 = vld [vmem:[#allocation2 + $0xda] sm:$0xff] }
  0x3c   : > { %3681 = vmatmul.mubr.msk.bf16.gmra.mrb[8].mxu1 %vm329_vm1, %v4488_v50  ;;  %v1839_v57 = vld [vmem:[#allocation2 + $0xca] sm:$0xff]  ;;  %v1841_v61 = vld [vmem:[#allocation2 + $0xe2] sm:$0xff]  ;;  %v4599_v62 = vpack.c.bf16 %v498_v55, %v497_v54  ;;  %v450_v4 = vpack.c.bf16 %v419_v59, %v418_v58  ;;  %v420_v6 = vld [vmem:[#allocation2 + $0x18] sm:$0xff] }
  0x3d   : > { %3817 = vmatmul.mubr.msk.bf16.gmra.mrb[8].mxu0 %vm329_vm1, %v4514_v63  ;;  %3684 = vmatprep.mubr.msk.bf16.mxu1 %vm329_vm1, %v4514_v63  ;;  %v4601_v2 = vpack.c.bf16 %v1839_v57, %v1838_v56  ;;  %v4603_v5 = vpack.c.bf16 %v1841_v61, %v1840_v60  ;;  %v421_v9 = vld [vmem:[#allocation2 + $0x20] sm:$0xff]  ;;  %v1842_v10 = vld [vmem:[#allocation2 + $0xf2] sm:$0xff]  ;;  %v1844_v14 = vld [vmem:[#allocation2 + $0x10a] sm:$0xff] }
  0x3e   : > { %3820 = vmatprep.mubr.msk.bf16.mxu0 %vm329_vm1, %v4516_v0  ;;  %v1843_v11 = vld [vmem:[#allocation2 + $0xfa] sm:$0xff]  ;;  %v422_v12 = vld [vmem:[#allocation2 + $0x30] sm:$0xff]  ;;  %v4612_v16 = vpack.c.bf16 %v421_v9, %v420_v6  ;;  %v4627_v26 = vld [vmem:[%s5103_s3 + $0x3] sm:$0x1] }
  0x3f   : > { %v423_v13 = vld [vmem:[#allocation2 + $0x38] sm:$0xff]  ;;  %v4614_v17 = vpack.c.bf16 %v1843_v11, %v1842_v10  ;;  %v424_v27 = vld [vmem:[#allocation2 + $0x48] sm:$0xff]  ;;  %v425_v28 = vld [vmem:[#allocation2 + $0x50] sm:$0xff] }
  0x40   : > { %v1845_v15 = vld [vmem:[#allocation2 + $0x112] sm:$0xff]  ;;  %v1846_v29 = vld [vmem:[#allocation2 + $0x122] sm:$0xff]  ;;  %v1847_v44 = vld [vmem:[#allocation2 + $0x12a] sm:$0xff]  ;;  %v4637_v38 = vpack.c.bf16 %v425_v28, %v424_v27 }
  0x41   : > { %v4620_v25 = vpack.c.bf16 %v1845_v15, %v1844_v14  ;;  %v426_v30 = vld [vmem:[#allocation2 + $0x60] sm:$0xff]  ;;  %v427_v31 = vld [vmem:[#allocation2 + $0x68] sm:$0xff]  ;;  %v4639_v39 = vpack.c.bf16 %v1847_v44, %v1846_v29  ;;  %v428_v45 = vld [vmem:[#allocation2 + $0x78] sm:$0xff] }
  0x42   : > { %v1848_v32 = vld [vmem:[#allocation2 + $0x13a] sm:$0xff]  ;;  %v1849_v37 = vld [vmem:[#allocation2 + $0x142] sm:$0xff]  ;;  %v4641_v41 = vpack.c.bf16 %v427_v31, %v426_v30  ;;  %v1850_v47 = vld [vmem:[#allocation2 + $0x152] sm:$0xff] }
  0x43   : > { %v4643_v43 = vpack.c.bf16 %v1849_v37, %v1848_v32  ;;  %v429_v46 = vld [vmem:[#allocation2 + $0x80] sm:$0xff]  ;;  %v430_v55 = vld [vmem:[#allocation2 + $0x90] sm:$0xff]  ;;  %v431_v56 = vld [vmem:[#allocation2 + $0x98] sm:$0xff]  ;;  %v2512_v32 = vsel %vm565_vm0, %v4557_v24, 0 }
  0x44   : > { %3685 = vmatmul.mubr.msk.bf16.gmra.mrb[12].mxu1 %vm329_vm1, %v4516_v0  ;;  %v1851_v54 = vld [vmem:[#allocation2 + $0x15a] sm:$0xff]  ;;  %v1852_v57 = vld [vmem:[#allocation2 + $0x16a] sm:$0xff]  ;;  %v1853_v58 = vld [vmem:[#allocation2 + $0x172] sm:$0xff]  ;;  %v4653_v59 = vpack.c.bf16 %v429_v46, %v428_v45  ;;  %v4657_v61 = vpack.c.bf16 %v431_v56, %v430_v55 }
  0x45   : > { %3821 = vmatmul.mubr.msk.bf16.gmra.mrb[12].mxu0 %vm329_vm1, %v4526_v7  ;;  %3688 = vmatprep.mubr.msk.bf16.mxu1 %vm329_vm1, %v4526_v7  ;;  %v4655_v60 = vpack.c.bf16 %v1851_v54, %v1850_v47  ;;  %v432_v6 = vld [vmem:[#allocation2 + $0xa8] sm:$0xff]  ;;  %v433_v9 = vld [vmem:[#allocation2 + $0xb0] sm:$0xff]  ;;  %v434_v10 = vld [vmem:[#allocation2 + $0xc0] sm:$0xff] }
  0x46   : > { %3842 = vmatprep.mubr.msk.bf16.mxu0 %vm329_vm1, %v4528_v8  ;;  %v1854_v11 = vld [vmem:[#allocation2 + $0x182] sm:$0xff]  ;;  %v4669_v14 = vpack.c.bf16 %v433_v9, %v432_v6  ;;  %v436_v27 = vld [vmem:[#allocation2 + $0xd8] sm:$0xff]  ;;  %v438_v29 = vld [vmem:[#allocation2 + $0xf0] sm:$0xff] }
  0x47   : > { %v437_v28 = vld [vmem:[#allocation2 + $0xe0] sm:$0xff]  ;;  %v439_v44 = vld [vmem:[#allocation2 + $0xf8] sm:$0xff]  ;;  %v3495_v37 = vld [vmem:[%s5103_s3 + $0x8] sm:$0x1] }
  0x48   : > { %v4683_v30 = vpack.c.bf16 %v437_v28, %v436_v27  ;;  %v4685_v31 = vpack.c.bf16 %v439_v44, %v438_v29  ;;  %v440_v45 = vld [vmem:[#allocation2 + $0x108] sm:$0xff]  ;;  %v441_v46 = vld [vmem:[#allocation2 + $0x110] sm:$0xff]  ;;  %v444_v56 = vld [vmem:[#allocation2 + $0x138] sm:$0xff]  ;;  %v1335_v44 = vsel %vm565_vm0, %v4627_v26, 0 }
  0x49   : > { %v443_v47 = vld [vmem:[#allocation2 + $0x128] sm:$0xff]  ;;  %v4701_v54 = vpack.c.bf16 %v441_v46, %v440_v45  ;;  %v447_v6 = vld [vmem:[#allocation2 + $0x158] sm:$0xff]  ;;  %v2150_v45 = vld [vmem:[#allocation2 + $0x1a0] sm:$0xff] }
  0x4a   : > { %v943_v27 = vld [vmem:[#allocation2 + $0xa] sm:$0xff] }
  0x4c   : > { %3689 = vmatmul.mubr.msk.bf16.gmra.mrb[16].mxu1 %vm329_vm1, %v4542_v19 }
  0x4d   : > { %3843 = vmatmul.mubr.msk.bf16.vlgmr.msra.gmra.mrb[0].mxu0 %vm329_vm1, %v4544_v20  ;;  %3692 = vmatprep.mubr.msk.bf16.mxu1 %vm329_vm1, %v4546_v21 }
  0x4e   : > { %3875 = vmatpush3.bf16.msra.mxu0 %v2218_v23  ;;  %3846 = vmatprep.mubr.msk.bf16.mxu0 %vm329_vm1, %v4548_v22  ;;  %v4618_v23 = vpack.c.bf16 %v423_v13, %v422_v12  ;;  %v1855_v12 = vld [vmem:[#allocation2 + $0x18a] sm:$0xff] }
  0x4f   : > { %4242 = vmatprep.subr.msk.bf16.mxu0 %vm565_vm0, %v4557_v24  ;;  %v435_v13 = vld [vmem:[#allocation2 + $0xc8] sm:$0xff]  ;;  %v4671_v15 = vpack.c.bf16 %v1855_v12, %v1854_v11  ;;  %v442_v24 = vld [vmem:[#allocation2 + $0x120] sm:$0xff]  ;;  %v449_v12 = vld [vmem:[#allocation2 + $0x170] sm:$0xff] }
  0x50   : > { %v4703_v55 = vpack.c.bf16 %v443_v47, %v442_v24  ;;  %v448_v11 = vld [vmem:[#allocation2 + $0x168] sm:$0xff]  ;;  %v2806_v24 = vsel %vm565_vm0, %v3495_v37, 0 }
  0x51   : > { %v4725_v28 = vpack.c.bf16 %v449_v12, %v448_v11 }
  0x54   : > { %3693 = vmatmul.mubr.msk.bf16.gmra.mrb[20].mxu1 %vm329_vm1, %v4567_v33 }
  0x55   : > { %3847 = vmatmul.mubr.msk.bf16.gmra.mrb[4].mxu0 %vm329_vm1, %v4569_v34  ;;  %3696 = vmatprep.mubr.msk.bf16.mxu1 %vm329_vm1, %v4571_v35 }
  0x56   : > { %3850 = vmatprep.mubr.msk.bf16.mxu0 %vm329_vm1, %v4573_v36 }
  0x5c   : > { %3697 = vmatmul.mubr.msk.bf16.gmra.mrb[24].mxu1 %vm329_vm1, %v4583_v48 }
  0x5d   : > { %3851 = vmatmul.mubr.msk.bf16.gmra.mrb[8].mxu0 %vm329_vm1, %v4585_v51  ;;  %3700 = vmatprep.mubr.msk.bf16.mxu1 %vm329_vm1, %v4587_v52 }
  0x5e   : > { %3854 = vmatprep.mubr.msk.bf16.mxu0 %vm329_vm1, %v4589_v53 }
  0x64   : > { %3701 = vmatmul.mubr.msk.bf16.gmra.mrb[28].mxu1 %vm329_vm1, %v4599_v62 }
  0x65   : > { %3855 = vmatmul.mubr.msk.bf16.gmra.mrb[12].mxu0 %vm329_vm1, %v4601_v2  ;;  %3706 = vmatprep.mubr.msk.bf16.mxu1 %vm329_vm1, %v450_v4  ;;  %v4659_v4 = vpack.c.bf16 %v1853_v58, %v1852_v57  ;;  %v445_v57 = vld [vmem:[#allocation2 + $0x140] sm:$0xff]  ;;  %v446_v58 = vld [vmem:[#allocation2 + $0x150] sm:$0xff] }
  0x66   : > { %3858 = vmatprep.mubr.msk.bf16.mxu0 %vm329_vm1, %v4603_v5  ;;  %v4713_v9 = vpack.c.bf16 %v445_v57, %v444_v56 }
  0x6c   : > { %3707 = vmatmul.mubr.msk.bf16.vlgmr.msra.gmra.mrb[0].mxu1 %vm329_vm1, %v4612_v16 }
  0x6d   : > { %3739 = vmatpush3.bf16.msra.mxu1 %v1041_v18  ;;  %3859 = vmatmul.mubr.msk.bf16.gmra.mrb[16].mxu0 %vm329_vm1, %v4614_v17  ;;  %v4673_v18 = vpack.c.bf16 %v435_v13, %v434_v10  ;;  %v4715_v10 = vpack.c.bf16 %v447_v6, %v446_v58  ;;  %v942_v13 = vld [vmem:[#allocation2 + $0x2] sm:$0xff] }
  0x6e   : > { %3710 = vmatprep.mubr.msk.bf16.mxu1 %vm329_vm1, %v4618_v23  ;;  %3862 = vmatprep.mubr.msk.bf16.mxu0 %vm329_vm1, %v4620_v25  ;;  %v974_v29 = vpack.c.bf16 %v943_v27, %v942_v13 }
  0x6f   : > { %4237 = vmatprep.subr.msk.bf16.mxu1 %vm565_vm0, %v4627_v26  ;;  %v2148_v26 = vld [vmem:[#allocation2 + $0x188] sm:$0xff] }
  0x74   : > { %3711 = vmatmul.mubr.msk.bf16.gmra.mrb[4].mxu1 %vm329_vm1, %v4637_v38 }
  0x75   : > { %3863 = vmatmul.mubr.msk.bf16.gmra.mrb[20].mxu0 %vm329_vm1, %v4639_v39  ;;  %3714 = vmatprep.mubr.msk.bf16.mxu1 %vm329_vm1, %v4641_v41 }
  0x76   : > { %3866 = vmatprep.mubr.msk.bf16.mxu0 %vm329_vm1, %v4643_v43 }
  0x7c   : > { %3715 = vmatmul.mubr.msk.bf16.gmra.mrb[8].mxu1 %vm329_vm1, %v4653_v59 }
  0x7d   : > { %3867 = vmatmul.mubr.msk.bf16.gmra.mrb[24].mxu0 %vm329_vm1, %v4655_v60  ;;  %3718 = vmatprep.mubr.msk.bf16.mxu1 %vm329_vm1, %v4657_v61 }
  0x7e   : > { %3870 = vmatprep.mubr.msk.bf16.mxu0 %vm329_vm1, %v4659_v4 }
  0x84   : > { %3719 = vmatmul.mubr.msk.bf16.gmra.mrb[12].mxu1 %vm329_vm1, %v4669_v14 }
  0x85   : > { %3871 = vmatmul.mubr.msk.bf16.gmra.mrb[28].mxu0 %vm329_vm1, %v4671_v15  ;;  %3722 = vmatprep.mubr.msk.bf16.mxu1 %vm329_vm1, %v4673_v18 }
  0x86   : > { %3876 = vmatprep.mubr.msk.bf16.mxu0 %vm329_vm1, %v4618_v23 }
  0x8c   : > { %3723 = vmatmul.mubr.msk.bf16.gmra.mrb[16].mxu1 %vm329_vm1, %v4683_v30 }
  0x8d   : > { %3877 = vmatmul.mubr.msk.bf16.vlgmr.msra.gmra.mrb[0].mxu0 %vm329_vm1, %v4637_v38  ;;  %3726 = vmatprep.mubr.msk.bf16.mxu1 %vm329_vm1, %v4685_v31 }
  0x8e   : > { %3909 = vmatpush3.bf16.msra.mxu0 %v2512_v32  ;;  %3880 = vmatprep.mubr.msk.bf16.mxu0 %vm329_vm1, %v4641_v41 }
  0x8f   : > { %4243 = vmatprep.subr.msk.bf16.mxu0 %vm565_vm0, %v3495_v37 }
  0x94   : > { %3727 = vmatmul.mubr.msk.bf16.gmra.mrb[20].mxu1 %vm329_vm1, %v4701_v54 }
  0x95   : > { %3881 = vmatmul.mubr.msk.bf16.gmra.mrb[4].mxu0 %vm329_vm1, %v4653_v59  ;;  %3730 = vmatprep.mubr.msk.bf16.mxu1 %vm329_vm1, %v4703_v55 }
  0x96   : > { %3884 = vmatprep.mubr.msk.bf16.mxu0 %vm329_vm1, %v4657_v61 }
  0x9c   : > { %3731 = vmatmul.mubr.msk.bf16.gmra.mrb[24].mxu1 %vm329_vm1, %v4713_v9 }
  0x9d   : > { %3885 = vmatmul.mubr.msk.bf16.gmra.mrb[8].mxu0 %vm329_vm1, %v4669_v14  ;;  %3734 = vmatprep.mubr.msk.bf16.mxu1 %vm329_vm1, %v4715_v10 }
  0x9e   : > { %3888 = vmatprep.mubr.msk.bf16.mxu0 %vm329_vm1, %v4673_v18 }
  0xa4   : > { %3735 = vmatmul.mubr.msk.bf16.gmra.mrb[28].mxu1 %vm329_vm1, %v4725_v28 }
  0xa5   : > { %3889 = vmatmul.mubr.msk.bf16.gmra.mrb[12].mxu0 %vm329_vm1, %v4683_v30  ;;  %3740 = vmatprep.mubr.msk.bf16.mxu1 %vm329_vm1, %v974_v29 }
  0xa6   : > { %3892 = vmatprep.mubr.msk.bf16.mxu0 %vm329_vm1, %v4685_v31 }
  0xac   : > { %3741 = vmatmul.mubr.msk.bf16.vlgmr.msra.gmra.mrb[0].mxu1 %vm329_vm1, %v4528_v8  ;;  %v2147_v8 = vld [vmem:[#allocation2 + $0x180] sm:$0xff] }
  0xad   : > { %3773 = vmatpush3.bf16.msra.mxu1 %v1335_v44  ;;  %3893 = vmatmul.mubr.msk.bf16.gmra.mrb[16].mxu0 %vm329_vm1, %v4701_v54  ;;  %v4754_v32 = vpack.c.bf16 %v2148_v26, %v2147_v8 }
  0xae   : > { %3744 = vmatprep.mubr.msk.bf16.mxu1 %vm329_vm1, %v4544_v20  ;;  %3896 = vmatprep.mubr.msk.bf16.mxu0 %vm329_vm1, %v4703_v55 }
  0xaf   : > { %4239 = vmatprep.subr.msk.bf16.mxu1 %vm565_vm0, %v4316_v1  ;;  %v2149_v1 = vld [vmem:[#allocation2 + $0x198] sm:$0xff] }
  0xb0   : > { %v2166_v46 = vpack.c.bf16 %v2150_v45, %v2149_v1 }
  0xb4   : > { %3745 = vmatmul.mubr.msk.bf16.gmra.mrb[4].mxu1 %vm329_vm1, %v4548_v22 }
  0xb5   : > { %3897 = vmatmul.mubr.msk.bf16.gmra.mrb[20].mxu0 %vm329_vm1, %v4713_v9  ;;  %3748 = vmatprep.mubr.msk.bf16.mxu1 %vm329_vm1, %v4569_v34 }
  0xb6   : > { %3900 = vmatprep.mubr.msk.bf16.mxu0 %vm329_vm1, %v4715_v10 }
  0xbc   : > { %3749 = vmatmul.mubr.msk.bf16.gmra.mrb[8].mxu1 %vm329_vm1, %v4573_v36 }
  0xbd   : > { %3901 = vmatmul.mubr.msk.bf16.gmra.mrb[24].mxu0 %vm329_vm1, %v4725_v28  ;;  %3752 = vmatprep.mubr.msk.bf16.mxu1 %vm329_vm1, %v4585_v51 }
  0xbe   : > { %3904 = vmatprep.mubr.msk.bf16.mxu0 %vm329_vm1, %v4754_v32 }
  0xc4   : > { %3753 = vmatmul.mubr.msk.bf16.gmra.mrb[12].mxu1 %vm329_vm1, %v4589_v53 }
  0xc5   : > { %3905 = vmatmul.mubr.msk.bf16.gmra.mrb[28].mxu0 %vm329_vm1, %v2166_v46  ;;  %3756 = vmatprep.mubr.msk.bf16.mxu1 %vm329_vm1, %v4601_v2 }
  0xc6   : > { %3910 = vmatprep.mubr.msk.bf16.mxu0 %vm329_vm1, %v4458_v40  ;;  %v2442_v40 = vld [vmem:[#allocation2 + $0x189] sm:$0xff] }
  0xcc   : > { %3757 = vmatmul.mubr.msk.bf16.gmra.mrb[16].mxu1 %vm329_vm1, %v4603_v5 }
  0xcd   : > { %3911 = vmatmul.mubr.msk.bf16.vlgmr.msra.gmra.mrb[0].mxu0 %vm329_vm1, %v4462_v42  ;;  %3760 = vmatprep.mubr.msk.bf16.mxu1 %vm329_vm1, %v4614_v17 }
  0xce   : > { %3943 = vmatpush3.bf16.msra.mxu0 %v2806_v24  ;;  %3914 = vmatprep.mubr.msk.bf16.mxu0 %vm329_vm1, %v4486_v49  ;;  %v2443_v49 = vld [vmem:[#allocation2 + $0x199] sm:$0xff] }
  0xd4   : > { %3761 = vmatmul.mubr.msk.bf16.gmra.mrb[20].mxu1 %vm329_vm1, %v4620_v25 }
  0xd5   : > { %3915 = vmatmul.mubr.msk.bf16.gmra.mrb[4].mxu0 %vm329_vm1, %v4488_v50  ;;  %3764 = vmatprep.mubr.msk.bf16.mxu1 %vm329_vm1, %v4639_v39  ;;  %v2444_v50 = vld [vmem:[#allocation2 + $0x1a1] sm:$0xff] }
  0xd6   : > { %3918 = vmatprep.mubr.msk.bf16.mxu0 %vm329_vm1, %v4514_v63  ;;  %v2460_v63 = vpack.c.bf16 %v2444_v50, %v2443_v49 }
  0xdc   : > { %3765 = vmatmul.mubr.msk.bf16.gmra.mrb[24].mxu1 %vm329_vm1, %v4643_v43 }
  0xdd   : > { %3919 = vmatmul.mubr.msk.bf16.gmra.mrb[8].mxu0 %vm329_vm1, %v4516_v0  ;;  %3768 = vmatprep.mubr.msk.bf16.mxu1 %vm329_vm1, %v4655_v60  ;;  %v2737_v0 = vld [vmem:[#allocation2 + $0x19a] sm:$0xff] }
  0xde   : > { %3922 = vmatprep.mubr.msk.bf16.mxu0 %vm329_vm1, %v4526_v7  ;;  %v2738_v7 = vld [vmem:[#allocation2 + $0x1a2] sm:$0xff] }
  0xe4   : > { %3769 = vmatmul.mubr.msk.bf16.gmra.mrb[28].mxu1 %vm329_vm1, %v4659_v4 }
  0xe5   : > { %3923 = vmatmul.mubr.msk.bf16.gmra.mrb[12].mxu0 %vm329_vm1, %v4542_v19  ;;  %3774 = vmatprep.mubr.msk.bf16.mxu1 %vm329_vm1, %v4612_v16 }
  0xe6   : > { %3926 = vmatprep.mubr.msk.bf16.mxu0 %vm329_vm1, %v4546_v21 }
  0xec   : > { %3775 = vmatmul.mubr.msk.bf16.vlgmr.msra.gmra.mrb[0].mxu1 %vm329_vm1, %v4618_v23 }
  0xed   : > { %3977 = vmatpush3.bf16.msra.mxu1 %v4324_v3  ;;  %3927 = vmatmul.mubr.msk.bf16.gmra.mrb[16].mxu0 %vm329_vm1, %v4567_v33  ;;  %v2441_v3 = vld [vmem:[#allocation2 + $0x181] sm:$0xff] }
  0xee   : > { %3778 = vmatprep.mubr.msk.bf16.mxu1 %vm329_vm1, %v4637_v38  ;;  %3930 = vmatprep.mubr.msk.bf16.mxu0 %vm329_vm1, %v4571_v35  ;;  %v2459_v42 = vpack.c.bf16 %v2442_v40, %v2441_v3 }
  0xf4   : > { %3779 = vmatmul.mubr.msk.bf16.gmra.mrb[4].mxu1 %vm329_vm1, %v4641_v41 }
  0xf5   : > { %3931 = vmatmul.mubr.msk.bf16.gmra.mrb[20].mxu0 %vm329_vm1, %v4583_v48  ;;  %3782 = vmatprep.mubr.msk.bf16.mxu1 %vm329_vm1, %v4653_v59 }
  0xf6   : > { %3934 = vmatprep.mubr.msk.bf16.mxu0 %vm329_vm1, %v4587_v52 }
  0xfc   : > { %3783 = vmatmul.mubr.msk.bf16.gmra.mrb[8].mxu1 %vm329_vm1, %v4657_v61 }
  0xfd   : > { %3935 = vmatmul.mubr.msk.bf16.gmra.mrb[24].mxu0 %vm329_vm1, %v4599_v62  ;;  %3786 = vmatprep.mubr.msk.bf16.mxu1 %vm329_vm1, %v4669_v14 }
  0xfe   : > { %3938 = vmatprep.mubr.msk.bf16.mxu0 %vm329_vm1, %v2459_v42 }
 0x104   : > { %3787 = vmatmul.mubr.msk.bf16.gmra.mrb[12].mxu1 %vm329_vm1, %v4673_v18 }
 0x105   : > { %3939 = vmatmul.mubr.msk.bf16.gmra.mrb[28].mxu0 %vm329_vm1, %v2460_v63  ;;  %3790 = vmatprep.mubr.msk.bf16.mxu1 %vm329_vm1, %v4683_v30 }
 0x106   : > { %3944 = vmatprep.mubr.msk.bf16.mxu0 %vm329_vm1, %v4544_v20 }
 0x10c   : > { %3791 = vmatmul.mubr.msk.bf16.gmra.mrb[16].mxu1 %vm329_vm1, %v4685_v31 }
 0x10d   : > { %3945 = vmatmul.mubr.msk.bf16.vlgmr.msra.gmra.mrb[0].mxu0 %vm329_vm1, %v4548_v22  ;;  %3794 = vmatprep.mubr.msk.bf16.mxu1 %vm329_vm1, %v4701_v54 }
 0x10e   : > { %3948 = vmatprep.mubr.msk.bf16.mxu0 %vm329_vm1, %v4569_v34 }
 0x114   : > { %3795 = vmatmul.mubr.msk.bf16.gmra.mrb[20].mxu1 %vm329_vm1, %v4703_v55 }
 0x115   : > { %3949 = vmatmul.mubr.msk.bf16.gmra.mrb[4].mxu0 %vm329_vm1, %v4573_v36  ;;  %3798 = vmatprep.mubr.msk.bf16.mxu1 %vm329_vm1, %v4713_v9 }
 0x116   : > { %3952 = vmatprep.mubr.msk.bf16.mxu0 %vm329_vm1, %v4585_v51 }
 0x11c   : > { %3799 = vmatmul.mubr.msk.bf16.gmra.mrb[24].mxu1 %vm329_vm1, %v4715_v10 }
 0x11d   : > { %3953 = vmatmul.mubr.msk.bf16.gmra.mrb[8].mxu0 %vm329_vm1, %v4589_v53  ;;  %3802 = vmatprep.mubr.msk.bf16.mxu1 %vm329_vm1, %v4725_v28 }
 0x11e   : > { %3956 = vmatprep.mubr.msk.bf16.mxu0 %vm329_vm1, %v4601_v2 }
 0x124   : > { %3803 = vmatmul.mubr.msk.bf16.gmra.mrb[28].mxu1 %vm329_vm1, %v4754_v32 }
 0x125   : > { %3957 = vmatmul.mubr.msk.bf16.gmra.mrb[12].mxu0 %vm329_vm1, %v4603_v5  ;;  %3824 = vmatprep.mubr.msk.bf16.mxu1 %vm329_vm1, %v4542_v19  ;;  %v2754_v19 = vpack.c.bf16 %v2738_v7, %v2737_v0 }
 0x126   : > { %3960 = vmatprep.mubr.msk.bf16.mxu0 %vm329_vm1, %v4614_v17 }
 0x12c   : > { %3825 = vmatmul.mubr.msk.bf16.vlgmr.msra.gmra.mrb[16].mxu1 %vm329_vm1, %v4546_v21 }
 0x12d   : > { %3961 = vmatmul.mubr.msk.bf16.gmra.mrb[16].mxu0 %vm329_vm1, %v4620_v25  ;;  %3828 = vmatprep.mubr.msk.bf16.mxu1 %vm329_vm1, %v4567_v33  ;;  %v4912_v25 = vld [vmem:[%s5104_s4] ss:$0 sm:$0xff] }
 0x12e   : > { %3964 = vmatprep.mubr.msk.bf16.mxu0 %vm329_vm1, %v4639_v39 }
 0x134   : > { %3829 = vmatmul.mubr.msk.bf16.gmra.mrb[20].mxu1 %vm329_vm1, %v4571_v35 }
 0x135   : > { %3965 = vmatmul.mubr.msk.bf16.gmra.mrb[20].mxu0 %vm329_vm1, %v4643_v43  ;;  %3832 = vmatprep.mubr.msk.bf16.mxu1 %vm329_vm1, %v4583_v48 }
 0x136   : > { %3968 = vmatprep.mubr.msk.bf16.mxu0 %vm329_vm1, %v4655_v60 }
 0x13c   : > { %3833 = vmatmul.mubr.msk.bf16.gmra.mrb[24].mxu1 %vm329_vm1, %v4587_v52 }
 0x13d   : > { %3969 = vmatmul.mubr.msk.bf16.gmra.mrb[24].mxu0 %vm329_vm1, %v4659_v4  ;;  %3836 = vmatprep.mubr.msk.bf16.mxu1 %vm329_vm1, %v4599_v62 }
 0x13e   : > { %3972 = vmatprep.mubr.msk.bf16.mxu0 %vm329_vm1, %v4671_v15 }
 0x144   : > { %3837 = vmatmul.mubr.msk.bf16.gmra.mrb[28].mxu1 %vm329_vm1, %v2459_v42 }
 0x145   : > { %3973 = vmatmul.mubr.msk.bf16.gmra.mrb[28].mxu0 %vm329_vm1, %v2754_v19 }
 0x1bf   : > { %v3776_v20 = vpop.f32.mrb[0].mxu1 }
 0x1c0   : > { %v1371_v21 = vpop.f32.mrb[1].mxu1 }
 0x1c1   : > { %v3777_v22 = vpop.f32.mrb[2].mxu1 }
 0x1c2   : > { %v1374_v33 = vpop.f32.mrb[3].mxu1 }
 0x1c7   : > { %v3780_v34 = vpop.f32.mrb[4].mxu1 }
 0x1c8   : > { %v1387_v35 = vpop.f32.mrb[5].mxu1 }
 0x1c9   : > { %v3781_v36 = vpop.f32.mrb[6].mxu1 }
 0x1ca   : > { %v1390_v48 = vpop.f32.mrb[7].mxu1 }
 0x1cf   : > { %v4893_v51 = vpop.f32.mrb[8].mxu1 }
 0x1d0   : > { %v4895_v52 = vpop.f32.mrb[9].mxu1 }
 0x1d1   : > { %v4897_v53 = vpop.f32.mrb[10].mxu1 }
 0x1d2   : > { %v4899_v62 = vpop.f32.mrb[11].mxu1 }
 0x1d7   : > { %v4901_v2 = vpop.f32.mrb[12].mxu1 }
 0x1d8   : > { %v4903_v5 = vpop.f32.mrb[13].mxu1 }
 0x1d9   : > { %v4905_v16 = vpop.f32.mrb[14].mxu1 }
 0x1da   : > { %v4907_v17 = vpop.f32.mrb[15].mxu1 }
 0x1e0   : > { %v3946_v23 = vpop.f32.mrb[0].mxu0 }
 0x1e1   : > { %v3978_v38 = vadd.f32 %v3946_v23, %v3776_v20  ;;  %v2842_v39 = vpop.f32.mrb[1].mxu0 }
 0x1e2   : > { %v3979_v41 = vadd.f32 %v2842_v39, %v1371_v21  ;;  %v3947_v43 = vpop.f32.mrb[2].mxu0 }
 0x1e3   : > { %v3010_v59 = vadd.f32 %v3978_v38, %v4912_v25  ;;  %v3980_v60 = vadd.f32 %v3947_v43, %v3777_v22  ;;  %v2845_v61 = vpop.f32.mrb[3].mxu0 }
 0x1e4   : > { %v3008_v4 = vadd.f32 %v3979_v41, %v4912_v25  ;;  %v3981_v14 = vadd.f32 %v2845_v61, %v1374_v33 }
 0x1e5   : > { %3043 = vst.msk [vmem:[%s4919_s28 + $0x10] sm:$0xff] %vm3040_vm3, %v3010_v59  ;;  %v3011_v15 = vadd.f32 %v3980_v60, %v4912_v25  ;;  %v3146_v31 = vmul.f32 %v3010_v59, %v3010_v59  ;;  %v3076_v9 = vsel %vm3040_vm3, %v3010_v59, 0.0 }
 0x1e6   : > { %3041 = vst.msk [vmem:[%s4919_s28] sm:$0xff] %vm3040_vm3, %v3008_v4  ;;  %v3144_v18 = vmul.f32 %v3008_v4, %v3008_v4  ;;  %v3009_v30 = vadd.f32 %v3981_v14, %v4912_v25  ;;  %v3073_v37 = vsel %vm3040_vm3, %v3008_v4, 0.0 }
 0x1e7   : > { %3044 = vst.msk [vmem:[%s4919_s28 + $0x18] sm:$0xff] %vm3040_vm3, %v3011_v15  ;;  %v3147_v56 = vmul.f32 %v3011_v15, %v3011_v15  ;;  %v3179_v26 = vsel %vm3040_vm3, %v3146_v31, 0.0  ;;  %v3078_v32 = vsel %vm3040_vm3, %v3011_v15, 0.0 }
 0x1e8   : > { %3042 = vst.msk [vmem:[%s4919_s28 + $0x8] sm:$0xff] %vm3040_vm3, %v3009_v30  ;;  %v3074_v47 = vsel %vm3040_vm3, %v3009_v30, 0.0  ;;  %v3145_v54 = vmul.f32 %v3009_v30, %v3009_v30  ;;  %v3950_v55 = vpop.f32.mrb[4].mxu0  ;;  %v3176_v10 = vsel %vm3040_vm3, %v3144_v18, 0.0 }
 0x1e9   : > { %v3075_v57 = vadd.f32 %v3074_v47, %v3073_v37  ;;  %v3982_v58 = vadd.f32 %v3950_v55, %v3780_v34  ;;  %v2858_v6 = vpop.f32.mrb[5].mxu0  ;;  %v3181_v46 = vsel %vm3040_vm3, %v3147_v56, 0.0 }
 0x1ea   : > { %v3177_v11 = vsel %vm3040_vm3, %v3145_v54, 0.0  ;;  %v3983_v12 = vadd.f32 %v2858_v6, %v1387_v35  ;;  %v3951_v13 = vpop.f32.mrb[6].mxu0 }
 0x1eb   : > { %v3077_v27 = vadd.f32 %v3076_v9, %v3075_v57  ;;  %v3178_v28 = vadd.f32 %v3177_v11, %v3176_v10  ;;  %v3014_v29 = vadd.f32 %v3982_v58, %v4912_v25  ;;  %v3984_v44 = vadd.f32 %v3951_v13, %v3781_v36  ;;  %v2861_v8 = vpop.f32.mrb[7].mxu0 }
 0x1ec   : > { %v3012_v1 = vadd.f32 %v3983_v12, %v4912_v25  ;;  %v3985_v45 = vadd.f32 %v2861_v8, %v1390_v48 }
 0x1ed   : > { %v3180_v24 = vadd.f32 %v3179_v26, %v3178_v28  ;;  %3047 = vst.msk [vmem:[%s4919_s28 + $0x30] sm:$0xff] %vm3040_vm3, %v3014_v29  ;;  %v3079_v3 = vadd.f32 %v3078_v32, %v3077_v27  ;;  %v3015_v49 = vadd.f32 %v3984_v44, %v4912_v25  ;;  %v3150_v7 = vmul.f32 %v3014_v29, %v3014_v29 }
 0x1ee   : > { %3045 = vst.msk [vmem:[%s4919_s28 + $0x20] sm:$0xff] %vm3040_vm3, %v3012_v1  ;;  %v3080_v40 = vsel %vm3040_vm3, %v3012_v1, 0.0  ;;  %v3148_v42 = vmul.f32 %v3012_v1, %v3012_v1  ;;  %v3013_v50 = vadd.f32 %v3985_v45, %v4912_v25  ;;  %v3084_v48 = vsel %vm3040_vm3, %v3014_v29, 0.0 }
 0x1ef   : > { %v3081_v63 = vadd.f32 %v3080_v40, %v3079_v3  ;;  %v3182_v0 = vadd.f32 %v3181_v46, %v3180_v24  ;;  %3048 = vst.msk [vmem:[%s4919_s28 + $0x38] sm:$0xff] %vm3040_vm3, %v3015_v49  ;;  %v3151_v23 = vmul.f32 %v3015_v49, %v3015_v49 }
 0x1f0   : > { %v3183_v19 = vsel %vm3040_vm3, %v3148_v42, 0.0  ;;  %3046 = vst.msk [vmem:[%s4919_s28 + $0x28] sm:$0xff] %vm3040_vm3, %v3013_v50  ;;  %v3082_v20 = vsel %vm3040_vm3, %v3013_v50, 0.0  ;;  %v3954_v21 = vpop.f32.mrb[8].mxu0  ;;  %v3149_v34 = vmul.f32 %v3013_v50, %v3013_v50 }
 0x1f1   : > { %v3184_v22 = vadd.f32 %v3183_v19, %v3182_v0  ;;  %v3083_v33 = vadd.f32 %v3082_v20, %v3081_v63  ;;  %v3986_v35 = vadd.f32 %v3954_v21, %v4893_v51  ;;  %v2874_v36 = vpop.f32.mrb[9].mxu0  ;;  %v3086_v51 = vsel %vm3040_vm3, %v3015_v49, 0.0 }
 0x1f2   : > { %v3987_v38 = vadd.f32 %v2874_v36, %v4895_v52  ;;  %v3955_v39 = vpop.f32.mrb[10].mxu0  ;;  %v3185_v43 = vsel %vm3040_vm3, %v3149_v34, 0.0  ;;  %v3187_v52 = vsel %vm3040_vm3, %v3150_v7, 0.0  ;;  %v3189_v54 = vsel %vm3040_vm3, %v3151_v23, 0.0 }
 0x1f3   : > { %v3085_v41 = vadd.f32 %v3084_v48, %v3083_v33  ;;  %v3018_v59 = vadd.f32 %v3986_v35, %v4912_v25  ;;  %v3988_v60 = vadd.f32 %v3955_v39, %v4897_v53  ;;  %v2877_v61 = vpop.f32.mrb[11].mxu0  ;;  %v3186_v4 = vadd.f32 %v3185_v43, %v3184_v22 }
 0x1f4   : > { %v3016_v14 = vadd.f32 %v3987_v38, %v4912_v25  ;;  %v3989_v15 = vadd.f32 %v2877_v61, %v4899_v62 }
 0x1f5   : > { %3051 = vst.msk [vmem:[%s4919_s28 + $0x50] sm:$0xff] %vm3040_vm3, %v3018_v59  ;;  %v3087_v18 = vadd.f32 %v3086_v51, %v3085_v41  ;;  %v3019_v30 = vadd.f32 %v3988_v60, %v4912_v25  ;;  %v3188_v31 = vadd.f32 %v3187_v52, %v3186_v4  ;;  %v3154_v9 = vmul.f32 %v3018_v59, %v3018_v59 }
 0x1f6   : > { %3049 = vst.msk [vmem:[%s4919_s28 + $0x40] sm:$0xff] %vm3040_vm3, %v3016_v14  ;;  %v3088_v53 = vsel %vm3040_vm3, %v3016_v14, 0.0  ;;  %v3152_v37 = vmul.f32 %v3016_v14, %v3016_v14  ;;  %v3017_v47 = vadd.f32 %v3989_v15, %v4912_v25  ;;  %v3092_v13 = vsel %vm3040_vm3, %v3018_v59, 0.0 }
 0x1f7   : > { %v3089_v55 = vadd.f32 %v3088_v53, %v3087_v18  ;;  %3052 = vst.msk [vmem:[%s4919_s28 + $0x58] sm:$0xff] %vm3040_vm3, %v3019_v30  ;;  %v3190_v62 = vadd.f32 %v3189_v54, %v3188_v31  ;;  %v3155_v8 = vmul.f32 %v3019_v30, %v3019_v30 }
 0x1f8   : > { %v3191_v56 = vsel %vm3040_vm3, %v3152_v37, 0.0  ;;  %3050 = vst.msk [vmem:[%s4919_s28 + $0x48] sm:$0xff] %vm3040_vm3, %v3017_v47  ;;  %v3090_v57 = vsel %vm3040_vm3, %v3017_v47, 0.0  ;;  %v3153_v58 = vmul.f32 %v3017_v47, %v3017_v47  ;;  %v3958_v6 = vpop.f32.mrb[12].mxu0 }
 0x1f9   : > { %v3091_v10 = vadd.f32 %v3090_v57, %v3089_v55  ;;  %v3990_v11 = vadd.f32 %v3958_v6, %v4901_v2  ;;  %v2890_v12 = vpop.f32.mrb[13].mxu0  ;;  %v3192_v27 = vadd.f32 %v3191_v56, %v3190_v62  ;;  %v3094_v2 = vsel %vm3040_vm3, %v3019_v30, 0.0 }
 0x1fa   : > { %v3193_v28 = vsel %vm3040_vm3, %v3153_v58, 0.0  ;;  %v3991_v29 = vadd.f32 %v2890_v12, %v4903_v5  ;;  %v3959_v44 = vpop.f32.mrb[14].mxu0  ;;  %v3195_v5 = vsel %vm3040_vm3, %v3154_v9, 0.0  ;;  %v3197_v0 = vsel %vm3040_vm3, %v3155_v8, 0.0 }
 0x1fb   : > { %v3093_v26 = vadd.f32 %v3092_v13, %v3091_v10  ;;  %v3022_v32 = vadd.f32 %v3990_v11, %v4912_v25  ;;  %v3992_v1 = vadd.f32 %v3959_v44, %v4905_v16  ;;  %v2893_v45 = vpop.f32.mrb[15].mxu0  ;;  %v3194_v46 = vadd.f32 %v3193_v28, %v3192_v27 }
 0x1fc   : > { %v3020_v24 = vadd.f32 %v3991_v29, %v4912_v25  ;;  %v3993_v3 = vadd.f32 %v2893_v45, %v4907_v17 }
 0x1fd   : > { %3055 = vst.msk [vmem:[%s4919_s28 + $0x70] sm:$0xff] %vm3040_vm3, %v3022_v32  ;;  %v3095_v40 = vadd.f32 %v3094_v2, %v3093_v26  ;;  %v3023_v42 = vadd.f32 %v3992_v1, %v4912_v25  ;;  %v3196_v49 = vadd.f32 %v3195_v5, %v3194_v46  ;;  %v3158_v35 = vmul.f32 %v3022_v32, %v3022_v32 }
 0x1fe   : > { %3053 = vst.msk [vmem:[%s4919_s28 + $0x60] sm:$0xff] %vm3040_vm3, %v3020_v24  ;;  %v3096_v16 = vsel %vm3040_vm3, %v3020_v24, 0.0  ;;  %v3156_v50 = vmul.f32 %v3020_v24, %v3020_v24  ;;  %v3021_v63 = vadd.f32 %v3993_v3, %v4912_v25  ;;  %v3100_v39 = vsel %vm3040_vm3, %v3022_v32, 0.0 }
 0x1ff   : > { %v3097_v7 = vadd.f32 %v3096_v16, %v3095_v40  ;;  %3056 = vst.msk [vmem:[%s4919_s28 + $0x78] sm:$0xff] %vm3040_vm3, %v3023_v42  ;;  %v3826_v17 = vpop.f32.mrb[16].mxu1  ;;  %v3198_v19 = vadd.f32 %v3197_v0, %v3196_v49  ;;  %v3159_v51 = vmul.f32 %v3023_v42, %v3023_v42  ;;  %v3102_v18 = vsel %vm3040_vm3, %v3023_v42, 0.0 }
 0x200   : > { %v3199_v20 = vsel %vm3040_vm3, %v3156_v50, 0.0  ;;  %3054 = vst.msk [vmem:[%s4919_s28 + $0x68] sm:$0xff] %vm3040_vm3, %v3021_v63  ;;  %v3098_v21 = vsel %vm3040_vm3, %v3021_v63, 0.0  ;;  %v3157_v22 = vmul.f32 %v3021_v63, %v3021_v63  ;;  %v1729_v33 = vpop.f32.mrb[17].mxu1  ;;  %v3962_v34 = vpop.f32.mrb[16].mxu0  ;;  %v3203_v37 = vsel %vm3040_vm3, %v3158_v35, 0.0 }
 0x201   : > { %v3099_v36 = vadd.f32 %v3098_v21, %v3097_v7  ;;  %v3994_v48 = vadd.f32 %v3962_v34, %v3826_v17  ;;  %v3827_v23 = vpop.f32.mrb[18].mxu1  ;;  %v2906_v38 = vpop.f32.mrb[17].mxu0  ;;  %v3200_v41 = vadd.f32 %v3199_v20, %v3198_v19  ;;  %v3205_v58 = vsel %vm3040_vm3, %v3159_v51, 0.0 }
 0x202   : > { %v3201_v43 = vsel %vm3040_vm3, %v3157_v22, 0.0  ;;  %v3995_v59 = vadd.f32 %v2906_v38, %v1729_v33  ;;  %v1732_v60 = vpop.f32.mrb[19].mxu1  ;;  %v3963_v61 = vpop.f32.mrb[18].mxu0 }
 0x203   : > { %v3101_v4 = vadd.f32 %v3100_v39, %v3099_v36  ;;  %v3026_v14 = vadd.f32 %v3994_v48, %v4912_v25  ;;  %v3996_v15 = vadd.f32 %v3963_v61, %v3827_v23  ;;  %v2909_v52 = vpop.f32.mrb[19].mxu0  ;;  %v3202_v30 = vadd.f32 %v3201_v43, %v3200_v41 }
 0x204   : > { %v3024_v31 = vadd.f32 %v3995_v59, %v4912_v25  ;;  %v3997_v53 = vadd.f32 %v2909_v52, %v1732_v60 }
 0x205   : > { %3059 = vst.msk [vmem:[%s4919_s28 + $0x90] sm:$0xff] %vm3040_vm3, %v3026_v14  ;;  %v3103_v47 = vadd.f32 %v3102_v18, %v3101_v4  ;;  %v3027_v54 = vadd.f32 %v3996_v15, %v4912_v25  ;;  %v3204_v55 = vadd.f32 %v3203_v37, %v3202_v30  ;;  %v3162_v29 = vmul.f32 %v3026_v14, %v3026_v14 }
 0x206   : > { %3057 = vst.msk [vmem:[%s4919_s28 + $0x80] sm:$0xff] %vm3040_vm3, %v3024_v31  ;;  %v3104_v62 = vsel %vm3040_vm3, %v3024_v31, 0.0  ;;  %v3160_v56 = vmul.f32 %v3024_v31, %v3024_v31  ;;  %v3025_v57 = vadd.f32 %v3997_v53, %v4912_v25  ;;  %v3108_v1 = vsel %vm3040_vm3, %v3026_v14, 0.0 }
 0x207   : > { %v3105_v6 = vadd.f32 %v3104_v62, %v3103_v47  ;;  %3060 = vst.msk [vmem:[%s4919_s28 + $0x98] sm:$0xff] %vm3040_vm3, %v3027_v54  ;;  %v3830_v9 = vpop.f32.mrb[20].mxu1  ;;  %v3206_v10 = vadd.f32 %v3205_v58, %v3204_v55  ;;  %v3163_v5 = vmul.f32 %v3027_v54, %v3027_v54  ;;  %v3110_v50 = vsel %vm3040_vm3, %v3027_v54, 0.0 }
 0x208   : > { %v3207_v11 = vsel %vm3040_vm3, %v3160_v56, 0.0  ;;  %3058 = vst.msk [vmem:[%s4919_s28 + $0x88] sm:$0xff] %vm3040_vm3, %v3025_v57  ;;  %v3106_v12 = vsel %vm3040_vm3, %v3025_v57, 0.0  ;;  %v3161_v13 = vmul.f32 %v3025_v57, %v3025_v57  ;;  %v1745_v27 = vpop.f32.mrb[21].mxu1  ;;  %v3966_v28 = vpop.f32.mrb[20].mxu0  ;;  %v3211_v17 = vsel %vm3040_vm3, %v3162_v29, 0.0 }
 0x209   : > { %v3107_v44 = vadd.f32 %v3106_v12, %v3105_v6  ;;  %v3998_v8 = vadd.f32 %v3966_v28, %v3830_v9  ;;  %v3831_v26 = vpop.f32.mrb[22].mxu1  ;;  %v2922_v32 = vpop.f32.mrb[21].mxu0  ;;  %v3208_v45 = vadd.f32 %v3207_v11, %v3206_v10  ;;  %v3213_v35 = vsel %vm3040_vm3, %v3163_v5, 0.0 }
 0x20a   : > { %v3209_v2 = vsel %vm3040_vm3, %v3161_v13, 0.0  ;;  %v3999_v46 = vadd.f32 %v2922_v32, %v1745_v27  ;;  %v1748_v24 = vpop.f32.mrb[23].mxu1  ;;  %v3967_v3 = vpop.f32.mrb[22].mxu0 }
 0x20b   : > { %v3109_v40 = vadd.f32 %v3108_v1, %v3107_v44  ;;  %v3030_v42 = vadd.f32 %v3998_v8, %v4912_v25  ;;  %v4000_v49 = vadd.f32 %v3967_v3, %v3831_v26  ;;  %v2925_v16 = vpop.f32.mrb[23].mxu0  ;;  %v3210_v63 = vadd.f32 %v3209_v2, %v3208_v45 }
 0x20c   : > { %v3028_v0 = vadd.f32 %v3999_v46, %v4912_v25  ;;  %v4001_v7 = vadd.f32 %v2925_v16, %v1748_v24 }
 0x20d   : > { %3063 = vst.msk [vmem:[%s4919_s28 + $0xb0] sm:$0xff] %vm3040_vm3, %v3030_v42  ;;  %v3111_v19 = vadd.f32 %v3110_v50, %v3109_v40  ;;  %v3031_v20 = vadd.f32 %v4000_v49, %v4912_v25  ;;  %v3212_v21 = vadd.f32 %v3211_v17, %v3210_v63  ;;  %v3166_v60 = vmul.f32 %v3030_v42, %v3030_v42 }
 0x20e   : > { %3061 = vst.msk [vmem:[%s4919_s28 + $0xa0] sm:$0xff] %vm3040_vm3, %v3028_v0  ;;  %v3112_v22 = vsel %vm3040_vm3, %v3028_v0, 0.0  ;;  %v3164_v33 = vmul.f32 %v3028_v0, %v3028_v0  ;;  %v3029_v34 = vadd.f32 %v4001_v7, %v4912_v25  ;;  %v3116_v15 = vsel %vm3040_vm3, %v3030_v42, 0.0 }
 0x20f   : > { %v3113_v36 = vadd.f32 %v3112_v22, %v3111_v19  ;;  %3064 = vst.msk [vmem:[%s4919_s28 + $0xb8] sm:$0xff] %vm3040_vm3, %v3031_v20  ;;  %v3834_v48 = vpop.f32.mrb[24].mxu1  ;;  %v3214_v23 = vadd.f32 %v3213_v35, %v3212_v21  ;;  %v3167_v37 = vmul.f32 %v3031_v20, %v3031_v20  ;;  %v3118_v56 = vsel %vm3040_vm3, %v3031_v20, 0.0 }
 0x210   : > { %v3215_v38 = vsel %vm3040_vm3, %v3164_v33, 0.0  ;;  %3062 = vst.msk [vmem:[%s4919_s28 + $0xa8] sm:$0xff] %vm3040_vm3, %v3029_v34  ;;  %v3114_v39 = vsel %vm3040_vm3, %v3029_v34, 0.0  ;;  %v3165_v41 = vmul.f32 %v3029_v34, %v3029_v34  ;;  %v1761_v43 = vpop.f32.mrb[25].mxu1  ;;  %v3970_v59 = vpop.f32.mrb[24].mxu0  ;;  %v3219_v9 = vsel %vm3040_vm3, %v3166_v60, 0.0 }
 0x211   : > { %v3115_v61 = vadd.f32 %v3114_v39, %v3113_v36  ;;  %v4002_v51 = vadd.f32 %v3970_v59, %v3834_v48  ;;  %v3835_v4 = vpop.f32.mrb[26].mxu1  ;;  %v2938_v14 = vpop.f32.mrb[25].mxu0  ;;  %v3216_v52 = vadd.f32 %v3215_v38, %v3214_v23  ;;  %v3221_v29 = vsel %vm3040_vm3, %v3167_v37, 0.0 }
 0x212   : > { %v3217_v18 = vsel %vm3040_vm3, %v3165_v41, 0.0  ;;  %v4003_v30 = vadd.f32 %v2938_v14, %v1761_v43  ;;  %v1764_v31 = vpop.f32.mrb[27].mxu1  ;;  %v3971_v53 = vpop.f32.mrb[26].mxu0 }
 0x213   : > { %v3117_v47 = vadd.f32 %v3116_v15, %v3115_v61  ;;  %v3034_v54 = vadd.f32 %v4002_v51, %v4912_v25  ;;  %v4004_v55 = vadd.f32 %v3971_v53, %v3835_v4  ;;  %v2941_v62 = vpop.f32.mrb[27].mxu0  ;;  %v3218_v57 = vadd.f32 %v3217_v18, %v3216_v52 }
 0x214   : > { %v3032_v58 = vadd.f32 %v4003_v30, %v4912_v25  ;;  %v4005_v6 = vadd.f32 %v2941_v62, %v1764_v31 }
 0x215   : > { %3067 = vst.msk [vmem:[%s4919_s28 + $0xd0] sm:$0xff] %vm3040_vm3, %v3034_v54  ;;  %v3119_v10 = vadd.f32 %v3118_v56, %v3117_v47  ;;  %v3035_v11 = vadd.f32 %v4004_v55, %v4912_v25  ;;  %v3220_v12 = vadd.f32 %v3219_v9, %v3218_v57  ;;  %v3170_v24 = vmul.f32 %v3034_v54, %v3034_v54 }
 0x216   : > { %3065 = vst.msk [vmem:[%s4919_s28 + $0xc0] sm:$0xff] %vm3040_vm3, %v3032_v58  ;;  %v3120_v13 = vsel %vm3040_vm3, %v3032_v58, 0.0  ;;  %v3168_v27 = vmul.f32 %v3032_v58, %v3032_v58  ;;  %v3033_v28 = vadd.f32 %v4005_v6, %v4912_v25  ;;  %v3124_v49 = vsel %vm3040_vm3, %v3034_v54, 0.0 }
 0x217   : > { %v3121_v44 = vadd.f32 %v3120_v13, %v3119_v10  ;;  %3068 = vst.msk [vmem:[%s4919_s28 + $0xd8] sm:$0xff] %vm3040_vm3, %v3035_v11  ;;  %v3838_v8 = vpop.f32.mrb[28].mxu1  ;;  %v3222_v26 = vadd.f32 %v3221_v29, %v3220_v12  ;;  %v3171_v17 = vmul.f32 %v3035_v11, %v3035_v11  ;;  %v3126_v33 = vsel %vm3040_vm3, %v3035_v11, 0.0 }
 0x218   : > { %v3223_v32 = vsel %vm3040_vm3, %v3168_v27, 0.0  ;;  %3066 = vst.msk [vmem:[%s4919_s28 + $0xc8] sm:$0xff] %vm3040_vm3, %v3033_v28  ;;  %v3122_v1 = vsel %vm3040_vm3, %v3033_v28, 0.0  ;;  %v3169_v45 = vmul.f32 %v3033_v28, %v3033_v28  ;;  %v1777_v2 = vpop.f32.mrb[29].mxu1  ;;  %v3974_v46 = vpop.f32.mrb[28].mxu0  ;;  %v3227_v48 = vsel %vm3040_vm3, %v3170_v24, 0.0 }
 0x219   : > { %v3123_v3 = vadd.f32 %v3122_v1, %v3121_v44  ;;  %v4006_v5 = vadd.f32 %v3974_v46, %v3838_v8  ;;  %v3839_v40 = vpop.f32.mrb[30].mxu1  ;;  %v2954_v42 = vpop.f32.mrb[29].mxu0  ;;  %v3224_v16 = vadd.f32 %v3223_v32, %v3222_v26  ;;  %v3229_v61 = vsel %vm3040_vm3, %v3171_v17, 0.0 }
 0x21a   : > { %v3225_v50 = vsel %vm3040_vm3, %v3169_v45, 0.0  ;;  %v4007_v63 = vadd.f32 %v2954_v42, %v1777_v2  ;;  %v1780_v0 = vpop.f32.mrb[31].mxu1  ;;  %v3975_v7 = vpop.f32.mrb[30].mxu0 }
 0x21b   : > { %v3125_v19 = vadd.f32 %v3124_v49, %v3123_v3  ;;  %v3038_v20 = vadd.f32 %v4006_v5, %v4912_v25  ;;  %v4008_v21 = vadd.f32 %v3975_v7, %v3839_v40  ;;  %v2957_v22 = vpop.f32.mrb[31].mxu0  ;;  %v3226_v34 = vadd.f32 %v3225_v50, %v3224_v16 }
 0x21c   : > { %v3036_v35 = vadd.f32 %v4007_v63, %v4912_v25  ;;  %v4009_v36 = vadd.f32 %v2957_v22, %v1780_v0 }
 0x21d   : > { %3071 = vst.msk [vmem:[%s4919_s28 + $0xf0] sm:$0xff] %vm3040_vm3, %v3038_v20  ;;  %v3174_v23 = vmul.f32 %v3038_v20, %v3038_v20  ;;  %v3127_v38 = vadd.f32 %v3126_v33, %v3125_v19  ;;  %v3039_v39 = vadd.f32 %v4008_v21, %v4912_v25  ;;  %v3228_v41 = vadd.f32 %v3227_v48, %v3226_v34 }
 0x21e   : > { %3069 = vst.msk [vmem:[%s4919_s28 + $0xe0] sm:$0xff] %vm3040_vm3, %v3036_v35  ;;  %v3128_v43 = vsel %vm3040_vm3, %v3036_v35, 0.0  ;;  %v3172_v59 = vmul.f32 %v3036_v35, %v3036_v35  ;;  %v3037_v60 = vadd.f32 %v4009_v36, %v4912_v25  ;;  %v3132_v25 = vsel %vm3040_vm3, %v3038_v20, 0.0 }
 0x21f   : > { %v3235_v51 = vsel %vm3040_vm3, %v3174_v23, 0.0  ;;  %v3129_v4 = vadd.f32 %v3128_v43, %v3127_v38  ;;  %3072 = vst.msk [vmem:[%s4919_s28 + $0xf8] sm:$0xff] %vm3040_vm3, %v3039_v39  ;;  %v3175_v14 = vmul.f32 %v3039_v39, %v3039_v39  ;;  %v3230_v15 = vadd.f32 %v3229_v61, %v3228_v41 }
 0x220   : > { %v3231_v52 = vsel %vm3040_vm3, %v3172_v59, 0.0  ;;  %3070 = vst.msk [vmem:[%s4919_s28 + $0xe8] sm:$0xff] %vm3040_vm3, %v3037_v60  ;;  %v3130_v18 = vsel %vm3040_vm3, %v3037_v60, 0.0  ;;  %v3173_v30 = vmul.f32 %v3037_v60, %v3037_v60  ;;  %v3134_v55 = vsel %vm3040_vm3, %v3039_v39, 0.0 }
 0x221   : > { %v3237_v31 = vsel %vm3040_vm3, %v3175_v14, 0.0  ;;  %v3131_v53 = vadd.f32 %v3130_v18, %v3129_v4  ;;  %v3232_v37 = vadd.f32 %v3231_v52, %v3230_v15 }
 0x222   : > { %v3233_v47 = vsel %vm3040_vm3, %v3173_v30, 0.0 }
 0x223   : > { %v3133_v54 = vadd.f32 %v3132_v25, %v3131_v53  ;;  %v3234_v62 = vadd.f32 %v3233_v47, %v3232_v37 }
 0x225   : > { %v3135_v56 = vadd.f32 %v3134_v55, %v3133_v54  ;;  %v3236_v57 = vadd.f32 %v3235_v51, %v3234_v62 }
 0x227   : > { %v3136_v58 = vrot.slane %v3135_v56, 4  ;;  %v3238_v6 = vadd.f32 %v3237_v31, %v3236_v57 }
 0x229   : > { %v3137_v9 = vadd.f32 %v3136_v58, %v3135_v56  ;;  %v3239_v10 = vrot.slane %v3238_v6, 4 }
 0x22b   : > { %v3138_v11 = vrot.slane %v3137_v9, 2  ;;  %v3240_v12 = vadd.f32 %v3239_v10, %v3238_v6 }
 0x22d   : > { %v3139_v13 = vadd.f32 %v3138_v11, %v3137_v9  ;;  %v3241_v27 = vrot.slane %v3240_v12, 2 }
 0x22f   : > { %v3140_v28 = vrot.slane %v3139_v13, 1  ;;  %v3242_v29 = vadd.f32 %v3241_v27, %v3240_v12 }
 0x231   : > { %v3141_v44 = vadd.f32 %v3140_v28, %v3139_v13  ;;  %v3243_v8 = vrot.slane %v3242_v29, 1 }
 0x233   : > { %3143 = vst.msk [vmem:[%s292_s8] sm:$0x1] %vm3142_vm4, %v3141_v44  ;;  %v3244_v26 = vadd.f32 %v3243_v8, %v3242_v29 }
 0x235   : > { %3245 = vst.msk [vmem:[%s295_s11] sm:$0x1] %vm3142_vm4, %v3244_v26 }
 0x236 PF: > { %s18_s24 = sadd.s32 1, %s4259_s24  }
 0x237   : > { %p15_p4 = scmp.ge.s32.totalorder %s18_s24, 4  }
 0x239   :  { %17 = sbr.rel (!%p15_p4) target bundleno = 1 (0x1), region = 104 }

// kernel: parts_forward.6
= control target key start
LH: loop header
LB: loop body
LE: loop exit
PB: predicated region body
PF: predicated region fallthrough
CT: control target
= control target key end

     0   :  { %s4873_s24 = smov 0   ;;  %s5785_s0 = inlined_call_operand.vmem [shape: f32[2,16,16,64], index: 0, kind: input, shape index: {}]   ;;  %s5786_s1 = inlined_call_operand.vmem [shape: f32[1,64], index: 1, kind: input, shape index: {}]   ;;  %s5787_s2 = inlined_call_operand.vmem [shape: f32[1,64], index: 2, kind: input, shape index: {}]   ;;  %s5788_s3 = inlined_call_operand.vmem [shape: bf16[9,64,64], index: 3, kind: input, shape index: {}]   ;;  %s5789_s4 = inlined_call_operand.vmem [shape: f32[1,64], index: 4, kind: input, shape index: {}]   ;;  %s5790_s5 = inlined_call_operand.vmem [shape: f32[2,16,16,64], index: 5, kind: output, shape index: {0}]   ;;  %s5791_s6 = inlined_call_operand.vmem [shape: f32[2,1,64], index: 6, kind: output, shape index: {1}]   ;;  %s5792_s7 = inlined_call_operand.vmem [shape: f32[2,1,64], index: 7, kind: output, shape index: {2}]  }
   0x1 LB: > { %s3711_s25 = sadd.s32 4294967295, %s4830_s24   ;;  %p3715_p0 = scmp.ge.s32.totalorder %s4830_s24, 1  ;;  %s4830_s24 = sphi %s4873_s24, %s18_s24  }
   0x2   : > { %p242_p1 = scmp.lt.s32.totalorder %s4830_s24, 3 }
   0x4   : > { %p243_p2 = pnand %p3715_p0, %p242_p1 }
   0x5   : > { %v4784_v0 = vld [vmem:[%s5788_s3 + $0x20] sm:$0xff] (!%p243_p2)   ;;  %vm439_vm0 = vcmask (!%p243_p2), 523264   ;;  %v4890_v2 = vld [vmem:[%s5788_s3 + $0x28] sm:$0xff] (!%p243_p2)   ;;  %v4832_v3 = vmov (!%p243_p2), 0.0   ;;  %vm442_vm1 = vcmask (!%p243_p2), 517120   ;;  %p280_p3 = scmp.lt.s32.totalorder (!%p243_p2), %s3711_s25, 1 }
   0x6   : > { %246 = sbr.rel (%p243_p2) target bundleno = 566 (0x236), region = 40  ;;  %v4785_v1 = vld [vmem:[%s5788_s3 + $0x80] sm:$0xff] (!%p243_p2)   ;;  %4151 = vmatprep.subr.bf16.mxu1 (!%p243_p2), %v4784_v0  ;;  %440 = vst.msk [vmem:[#allocation2] sm:$0xff] (!%p243_p2), %vm439_vm0, %v4832_v3  ;;  %441 = vst.msk [vmem:[#allocation2 + $0x8] sm:$0xff] (!%p243_p2), %vm439_vm0, %v4832_v3  ;;  %v4787_v4 = vld [vmem:[%s5788_s3 + $0x88] sm:$0xff] (!%p243_p2)   ;;  %vm3502_vm2 = vcmask (!%p243_p2), 516096  }
   0x7   : > { %444 = vst.msk [vmem:[#allocation2 + $0x18] sm:$0xff] (!%p243_p2), %vm439_vm0, %v4832_v3  ;;  %445 = vst.msk [vmem:[#allocation2 + $0x20] sm:$0xff] (!%p243_p2), %vm439_vm0, %v4832_v3  ;;  %4311 = vmatprep.subr.bf16.mxu0 (!%p243_p2), %v4785_v1  ;;  %4152 = vmatpush3.bf16.msra.mxu1 (!%p243_p2), %v4784_v0  ;;  %v4788_v5 = vld [vmem:[%s5788_s3 + $0x30] sm:$0xff] (!%p243_p2)   ;;  %v4790_v7 = vld [vmem:[%s5788_s3 + $0x38] sm:$0xff] (!%p243_p2)  }
   0x8   : > { %447 = vst.msk [vmem:[#allocation2 + $0x30] sm:$0xff] (!%p243_p2), %vm439_vm0, %v4832_v3  ;;  %448 = vst.msk [vmem:[#allocation2 + $0x38] sm:$0xff] (!%p243_p2), %vm439_vm0, %v4832_v3  ;;  %4312 = vmatpush3.bf16.msra.mxu0 (!%p243_p2), %v4785_v1  ;;  %4153 = vmatprep.subr.bf16.mxu1 (!%p243_p2), %v4890_v2  ;;  %v4789_v6 = vld [vmem:[%s5788_s3 + $0x90] sm:$0xff] (!%p243_p2)   ;;  %v4791_v8 = vld [vmem:[%s5788_s3 + $0x98] sm:$0xff] (!%p243_p2)  }
   0x9   : > { %450 = vst.msk [vmem:[#allocation2 + $0x48] sm:$0xff] (!%p243_p2), %vm439_vm0, %v4832_v3  ;;  %451 = vst.msk [vmem:[#allocation2 + $0x50] sm:$0xff] (!%p243_p2), %vm439_vm0, %v4832_v3  ;;  %4313 = vmatprep.subr.bf16.mxu0 (!%p243_p2), %v4787_v4  ;;  %v4980_v9 = vld [vmem:[%s5786_s1] ss:$0 sm:$0xff] (!%p243_p2) }
   0xa   : > { %453 = vst.msk [vmem:[#allocation2 + $0x60] sm:$0xff] (!%p243_p2), %vm439_vm0, %v4832_v3  ;;  %454 = vst.msk [vmem:[#allocation2 + $0x68] sm:$0xff] (!%p243_p2), %vm439_vm0, %v4832_v3  ;;  %v4985_v10 = vld [vmem:[%s5787_s2] ss:$0 sm:$0xff] (!%p243_p2) }
   0xb   : > { %456 = vst.msk [vmem:[#allocation2 + $0x78] sm:$0xff] (!%p243_p2), %vm439_vm0, %v4832_v3  ;;  %457 = vst.msk [vmem:[#allocation2 + $0x80] sm:$0xff] (!%p243_p2), %vm439_vm0, %v4832_v3  ;;  %4154 = vmatpush3.bf16.msra.mxu1 (!%p243_p2), %v4890_v2  ;;  %v4994_v17 = vld [vmem:[%s5788_s3] sm:$0xff] (!%p243_p2)  }
   0xc   : > { %459 = vst.msk [vmem:[#allocation2 + $0x90] sm:$0xff] (!%p243_p2), %vm439_vm0, %v4832_v3  ;;  %460 = vst.msk [vmem:[#allocation2 + $0x98] sm:$0xff] (!%p243_p2), %vm439_vm0, %v4832_v3  ;;  %4314 = vmatpush3.bf16.msra.mxu0 (!%p243_p2), %v4787_v4  ;;  %4155 = vmatprep.subr.bf16.mxu1 (!%p243_p2), %v4788_v5  ;;  %v4999_v19 = vld [vmem:[%s5788_s3 + $0xa0] sm:$0xff] (!%p243_p2)  }
   0xd   : > { %462 = vst.msk [vmem:[#allocation2 + $0xa8] sm:$0xff] %vm439_vm0, %v4832_v3  ;;  %463 = vst.msk [vmem:[#allocation2 + $0xb0] sm:$0xff] %vm439_vm0, %v4832_v3  ;;  %s5794_s25 = smov (!%p280_p3, %s3711_s25), 1  ;;  %4315 = vmatprep.subr.bf16.mxu0 %v4789_v6  ;;  %v584_v11 = vld [vmem:[#allocation2 + $0x1] sm:$0xff] }
   0xe   : > { %465 = vst.msk [vmem:[#allocation2 + $0xc0] sm:$0xff] %vm439_vm0, %v4832_v3  ;;  %466 = vst.msk [vmem:[#allocation2 + $0xc8] sm:$0xff] %vm439_vm0, %v4832_v3  ;;  %s3969_s19 = sshll.u32 %s5794_s25, 8  ;;  %s292_s16 = scalar_lea.vmem %s5791_s6, %s5794_s25 }
   0xf   : > { %468 = vst.msk [vmem:[#allocation2 + $0xd8] sm:$0xff] %vm439_vm0, %v4832_v3  ;;  %469 = vst.msk [vmem:[#allocation2 + $0xe0] sm:$0xff] %vm439_vm0, %v4832_v3  ;;  %s4975_s22 = scalar_lea.vmem %s5785_s0, %s3969_s19  ;;  %4156 = vmatpush3.bf16.msra.mxu1 %v4788_v5  ;;  %s5604_s14 = scalar_lea.vmem %s5790_s5, %s3969_s19 }
  0x10   : > { %471 = vst.msk [vmem:[#allocation2 + $0xf0] sm:$0xff] %vm439_vm0, %v4832_v3  ;;  %472 = vst.msk [vmem:[#allocation2 + $0xf8] sm:$0xff] %vm439_vm0, %v4832_v3  ;;  %v297_v12 = vld [vmem:[%s4975_s22] sm:$0xff]  ;;  %v298_v13 = vld [vmem:[%s4975_s22 + $0x8] sm:$0xff]  ;;  %4316 = vmatpush3.bf16.msra.mxu0 %v4789_v6  ;;  %4157 = vmatprep.subr.bf16.mxu1 %v4790_v7  ;;  %s295_s20 = scalar_lea.vmem %s5792_s7, %s5794_s25 }
  0x11   : > { %474 = vst.msk [vmem:[#allocation2 + $0x108] sm:$0xff] %vm439_vm0, %v4832_v3  ;;  %475 = vst.msk [vmem:[#allocation2 + $0x110] sm:$0xff] %vm439_vm0, %v4832_v3  ;;  %v336_v15 = vmul.f32 %v4980_v9, %v297_v12  ;;  %v337_v16 = vmul.f32 %v4980_v9, %v298_v13  ;;  %v299_v22 = vld [vmem:[%s4975_s22 + $0x10] sm:$0xff]  ;;  %v300_v23 = vld [vmem:[%s4975_s22 + $0x18] sm:$0xff]  ;;  %4317 = vmatprep.subr.bf16.mxu0 %v4791_v8 }
  0x12   : > { %477 = vst.msk [vmem:[#allocation2 + $0x120] sm:$0xff] %vm439_vm0, %v4832_v3  ;;  %478 = vst.msk [vmem:[#allocation2 + $0x128] sm:$0xff] %vm439_vm0, %v4832_v3  ;;  %v301_v24 = vld [vmem:[%s4975_s22 + $0x20] sm:$0xff]  ;;  %v338_v25 = vmul.f32 %v4980_v9, %v299_v22  ;;  %v339_v26 = vmul.f32 %v4980_v9, %v300_v23  ;;  %v302_v27 = vld [vmem:[%s4975_s22 + $0x28] sm:$0xff] }
  0x13   : > { %480 = vst.msk [vmem:[#allocation2 + $0x138] sm:$0xff] %vm439_vm0, %v4832_v3  ;;  %481 = vst.msk [vmem:[#allocation2 + $0x140] sm:$0xff] %vm439_vm0, %v4832_v3  ;;  %v375_v20 = vadd.f32 %v4985_v10, %v336_v15  ;;  %v376_v21 = vadd.f32 %v4985_v10, %v337_v16  ;;  %v340_v28 = vmul.f32 %v4980_v9, %v301_v24  ;;  %v303_v32 = vld [vmem:[%s4975_s22 + $0x30] sm:$0xff]  ;;  %v304_v33 = vld [vmem:[%s4975_s22 + $0x38] sm:$0xff]  ;;  %4158 = vmatpush3.bf16.msra.mxu1 %v4790_v7 }
  0x14   : > { %483 = vst.msk [vmem:[#allocation2 + $0x150] sm:$0xff] %vm439_vm0, %v4832_v3  ;;  %484 = vst.msk [vmem:[#allocation2 + $0x158] sm:$0xff] %vm439_vm0, %v4832_v3  ;;  %v341_v31 = vmul.f32 %v4980_v9, %v302_v27  ;;  %v377_v34 = vadd.f32 %v4985_v10, %v338_v25  ;;  %v378_v35 = vadd.f32 %v4985_v10, %v339_v26  ;;  %v305_v38 = vld [vmem:[%s4975_s22 + $0x40] sm:$0xff]  ;;  %v306_v39 = vld [vmem:[%s4975_s22 + $0x48] sm:$0xff]  ;;  %4318 = vmatpush3.bf16.msra.mxu0 %v4791_v8 }
  0x15   : > { %486 = vst.msk [vmem:[#allocation2 + $0x168] sm:$0xff] %vm439_vm0, %v4832_v3  ;;  %487 = vst.msk [vmem:[#allocation2 + $0x170] sm:$0xff] %vm439_vm0, %v4832_v3  ;;  %v407_v29 = vmax.f32 %v375_v20, 0.0  ;;  %v408_v30 = vmax.f32 %v376_v21, 0.0  ;;  %v379_v36 = vadd.f32 %v4985_v10, %v340_v28  ;;  %v342_v37 = vmul.f32 %v4980_v9, %v303_v32  ;;  %4191 = vmatprep.subr.bf16.mxu1 %v4994_v17  ;;  %v307_v51 = vld [vmem:[%s4975_s22 + $0x50] sm:$0xff]  ;;  %v308_v52 = vld [vmem:[%s4975_s22 + $0x58] sm:$0xff] }
  0x16   : > { %489 = vst.msk [vmem:[#allocation2 + $0x180] sm:$0xff] %vm439_vm0, %v4832_v3  ;;  %490 = vst.msk [vmem:[#allocation2 + $0x188] sm:$0xff] %vm439_vm0, %v4832_v3  ;;  %v380_v40 = vadd.f32 %v4985_v10, %v341_v31  ;;  %v343_v41 = vmul.f32 %v4980_v9, %v304_v33  ;;  %v344_v42 = vmul.f32 %v4980_v9, %v305_v38  ;;  %4351 = vmatprep.subr.bf16.mxu0 %v4999_v19  ;;  %v309_v53 = vld [vmem:[%s4975_s22 + $0x60] sm:$0xff]  ;;  %v310_v57 = vld [vmem:[%s4975_s22 + $0x68] sm:$0xff] }
  0x17   : > { %492 = vst.msk [vmem:[#allocation2 + $0x198] sm:$0xff] %vm439_vm0, %v4832_v3  ;;  %493 = vst.msk [vmem:[#allocation2 + $0x1a0] sm:$0xff] %vm439_vm0, %v4832_v3  ;;  %v409_v43 = vmax.f32 %v377_v34, 0.0  ;;  %v410_v44 = vmax.f32 %v378_v35, 0.0  ;;  %v411_v45 = vmax.f32 %v379_v36, 0.0  ;;  %v381_v46 = vadd.f32 %v4985_v10, %v342_v37  ;;  %v311_v63 = vld [vmem:[%s4975_s22 + $0x70] sm:$0xff] }
  0x18   : > { %443 = vst.msk [vmem:[#allocation2 + $0x10] sm:$0x3] %vm442_vm1, %v4832_v3  ;;  %446 = vst.msk [vmem:[#allocation2 + $0x28] sm:$0x3] %vm442_vm1, %v4832_v3  ;;  %v412_v47 = vmax.f32 %v380_v40, 0.0  ;;  %v382_v48 = vadd.f32 %v4985_v10, %v343_v41  ;;  %v345_v49 = vmul.f32 %v4980_v9, %v306_v39  ;;  %v383_v50 = vadd.f32 %v4985_v10, %v344_v42  ;;  %v312_v0 = vld [vmem:[%s4975_s22 + $0x78] sm:$0xff] }
  0x19   : > { %449 = vst.msk [vmem:[#allocation2 + $0x40] sm:$0x3] %vm442_vm1, %v4832_v3  ;;  %452 = vst.msk [vmem:[#allocation2 + $0x58] sm:$0x3] %vm442_vm1, %v4832_v3  ;;  %v413_v54 = vmax.f32 %v381_v46, 0.0  ;;  %v346_v55 = vmul.f32 %v4980_v9, %v307_v51  ;;  %v347_v56 = vmul.f32 %v4980_v9, %v308_v52  ;;  %v348_v58 = vmul.f32 %v4980_v9, %v309_v53  ;;  %v313_v5 = vld [vmem:[%s4975_s22 + $0x80] sm:$0xff] }
  0x1a   : > { %455 = vst.msk [vmem:[#allocation2 + $0x70] sm:$0x3] %vm442_vm1, %v4832_v3  ;;  %458 = vst.msk [vmem:[#allocation2 + $0x88] sm:$0x3] %vm442_vm1, %v4832_v3  ;;  %v414_v59 = vmax.f32 %v382_v48, 0.0  ;;  %v384_v60 = vadd.f32 %v4985_v10, %v345_v49  ;;  %v415_v61 = vmax.f32 %v383_v50, 0.0  ;;  %v349_v62 = vmul.f32 %v4980_v9, %v310_v57 }
  0x1b   : > { %461 = vst.msk [vmem:[#allocation2 + $0xa0] sm:$0x3] %vm442_vm1, %v4832_v3  ;;  %464 = vst.msk [vmem:[#allocation2 + $0xb8] sm:$0x3] %vm442_vm1, %v4832_v3  ;;  %v385_v1 = vadd.f32 %v4985_v10, %v346_v55  ;;  %v386_v2 = vadd.f32 %v4985_v10, %v347_v56  ;;  %v350_v4 = vmul.f32 %v4980_v9, %v311_v63  ;;  %v314_v6 = vld [vmem:[%s4975_s22 + $0x88] sm:$0xff]  ;;  %v315_v28 = vld [vmem:[%s4975_s22 + $0x90] sm:$0xff] }
  0x1c   : > { %467 = vst.msk [vmem:[#allocation2 + $0xd0] sm:$0x3] %vm442_vm1, %v4832_v3  ;;  %470 = vst.msk [vmem:[#allocation2 + $0xe8] sm:$0x3] %vm442_vm1, %v4832_v3  ;;  %v416_v7 = vmax.f32 %v384_v60, 0.0  ;;  %v388_v8 = vadd.f32 %v4985_v10, %v349_v62  ;;  %v352_v12 = vmul.f32 %v4980_v9, %v313_v5  ;;  %v4795_v22 = vld [vmem:[%s5788_s3 + $0x8] sm:$0xff]   ;;  %v353_v25 = vmul.f32 %v4980_v9, %v314_v6 }
  0x1d   : > { %473 = vst.msk [vmem:[#allocation2 + $0x100] sm:$0x3] %vm442_vm1, %v4832_v3  ;;  %476 = vst.msk [vmem:[#allocation2 + $0x118] sm:$0x3] %vm442_vm1, %v4832_v3  ;;  %v417_v15 = vmax.f32 %v385_v1, 0.0  ;;  %v418_v16 = vmax.f32 %v386_v2, 0.0  ;;  %v389_v20 = vadd.f32 %v4985_v10, %v350_v4  ;;  %v354_v36 = vmul.f32 %v4980_v9, %v315_v28 }
  0x1e   : > { %479 = vst.msk [vmem:[#allocation2 + $0x130] sm:$0x3] %vm442_vm1, %v4832_v3  ;;  %482 = vst.msk [vmem:[#allocation2 + $0x148] sm:$0x3] %vm442_vm1, %v4832_v3  ;;  %v420_v23 = vmax.f32 %v388_v8, 0.0  ;;  %v391_v27 = vadd.f32 %v4985_v10, %v352_v12  ;;  %v392_v35 = vadd.f32 %v4985_v10, %v353_v25  ;;  %v4794_v40 = vld [vmem:[%s5788_s3 + $0xa8] sm:$0xff]  }
  0x1f   : > { %485 = vst.msk [vmem:[#allocation2 + $0x160] sm:$0x3] %vm442_vm1, %v4832_v3  ;;  %488 = vst.msk [vmem:[#allocation2 + $0x178] sm:$0x3] %vm442_vm1, %v4832_v3  ;;  %v585_v14 = vld [vmem:[#allocation2 + $0x9] sm:$0xff]  ;;  %v421_v26 = vmax.f32 %v389_v20, 0.0 }
  0x20   : > { %491 = vst.msk [vmem:[#allocation2 + $0x190] sm:$0x3] %vm442_vm1, %v4832_v3  ;;  %494 = vst.msk [vmem:[#allocation2 + $0x1a8] sm:$0x3] %vm442_vm1, %v4832_v3  ;;  %v616_v18 = vpack.c.bf16 %v585_v14, %v584_v11  ;;  %v387_v3 = vadd.f32 %v4985_v10, %v348_v58  ;;  %v351_v11 = vmul.f32 %v4980_v9, %v312_v0  ;;  %v423_v41 = vmax.f32 %v391_v27, 0.0  ;;  %v318_v46 = vld [vmem:[%s4975_s22 + $0xa8] sm:$0xff] }
  0x21   : > { %496 = vst.msk [vmem:[#allocation2 + $0x19] sm:$0xff] %vm439_vm0, %v407_v29  ;;  %497 = vst.msk [vmem:[#allocation2 + $0x21] sm:$0xff] %vm439_vm0, %v408_v30  ;;  %v316_v29 = vld [vmem:[%s4975_s22 + $0x98] sm:$0xff]  ;;  %v317_v30 = vld [vmem:[%s4975_s22 + $0xa0] sm:$0xff]  ;;  %v357_v50 = vmul.f32 %v4980_v9, %v318_v46 }
  0x22   : > { %4159 = vmatprep.mubr.msk.bf16.mxu1 %vm439_vm0, %v616_v18  ;;  %498 = vst.msk [vmem:[#allocation2 + $0x31] sm:$0xff] %vm439_vm0, %v409_v43  ;;  %499 = vst.msk [vmem:[#allocation2 + $0x39] sm:$0xff] %vm439_vm0, %v410_v44  ;;  %v419_v18 = vmax.f32 %v387_v3, 0.0  ;;  %v390_v24 = vadd.f32 %v4985_v10, %v351_v11  ;;  %v355_v37 = vmul.f32 %v4980_v9, %v316_v29  ;;  %v424_v44 = vmax.f32 %v392_v35, 0.0  ;;  %v4796_v48 = vld [vmem:[%s5788_s3 + $0xb0] sm:$0xff]   ;;  %v320_v60 = vld [vmem:[%s4975_s22 + $0xb8] sm:$0xff] }
  0x23   : > { %500 = vst.msk [vmem:[#allocation2 + $0x49] sm:$0xff] %vm439_vm0, %v411_v45  ;;  %501 = vst.msk [vmem:[#allocation2 + $0x51] sm:$0xff] %vm439_vm0, %v412_v47  ;;  %v356_v42 = vmul.f32 %v4980_v9, %v317_v30  ;;  %v393_v45 = vadd.f32 %v4985_v10, %v354_v36  ;;  %v319_v55 = vld [vmem:[%s4975_s22 + $0xb0] sm:$0xff]  ;;  %v396_v58 = vadd.f32 %v4985_v10, %v357_v50  ;;  %v322_v2 = vld [vmem:[%s4975_s22 + $0xc8] sm:$0xff] }
  0x24   : > { %502 = vst.msk [vmem:[#allocation2 + $0x61] sm:$0xff] %vm439_vm0, %v413_v54  ;;  %503 = vst.msk [vmem:[#allocation2 + $0x69] sm:$0xff] %vm439_vm0, %v414_v59  ;;  %v422_v34 = vmax.f32 %v390_v24, 0.0  ;;  %v394_v49 = vadd.f32 %v4985_v10, %v355_v37  ;;  %v359_v62 = vmul.f32 %v4980_v9, %v320_v60  ;;  %v4800_v6 = vld [vmem:[%s5788_s3 + $0x18] sm:$0xff]   ;;  %v361_v8 = vmul.f32 %v4980_v9, %v322_v2  ;;  %v325_v28 = vld [vmem:[%s4975_s22 + $0xe0] sm:$0xff] }
  0x25   : > { %504 = vst.msk [vmem:[#allocation2 + $0x79] sm:$0xff] %vm439_vm0, %v415_v61  ;;  %505 = vst.msk [vmem:[#allocation2 + $0x81] sm:$0xff] %vm439_vm0, %v416_v7  ;;  %v395_v51 = vadd.f32 %v4985_v10, %v356_v42  ;;  %v425_v54 = vmax.f32 %v393_v45, 0.0  ;;  %v321_v61 = vld [vmem:[%s4975_s22 + $0xc0] sm:$0xff]  ;;  %v428_v1 = vmax.f32 %v396_v58, 0.0  ;;  %v4797_v7 = vld [vmem:[%s5788_s3 + $0xb8] sm:$0xff]   ;;  %v364_v30 = vmul.f32 %v4980_v9, %v325_v28 }
  0x26   : > { %506 = vst.msk [vmem:[#allocation2 + $0x91] sm:$0xff] %vm439_vm0, %v417_v15  ;;  %507 = vst.msk [vmem:[#allocation2 + $0x99] sm:$0xff] %vm439_vm0, %v418_v16  ;;  %v426_v57 = vmax.f32 %v394_v49, 0.0  ;;  %v360_v63 = vmul.f32 %v4980_v9, %v321_v61  ;;  %v398_v5 = vadd.f32 %v4985_v10, %v359_v62  ;;  %v5130_v16 = vld [vmem:[%s5788_s3 + $0xc0] sm:$0xff]   ;;  %v326_v29 = vld [vmem:[%s4975_s22 + $0xe8] sm:$0xff] }
  0x27   : > { %508 = vst.msk [vmem:[#allocation2 + $0xa9] sm:$0xff] %vm439_vm0, %v419_v18  ;;  %509 = vst.msk [vmem:[#allocation2 + $0xb1] sm:$0xff] %vm439_vm0, %v420_v23  ;;  %v427_v59 = vmax.f32 %v395_v51, 0.0  ;;  %v400_v18 = vadd.f32 %v4985_v10, %v361_v8  ;;  %v324_v23 = vld [vmem:[%s4975_s22 + $0xd8] sm:$0xff]  ;;  %v403_v36 = vadd.f32 %v4985_v10, %v364_v30  ;;  %v5158_v42 = vld [vmem:[%s5788_s3 + $0x40] sm:$0xff]  }
  0x28   : > { %v586_v13 = vld [vmem:[#allocation2 + $0x19] sm:$0xff]  ;;  %v587_v14 = vld [vmem:[#allocation2 + $0x21] sm:$0xff]  ;;  %510 = vst.msk [vmem:[#allocation2 + $0xc1] sm:$0xff] %vm439_vm0, %v421_v26  ;;  %511 = vst.msk [vmem:[#allocation2 + $0xc9] sm:$0xff] %vm439_vm0, %v422_v34  ;;  %v399_v11 = vadd.f32 %v4985_v10, %v360_v63  ;;  %v363_v27 = vmul.f32 %v4980_v9, %v324_v23 }
  0x29   : > { %v617_v21 = vpack.c.bf16 %v587_v14, %v586_v13  ;;  %v1753_v31 = vld [vmem:[#allocation2 + $0x31] sm:$0xff]  ;;  %v1754_v32 = vld [vmem:[#allocation2 + $0x39] sm:$0xff]  ;;  %512 = vst.msk [vmem:[#allocation2 + $0xd9] sm:$0xff] %vm439_vm0, %v423_v41  ;;  %513 = vst.msk [vmem:[#allocation2 + $0xe1] sm:$0xff] %vm439_vm0, %v424_v44  ;;  %v430_v13 = vmax.f32 %v398_v5, 0.0  ;;  %v432_v25 = vmax.f32 %v400_v18, 0.0 }
  0x2a   : > { %v590_v33 = vld [vmem:[#allocation2 + $0x49] sm:$0xff]  ;;  %v1784_v38 = vpack.c.bf16 %v1754_v32, %v1753_v31  ;;  %v591_v39 = vld [vmem:[#allocation2 + $0x51] sm:$0xff]  ;;  %514 = vst.msk [vmem:[#allocation2 + $0xf1] sm:$0xff] %vm439_vm0, %v425_v54  ;;  %515 = vst.msk [vmem:[#allocation2 + $0xf9] sm:$0xff] %vm439_vm0, %v426_v57  ;;  %v431_v20 = vmax.f32 %v399_v11, 0.0  ;;  %v365_v31 = vmul.f32 %v4980_v9, %v326_v29  ;;  %v402_v34 = vadd.f32 %v4985_v10, %v363_v27 }
  0x2b   : > { %4160 = vmatmul.mubr.msk.bf16.vlgmr.msra.gmra.mrb[0].mxu1 %vm439_vm0, %v617_v21  ;;  %4319 = vmatprep.mubr.msk.bf16.mxu0 %vm439_vm0, %v617_v21  ;;  %v619_v43 = vpack.c.bf16 %v591_v39, %v590_v33  ;;  %v1757_v47 = vld [vmem:[#allocation2 + $0x61] sm:$0xff]  ;;  %v1758_v52 = vld [vmem:[#allocation2 + $0x69] sm:$0xff]  ;;  %516 = vst.msk [vmem:[#allocation2 + $0x109] sm:$0xff] %vm439_vm0, %v427_v59  ;;  %517 = vst.msk [vmem:[#allocation2 + $0x111] sm:$0xff] %vm439_vm0, %v428_v1 }
  0x2c   : > { %4192 = vmatpush3.bf16.msra.mxu1 %v4994_v17  ;;  %v4798_v17 = vld [vmem:[%s5788_s3 + $0x10] sm:$0xff]   ;;  %4320 = vmatmul.mubr.msk.bf16.vlgmr.msra.gmra.mrb[0].mxu0 %vm439_vm0, %v1784_v38  ;;  %v594_v53 = vld [vmem:[#allocation2 + $0x79] sm:$0xff]  ;;  %v595_v56 = vld [vmem:[#allocation2 + $0x81] sm:$0xff]  ;;  %v1786_v0 = vpack.c.bf16 %v1758_v52, %v1757_v47  ;;  %519 = vst.msk [vmem:[#allocation2 + $0x129] sm:$0xff] %vm439_vm0, %v430_v13  ;;  %v404_v37 = vadd.f32 %v4985_v10, %v365_v31  ;;  %v434_v39 = vmax.f32 %v402_v34, 0.0 }
  0x2d   : > { %4193 = vmatprep.subr.bf16.mxu1 %v4795_v22  ;;  %4163 = vmatprep.mubr.msk.bf16.mxu1 %vm439_vm0, %v1784_v38  ;;  %v621_v3 = vpack.c.bf16 %v595_v56, %v594_v53  ;;  %v1761_v14 = vld [vmem:[#allocation2 + $0x91] sm:$0xff]  ;;  %v1762_v15 = vld [vmem:[#allocation2 + $0x99] sm:$0xff]  ;;  %520 = vst.msk [vmem:[#allocation2 + $0x139] sm:$0xff] %vm439_vm0, %v431_v20  ;;  %521 = vst.msk [vmem:[#allocation2 + $0x141] sm:$0xff] %vm439_vm0, %v432_v25 }
  0x2e   : > { %4352 = vmatpush3.bf16.msra.mxu0 %v4999_v19  ;;  %4323 = vmatprep.mubr.msk.bf16.mxu0 %vm439_vm0, %v619_v43  ;;  %v358_v19 = vmul.f32 %v4980_v9, %v319_v55  ;;  %v598_v21 = vld [vmem:[#allocation2 + $0xa9] sm:$0xff]  ;;  %v599_v24 = vld [vmem:[#allocation2 + $0xb1] sm:$0xff]  ;;  %v1788_v32 = vpack.c.bf16 %v1762_v15, %v1761_v14  ;;  %v436_v41 = vmax.f32 %v404_v37, 0.0  ;;  %523 = vst.msk [vmem:[#allocation2 + $0x159] sm:$0xff] %vm439_vm0, %v434_v39  ;;  %v2076_v54 = vld [vmem:[#allocation2 + $0x3a] sm:$0xff] }
  0x2f   : > { %4353 = vmatprep.subr.bf16.mxu0 %v4794_v40  ;;  %v5149_v35 = vpack.c.bf16 %v599_v24, %v598_v21  ;;  %v1766_v44 = vld [vmem:[#allocation2 + $0xc9] sm:$0xff]  ;;  %v2075_v52 = vld [vmem:[#allocation2 + $0x32] sm:$0xff]  ;;  %v2084_v25 = vld [vmem:[#allocation2 + $0x9a] sm:$0xff] }
  0x30   : > { %4194 = vmatpush3.bf16.msra.mxu1 %v4795_v22  ;;  %v397_v4 = vadd.f32 %v4985_v10, %v358_v19  ;;  %v323_v22 = vld [vmem:[%s4975_s22 + $0xd0] sm:$0xff]  ;;  %525 = vst.msk [vmem:[#allocation2 + $0x171] sm:$0xff] %vm439_vm0, %v436_v41  ;;  %v2074_v45 = vld [vmem:[#allocation2 + $0x22] sm:$0xff]  ;;  %v5184_v58 = vpack.c.bf16 %v2076_v54, %v2075_v52  ;;  %v328_v63 = vld [vmem:[%s4975_s22 + $0xf8] sm:$0xff] }
  0x31   : > { %4195 = vmatprep.subr.bf16.mxu1 %v4798_v17  ;;  %v362_v26 = vmul.f32 %v4980_v9, %v323_v22  ;;  %v603_v49 = vld [vmem:[#allocation2 + $0xe1] sm:$0xff]  ;;  %v604_v50 = vld [vmem:[#allocation2 + $0xf1] sm:$0xff]  ;;  %v605_v51 = vld [vmem:[#allocation2 + $0xf9] sm:$0xff] }
  0x32   : > { %4354 = vmatpush3.bf16.msra.mxu0 %v4794_v40  ;;  %v429_v12 = vmax.f32 %v397_v4, 0.0  ;;  %v435_v40 = vmax.f32 %v403_v36, 0.0  ;;  %v2077_v55 = vld [vmem:[#allocation2 + $0x4a] sm:$0xff]  ;;  %v5182_v56 = vpack.c.bf16 %v605_v51, %v604_v50  ;;  %v2078_v57 = vld [vmem:[#allocation2 + $0x52] sm:$0xff]  ;;  %v2079_v4 = vld [vmem:[#allocation2 + $0x62] sm:$0xff] }
  0x33   : > { %4164 = vmatmul.mubr.msk.bf16.gmra.mrb[4].mxu1 %vm439_vm0, %v619_v43  ;;  %4355 = vmatprep.subr.bf16.mxu0 %v4796_v48  ;;  %v401_v33 = vadd.f32 %v4985_v10, %v362_v26  ;;  %v1765_v43 = vld [vmem:[#allocation2 + $0xc1] sm:$0xff]  ;;  %v606_v59 = vld [vmem:[#allocation2 + $0x109] sm:$0xff]  ;;  %v5188_v60 = vpack.c.bf16 %v2078_v57, %v2077_v55  ;;  %v607_v19 = vld [vmem:[#allocation2 + $0x111] sm:$0xff] }
  0x34   : > { %4167 = vmatprep.mubr.msk.bf16.mxu1 %vm439_vm0, %v1786_v0  ;;  %4196 = vmatpush3.bf16.msra.mxu1 %v4798_v17  ;;  %518 = vst.msk [vmem:[#allocation2 + $0x121] sm:$0xff] %vm439_vm0, %v429_v12  ;;  %524 = vst.msk [vmem:[#allocation2 + $0x169] sm:$0xff] %vm439_vm0, %v435_v40  ;;  %v2073_v17 = vld [vmem:[#allocation2 + $0x1a] sm:$0xff]  ;;  %v5168_v46 = vpack.c.bf16 %v1766_v44, %v1765_v43  ;;  %v4801_v61 = vld [vmem:[%s5788_s3 + $0xc8] sm:$0xff]   ;;  %v5202_v5 = vpack.c.bf16 %v607_v19, %v606_v59 }
  0x35   : > { %4324 = vmatmul.mubr.msk.bf16.gmra.mrb[4].mxu0 %vm439_vm0, %v1786_v0  ;;  %4197 = vmatprep.subr.bf16.mxu1 %v4800_v6  ;;  %v433_v38 = vmax.f32 %v401_v33, 0.0  ;;  %v5172_v47 = vpack.c.bf16 %v2074_v45, %v2073_v17  ;;  %v327_v62 = vld [vmem:[%s4975_s22 + $0xf0] sm:$0xff]  ;;  %v2081_v12 = vld [vmem:[#allocation2 + $0x7a] sm:$0xff]  ;;  %v529_v37 = vld [vmem:[#allocation2 + $0x8] sm:$0xff] }
  0x36   : > { %4327 = vmatprep.mubr.msk.bf16.mxu0 %vm439_vm0, %v621_v3  ;;  %4356 = vmatpush3.bf16.msra.mxu0 %v4796_v48  ;;  %v602_v48 = vld [vmem:[#allocation2 + $0xd9] sm:$0xff]  ;;  %v609_v1 = vld [vmem:[#allocation2 + $0x129] sm:$0xff]  ;;  %v366_v2 = vmul.f32 %v4980_v9, %v327_v62 }
  0x37   : > { %4357 = vmatprep.subr.bf16.mxu0 %v4797_v7  ;;  %522 = vst.msk [vmem:[#allocation2 + $0x151] sm:$0xff] %vm439_vm0, %v433_v38  ;;  %v5178_v53 = vpack.c.bf16 %v603_v49, %v602_v48  ;;  %v4803_v13 = vld [vmem:[%s5788_s3 + $0xd0] sm:$0xff]   ;;  %v610_v18 = vld [vmem:[#allocation2 + $0x139] sm:$0xff]  ;;  %v2087_v39 = vld [vmem:[#allocation2 + $0xc2] sm:$0xff] }
  0x38   : > { %4198 = vmatpush3.bf16.msra.mxu1 %v4800_v6  ;;  %v2080_v6 = vld [vmem:[#allocation2 + $0x6a] sm:$0xff]  ;;  %v4805_v21 = vld [vmem:[%s5788_s3 + $0xd8] sm:$0xff]   ;;  %v5237_v30 = vld [vmem:[%s5788_s3 + $0xe0] sm:$0xff]  }
  0x39   : > { %4231 = vmatprep.subr.bf16.mxu1 %v5158_v42  ;;  %v2083_v22 = vld [vmem:[#allocation2 + $0x92] sm:$0xff]  ;;  %v2085_v26 = vld [vmem:[#allocation2 + $0xaa] sm:$0xff]  ;;  %v528_v36 = vld [vmem:[#allocation2] sm:$0xff] }
  0x3a   : > { %4358 = vmatpush3.bf16.msra.mxu0 %v4797_v7  ;;  %v405_v7 = vadd.f32 %v4985_v10, %v366_v2  ;;  %v613_v24 = vld [vmem:[#allocation2 + $0x159] sm:$0xff]  ;;  %v5239_v31 = vpack.c.bf16 %v2084_v25, %v2083_v22  ;;  %v615_v34 = vld [vmem:[#allocation2 + $0x171] sm:$0xff]  ;;  %v560_v41 = vpack.c.bf16 %v529_v37, %v528_v36  ;;  %v2090_v44 = vld [vmem:[#allocation2 + $0xe2] sm:$0xff] }
  0x3b   : > { %4168 = vmatmul.mubr.msk.bf16.gmra.mrb[8].mxu1 %vm439_vm0, %v621_v3  ;;  %4391 = vmatprep.subr.bf16.mxu0 %v5130_v16  ;;  %v608_v0 = vld [vmem:[#allocation2 + $0x121] sm:$0xff]  ;;  %v367_v3 = vmul.f32 %v4980_v9, %v328_v63  ;;  %v2086_v28 = vld [vmem:[#allocation2 + $0xb2] sm:$0xff]  ;;  %v614_v33 = vld [vmem:[#allocation2 + $0x169] sm:$0xff] }
  0x3c   : > { %4171 = vmatprep.mubr.msk.bf16.mxu1 %vm439_vm0, %v1788_v32  ;;  %v5208_v11 = vpack.c.bf16 %v609_v1, %v608_v0  ;;  %v2082_v9 = vld [vmem:[#allocation2 + $0x82] sm:$0xff]  ;;  %v437_v14 = vmax.f32 %v405_v7, 0.0  ;;  %v5250_v38 = vpack.c.bf16 %v615_v34, %v614_v33  ;;  %v2088_v40 = vld [vmem:[#allocation2 + $0xca] sm:$0xff]  ;;  %v2089_v43 = vld [vmem:[#allocation2 + $0xda] sm:$0xff] }
  0x3d   : > { %4328 = vmatmul.mubr.msk.bf16.gmra.mrb[8].mxu0 %vm439_vm0, %v1788_v32  ;;  %v406_v8 = vadd.f32 %v4985_v10, %v367_v3  ;;  %v5217_v20 = vpack.c.bf16 %v2082_v9, %v2081_v12  ;;  %v611_v10 = vld [vmem:[#allocation2 + $0x141] sm:$0xff]  ;;  %v5243_v32 = vpack.c.bf16 %v2086_v28, %v2085_v26  ;;  %v5254_v17 = vpack.c.bf16 %v2088_v40, %v2087_v39  ;;  %v530_v45 = vld [vmem:[#allocation2 + $0x18] sm:$0xff]  ;;  %v532_v50 = vld [vmem:[#allocation2 + $0x30] sm:$0xff] }
  0x3e   : > { %4331 = vmatprep.mubr.msk.bf16.mxu0 %vm439_vm0, %v5149_v35  ;;  %526 = vst.msk [vmem:[#allocation2 + $0x181] sm:$0xff] %vm439_vm0, %v437_v14  ;;  %v612_v23 = vld [vmem:[#allocation2 + $0x151] sm:$0xff]  ;;  %v5228_v27 = vpack.c.bf16 %v611_v10, %v610_v18  ;;  %v531_v48 = vld [vmem:[#allocation2 + $0x20] sm:$0xff]  ;;  %v5258_v49 = vpack.c.bf16 %v2090_v44, %v2089_v43  ;;  %v4804_v19 = vld [vmem:[%s5788_s3 + $0x48] sm:$0xff]  }
  0x3f   : > { %v438_v15 = vmax.f32 %v406_v8, 0.0  ;;  %v5232_v29 = vpack.c.bf16 %v613_v24, %v612_v23  ;;  %v533_v51 = vld [vmem:[#allocation2 + $0x38] sm:$0xff]  ;;  %v5263_v52 = vpack.c.bf16 %v531_v48, %v530_v45  ;;  %v2093_v59 = vld [vmem:[#allocation2 + $0x10a] sm:$0xff]  ;;  %v536_v2 = vld [vmem:[#allocation2 + $0x60] sm:$0xff] }
  0x40   : > { %v2091_v54 = vld [vmem:[#allocation2 + $0xf2] sm:$0xff]  ;;  %v2092_v55 = vld [vmem:[#allocation2 + $0xfa] sm:$0xff]  ;;  %v5267_v57 = vpack.c.bf16 %v533_v51, %v532_v50  ;;  %v534_v0 = vld [vmem:[#allocation2 + $0x48] sm:$0xff] }
  0x41   : > { %527 = vst.msk [vmem:[#allocation2 + $0x189] sm:$0xff] %vm439_vm0, %v438_v15  ;;  %v5272_v62 = vpack.c.bf16 %v2092_v55, %v2091_v54  ;;  %v535_v1 = vld [vmem:[#allocation2 + $0x50] sm:$0xff]  ;;  %v537_v3 = vld [vmem:[#allocation2 + $0x68] sm:$0xff]  ;;  %v2097_v12 = vld [vmem:[#allocation2 + $0x13a] sm:$0xff] }
  0x42   : > { %v2096_v7 = vld [vmem:[#allocation2 + $0x12a] sm:$0xff]  ;;  %v5290_v8 = vpack.c.bf16 %v537_v3, %v536_v2  ;;  %v2098_v9 = vld [vmem:[#allocation2 + $0x142] sm:$0xff]  ;;  %v538_v18 = vld [vmem:[#allocation2 + $0x78] sm:$0xff] }
  0x43   : > { %4172 = vmatmul.mubr.msk.bf16.gmra.mrb[12].mxu1 %vm439_vm0, %v5149_v35  ;;  %v5299_v15 = vpack.c.bf16 %v2098_v9, %v2097_v12  ;;  %v539_v10 = vld [vmem:[#allocation2 + $0x80] sm:$0xff]  ;;  %v541_v22 = vld [vmem:[#allocation2 + $0x98] sm:$0xff]  ;;  %v2101_v33 = vld [vmem:[#allocation2 + $0x16a] sm:$0xff] }
  0x44   : > { %4175 = vmatprep.mubr.msk.bf16.mxu1 %vm439_vm0, %v5168_v46  ;;  %v5306_v23 = vld [vmem:[%s5788_s3 + $0x60] sm:$0xff]   ;;  %v5310_v24 = vpack.c.bf16 %v539_v10, %v538_v18  ;;  %v2099_v25 = vld [vmem:[#allocation2 + $0x152] sm:$0xff]  ;;  %v542_v39 = vld [vmem:[#allocation2 + $0xa8] sm:$0xff] }
  0x45   : > { %4332 = vmatmul.mubr.msk.bf16.gmra.mrb[12].mxu0 %vm439_vm0, %v5168_v46  ;;  %v2100_v26 = vld [vmem:[#allocation2 + $0x15a] sm:$0xff]  ;;  %v2102_v34 = vld [vmem:[#allocation2 + $0x172] sm:$0xff]  ;;  %v545_v43 = vld [vmem:[#allocation2 + $0xc8] sm:$0xff] }
  0x46   : > { %4359 = vmatprep.mubr.msk.bf16.mxu0 %vm439_vm0, %v5172_v47  ;;  %v5317_v36 = vpack.c.bf16 %v2100_v26, %v2099_v25  ;;  %v5321_v37 = vpack.c.bf16 %v2102_v34, %v2101_v33  ;;  %v543_v40 = vld [vmem:[#allocation2 + $0xb0] sm:$0xff]  ;;  %v546_v54 = vld [vmem:[#allocation2 + $0xd8] sm:$0xff]  ;;  %v547_v55 = vld [vmem:[#allocation2 + $0xe0] sm:$0xff] }
  0x47   : > { %v5327_v44 = vpack.c.bf16 %v543_v40, %v542_v39  ;;  %v551_v2 = vld [vmem:[#allocation2 + $0x110] sm:$0xff]  ;;  %v4809_v3 = vld [vmem:[%s5788_s3 + $0xe8] sm:$0xff]   ;;  %v4813_v18 = vld [vmem:[%s5788_s3 + $0xf8] sm:$0xff]  }
  0x48   : > { %v2103_v45 = vld [vmem:[#allocation2 + $0x182] sm:$0xff]  ;;  %v2104_v48 = vld [vmem:[#allocation2 + $0x18a] sm:$0xff] }
  0x49   : > { %v5333_v51 = vpack.c.bf16 %v2104_v48, %v2103_v45  ;;  %v4811_v9 = vld [vmem:[%s5788_s3 + $0xf0] sm:$0xff]   ;;  %v5384_v26 = vld [vmem:[%s5788_s3 + $0x100] sm:$0xff]   ;;  %v558_v33 = vld [vmem:[#allocation2 + $0x168] sm:$0xff] }
  0x4a   : > { %v556_v10 = vld [vmem:[#allocation2 + $0x150] sm:$0xff]  ;;  %v1107_v39 = vld [vmem:[#allocation2 + $0x2] sm:$0xff] }
  0x4b   : > { %4176 = vmatmul.mubr.msk.bf16.gmra.mrb[16].mxu1 %vm439_vm0, %v5178_v53  ;;  %v559_v34 = vld [vmem:[#allocation2 + $0x170] sm:$0xff]  ;;  %v4812_v45 = vld [vmem:[%s5788_s3 + $0x68] sm:$0xff]  }
  0x4c   : > { %4179 = vmatprep.mubr.msk.bf16.mxu1 %vm439_vm0, %v5182_v56  ;;  %v1108_v40 = vld [vmem:[#allocation2 + $0xa] sm:$0xff] }
  0x4d   : > { %4360 = vmatmul.mubr.msk.bf16.vlgmr.msra.gmra.mrb[0].mxu0 %vm439_vm0, %v5184_v58  ;;  %v4814_v48 = vld [vmem:[%s5788_s3 + $0x70] sm:$0xff]  }
  0x4e   : > { %4392 = vmatpush3.bf16.msra.mxu0 %v5130_v16  ;;  %4363 = vmatprep.mubr.msk.bf16.mxu0 %vm439_vm0, %v5188_v60  ;;  %v5213_v16 = vpack.c.bf16 %v2080_v6, %v2079_v4  ;;  %v4806_v4 = vld [vmem:[%s5788_s3 + $0x50] sm:$0xff]   ;;  %v5286_v6 = vpack.c.bf16 %v535_v1, %v534_v0  ;;  %v550_v1 = vld [vmem:[#allocation2 + $0x108] sm:$0xff] }
  0x4f   : > { %4393 = vmatprep.subr.bf16.mxu0 %v4801_v61 }
  0x52   : > { %4394 = vmatpush3.bf16.msra.mxu0 %v4801_v61  ;;  %v2094_v61 = vld [vmem:[#allocation2 + $0x112] sm:$0xff] }
  0x53   : > { %4180 = vmatmul.mubr.msk.bf16.gmra.mrb[20].mxu1 %vm439_vm0, %v5202_v5  ;;  %4395 = vmatprep.subr.bf16.mxu0 %v4803_v13  ;;  %v5276_v63 = vpack.c.bf16 %v2094_v61, %v2093_v59  ;;  %v548_v59 = vld [vmem:[#allocation2 + $0xf0] sm:$0xff]  ;;  %v549_v61 = vld [vmem:[#allocation2 + $0xf8] sm:$0xff] }
  0x54   : > { %4183 = vmatprep.mubr.msk.bf16.mxu1 %vm439_vm0, %v5208_v11  ;;  %v5345_v0 = vpack.c.bf16 %v549_v61, %v548_v59  ;;  %v2718_v59 = vld [vmem:[#allocation2 + $0x31] sm:$0xff]  ;;  %v2719_v61 = vld [vmem:[#allocation2 + $0x39] sm:$0xff] }
  0x55   : > { %4364 = vmatmul.mubr.msk.bf16.gmra.mrb[4].mxu0 %vm439_vm0, %v5213_v16 }
  0x56   : > { %4367 = vmatprep.mubr.msk.bf16.mxu0 %vm439_vm0, %v5217_v20  ;;  %4396 = vmatpush3.bf16.msra.mxu0 %v4803_v13  ;;  %v4808_v13 = vld [vmem:[%s5788_s3 + $0x58] sm:$0xff]  }
  0x57   : > { %4397 = vmatprep.subr.bf16.mxu0 %v4805_v21 }
  0x5a   : > { %4398 = vmatpush3.bf16.msra.mxu0 %v4805_v21  ;;  %v540_v21 = vld [vmem:[#allocation2 + $0x90] sm:$0xff] }
  0x5b   : > { %4184 = vmatmul.mubr.msk.bf16.gmra.mrb[24].mxu1 %vm439_vm0, %v5228_v27  ;;  %4431 = vmatprep.subr.bf16.mxu0 %v5237_v30  ;;  %v5314_v28 = vpack.c.bf16 %v541_v22, %v540_v21  ;;  %v557_v21 = vld [vmem:[#allocation2 + $0x158] sm:$0xff] }
  0x5c   : > { %4187 = vmatprep.mubr.msk.bf16.mxu1 %vm439_vm0, %v5232_v29  ;;  %v5379_v25 = vpack.c.bf16 %v557_v21, %v556_v10  ;;  %v2724_v10 = vld [vmem:[#allocation2 + $0x79] sm:$0xff]  ;;  %v2725_v21 = vld [vmem:[#allocation2 + $0x81] sm:$0xff] }
  0x5d   : > { %4368 = vmatmul.mubr.msk.bf16.gmra.mrb[8].mxu0 %vm439_vm0, %v5239_v31 }
  0x5e   : > { %4371 = vmatprep.mubr.msk.bf16.mxu0 %vm439_vm0, %v5243_v32 }
  0x63   : > { %4188 = vmatmul.mubr.msk.bf16.gmra.mrb[28].mxu1 %vm439_vm0, %v5250_v38 }
  0x64   : > { %4199 = vmatprep.mubr.msk.bf16.mxu1 %vm439_vm0, %v560_v41  ;;  %v544_v41 = vld [vmem:[#allocation2 + $0xc0] sm:$0xff] }
  0x65   : > { %4372 = vmatmul.mubr.msk.bf16.gmra.mrb[12].mxu0 %vm439_vm0, %v5254_v17  ;;  %v5331_v50 = vpack.c.bf16 %v545_v43, %v544_v41  ;;  %v5393_v41 = vpack.c.bf16 %v559_v34, %v558_v33  ;;  %v1139_v43 = vpack.c.bf16 %v1108_v40, %v1107_v39  ;;  %v2726_v33 = vld [vmem:[#allocation2 + $0x91] sm:$0xff]  ;;  %v2727_v34 = vld [vmem:[#allocation2 + $0x99] sm:$0xff]  ;;  %v2753_v40 = vpack.c.bf16 %v2725_v21, %v2724_v10 }
  0x66   : > { %4375 = vmatprep.mubr.msk.bf16.mxu0 %vm439_vm0, %v5258_v49  ;;  %v4818_v39 = vld [vmem:[%s5788_s3 + $0x110] sm:$0xff]  }
  0x6b   : > { %4200 = vmatmul.mubr.msk.bf16.vlgmr.msra.gmra.mrb[0].mxu1 %vm439_vm0, %v5263_v52 }
  0x6c   : > { %4232 = vmatpush3.bf16.msra.mxu1 %v5158_v42  ;;  %4203 = vmatprep.mubr.msk.bf16.mxu1 %vm439_vm0, %v5267_v57  ;;  %v2095_v42 = vld [vmem:[#allocation2 + $0x122] sm:$0xff] }
  0x6d   : > { %4233 = vmatprep.subr.bf16.mxu1 %v4804_v19  ;;  %4376 = vmatmul.mubr.msk.bf16.gmra.mrb[16].mxu0 %vm439_vm0, %v5272_v62  ;;  %v5295_v14 = vpack.c.bf16 %v2096_v7, %v2095_v42  ;;  %v553_v42 = vld [vmem:[#allocation2 + $0x128] sm:$0xff]  ;;  %v5357_v7 = vpack.c.bf16 %v551_v2, %v550_v1  ;;  %v2750_v2 = vpack.c.bf16 %v2719_v61, %v2718_v59 }
  0x6e   : > { %4379 = vmatprep.mubr.msk.bf16.mxu0 %vm439_vm0, %v5276_v63 }
  0x70   : > { %4234 = vmatpush3.bf16.msra.mxu1 %v4804_v19  ;;  %v5341_v19 = vpack.c.bf16 %v547_v55, %v546_v54  ;;  %v4820_v54 = vld [vmem:[%s5788_s3 + $0x80] sm:$0xff]  }
  0x71   : > { %4235 = vmatprep.subr.bf16.mxu1 %v4806_v4  ;;  %v2427_v55 = vld [vmem:[#allocation2 + $0x1a0] sm:$0xff] }
  0x73   : > { %4204 = vmatmul.mubr.msk.bf16.gmra.mrb[4].mxu1 %vm439_vm0, %v5286_v6 }
  0x74   : > { %4207 = vmatprep.mubr.msk.bf16.mxu1 %vm439_vm0, %v5290_v8  ;;  %4236 = vmatpush3.bf16.msra.mxu1 %v4806_v4  ;;  %v552_v4 = vld [vmem:[#allocation2 + $0x120] sm:$0xff] }
  0x75   : > { %4237 = vmatprep.subr.bf16.mxu1 %v4808_v13  ;;  %4380 = vmatmul.mubr.msk.bf16.gmra.mrb[20].mxu0 %vm439_vm0, %v5295_v14  ;;  %v5361_v12 = vpack.c.bf16 %v553_v42, %v552_v4  ;;  %v2721_v4 = vld [vmem:[#allocation2 + $0x51] sm:$0xff]  ;;  %v2722_v42 = vld [vmem:[#allocation2 + $0x61] sm:$0xff] }
  0x76   : > { %4383 = vmatprep.mubr.msk.bf16.mxu0 %vm439_vm0, %v5299_v15 }
  0x78   : > { %4238 = vmatpush3.bf16.msra.mxu1 %v4808_v13  ;;  %v555_v13 = vld [vmem:[#allocation2 + $0x140] sm:$0xff] }
  0x79   : > { %4271 = vmatprep.subr.bf16.mxu1 %v5306_v23 }
  0x7b   : > { %4208 = vmatmul.mubr.msk.bf16.gmra.mrb[8].mxu1 %vm439_vm0, %v5310_v24 }
  0x7c   : > { %4211 = vmatprep.mubr.msk.bf16.mxu1 %vm439_vm0, %v5314_v28 }
  0x7d   : > { %4384 = vmatmul.mubr.msk.bf16.gmra.mrb[24].mxu0 %vm439_vm0, %v5317_v36 }
  0x7e   : > { %4387 = vmatprep.mubr.msk.bf16.mxu0 %vm439_vm0, %v5321_v37 }
  0x83   : > { %4212 = vmatmul.mubr.msk.bf16.gmra.mrb[12].mxu1 %vm439_vm0, %v5327_v44 }
  0x84   : > { %4215 = vmatprep.mubr.msk.bf16.mxu1 %vm439_vm0, %v5331_v50 }
  0x85   : > { %4388 = vmatmul.mubr.msk.bf16.gmra.mrb[28].mxu0 %vm439_vm0, %v5333_v51 }
  0x86   : > { %4399 = vmatprep.mubr.msk.bf16.mxu0 %vm439_vm0, %v5267_v57 }
  0x8b   : > { %4216 = vmatmul.mubr.msk.bf16.gmra.mrb[16].mxu1 %vm439_vm0, %v5341_v19 }
  0x8c   : > { %4219 = vmatprep.mubr.msk.bf16.mxu1 %vm439_vm0, %v5345_v0 }
  0x8d   : > { %4400 = vmatmul.mubr.msk.bf16.vlgmr.msra.gmra.mrb[0].mxu0 %vm439_vm0, %v5286_v6 }
  0x8e   : > { %4432 = vmatpush3.bf16.msra.mxu0 %v5237_v30  ;;  %4403 = vmatprep.mubr.msk.bf16.mxu0 %vm439_vm0, %v5290_v8  ;;  %v554_v30 = vld [vmem:[#allocation2 + $0x138] sm:$0xff] }
  0x8f   : > { %4433 = vmatprep.subr.bf16.mxu0 %v4809_v3  ;;  %v5375_v22 = vpack.c.bf16 %v555_v13, %v554_v30 }
  0x92   : > { %4434 = vmatpush3.bf16.msra.mxu0 %v4809_v3  ;;  %v2720_v3 = vld [vmem:[#allocation2 + $0x49] sm:$0xff] }
  0x93   : > { %4220 = vmatmul.mubr.msk.bf16.gmra.mrb[20].mxu1 %vm439_vm0, %v5357_v7  ;;  %4435 = vmatprep.subr.bf16.mxu0 %v4811_v9  ;;  %v2751_v30 = vpack.c.bf16 %v2721_v4, %v2720_v3 }
  0x94   : > { %4223 = vmatprep.mubr.msk.bf16.mxu1 %vm439_vm0, %v5361_v12 }
  0x95   : > { %4404 = vmatmul.mubr.msk.bf16.gmra.mrb[4].mxu0 %vm439_vm0, %v5310_v24 }
  0x96   : > { %4407 = vmatprep.mubr.msk.bf16.mxu0 %vm439_vm0, %v5314_v28  ;;  %4436 = vmatpush3.bf16.msra.mxu0 %v4811_v9  ;;  %v2723_v9 = vld [vmem:[#allocation2 + $0x69] sm:$0xff] }
  0x97   : > { %4437 = vmatprep.subr.bf16.mxu0 %v4813_v18  ;;  %v2752_v13 = vpack.c.bf16 %v2723_v9, %v2722_v42 }
  0x9a   : > { %4438 = vmatpush3.bf16.msra.mxu0 %v4813_v18  ;;  %v4817_v18 = vld [vmem:[%s5788_s3 + $0x108] sm:$0xff]  }
  0x9b   : > { %4224 = vmatmul.mubr.msk.bf16.gmra.mrb[24].mxu1 %vm439_vm0, %v5375_v22  ;;  %4471 = vmatprep.subr.bf16.mxu0 %v5384_v26 }
  0x9c   : > { %4227 = vmatprep.mubr.msk.bf16.mxu1 %vm439_vm0, %v5379_v25 }
  0x9d   : > { %4408 = vmatmul.mubr.msk.bf16.gmra.mrb[8].mxu0 %vm439_vm0, %v5327_v44 }
  0x9e   : > { %4411 = vmatprep.mubr.msk.bf16.mxu0 %vm439_vm0, %v5331_v50 }
  0xa3   : > { %4228 = vmatmul.mubr.msk.bf16.gmra.mrb[28].mxu1 %vm439_vm0, %v5393_v41 }
  0xa4   : > { %4239 = vmatprep.mubr.msk.bf16.mxu1 %vm439_vm0, %v1139_v43  ;;  %v2754_v43 = vpack.c.bf16 %v2727_v34, %v2726_v33  ;;  %v5597_v34 = vld [vmem:[%s5789_s4] ss:$0 sm:$0xff] }
  0xa5   : > { %4412 = vmatmul.mubr.msk.bf16.gmra.mrb[12].mxu0 %vm439_vm0, %v5341_v19 }
  0xa6   : > { %4415 = vmatprep.mubr.msk.bf16.mxu0 %vm439_vm0, %v5345_v0 }
  0xab   : > { %4240 = vmatmul.mubr.msk.bf16.vlgmr.msra.gmra.mrb[0].mxu1 %vm439_vm0, %v5172_v47  ;;  %v4816_v47 = vld [vmem:[%s5788_s3 + $0x78] sm:$0xff]  }
  0xac   : > { %4272 = vmatpush3.bf16.msra.mxu1 %v5306_v23  ;;  %4243 = vmatprep.mubr.msk.bf16.mxu1 %vm439_vm0, %v5184_v58  ;;  %v2424_v58 = vld [vmem:[#allocation2 + $0x180] sm:$0xff]  ;;  %v2425_v23 = vld [vmem:[#allocation2 + $0x188] sm:$0xff] }
  0xad   : > { %4273 = vmatprep.subr.bf16.mxu1 %v4812_v45  ;;  %4416 = vmatmul.mubr.msk.bf16.gmra.mrb[16].mxu0 %vm439_vm0, %v5357_v7 }
  0xae   : > { %4419 = vmatprep.mubr.msk.bf16.mxu0 %vm439_vm0, %v5361_v12 }
  0xb0   : > { %4274 = vmatpush3.bf16.msra.mxu1 %v4812_v45 }
  0xb1   : > { %4275 = vmatprep.subr.bf16.mxu1 %v4814_v48 }
  0xb3   : > { %4244 = vmatmul.mubr.msk.bf16.gmra.mrb[4].mxu1 %vm439_vm0, %v5188_v60  ;;  %v5435_v60 = vpack.c.bf16 %v2425_v23, %v2424_v58  ;;  %v1778_v23 = vld [vmem:[#allocation2 + $0x159] sm:$0xff] }
  0xb4   : > { %4247 = vmatprep.mubr.msk.bf16.mxu1 %vm439_vm0, %v5213_v16  ;;  %4276 = vmatpush3.bf16.msra.mxu1 %v4814_v48  ;;  %v2426_v16 = vld [vmem:[#allocation2 + $0x198] sm:$0xff] }
  0xb5   : > { %4277 = vmatprep.subr.bf16.mxu1 %v4816_v47  ;;  %4420 = vmatmul.mubr.msk.bf16.gmra.mrb[20].mxu0 %vm439_vm0, %v5375_v22  ;;  %v2443_v1 = vpack.c.bf16 %v2427_v55, %v2426_v16  ;;  %v3071_v55 = vld [vmem:[#allocation2 + $0x1a2] sm:$0xff] }
  0xb6   : > { %4423 = vmatprep.mubr.msk.bf16.mxu0 %vm439_vm0, %v5379_v25 }
  0xb8   : > { %4278 = vmatpush3.bf16.msra.mxu1 %v4816_v47  ;;  %v1776_v47 = vld [vmem:[#allocation2 + $0x141] sm:$0xff] }
  0xb9   : > { %4511 = vmatprep.subr.bf16.mxu1 %v4820_v54 }
  0xbb   : > { %4248 = vmatmul.mubr.msk.bf16.gmra.mrb[8].mxu1 %vm439_vm0, %v5217_v20 }
  0xbc   : > { %4251 = vmatprep.mubr.msk.bf16.mxu1 %vm439_vm0, %v5239_v31 }
  0xbd   : > { %4424 = vmatmul.mubr.msk.bf16.gmra.mrb[24].mxu0 %vm439_vm0, %v5393_v41 }
  0xbe   : > { %4427 = vmatprep.mubr.msk.bf16.mxu0 %vm439_vm0, %v5435_v60 }
  0xc3   : > { %4252 = vmatmul.mubr.msk.bf16.gmra.mrb[12].mxu1 %vm439_vm0, %v5243_v32 }
  0xc4   : > { %4255 = vmatprep.mubr.msk.bf16.mxu1 %vm439_vm0, %v5254_v17 }
  0xc5   : > { %4428 = vmatmul.mubr.msk.bf16.gmra.mrb[28].mxu0 %vm439_vm0, %v2443_v1 }
  0xc6   : > { %4439 = vmatprep.mubr.msk.bf16.mxu0 %vm439_vm0, %v2750_v2 }
  0xcb   : > { %4256 = vmatmul.mubr.msk.bf16.gmra.mrb[16].mxu1 %vm439_vm0, %v5258_v49 }
  0xcc   : > { %4259 = vmatprep.mubr.msk.bf16.mxu1 %vm439_vm0, %v5272_v62 }
  0xcd   : > { %4440 = vmatmul.mubr.msk.bf16.vlgmr.msra.gmra.mrb[0].mxu0 %vm439_vm0, %v2751_v30 }
  0xce   : > { %4472 = vmatpush3.bf16.msra.mxu0 %v5384_v26  ;;  %4443 = vmatprep.mubr.msk.bf16.mxu0 %vm439_vm0, %v2752_v13  ;;  %v4819_v26 = vld [vmem:[%s5788_s3 + $0x118] sm:$0xff]  }
  0xcf   : > { %4473 = vmatprep.subr.bf16.mxu0 %v4817_v18 }
  0xd2   : > { %4474 = vmatpush3.bf16.msra.mxu0 %v4817_v18 }
  0xd3   : > { %4260 = vmatmul.mubr.msk.bf16.gmra.mrb[20].mxu1 %vm439_vm0, %v5276_v63  ;;  %4475 = vmatprep.subr.bf16.mxu0 %v4818_v39 }
  0xd4   : > { %4263 = vmatprep.mubr.msk.bf16.mxu1 %vm439_vm0, %v5295_v14 }
  0xd5   : > { %4444 = vmatmul.mubr.msk.bf16.gmra.mrb[4].mxu0 %vm439_vm0, %v2753_v40 }
  0xd6   : > { %4447 = vmatprep.mubr.msk.bf16.mxu0 %vm439_vm0, %v2754_v43  ;;  %4476 = vmatpush3.bf16.msra.mxu0 %v4818_v39 }
  0xd7   : > { %4477 = vmatprep.subr.bf16.mxu0 %v4819_v26 }
  0xda   : > { %4478 = vmatpush3.bf16.msra.mxu0 %v4819_v26 }
  0xdb   : > { %4264 = vmatmul.mubr.msk.bf16.gmra.mrb[24].mxu1 %vm439_vm0, %v5299_v15 }
  0xdc   : > { %4267 = vmatprep.mubr.msk.bf16.mxu1 %vm439_vm0, %v5317_v36 }
  0xdd   : > { %4448 = vmatmul.mubr.msk.bf16.gmra.mrb[8].mxu0 %vm439_vm0, %v5149_v35  ;;  %v4821_v35 = vld [vmem:[%s5788_s3 + $0x88] sm:$0xff]  }
  0xde   : > { %4451 = vmatprep.mubr.msk.bf16.mxu0 %vm439_vm0, %v5168_v46  ;;  %v4822_v46 = vld [vmem:[%s5788_s3 + $0x90] sm:$0xff]  }
  0xe3   : > { %4268 = vmatmul.mubr.msk.bf16.gmra.mrb[28].mxu1 %vm439_vm0, %v5321_v37 }
  0xe4   : > { %4279 = vmatprep.mubr.msk.bf16.mxu1 %vm439_vm0, %v5263_v52  ;;  %v2749_v52 = vld [vmem:[#allocation2 + $0x1a1] sm:$0xff] }
  0xe5   : > { %4452 = vmatmul.mubr.msk.bf16.gmra.mrb[12].mxu0 %vm439_vm0, %v5178_v53  ;;  %v4823_v53 = vld [vmem:[%s5788_s3 + $0x98] sm:$0xff]  }
  0xe6   : > { %4455 = vmatprep.mubr.msk.bf16.mxu0 %vm439_vm0, %v5182_v56  ;;  %v2746_v56 = vld [vmem:[#allocation2 + $0x181] sm:$0xff] }
  0xeb   : > { %4280 = vmatmul.mubr.msk.bf16.vlgmr.msra.gmra.mrb[0].mxu1 %vm439_vm0, %v5267_v57  ;;  %v3041_v57 = vld [vmem:[#allocation2 + $0x3a] sm:$0xff] }
  0xec   : > { %4515 = vmatpush3.bf16.msra.mxu1 %v4820_v54  ;;  %4283 = vmatprep.mubr.msk.bf16.mxu1 %vm439_vm0, %v5286_v6  ;;  %v1779_v54 = vld [vmem:[#allocation2 + $0x169] sm:$0xff] }
  0xed   : > { %4512 = vmatprep.subr.bf16.mxu1 %v4821_v35  ;;  %4456 = vmatmul.mubr.msk.bf16.gmra.mrb[16].mxu0 %vm439_vm0, %v5202_v5  ;;  %v2747_v5 = vld [vmem:[#allocation2 + $0x189] sm:$0xff] }
  0xee   : > { %4459 = vmatprep.mubr.msk.bf16.mxu0 %vm439_vm0, %v5208_v11  ;;  %v5514_v11 = vpack.c.bf16 %v2747_v5, %v2746_v56 }
  0xf0   : > { %4516 = vmatpush3.bf16.msra.mxu1 %v4821_v35 }
  0xf1   : > { %4513 = vmatprep.subr.bf16.mxu1 %v4822_v46 }
  0xf3   : > { %4284 = vmatmul.mubr.msk.bf16.gmra.mrb[4].mxu1 %vm439_vm0, %v5290_v8 }
  0xf4   : > { %4287 = vmatprep.mubr.msk.bf16.mxu1 %vm439_vm0, %v5310_v24  ;;  %4517 = vmatpush3.bf16.msra.mxu1 %v4822_v46  ;;  %v3043_v24 = vld [vmem:[#allocation2 + $0x52] sm:$0xff] }
  0xf5   : > { %4514 = vmatprep.subr.bf16.mxu1 %v4823_v53  ;;  %4460 = vmatmul.mubr.msk.bf16.gmra.mrb[20].mxu0 %vm439_vm0, %v5228_v27  ;;  %v2748_v27 = vld [vmem:[#allocation2 + $0x199] sm:$0xff] }
  0xf6   : > { %4463 = vmatprep.mubr.msk.bf16.mxu0 %vm439_vm0, %v5232_v29  ;;  %v3040_v29 = vld [vmem:[#allocation2 + $0x32] sm:$0xff]  ;;  %v2765_v6 = vpack.c.bf16 %v2749_v52, %v2748_v27 }
  0xf7   : > { %v3072_v8 = vpack.c.bf16 %v3041_v57, %v3040_v29 }
  0xf8   : > { %4518 = vmatpush3.bf16.msra.mxu1 %v4823_v53 }
  0xfb   : > { %4288 = vmatmul.mubr.msk.bf16.gmra.mrb[8].mxu1 %vm439_vm0, %v5314_v28  ;;  %v3044_v28 = vld [vmem:[#allocation2 + $0x62] sm:$0xff] }
  0xfc   : > { %4291 = vmatprep.mubr.msk.bf16.mxu1 %vm439_vm0, %v5327_v44  ;;  %v3045_v44 = vld [vmem:[#allocation2 + $0x6a] sm:$0xff] }
  0xfd   : > { %4464 = vmatmul.mubr.msk.bf16.gmra.mrb[24].mxu0 %vm439_vm0, %v5250_v38  ;;  %v3042_v38 = vld [vmem:[#allocation2 + $0x4a] sm:$0xff]  ;;  %v3074_v48 = vpack.c.bf16 %v3045_v44, %v3044_v28 }
  0xfe   : > { %4467 = vmatprep.mubr.msk.bf16.mxu0 %vm439_vm0, %v5514_v11  ;;  %v3073_v45 = vpack.c.bf16 %v3043_v24, %v3042_v38 }
 0x103   : > { %4292 = vmatmul.mubr.msk.bf16.gmra.mrb[12].mxu1 %vm439_vm0, %v5331_v50  ;;  %v1767_v50 = vld [vmem:[#allocation2 + $0xd9] sm:$0xff] }
 0x104   : > { %4295 = vmatprep.mubr.msk.bf16.mxu1 %vm439_vm0, %v5341_v19  ;;  %v1768_v19 = vld [vmem:[#allocation2 + $0xe1] sm:$0xff] }
 0x105   : > { %4468 = vmatmul.mubr.msk.bf16.gmra.mrb[28].mxu0 %vm439_vm0, %v2765_v6 }
 0x106   : > { %4479 = vmatprep.mubr.msk.bf16.mxu0 %vm439_vm0, %v3072_v8 }
 0x10b   : > { %4296 = vmatmul.mubr.msk.bf16.gmra.mrb[16].mxu1 %vm439_vm0, %v5345_v0  ;;  %v1791_v0 = vpack.c.bf16 %v1768_v19, %v1767_v50 }
 0x10c   : > { %4299 = vmatprep.mubr.msk.bf16.mxu1 %vm439_vm0, %v5357_v7  ;;  %v1771_v7 = vld [vmem:[#allocation2 + $0x109] sm:$0xff] }
 0x10d   : > { %4480 = vmatmul.mubr.msk.bf16.vlgmr.msra.gmra.mrb[0].mxu0 %vm439_vm0, %v3073_v45 }
 0x10e   : > { %4483 = vmatprep.mubr.msk.bf16.mxu0 %vm439_vm0, %v3074_v48 }
 0x113   : > { %4300 = vmatmul.mubr.msk.bf16.gmra.mrb[20].mxu1 %vm439_vm0, %v5361_v12  ;;  %v1772_v12 = vld [vmem:[#allocation2 + $0x111] sm:$0xff] }
 0x114   : > { %4303 = vmatprep.mubr.msk.bf16.mxu1 %vm439_vm0, %v5375_v22 }
 0x115   : > { %4484 = vmatmul.mubr.msk.bf16.gmra.mrb[4].mxu0 %vm439_vm0, %v5217_v20  ;;  %v1769_v20 = vld [vmem:[#allocation2 + $0xf1] sm:$0xff] }
 0x116   : > { %4487 = vmatprep.mubr.msk.bf16.mxu0 %vm439_vm0, %v5239_v31  ;;  %v1770_v31 = vld [vmem:[#allocation2 + $0xf9] sm:$0xff] }
 0x117   : > { %v1792_v22 = vpack.c.bf16 %v1770_v31, %v1769_v20 }
 0x11b   : > { %4304 = vmatmul.mubr.msk.bf16.gmra.mrb[24].mxu1 %vm439_vm0, %v5379_v25  ;;  %v1774_v25 = vld [vmem:[#allocation2 + $0x129] sm:$0xff] }
 0x11c   : > { %4307 = vmatprep.mubr.msk.bf16.mxu1 %vm439_vm0, %v5393_v41  ;;  %v1775_v41 = vld [vmem:[#allocation2 + $0x139] sm:$0xff] }
 0x11d   : > { %4488 = vmatmul.mubr.msk.bf16.gmra.mrb[8].mxu0 %vm439_vm0, %v5243_v32  ;;  %v1793_v32 = vpack.c.bf16 %v1772_v12, %v1771_v7 }
 0x11e   : > { %4491 = vmatprep.mubr.msk.bf16.mxu0 %vm439_vm0, %v5254_v17  ;;  %v1773_v17 = vld [vmem:[#allocation2 + $0x121] sm:$0xff] }
 0x11f   : > { %v1794_v58 = vpack.c.bf16 %v1774_v25, %v1773_v17 }
 0x123   : > { %4308 = vmatmul.mubr.msk.bf16.gmra.mrb[28].mxu1 %vm439_vm0, %v5435_v60  ;;  %v1780_v60 = vld [vmem:[#allocation2 + $0x171] sm:$0xff] }
 0x124   : > { %4335 = vmatprep.mubr.msk.bf16.mxu1 %vm439_vm0, %v1791_v0 }
 0x125   : > { %4492 = vmatmul.mubr.msk.bf16.gmra.mrb[12].mxu0 %vm439_vm0, %v5258_v49  ;;  %v1795_v49 = vpack.c.bf16 %v1776_v47, %v1775_v41 }
 0x126   : > { %4495 = vmatprep.mubr.msk.bf16.mxu0 %vm439_vm0, %v5272_v62  ;;  %v1777_v62 = vld [vmem:[#allocation2 + $0x151] sm:$0xff] }
 0x127   : > { %v1796_v16 = vpack.c.bf16 %v1778_v23, %v1777_v62 }
 0x12b   : > { %4336 = vmatmul.mubr.msk.bf16.vlgmr.msra.gmra.mrb[16].mxu1 %vm439_vm0, %v1792_v22 }
 0x12c   : > { %4339 = vmatprep.mubr.msk.bf16.mxu1 %vm439_vm0, %v1793_v32 }
 0x12d   : > { %4496 = vmatmul.mubr.msk.bf16.gmra.mrb[16].mxu0 %vm439_vm0, %v5276_v63  ;;  %v1797_v63 = vpack.c.bf16 %v1780_v60, %v1779_v54 }
 0x12e   : > { %4499 = vmatprep.mubr.msk.bf16.mxu0 %vm439_vm0, %v5295_v14  ;;  %v3070_v14 = vld [vmem:[#allocation2 + $0x19a] sm:$0xff] }
 0x12f   : > { %v3087_v59 = vpack.c.bf16 %v3071_v55, %v3070_v14 }
 0x133   : > { %4340 = vmatmul.mubr.msk.bf16.gmra.mrb[20].mxu1 %vm439_vm0, %v1794_v58 }
 0x134   : > { %4343 = vmatprep.mubr.msk.bf16.mxu1 %vm439_vm0, %v1795_v49 }
 0x135   : > { %4500 = vmatmul.mubr.msk.bf16.gmra.mrb[20].mxu0 %vm439_vm0, %v5299_v15 }
 0x136   : > { %4503 = vmatprep.mubr.msk.bf16.mxu0 %vm439_vm0, %v5317_v36 }
 0x13b   : > { %4344 = vmatmul.mubr.msk.bf16.gmra.mrb[24].mxu1 %vm439_vm0, %v1796_v16 }
 0x13c   : > { %4347 = vmatprep.mubr.msk.bf16.mxu1 %vm439_vm0, %v1797_v63 }
 0x13d   : > { %4504 = vmatmul.mubr.msk.bf16.gmra.mrb[24].mxu0 %vm439_vm0, %v5321_v37 }
 0x13e   : > { %4507 = vmatprep.mubr.msk.bf16.mxu0 %vm439_vm0, %v5333_v51 }
 0x143   : > { %4348 = vmatmul.mubr.msk.bf16.gmra.mrb[28].mxu1 %vm439_vm0, %v5514_v11 }
 0x145   : > { %4508 = vmatmul.mubr.msk.bf16.gmra.mrb[28].mxu0 %vm439_vm0, %v3087_v59 }
 0x1be   : > { %v4281_v15 = vpop.f32.mrb[0].mxu1 }
 0x1bf   : > { %v1592_v36 = vpop.f32.mrb[1].mxu1 }
 0x1c0   : > { %v4282_v61 = vpop.f32.mrb[2].mxu1 }
 0x1c1   : > { %v1595_v1 = vpop.f32.mrb[3].mxu1 }
 0x1c6   : > { %v4285_v2 = vpop.f32.mrb[4].mxu1 }
 0x1c7   : > { %v1608_v3 = vpop.f32.mrb[5].mxu1 }
 0x1c8   : > { %v4286_v4 = vpop.f32.mrb[6].mxu1 }
 0x1c9   : > { %v1611_v37 = vpop.f32.mrb[7].mxu1 }
 0x1ce   : > { %v5578_v42 = vpop.f32.mrb[8].mxu1 }
 0x1cf   : > { %v5580_v51 = vpop.f32.mrb[9].mxu1 }
 0x1d0   : > { %v5582_v9 = vpop.f32.mrb[10].mxu1 }
 0x1d1   : > { %v5584_v30 = vpop.f32.mrb[11].mxu1 }
 0x1d6   : > { %v5586_v13 = vpop.f32.mrb[12].mxu1 }
 0x1d7   : > { %v5588_v18 = vpop.f32.mrb[13].mxu1 }
 0x1d8   : > { %v5590_v10 = vpop.f32.mrb[14].mxu1 }
 0x1d9   : > { %v5592_v21 = vpop.f32.mrb[15].mxu1 }
 0x1e0   : > { %v4481_v33 = vpop.f32.mrb[0].mxu0 }
 0x1e1   : > { %v4519_v39 = vadd.f32 %v4481_v33, %v4281_v15  ;;  %v3203_v40 = vpop.f32.mrb[1].mxu0 }
 0x1e2   : > { %v4520_v43 = vadd.f32 %v3203_v40, %v1592_v36  ;;  %v4482_v26 = vpop.f32.mrb[2].mxu0 }
 0x1e3   : > { %v3371_v35 = vadd.f32 %v4519_v39, %v5597_v34  ;;  %v4521_v46 = vadd.f32 %v4482_v26, %v4282_v61  ;;  %v3206_v53 = vpop.f32.mrb[3].mxu0 }
 0x1e4   : > { %v3369_v56 = vadd.f32 %v4520_v43, %v5597_v34  ;;  %v4522_v5 = vadd.f32 %v3206_v53, %v1595_v1 }
 0x1e5   : > { %3403 = vst.msk [vmem:[%s5604_s14 + $0x10] sm:$0xff] %vm439_vm0, %v3371_v35  ;;  %v3372_v11 = vadd.f32 %v4521_v46, %v5597_v34  ;;  %v3506_v29 = vmul.f32 %v3371_v35, %v3371_v35  ;;  %v3436_v48 = vsel %vm439_vm0, %v3371_v35, 0.0 }
 0x1e6   : > { %3401 = vst.msk [vmem:[%s5604_s14] sm:$0xff] %vm439_vm0, %v3369_v56  ;;  %v3504_v27 = vmul.f32 %v3369_v56, %v3369_v56  ;;  %v3370_v52 = vadd.f32 %v4522_v5, %v5597_v34  ;;  %v3433_v57 = vsel %vm439_vm0, %v3369_v56, 0.0 }
 0x1e7   : > { %3404 = vst.msk [vmem:[%s5604_s14 + $0x18] sm:$0xff] %vm439_vm0, %v3372_v11  ;;  %v3507_v24 = vmul.f32 %v3372_v11, %v3372_v11  ;;  %v3539_v17 = vsel %vm439_vm0, %v3506_v29, 0.0  ;;  %v3438_v25 = vsel %vm439_vm0, %v3372_v11, 0.0 }
 0x1e8   : > { %3402 = vst.msk [vmem:[%s5604_s14 + $0x8] sm:$0xff] %vm439_vm0, %v3370_v52  ;;  %v3434_v6 = vsel %vm439_vm0, %v3370_v52, 0.0  ;;  %v3505_v8 = vmul.f32 %v3370_v52, %v3370_v52  ;;  %v4485_v38 = vpop.f32.mrb[4].mxu0  ;;  %v3536_v50 = vsel %vm439_vm0, %v3504_v27, 0.0 }
 0x1e9   : > { %v3435_v28 = vadd.f32 %v3434_v6, %v3433_v57  ;;  %v4523_v44 = vadd.f32 %v4485_v38, %v4285_v2  ;;  %v3219_v45 = vpop.f32.mrb[5].mxu0  ;;  %v3541_v58 = vsel %vm439_vm0, %v3507_v24, 0.0 }
 0x1ea   : > { %v3537_v19 = vsel %vm439_vm0, %v3505_v8, 0.0  ;;  %v4524_v0 = vadd.f32 %v3219_v45, %v1608_v3  ;;  %v4486_v20 = vpop.f32.mrb[6].mxu0 }
 0x1eb   : > { %v3437_v31 = vadd.f32 %v3436_v48, %v3435_v28  ;;  %v3538_v7 = vadd.f32 %v3537_v19, %v3536_v50  ;;  %v3375_v12 = vadd.f32 %v4523_v44, %v5597_v34  ;;  %v4525_v22 = vadd.f32 %v4486_v20, %v4286_v4  ;;  %v3222_v32 = vpop.f32.mrb[7].mxu0 }
 0x1ec   : > { %v3373_v41 = vadd.f32 %v4524_v0, %v5597_v34  ;;  %v4526_v47 = vadd.f32 %v3222_v32, %v1611_v37 }
 0x1ed   : > { %v3540_v49 = vadd.f32 %v3539_v17, %v3538_v7  ;;  %3407 = vst.msk [vmem:[%s5604_s14 + $0x30] sm:$0xff] %vm439_vm0, %v3375_v12  ;;  %v3439_v62 = vadd.f32 %v3438_v25, %v3437_v31  ;;  %v3376_v60 = vadd.f32 %v4525_v22, %v5597_v34  ;;  %v3510_v55 = vmul.f32 %v3375_v12, %v3375_v12 }
 0x1ee   : > { %3405 = vst.msk [vmem:[%s5604_s14 + $0x20] sm:$0xff] %vm439_vm0, %v3373_v41  ;;  %v3440_v23 = vsel %vm439_vm0, %v3373_v41, 0.0  ;;  %v3508_v54 = vmul.f32 %v3373_v41, %v3373_v41  ;;  %v3374_v16 = vadd.f32 %v4526_v47, %v5597_v34  ;;  %v3444_v37 = vsel %vm439_vm0, %v3375_v12, 0.0 }
 0x1ef   : > { %v3441_v63 = vadd.f32 %v3440_v23, %v3439_v62  ;;  %v3542_v14 = vadd.f32 %v3541_v58, %v3540_v49  ;;  %3408 = vst.msk [vmem:[%s5604_s14 + $0x38] sm:$0xff] %vm439_vm0, %v3376_v60  ;;  %v3511_v33 = vmul.f32 %v3376_v60, %v3376_v60 }
 0x1f0   : > { %v3543_v59 = vsel %vm439_vm0, %v3508_v54, 0.0  ;;  %3406 = vst.msk [vmem:[%s5604_s14 + $0x28] sm:$0xff] %vm439_vm0, %v3374_v16  ;;  %v3442_v15 = vsel %vm439_vm0, %v3374_v16, 0.0  ;;  %v4489_v36 = vpop.f32.mrb[8].mxu0  ;;  %v3509_v2 = vmul.f32 %v3374_v16, %v3374_v16 }
 0x1f1   : > { %v3544_v61 = vadd.f32 %v3543_v59, %v3542_v14  ;;  %v3443_v1 = vadd.f32 %v3442_v15, %v3441_v63  ;;  %v4527_v3 = vadd.f32 %v4489_v36, %v5578_v42  ;;  %v3235_v4 = vpop.f32.mrb[9].mxu0  ;;  %v3446_v42 = vsel %vm439_vm0, %v3376_v60, 0.0 }
 0x1f2   : > { %v4528_v39 = vadd.f32 %v3235_v4, %v5580_v51  ;;  %v4490_v40 = vpop.f32.mrb[10].mxu0  ;;  %v3545_v26 = vsel %vm439_vm0, %v3509_v2, 0.0  ;;  %v3547_v51 = vsel %vm439_vm0, %v3510_v55, 0.0  ;;  %v3549_v8 = vsel %vm439_vm0, %v3511_v33, 0.0 }
 0x1f3   : > { %v3445_v43 = vadd.f32 %v3444_v37, %v3443_v1  ;;  %v3379_v35 = vadd.f32 %v4527_v3, %v5597_v34  ;;  %v4529_v46 = vadd.f32 %v4490_v40, %v5582_v9  ;;  %v3238_v53 = vpop.f32.mrb[11].mxu0  ;;  %v3546_v56 = vadd.f32 %v3545_v26, %v3544_v61 }
 0x1f4   : > { %v3377_v5 = vadd.f32 %v4528_v39, %v5597_v34  ;;  %v4530_v11 = vadd.f32 %v3238_v53, %v5584_v30 }
 0x1f5   : > { %3411 = vst.msk [vmem:[%s5604_s14 + $0x50] sm:$0xff] %vm439_vm0, %v3379_v35  ;;  %v3447_v27 = vadd.f32 %v3446_v42, %v3445_v43  ;;  %v3380_v52 = vadd.f32 %v4529_v46, %v5597_v34  ;;  %v3548_v29 = vadd.f32 %v3547_v51, %v3546_v56  ;;  %v3514_v48 = vmul.f32 %v3379_v35, %v3379_v35 }
 0x1f6   : > { %3409 = vst.msk [vmem:[%s5604_s14 + $0x40] sm:$0xff] %vm439_vm0, %v3377_v5  ;;  %v3448_v9 = vsel %vm439_vm0, %v3377_v5, 0.0  ;;  %v3512_v57 = vmul.f32 %v3377_v5, %v3377_v5  ;;  %v3378_v6 = vadd.f32 %v4530_v11, %v5597_v34  ;;  %v3452_v20 = vsel %vm439_vm0, %v3379_v35, 0.0 }
 0x1f7   : > { %v3449_v38 = vadd.f32 %v3448_v9, %v3447_v27  ;;  %3412 = vst.msk [vmem:[%s5604_s14 + $0x58] sm:$0xff] %vm439_vm0, %v3380_v52  ;;  %v3550_v30 = vadd.f32 %v3549_v8, %v3548_v29  ;;  %v3515_v32 = vmul.f32 %v3380_v52, %v3380_v52  ;;  %v3555_v23 = vsel %vm439_vm0, %v3514_v48, 0.0 }
 0x1f8   : > { %v3551_v24 = vsel %vm439_vm0, %v3512_v57, 0.0  ;;  %3410 = vst.msk [vmem:[%s5604_s14 + $0x48] sm:$0xff] %vm439_vm0, %v3378_v6  ;;  %v3450_v28 = vsel %vm439_vm0, %v3378_v6, 0.0  ;;  %v3513_v44 = vmul.f32 %v3378_v6, %v3378_v6  ;;  %v4493_v45 = vpop.f32.mrb[12].mxu0 }
 0x1f9   : > { %v3451_v50 = vadd.f32 %v3450_v28, %v3449_v38  ;;  %v4531_v19 = vadd.f32 %v4493_v45, %v5586_v13  ;;  %v3251_v0 = vpop.f32.mrb[13].mxu0  ;;  %v3552_v31 = vadd.f32 %v3551_v24, %v3550_v30  ;;  %v3454_v13 = vsel %vm439_vm0, %v3380_v52, 0.0 }
 0x1fa   : > { %v3553_v7 = vsel %vm439_vm0, %v3513_v44, 0.0  ;;  %v4532_v12 = vadd.f32 %v3251_v0, %v5588_v18  ;;  %v4494_v22 = vpop.f32.mrb[14].mxu0 }
 0x1fb   : > { %v3453_v17 = vadd.f32 %v3452_v20, %v3451_v50  ;;  %v3383_v25 = vadd.f32 %v4531_v19, %v5597_v34  ;;  %v4533_v41 = vadd.f32 %v4494_v22, %v5590_v10  ;;  %v3254_v47 = vpop.f32.mrb[15].mxu0  ;;  %v3554_v58 = vadd.f32 %v3553_v7, %v3552_v31 }
 0x1fc   : > { %v3381_v49 = vadd.f32 %v4532_v12, %v5597_v34  ;;  %v4534_v62 = vadd.f32 %v3254_v47, %v5592_v21  ;;  %v3557_v21 = vsel %vm439_vm0, %v3515_v32, 0.0 }
 0x1fd   : > { %3415 = vst.msk [vmem:[%s5604_s14 + $0x70] sm:$0xff] %vm439_vm0, %v3383_v25  ;;  %v3455_v18 = vadd.f32 %v3454_v13, %v3453_v17  ;;  %v3384_v54 = vadd.f32 %v4533_v41, %v5597_v34  ;;  %v3556_v16 = vadd.f32 %v3555_v23, %v3554_v58  ;;  %v3518_v37 = vmul.f32 %v3383_v25, %v3383_v25 }
 0x1fe   : > { %v4337_v60 = vpop.f32.mrb[16].mxu1  ;;  %3413 = vst.msk [vmem:[%s5604_s14 + $0x60] sm:$0xff] %vm439_vm0, %v3381_v49  ;;  %v3456_v10 = vsel %vm439_vm0, %v3381_v49, 0.0  ;;  %v3516_v63 = vmul.f32 %v3381_v49, %v3381_v49  ;;  %v3382_v14 = vadd.f32 %v4534_v62, %v5597_v34  ;;  %v3460_v43 = vsel %vm439_vm0, %v3383_v25, 0.0 }
 0x1ff   : > { %v1978_v55 = vpop.f32.mrb[17].mxu1  ;;  %v3457_v59 = vadd.f32 %v3456_v10, %v3455_v18  ;;  %3416 = vst.msk [vmem:[%s5604_s14 + $0x78] sm:$0xff] %vm439_vm0, %v3384_v54  ;;  %v3558_v36 = vadd.f32 %v3557_v21, %v3556_v16  ;;  %v3519_v42 = vmul.f32 %v3384_v54, %v3384_v54  ;;  %v3462_v27 = vsel %vm439_vm0, %v3384_v54, 0.0 }
 0x200   : > { %v4338_v15 = vpop.f32.mrb[18].mxu1  ;;  %v3559_v61 = vsel %vm439_vm0, %v3516_v63, 0.0  ;;  %3414 = vst.msk [vmem:[%s5604_s14 + $0x68] sm:$0xff] %vm439_vm0, %v3382_v14  ;;  %v3458_v1 = vsel %vm439_vm0, %v3382_v14, 0.0  ;;  %v3517_v2 = vmul.f32 %v3382_v14, %v3382_v14  ;;  %v4497_v3 = vpop.f32.mrb[16].mxu0  ;;  %v3563_v57 = vsel %vm439_vm0, %v3518_v37, 0.0 }
 0x201   : > { %v1981_v4 = vpop.f32.mrb[19].mxu1  ;;  %v3459_v33 = vadd.f32 %v3458_v1, %v3457_v59  ;;  %v4535_v39 = vadd.f32 %v4497_v3, %v4337_v60  ;;  %v3267_v40 = vpop.f32.mrb[17].mxu0  ;;  %v3560_v26 = vadd.f32 %v3559_v61, %v3558_v36  ;;  %v3565_v48 = vsel %vm439_vm0, %v3519_v42, 0.0 }
 0x202   : > { %v3561_v35 = vsel %vm439_vm0, %v3517_v2, 0.0  ;;  %v4536_v46 = vadd.f32 %v3267_v40, %v1978_v55  ;;  %v4498_v53 = vpop.f32.mrb[18].mxu0 }
 0x203   : > { %v3461_v56 = vadd.f32 %v3460_v43, %v3459_v33  ;;  %v3387_v5 = vadd.f32 %v4535_v39, %v5597_v34  ;;  %v4537_v11 = vadd.f32 %v4498_v53, %v4338_v15  ;;  %v3270_v51 = vpop.f32.mrb[19].mxu0  ;;  %v3562_v52 = vadd.f32 %v3561_v35, %v3560_v26 }
 0x204   : > { %v3385_v29 = vadd.f32 %v4536_v46, %v5597_v34  ;;  %v4538_v9 = vadd.f32 %v3270_v51, %v1981_v4 }
 0x205   : > { %3419 = vst.msk [vmem:[%s5604_s14 + $0x90] sm:$0xff] %vm439_vm0, %v3387_v5  ;;  %v3463_v6 = vadd.f32 %v3462_v27, %v3461_v56  ;;  %v3388_v8 = vadd.f32 %v4537_v11, %v5597_v34  ;;  %v3564_v30 = vadd.f32 %v3563_v57, %v3562_v52  ;;  %v3522_v32 = vmul.f32 %v3387_v5, %v3387_v5 }
 0x206   : > { %v4341_v38 = vpop.f32.mrb[20].mxu1  ;;  %3417 = vst.msk [vmem:[%s5604_s14 + $0x80] sm:$0xff] %vm439_vm0, %v3385_v29  ;;  %v3464_v24 = vsel %vm439_vm0, %v3385_v29, 0.0  ;;  %v3520_v28 = vmul.f32 %v3385_v29, %v3385_v29  ;;  %v3386_v44 = vadd.f32 %v4538_v9, %v5597_v34  ;;  %v3468_v47 = vsel %vm439_vm0, %v3387_v5, 0.0 }
 0x207   : > { %v1994_v45 = vpop.f32.mrb[21].mxu1  ;;  %v3465_v50 = vadd.f32 %v3464_v24, %v3463_v6  ;;  %3420 = vst.msk [vmem:[%s5604_s14 + $0x98] sm:$0xff] %vm439_vm0, %v3388_v8  ;;  %v3566_v0 = vadd.f32 %v3565_v48, %v3564_v30  ;;  %v3523_v23 = vmul.f32 %v3388_v8, %v3388_v8  ;;  %v3470_v10 = vsel %vm439_vm0, %v3388_v8, 0.0 }
 0x208   : > { %v4342_v19 = vpop.f32.mrb[22].mxu1  ;;  %v3567_v20 = vsel %vm439_vm0, %v3520_v28, 0.0  ;;  %3418 = vst.msk [vmem:[%s5604_s14 + $0x88] sm:$0xff] %vm439_vm0, %v3386_v44  ;;  %v3466_v31 = vsel %vm439_vm0, %v3386_v44, 0.0  ;;  %v3521_v7 = vmul.f32 %v3386_v44, %v3386_v44  ;;  %v4501_v12 = vpop.f32.mrb[20].mxu0  ;;  %v3571_v21 = vsel %vm439_vm0, %v3522_v32, 0.0 }
 0x209   : > { %v1997_v22 = vpop.f32.mrb[23].mxu1  ;;  %v3467_v17 = vadd.f32 %v3466_v31, %v3465_v50  ;;  %v4539_v25 = vadd.f32 %v4501_v12, %v4341_v38  ;;  %v3283_v41 = vpop.f32.mrb[21].mxu0  ;;  %v3568_v13 = vadd.f32 %v3567_v20, %v3566_v0  ;;  %v3573_v37 = vsel %vm439_vm0, %v3523_v23, 0.0 }
 0x20a   : > { %v3569_v58 = vsel %vm439_vm0, %v3521_v7, 0.0  ;;  %v4540_v49 = vadd.f32 %v3283_v41, %v1994_v45  ;;  %v4502_v62 = vpop.f32.mrb[22].mxu0 }
 0x20b   : > { %v3469_v18 = vadd.f32 %v3468_v47, %v3467_v17  ;;  %v3391_v54 = vadd.f32 %v4539_v25, %v5597_v34  ;;  %v4541_v60 = vadd.f32 %v4502_v62, %v4342_v19  ;;  %v3286_v16 = vpop.f32.mrb[23].mxu0  ;;  %v3570_v63 = vadd.f32 %v3569_v58, %v3568_v13 }
 0x20c   : > { %v3389_v14 = vadd.f32 %v4540_v49, %v5597_v34  ;;  %v4542_v55 = vadd.f32 %v3286_v16, %v1997_v22 }
 0x20d   : > { %3423 = vst.msk [vmem:[%s5604_s14 + $0xb0] sm:$0xff] %vm439_vm0, %v3391_v54  ;;  %v3471_v59 = vadd.f32 %v3470_v10, %v3469_v18  ;;  %v3392_v15 = vadd.f32 %v4541_v60, %v5597_v34  ;;  %v3572_v61 = vadd.f32 %v3571_v21, %v3570_v63  ;;  %v3526_v42 = vmul.f32 %v3391_v54, %v3391_v54 }
 0x20e   : > { %v4345_v36 = vpop.f32.mrb[24].mxu1  ;;  %3421 = vst.msk [vmem:[%s5604_s14 + $0xa0] sm:$0xff] %vm439_vm0, %v3389_v14  ;;  %v3472_v1 = vsel %vm439_vm0, %v3389_v14, 0.0  ;;  %v3524_v2 = vmul.f32 %v3389_v14, %v3389_v14  ;;  %v3390_v3 = vadd.f32 %v4542_v55, %v5597_v34  ;;  %v3476_v51 = vsel %vm439_vm0, %v3391_v54, 0.0 }
 0x20f   : > { %v2010_v4 = vpop.f32.mrb[25].mxu1  ;;  %v3473_v33 = vadd.f32 %v3472_v1, %v3471_v59  ;;  %3424 = vst.msk [vmem:[%s5604_s14 + $0xb8] sm:$0xff] %vm439_vm0, %v3392_v15  ;;  %v3574_v40 = vadd.f32 %v3573_v37, %v3572_v61  ;;  %v3527_v57 = vmul.f32 %v3392_v15, %v3392_v15  ;;  %v3478_v24 = vsel %vm439_vm0, %v3392_v15, 0.0 }
 0x210   : > { %v4346_v39 = vpop.f32.mrb[26].mxu1  ;;  %v3575_v43 = vsel %vm439_vm0, %v3524_v2, 0.0  ;;  %3422 = vst.msk [vmem:[%s5604_s14 + $0xa8] sm:$0xff] %vm439_vm0, %v3390_v3  ;;  %v3474_v26 = vsel %vm439_vm0, %v3390_v3, 0.0  ;;  %v3525_v35 = vmul.f32 %v3390_v3, %v3390_v3  ;;  %v4505_v46 = vpop.f32.mrb[24].mxu0  ;;  %v3579_v48 = vsel %vm439_vm0, %v3526_v42, 0.0 }
 0x211   : > { %v2013_v53 = vpop.f32.mrb[27].mxu1  ;;  %v3475_v56 = vadd.f32 %v3474_v26, %v3473_v33  ;;  %v4543_v5 = vadd.f32 %v4505_v46, %v4345_v36  ;;  %v3299_v11 = vpop.f32.mrb[25].mxu0  ;;  %v3576_v27 = vadd.f32 %v3575_v43, %v3574_v40  ;;  %v3581_v32 = vsel %vm439_vm0, %v3527_v57, 0.0 }
 0x212   : > { %v3577_v52 = vsel %vm439_vm0, %v3525_v35, 0.0  ;;  %v4544_v29 = vadd.f32 %v3299_v11, %v2010_v4  ;;  %v4506_v9 = vpop.f32.mrb[26].mxu0 }
 0x213   : > { %v3477_v6 = vadd.f32 %v3476_v51, %v3475_v56  ;;  %v3395_v8 = vadd.f32 %v4543_v5, %v5597_v34  ;;  %v4545_v38 = vadd.f32 %v4506_v9, %v4346_v39  ;;  %v3302_v30 = vpop.f32.mrb[27].mxu0  ;;  %v3578_v28 = vadd.f32 %v3577_v52, %v3576_v27 }
 0x214   : > { %v3393_v44 = vadd.f32 %v4544_v29, %v5597_v34  ;;  %v4546_v45 = vadd.f32 %v3302_v30, %v2013_v53 }
 0x215   : > { %3427 = vst.msk [vmem:[%s5604_s14 + $0xd0] sm:$0xff] %vm439_vm0, %v3395_v8  ;;  %v3479_v50 = vadd.f32 %v3478_v24, %v3477_v6  ;;  %v3396_v19 = vadd.f32 %v4545_v38, %v5597_v34  ;;  %v3580_v20 = vadd.f32 %v3579_v48, %v3578_v28  ;;  %v3530_v23 = vmul.f32 %v3395_v8, %v3395_v8 }
 0x216   : > { %v4349_v0 = vpop.f32.mrb[28].mxu1  ;;  %3425 = vst.msk [vmem:[%s5604_s14 + $0xc0] sm:$0xff] %vm439_vm0, %v3393_v44  ;;  %v3480_v31 = vsel %vm439_vm0, %v3393_v44, 0.0  ;;  %v3528_v7 = vmul.f32 %v3393_v44, %v3393_v44  ;;  %v3394_v12 = vadd.f32 %v4546_v45, %v5597_v34  ;;  %v3484_v16 = vsel %vm439_vm0, %v3395_v8, 0.0 }
 0x217   : > { %v2026_v22 = vpop.f32.mrb[29].mxu1  ;;  %v3481_v17 = vadd.f32 %v3480_v31, %v3479_v50  ;;  %3428 = vst.msk [vmem:[%s5604_s14 + $0xd8] sm:$0xff] %vm439_vm0, %v3396_v19  ;;  %v3582_v41 = vadd.f32 %v3581_v32, %v3580_v20  ;;  %v3531_v21 = vmul.f32 %v3396_v19, %v3396_v19  ;;  %v3486_v1 = vsel %vm439_vm0, %v3396_v19, 0.0 }
 0x218   : > { %v4350_v25 = vpop.f32.mrb[30].mxu1  ;;  %v3583_v47 = vsel %vm439_vm0, %v3528_v7, 0.0  ;;  %3426 = vst.msk [vmem:[%s5604_s14 + $0xc8] sm:$0xff] %vm439_vm0, %v3394_v12  ;;  %v3482_v13 = vsel %vm439_vm0, %v3394_v12, 0.0  ;;  %v3529_v58 = vmul.f32 %v3394_v12, %v3394_v12  ;;  %v4509_v49 = vpop.f32.mrb[28].mxu0  ;;  %v3587_v37 = vsel %vm439_vm0, %v3530_v23, 0.0 }
 0x219   : > { %v2029_v62 = vpop.f32.mrb[31].mxu1  ;;  %v3483_v18 = vadd.f32 %v3482_v13, %v3481_v17  ;;  %v4547_v54 = vadd.f32 %v4509_v49, %v4349_v0  ;;  %v3315_v60 = vpop.f32.mrb[29].mxu0  ;;  %v3584_v10 = vadd.f32 %v3583_v47, %v3582_v41  ;;  %v3589_v46 = vsel %vm439_vm0, %v3531_v21, 0.0 }
 0x21a   : > { %v3585_v63 = vsel %vm439_vm0, %v3529_v58, 0.0  ;;  %v4548_v14 = vadd.f32 %v3315_v60, %v2026_v22  ;;  %v4510_v55 = vpop.f32.mrb[30].mxu0 }
 0x21b   : > { %v3485_v59 = vadd.f32 %v3484_v16, %v3483_v18  ;;  %v3399_v15 = vadd.f32 %v4547_v54, %v5597_v34  ;;  %v4549_v36 = vadd.f32 %v4510_v55, %v4350_v25  ;;  %v3318_v61 = vpop.f32.mrb[31].mxu0  ;;  %v3586_v2 = vadd.f32 %v3585_v63, %v3584_v10 }
 0x21c   : > { %v3397_v3 = vadd.f32 %v4548_v14, %v5597_v34  ;;  %v4550_v4 = vadd.f32 %v3318_v61, %v2029_v62 }
 0x21d   : > { %3431 = vst.msk [vmem:[%s5604_s14 + $0xf0] sm:$0xff] %vm439_vm0, %v3399_v15  ;;  %v3487_v33 = vadd.f32 %v3486_v1, %v3485_v59  ;;  %v3400_v39 = vadd.f32 %v4549_v36, %v5597_v34  ;;  %v3588_v40 = vadd.f32 %v3587_v37, %v3586_v2  ;;  %v3534_v51 = vmul.f32 %v3399_v15, %v3399_v15 }
 0x21e   : > { %3429 = vst.msk [vmem:[%s5604_s14 + $0xe0] sm:$0xff] %vm439_vm0, %v3397_v3  ;;  %v3488_v43 = vsel %vm439_vm0, %v3397_v3, 0.0  ;;  %v3532_v26 = vmul.f32 %v3397_v3, %v3397_v3  ;;  %v3398_v35 = vadd.f32 %v4550_v4, %v5597_v34  ;;  %v3492_v52 = vsel %vm439_vm0, %v3399_v15, 0.0 }
 0x21f   : > { %v3489_v53 = vadd.f32 %v3488_v43, %v3487_v33  ;;  %3432 = vst.msk [vmem:[%s5604_s14 + $0xf8] sm:$0xff] %vm439_vm0, %v3400_v39  ;;  %v3590_v42 = vadd.f32 %v3589_v46, %v3588_v40  ;;  %v3535_v9 = vmul.f32 %v3400_v39, %v3400_v39  ;;  %v3494_v6 = vsel %vm439_vm0, %v3400_v39, 0.0 }
 0x220   : > { %v3591_v56 = vsel %vm439_vm0, %v3532_v26, 0.0  ;;  %3430 = vst.msk [vmem:[%s5604_s14 + $0xe8] sm:$0xff] %vm439_vm0, %v3398_v35  ;;  %v3490_v5 = vsel %vm439_vm0, %v3398_v35, 0.0  ;;  %v3533_v11 = vmul.f32 %v3398_v35, %v3398_v35  ;;  %v3595_v38 = vsel %vm439_vm0, %v3534_v51, 0.0 }
 0x221   : > { %v3491_v27 = vadd.f32 %v3490_v5, %v3489_v53  ;;  %v3592_v29 = vadd.f32 %v3591_v56, %v3590_v42  ;;  %v3597_v28 = vsel %vm439_vm0, %v3535_v9, 0.0 }
 0x222   : > { %v3593_v34 = vsel %vm439_vm0, %v3533_v11, 0.0 }
 0x223   : > { %v3493_v57 = vadd.f32 %v3492_v52, %v3491_v27  ;;  %v3594_v8 = vadd.f32 %v3593_v34, %v3592_v29 }
 0x225   : > { %v3495_v30 = vadd.f32 %v3494_v6, %v3493_v57  ;;  %v3596_v24 = vadd.f32 %v3595_v38, %v3594_v8 }
 0x227   : > { %v3496_v44 = vrot.slane %v3495_v30, 4  ;;  %v3598_v45 = vadd.f32 %v3597_v28, %v3596_v24 }
 0x229   : > { %v3497_v48 = vadd.f32 %v3496_v44, %v3495_v30  ;;  %v3599_v50 = vrot.slane %v3598_v45, 4 }
 0x22b   : > { %v3498_v19 = vrot.slane %v3497_v48, 2  ;;  %v3600_v0 = vadd.f32 %v3599_v50, %v3598_v45 }
 0x22d   : > { %v3499_v20 = vadd.f32 %v3498_v19, %v3497_v48  ;;  %v3601_v31 = vrot.slane %v3600_v0, 2 }
 0x22f   : > { %v3500_v7 = vrot.slane %v3499_v20, 1  ;;  %v3602_v12 = vadd.f32 %v3601_v31, %v3600_v0 }
 0x231   : > { %v3501_v22 = vadd.f32 %v3500_v7, %v3499_v20  ;;  %v3603_v32 = vrot.slane %v3602_v12, 1 }
 0x233   : > { %3503 = vst.msk [vmem:[%s292_s16] sm:$0x1] %vm3502_vm2, %v3501_v22  ;;  %v3604_v17 = vadd.f32 %v3603_v32, %v3602_v12 }
 0x235   : > { %3605 = vst.msk [vmem:[%s295_s20] sm:$0x1] %vm3502_vm2, %v3604_v17 }
 0x236 PF: > { %s18_s24 = sadd.s32 1, %s4830_s24  }
 0x237   : > { %p15_p4 = scmp.ge.s32.totalorder %s18_s24, 4  }
 0x239   :  { %17 = sbr.rel (!%p15_p4) target bundleno = 1 (0x1), region = 104 }

// kernel: parts_forward.8
= control target key start
LH: loop header
LB: loop body
LE: loop exit
PB: predicated region body
PF: predicated region fallthrough
CT: control target
= control target key end

     0   :  { %s4808_s24 = smov 0   ;;  %s5618_s0 = inlined_call_operand.vmem [shape: f32[2,16,16,64], index: 0, kind: input, shape index: {}]   ;;  %s5619_s1 = inlined_call_operand.vmem [shape: f32[1,64], index: 1, kind: input, shape index: {}]   ;;  %s5620_s2 = inlined_call_operand.vmem [shape: f32[1,64], index: 2, kind: input, shape index: {}]   ;;  %s5621_s3 = inlined_call_operand.vmem [shape: bf16[9,64,128], index: 3, kind: input, shape index: {}]   ;;  %s5622_s4 = inlined_call_operand.vmem [shape: f32[1,128], index: 4, kind: input, shape index: {}]   ;;  %s5623_s5 = inlined_call_operand.vmem [shape: f32[2,16,16,128], index: 5, kind: output, shape index: {0}]   ;;  %s5624_s6 = inlined_call_operand.vmem [shape: f32[2,1,128], index: 6, kind: output, shape index: {1}]   ;;  %s5625_s7 = inlined_call_operand.vmem [shape: f32[2,1,128], index: 7, kind: output, shape index: {2}]  }
   0x1 LB: > { %s3646_s25 = sadd.s32 4294967295, %s4765_s24   ;;  %p3650_p0 = scmp.ge.s32.totalorder %s4765_s24, 1  ;;  %s4765_s24 = sphi %s4808_s24, %s18_s24  }
   0x2   : > { %p242_p1 = scmp.lt.s32.totalorder %s4765_s24, 3 }
   0x4   : > { %p243_p2 = pnand %p3650_p0, %p242_p1 }
   0x5   : > { %v4719_v0 = vld [vmem:[%s5621_s3 + $0x20] sm:$0xff] (!%p243_p2)   ;;  %vm439_vm0 = vcmask (!%p243_p2), 523264   ;;  %v4825_v2 = vld [vmem:[%s5621_s3 + $0x28] sm:$0xff] (!%p243_p2)   ;;  %v4767_v3 = vmov (!%p243_p2), 0.0   ;;  %vm442_vm1 = vcmask (!%p243_p2), 517120   ;;  %p280_p3 = scmp.lt.s32.totalorder (!%p243_p2), %s3646_s25, 1 }
   0x6   : > { %246 = sbr.rel (%p243_p2) target bundleno = 565 (0x235), region = 40  ;;  %v4720_v1 = vld [vmem:[%s5621_s3 + $0x80] sm:$0xff] (!%p243_p2)   ;;  %4086 = vmatprep.subr.bf16.mxu1 (!%p243_p2), %v4719_v0  ;;  %440 = vst.msk [vmem:[#allocation2] sm:$0xff] (!%p243_p2), %vm439_vm0, %v4767_v3  ;;  %441 = vst.msk [vmem:[#allocation2 + $0x8] sm:$0xff] (!%p243_p2), %vm439_vm0, %v4767_v3  ;;  %v4722_v4 = vld [vmem:[%s5621_s3 + $0x88] sm:$0xff] (!%p243_p2)  }
   0x7   : > { %444 = vst.msk [vmem:[#allocation2 + $0x18] sm:$0xff] (!%p243_p2), %vm439_vm0, %v4767_v3  ;;  %445 = vst.msk [vmem:[#allocation2 + $0x20] sm:$0xff] (!%p243_p2), %vm439_vm0, %v4767_v3  ;;  %4246 = vmatprep.subr.bf16.mxu0 (!%p243_p2), %v4720_v1  ;;  %4087 = vmatpush3.bf16.msra.mxu1 (!%p243_p2), %v4719_v0  ;;  %v4723_v5 = vld [vmem:[%s5621_s3 + $0x30] sm:$0xff] (!%p243_p2)   ;;  %v4725_v7 = vld [vmem:[%s5621_s3 + $0x38] sm:$0xff] (!%p243_p2)  }
   0x8   : > { %447 = vst.msk [vmem:[#allocation2 + $0x30] sm:$0xff] (!%p243_p2), %vm439_vm0, %v4767_v3  ;;  %448 = vst.msk [vmem:[#allocation2 + $0x38] sm:$0xff] (!%p243_p2), %vm439_vm0, %v4767_v3  ;;  %4247 = vmatpush3.bf16.msra.mxu0 (!%p243_p2), %v4720_v1  ;;  %4088 = vmatprep.subr.bf16.mxu1 (!%p243_p2), %v4825_v2  ;;  %v4724_v6 = vld [vmem:[%s5621_s3 + $0x90] sm:$0xff] (!%p243_p2)   ;;  %v4726_v8 = vld [vmem:[%s5621_s3 + $0x98] sm:$0xff] (!%p243_p2)  }
   0x9   : > { %450 = vst.msk [vmem:[#allocation2 + $0x48] sm:$0xff] (!%p243_p2), %vm439_vm0, %v4767_v3  ;;  %451 = vst.msk [vmem:[#allocation2 + $0x50] sm:$0xff] (!%p243_p2), %vm439_vm0, %v4767_v3  ;;  %4248 = vmatprep.subr.bf16.mxu0 (!%p243_p2), %v4722_v4  ;;  %v4915_v9 = vld [vmem:[%s5619_s1] ss:$0 sm:$0xff] (!%p243_p2) }
   0xa   : > { %453 = vst.msk [vmem:[#allocation2 + $0x60] sm:$0xff] (!%p243_p2), %vm439_vm0, %v4767_v3  ;;  %454 = vst.msk [vmem:[#allocation2 + $0x68] sm:$0xff] (!%p243_p2), %vm439_vm0, %v4767_v3  ;;  %v4920_v10 = vld [vmem:[%s5620_s2] ss:$0 sm:$0xff] (!%p243_p2) }
   0xb   : > { %456 = vst.msk [vmem:[#allocation2 + $0x78] sm:$0xff] (!%p243_p2), %vm439_vm0, %v4767_v3  ;;  %457 = vst.msk [vmem:[#allocation2 + $0x80] sm:$0xff] (!%p243_p2), %vm439_vm0, %v4767_v3  ;;  %4089 = vmatpush3.bf16.msra.mxu1 (!%p243_p2), %v4825_v2  ;;  %v4929_v17 = vld [vmem:[%s5621_s3] sm:$0xff] (!%p243_p2)  }
   0xc   : > { %459 = vst.msk [vmem:[#allocation2 + $0x90] sm:$0xff] (!%p243_p2), %vm439_vm0, %v4767_v3  ;;  %460 = vst.msk [vmem:[#allocation2 + $0x98] sm:$0xff] (!%p243_p2), %vm439_vm0, %v4767_v3  ;;  %4249 = vmatpush3.bf16.msra.mxu0 (!%p243_p2), %v4722_v4  ;;  %4090 = vmatprep.subr.bf16.mxu1 (!%p243_p2), %v4723_v5  ;;  %v4934_v19 = vld [vmem:[%s5621_s3 + $0xa0] sm:$0xff] (!%p243_p2)  }
   0xd   : > { %462 = vst.msk [vmem:[#allocation2 + $0xa8] sm:$0xff] %vm439_vm0, %v4767_v3  ;;  %463 = vst.msk [vmem:[#allocation2 + $0xb0] sm:$0xff] %vm439_vm0, %v4767_v3  ;;  %s5627_s25 = smov (!%p280_p3, %s3646_s25), 1  ;;  %4250 = vmatprep.subr.bf16.mxu0 %v4724_v6  ;;  %v584_v11 = vld [vmem:[#allocation2 + $0x1] sm:$0xff] }
   0xe   : > { %465 = vst.msk [vmem:[#allocation2 + $0xc0] sm:$0xff] %vm439_vm0, %v4767_v3  ;;  %466 = vst.msk [vmem:[#allocation2 + $0xc8] sm:$0xff] %vm439_vm0, %v4767_v3  ;;  %s3904_s19 = sshll.u32 %s5627_s25, 8  ;;  %s292_s16 = scalar_lea.vmem %s5624_s6, %s5627_s25 }
   0xf   : > { %468 = vst.msk [vmem:[#allocation2 + $0xd8] sm:$0xff] %vm439_vm0, %v4767_v3  ;;  %469 = vst.msk [vmem:[#allocation2 + $0xe0] sm:$0xff] %vm439_vm0, %v4767_v3  ;;  %s4910_s22 = scalar_lea.vmem %s5618_s0, %s3904_s19  ;;  %4091 = vmatpush3.bf16.msra.mxu1 %v4723_v5  ;;  %s5535_s14 = scalar_lea.vmem %s5623_s5, %s3904_s19 }
  0x10   : > { %471 = vst.msk [vmem:[#allocation2 + $0xf0] sm:$0xff] %vm439_vm0, %v4767_v3  ;;  %472 = vst.msk [vmem:[#allocation2 + $0xf8] sm:$0xff] %vm439_vm0, %v4767_v3  ;;  %v297_v12 = vld [vmem:[%s4910_s22] sm:$0xff]  ;;  %v298_v13 = vld [vmem:[%s4910_s22 + $0x8] sm:$0xff]  ;;  %4251 = vmatpush3.bf16.msra.mxu0 %v4724_v6  ;;  %4092 = vmatprep.subr.bf16.mxu1 %v4725_v7  ;;  %s295_s20 = scalar_lea.vmem %s5625_s7, %s5627_s25 }
  0x11   : > { %474 = vst.msk [vmem:[#allocation2 + $0x108] sm:$0xff] %vm439_vm0, %v4767_v3  ;;  %475 = vst.msk [vmem:[#allocation2 + $0x110] sm:$0xff] %vm439_vm0, %v4767_v3  ;;  %v336_v15 = vmul.f32 %v4915_v9, %v297_v12  ;;  %v337_v16 = vmul.f32 %v4915_v9, %v298_v13  ;;  %v299_v22 = vld [vmem:[%s4910_s22 + $0x10] sm:$0xff]  ;;  %v300_v23 = vld [vmem:[%s4910_s22 + $0x18] sm:$0xff]  ;;  %4252 = vmatprep.subr.bf16.mxu0 %v4726_v8 }
  0x12   : > { %477 = vst.msk [vmem:[#allocation2 + $0x120] sm:$0xff] %vm439_vm0, %v4767_v3  ;;  %478 = vst.msk [vmem:[#allocation2 + $0x128] sm:$0xff] %vm439_vm0, %v4767_v3  ;;  %v301_v24 = vld [vmem:[%s4910_s22 + $0x20] sm:$0xff]  ;;  %v338_v25 = vmul.f32 %v4915_v9, %v299_v22  ;;  %v339_v26 = vmul.f32 %v4915_v9, %v300_v23  ;;  %v302_v27 = vld [vmem:[%s4910_s22 + $0x28] sm:$0xff] }
  0x13   : > { %480 = vst.msk [vmem:[#allocation2 + $0x138] sm:$0xff] %vm439_vm0, %v4767_v3  ;;  %481 = vst.msk [vmem:[#allocation2 + $0x140] sm:$0xff] %vm439_vm0, %v4767_v3  ;;  %v375_v20 = vadd.f32 %v4920_v10, %v336_v15  ;;  %v376_v21 = vadd.f32 %v4920_v10, %v337_v16  ;;  %v340_v28 = vmul.f32 %v4915_v9, %v301_v24  ;;  %v303_v32 = vld [vmem:[%s4910_s22 + $0x30] sm:$0xff]  ;;  %v304_v33 = vld [vmem:[%s4910_s22 + $0x38] sm:$0xff]  ;;  %4093 = vmatpush3.bf16.msra.mxu1 %v4725_v7 }
  0x14   : > { %483 = vst.msk [vmem:[#allocation2 + $0x150] sm:$0xff] %vm439_vm0, %v4767_v3  ;;  %484 = vst.msk [vmem:[#allocation2 + $0x158] sm:$0xff] %vm439_vm0, %v4767_v3  ;;  %v341_v31 = vmul.f32 %v4915_v9, %v302_v27  ;;  %v377_v34 = vadd.f32 %v4920_v10, %v338_v25  ;;  %v378_v35 = vadd.f32 %v4920_v10, %v339_v26  ;;  %v305_v38 = vld [vmem:[%s4910_s22 + $0x40] sm:$0xff]  ;;  %v306_v39 = vld [vmem:[%s4910_s22 + $0x48] sm:$0xff]  ;;  %4253 = vmatpush3.bf16.msra.mxu0 %v4726_v8 }
  0x15   : > { %486 = vst.msk [vmem:[#allocation2 + $0x168] sm:$0xff] %vm439_vm0, %v4767_v3  ;;  %487 = vst.msk [vmem:[#allocation2 + $0x170] sm:$0xff] %vm439_vm0, %v4767_v3  ;;  %v407_v29 = vmax.f32 %v375_v20, 0.0  ;;  %v408_v30 = vmax.f32 %v376_v21, 0.0  ;;  %v379_v36 = vadd.f32 %v4920_v10, %v340_v28  ;;  %v342_v37 = vmul.f32 %v4915_v9, %v303_v32  ;;  %4126 = vmatprep.subr.bf16.mxu1 %v4929_v17  ;;  %v307_v51 = vld [vmem:[%s4910_s22 + $0x50] sm:$0xff]  ;;  %v308_v52 = vld [vmem:[%s4910_s22 + $0x58] sm:$0xff] }
  0x16   : > { %489 = vst.msk [vmem:[#allocation2 + $0x180] sm:$0xff] %vm439_vm0, %v4767_v3  ;;  %490 = vst.msk [vmem:[#allocation2 + $0x188] sm:$0xff] %vm439_vm0, %v4767_v3  ;;  %v380_v40 = vadd.f32 %v4920_v10, %v341_v31  ;;  %v343_v41 = vmul.f32 %v4915_v9, %v304_v33  ;;  %v344_v42 = vmul.f32 %v4915_v9, %v305_v38  ;;  %4286 = vmatprep.subr.bf16.mxu0 %v4934_v19  ;;  %v309_v53 = vld [vmem:[%s4910_s22 + $0x60] sm:$0xff]  ;;  %v310_v57 = vld [vmem:[%s4910_s22 + $0x68] sm:$0xff] }
  0x17   : > { %492 = vst.msk [vmem:[#allocation2 + $0x198] sm:$0xff] %vm439_vm0, %v4767_v3  ;;  %493 = vst.msk [vmem:[#allocation2 + $0x1a0] sm:$0xff] %vm439_vm0, %v4767_v3  ;;  %v409_v43 = vmax.f32 %v377_v34, 0.0  ;;  %v410_v44 = vmax.f32 %v378_v35, 0.0  ;;  %v411_v45 = vmax.f32 %v379_v36, 0.0  ;;  %v381_v46 = vadd.f32 %v4920_v10, %v342_v37  ;;  %v311_v63 = vld [vmem:[%s4910_s22 + $0x70] sm:$0xff] }
  0x18   : > { %443 = vst.msk [vmem:[#allocation2 + $0x10] sm:$0x3] %vm442_vm1, %v4767_v3  ;;  %446 = vst.msk [vmem:[#allocation2 + $0x28] sm:$0x3] %vm442_vm1, %v4767_v3  ;;  %v412_v47 = vmax.f32 %v380_v40, 0.0  ;;  %v382_v48 = vadd.f32 %v4920_v10, %v343_v41  ;;  %v345_v49 = vmul.f32 %v4915_v9, %v306_v39  ;;  %v383_v50 = vadd.f32 %v4920_v10, %v344_v42  ;;  %v312_v0 = vld [vmem:[%s4910_s22 + $0x78] sm:$0xff] }
  0x19   : > { %449 = vst.msk [vmem:[#allocation2 + $0x40] sm:$0x3] %vm442_vm1, %v4767_v3  ;;  %452 = vst.msk [vmem:[#allocation2 + $0x58] sm:$0x3] %vm442_vm1, %v4767_v3  ;;  %v413_v54 = vmax.f32 %v381_v46, 0.0  ;;  %v346_v55 = vmul.f32 %v4915_v9, %v307_v51  ;;  %v347_v56 = vmul.f32 %v4915_v9, %v308_v52  ;;  %v348_v58 = vmul.f32 %v4915_v9, %v309_v53  ;;  %v313_v5 = vld [vmem:[%s4910_s22 + $0x80] sm:$0xff] }
  0x1a   : > { %455 = vst.msk [vmem:[#allocation2 + $0x70] sm:$0x3] %vm442_vm1, %v4767_v3  ;;  %458 = vst.msk [vmem:[#allocation2 + $0x88] sm:$0x3] %vm442_vm1, %v4767_v3  ;;  %v414_v59 = vmax.f32 %v382_v48, 0.0  ;;  %v384_v60 = vadd.f32 %v4920_v10, %v345_v49  ;;  %v415_v61 = vmax.f32 %v383_v50, 0.0  ;;  %v349_v62 = vmul.f32 %v4915_v9, %v310_v57 }
  0x1b   : > { %461 = vst.msk [vmem:[#allocation2 + $0xa0] sm:$0x3] %vm442_vm1, %v4767_v3  ;;  %464 = vst.msk [vmem:[#allocation2 + $0xb8] sm:$0x3] %vm442_vm1, %v4767_v3  ;;  %v385_v1 = vadd.f32 %v4920_v10, %v346_v55  ;;  %v386_v2 = vadd.f32 %v4920_v10, %v347_v56  ;;  %v350_v4 = vmul.f32 %v4915_v9, %v311_v63  ;;  %v314_v6 = vld [vmem:[%s4910_s22 + $0x88] sm:$0xff]  ;;  %v315_v28 = vld [vmem:[%s4910_s22 + $0x90] sm:$0xff] }
  0x1c   : > { %467 = vst.msk [vmem:[#allocation2 + $0xd0] sm:$0x3] %vm442_vm1, %v4767_v3  ;;  %470 = vst.msk [vmem:[#allocation2 + $0xe8] sm:$0x3] %vm442_vm1, %v4767_v3  ;;  %v416_v7 = vmax.f32 %v384_v60, 0.0  ;;  %v388_v8 = vadd.f32 %v4920_v10, %v349_v62  ;;  %v352_v12 = vmul.f32 %v4915_v9, %v313_v5  ;;  %v4730_v22 = vld [vmem:[%s5621_s3 + $0x8] sm:$0xff]   ;;  %v353_v25 = vmul.f32 %v4915_v9, %v314_v6 }
  0x1d   : > { %473 = vst.msk [vmem:[#allocation2 + $0x100] sm:$0x3] %vm442_vm1, %v4767_v3  ;;  %476 = vst.msk [vmem:[#allocation2 + $0x118] sm:$0x3] %vm442_vm1, %v4767_v3  ;;  %v417_v15 = vmax.f32 %v385_v1, 0.0  ;;  %v418_v16 = vmax.f32 %v386_v2, 0.0  ;;  %v389_v20 = vadd.f32 %v4920_v10, %v350_v4  ;;  %v354_v36 = vmul.f32 %v4915_v9, %v315_v28 }
  0x1e   : > { %479 = vst.msk [vmem:[#allocation2 + $0x130] sm:$0x3] %vm442_vm1, %v4767_v3  ;;  %482 = vst.msk [vmem:[#allocation2 + $0x148] sm:$0x3] %vm442_vm1, %v4767_v3  ;;  %v420_v23 = vmax.f32 %v388_v8, 0.0  ;;  %v391_v27 = vadd.f32 %v4920_v10, %v352_v12  ;;  %v392_v35 = vadd.f32 %v4920_v10, %v353_v25  ;;  %v4729_v40 = vld [vmem:[%s5621_s3 + $0xa8] sm:$0xff]  }
  0x1f   : > { %485 = vst.msk [vmem:[#allocation2 + $0x160] sm:$0x3] %vm442_vm1, %v4767_v3  ;;  %488 = vst.msk [vmem:[#allocation2 + $0x178] sm:$0x3] %vm442_vm1, %v4767_v3  ;;  %v585_v14 = vld [vmem:[#allocation2 + $0x9] sm:$0xff]  ;;  %v421_v26 = vmax.f32 %v389_v20, 0.0 }
  0x20   : > { %491 = vst.msk [vmem:[#allocation2 + $0x190] sm:$0x3] %vm442_vm1, %v4767_v3  ;;  %494 = vst.msk [vmem:[#allocation2 + $0x1a8] sm:$0x3] %vm442_vm1, %v4767_v3  ;;  %v616_v18 = vpack.c.bf16 %v585_v14, %v584_v11  ;;  %v387_v3 = vadd.f32 %v4920_v10, %v348_v58  ;;  %v351_v11 = vmul.f32 %v4915_v9, %v312_v0  ;;  %v423_v41 = vmax.f32 %v391_v27, 0.0  ;;  %v318_v46 = vld [vmem:[%s4910_s22 + $0xa8] sm:$0xff] }
  0x21   : > { %496 = vst.msk [vmem:[#allocation2 + $0x19] sm:$0xff] %vm439_vm0, %v407_v29  ;;  %497 = vst.msk [vmem:[#allocation2 + $0x21] sm:$0xff] %vm439_vm0, %v408_v30  ;;  %v316_v29 = vld [vmem:[%s4910_s22 + $0x98] sm:$0xff]  ;;  %v317_v30 = vld [vmem:[%s4910_s22 + $0xa0] sm:$0xff]  ;;  %v357_v50 = vmul.f32 %v4915_v9, %v318_v46 }
  0x22   : > { %4094 = vmatprep.mubr.msk.bf16.mxu1 %vm439_vm0, %v616_v18  ;;  %498 = vst.msk [vmem:[#allocation2 + $0x31] sm:$0xff] %vm439_vm0, %v409_v43  ;;  %499 = vst.msk [vmem:[#allocation2 + $0x39] sm:$0xff] %vm439_vm0, %v410_v44  ;;  %v419_v18 = vmax.f32 %v387_v3, 0.0  ;;  %v390_v24 = vadd.f32 %v4920_v10, %v351_v11  ;;  %v355_v37 = vmul.f32 %v4915_v9, %v316_v29  ;;  %v424_v44 = vmax.f32 %v392_v35, 0.0  ;;  %v4731_v48 = vld [vmem:[%s5621_s3 + $0xb0] sm:$0xff]   ;;  %v320_v60 = vld [vmem:[%s4910_s22 + $0xb8] sm:$0xff] }
  0x23   : > { %500 = vst.msk [vmem:[#allocation2 + $0x49] sm:$0xff] %vm439_vm0, %v411_v45  ;;  %501 = vst.msk [vmem:[#allocation2 + $0x51] sm:$0xff] %vm439_vm0, %v412_v47  ;;  %v356_v42 = vmul.f32 %v4915_v9, %v317_v30  ;;  %v393_v45 = vadd.f32 %v4920_v10, %v354_v36  ;;  %v319_v55 = vld [vmem:[%s4910_s22 + $0xb0] sm:$0xff]  ;;  %v396_v58 = vadd.f32 %v4920_v10, %v357_v50  ;;  %v322_v2 = vld [vmem:[%s4910_s22 + $0xc8] sm:$0xff] }
  0x24   : > { %502 = vst.msk [vmem:[#allocation2 + $0x61] sm:$0xff] %vm439_vm0, %v413_v54  ;;  %503 = vst.msk [vmem:[#allocation2 + $0x69] sm:$0xff] %vm439_vm0, %v414_v59  ;;  %v422_v34 = vmax.f32 %v390_v24, 0.0  ;;  %v394_v49 = vadd.f32 %v4920_v10, %v355_v37  ;;  %v359_v62 = vmul.f32 %v4915_v9, %v320_v60  ;;  %v4735_v6 = vld [vmem:[%s5621_s3 + $0x18] sm:$0xff]   ;;  %v361_v8 = vmul.f32 %v4915_v9, %v322_v2  ;;  %v325_v28 = vld [vmem:[%s4910_s22 + $0xe0] sm:$0xff] }
  0x25   : > { %504 = vst.msk [vmem:[#allocation2 + $0x79] sm:$0xff] %vm439_vm0, %v415_v61  ;;  %505 = vst.msk [vmem:[#allocation2 + $0x81] sm:$0xff] %vm439_vm0, %v416_v7  ;;  %v395_v51 = vadd.f32 %v4920_v10, %v356_v42  ;;  %v425_v54 = vmax.f32 %v393_v45, 0.0  ;;  %v321_v61 = vld [vmem:[%s4910_s22 + $0xc0] sm:$0xff]  ;;  %v428_v1 = vmax.f32 %v396_v58, 0.0  ;;  %v4732_v7 = vld [vmem:[%s5621_s3 + $0xb8] sm:$0xff]   ;;  %v364_v30 = vmul.f32 %v4915_v9, %v325_v28 }
  0x26   : > { %506 = vst.msk [vmem:[#allocation2 + $0x91] sm:$0xff] %vm439_vm0, %v417_v15  ;;  %507 = vst.msk [vmem:[#allocation2 + $0x99] sm:$0xff] %vm439_vm0, %v418_v16  ;;  %v426_v57 = vmax.f32 %v394_v49, 0.0  ;;  %v360_v63 = vmul.f32 %v4915_v9, %v321_v61  ;;  %v398_v5 = vadd.f32 %v4920_v10, %v359_v62  ;;  %v5065_v16 = vld [vmem:[%s5621_s3 + $0xc0] sm:$0xff]   ;;  %v326_v29 = vld [vmem:[%s4910_s22 + $0xe8] sm:$0xff] }
  0x27   : > { %508 = vst.msk [vmem:[#allocation2 + $0xa9] sm:$0xff] %vm439_vm0, %v419_v18  ;;  %509 = vst.msk [vmem:[#allocation2 + $0xb1] sm:$0xff] %vm439_vm0, %v420_v23  ;;  %v427_v59 = vmax.f32 %v395_v51, 0.0  ;;  %v400_v18 = vadd.f32 %v4920_v10, %v361_v8  ;;  %v324_v23 = vld [vmem:[%s4910_s22 + $0xd8] sm:$0xff]  ;;  %v403_v36 = vadd.f32 %v4920_v10, %v364_v30  ;;  %v5093_v42 = vld [vmem:[%s5621_s3 + $0x40] sm:$0xff]  }
  0x28   : > { %v586_v13 = vld [vmem:[#allocation2 + $0x19] sm:$0xff]  ;;  %v587_v14 = vld [vmem:[#allocation2 + $0x21] sm:$0xff]  ;;  %510 = vst.msk [vmem:[#allocation2 + $0xc1] sm:$0xff] %vm439_vm0, %v421_v26  ;;  %511 = vst.msk [vmem:[#allocation2 + $0xc9] sm:$0xff] %vm439_vm0, %v422_v34  ;;  %v399_v11 = vadd.f32 %v4920_v10, %v360_v63  ;;  %v363_v27 = vmul.f32 %v4915_v9, %v324_v23 }
  0x29   : > { %v617_v21 = vpack.c.bf16 %v587_v14, %v586_v13  ;;  %v1753_v31 = vld [vmem:[#allocation2 + $0x31] sm:$0xff]  ;;  %v1754_v32 = vld [vmem:[#allocation2 + $0x39] sm:$0xff]  ;;  %512 = vst.msk [vmem:[#allocation2 + $0xd9] sm:$0xff] %vm439_vm0, %v423_v41  ;;  %513 = vst.msk [vmem:[#allocation2 + $0xe1] sm:$0xff] %vm439_vm0, %v424_v44  ;;  %v430_v13 = vmax.f32 %v398_v5, 0.0  ;;  %v432_v25 = vmax.f32 %v400_v18, 0.0 }
  0x2a   : > { %v590_v33 = vld [vmem:[#allocation2 + $0x49] sm:$0xff]  ;;  %v1784_v38 = vpack.c.bf16 %v1754_v32, %v1753_v31  ;;  %v591_v39 = vld [vmem:[#allocation2 + $0x51] sm:$0xff]  ;;  %514 = vst.msk [vmem:[#allocation2 + $0xf1] sm:$0xff] %vm439_vm0, %v425_v54  ;;  %515 = vst.msk [vmem:[#allocation2 + $0xf9] sm:$0xff] %vm439_vm0, %v426_v57  ;;  %v431_v20 = vmax.f32 %v399_v11, 0.0  ;;  %v365_v31 = vmul.f32 %v4915_v9, %v326_v29  ;;  %v402_v34 = vadd.f32 %v4920_v10, %v363_v27 }
  0x2b   : > { %4095 = vmatmul.mubr.msk.bf16.vlgmr.msra.gmra.mrb[0].mxu1 %vm439_vm0, %v617_v21  ;;  %4254 = vmatprep.mubr.msk.bf16.mxu0 %vm439_vm0, %v617_v21  ;;  %v619_v43 = vpack.c.bf16 %v591_v39, %v590_v33  ;;  %v1757_v47 = vld [vmem:[#allocation2 + $0x61] sm:$0xff]  ;;  %v1758_v52 = vld [vmem:[#allocation2 + $0x69] sm:$0xff]  ;;  %516 = vst.msk [vmem:[#allocation2 + $0x109] sm:$0xff] %vm439_vm0, %v427_v59  ;;  %517 = vst.msk [vmem:[#allocation2 + $0x111] sm:$0xff] %vm439_vm0, %v428_v1 }
  0x2c   : > { %4127 = vmatpush3.bf16.msra.mxu1 %v4929_v17  ;;  %v4733_v17 = vld [vmem:[%s5621_s3 + $0x10] sm:$0xff]   ;;  %4255 = vmatmul.mubr.msk.bf16.vlgmr.msra.gmra.mrb[0].mxu0 %vm439_vm0, %v1784_v38  ;;  %v594_v53 = vld [vmem:[#allocation2 + $0x79] sm:$0xff]  ;;  %v595_v56 = vld [vmem:[#allocation2 + $0x81] sm:$0xff]  ;;  %v1786_v0 = vpack.c.bf16 %v1758_v52, %v1757_v47  ;;  %519 = vst.msk [vmem:[#allocation2 + $0x129] sm:$0xff] %vm439_vm0, %v430_v13  ;;  %v404_v37 = vadd.f32 %v4920_v10, %v365_v31  ;;  %v434_v39 = vmax.f32 %v402_v34, 0.0 }
  0x2d   : > { %4128 = vmatprep.subr.bf16.mxu1 %v4730_v22  ;;  %4098 = vmatprep.mubr.msk.bf16.mxu1 %vm439_vm0, %v1784_v38  ;;  %v621_v3 = vpack.c.bf16 %v595_v56, %v594_v53  ;;  %v1761_v14 = vld [vmem:[#allocation2 + $0x91] sm:$0xff]  ;;  %v1762_v15 = vld [vmem:[#allocation2 + $0x99] sm:$0xff]  ;;  %520 = vst.msk [vmem:[#allocation2 + $0x139] sm:$0xff] %vm439_vm0, %v431_v20  ;;  %521 = vst.msk [vmem:[#allocation2 + $0x141] sm:$0xff] %vm439_vm0, %v432_v25 }
  0x2e   : > { %4287 = vmatpush3.bf16.msra.mxu0 %v4934_v19  ;;  %4258 = vmatprep.mubr.msk.bf16.mxu0 %vm439_vm0, %v619_v43  ;;  %v358_v19 = vmul.f32 %v4915_v9, %v319_v55  ;;  %v598_v21 = vld [vmem:[#allocation2 + $0xa9] sm:$0xff]  ;;  %v599_v24 = vld [vmem:[#allocation2 + $0xb1] sm:$0xff]  ;;  %v1788_v32 = vpack.c.bf16 %v1762_v15, %v1761_v14  ;;  %v436_v41 = vmax.f32 %v404_v37, 0.0  ;;  %523 = vst.msk [vmem:[#allocation2 + $0x159] sm:$0xff] %vm439_vm0, %v434_v39  ;;  %v2076_v54 = vld [vmem:[#allocation2 + $0x3a] sm:$0xff] }
  0x2f   : > { %4288 = vmatprep.subr.bf16.mxu0 %v4729_v40  ;;  %v5084_v35 = vpack.c.bf16 %v599_v24, %v598_v21  ;;  %v1766_v44 = vld [vmem:[#allocation2 + $0xc9] sm:$0xff]  ;;  %v2075_v52 = vld [vmem:[#allocation2 + $0x32] sm:$0xff]  ;;  %v2084_v25 = vld [vmem:[#allocation2 + $0x9a] sm:$0xff] }
  0x30   : > { %4129 = vmatpush3.bf16.msra.mxu1 %v4730_v22  ;;  %v397_v4 = vadd.f32 %v4920_v10, %v358_v19  ;;  %v323_v22 = vld [vmem:[%s4910_s22 + $0xd0] sm:$0xff]  ;;  %525 = vst.msk [vmem:[#allocation2 + $0x171] sm:$0xff] %vm439_vm0, %v436_v41  ;;  %v2074_v45 = vld [vmem:[#allocation2 + $0x22] sm:$0xff]  ;;  %v5119_v58 = vpack.c.bf16 %v2076_v54, %v2075_v52  ;;  %v328_v63 = vld [vmem:[%s4910_s22 + $0xf8] sm:$0xff] }
  0x31   : > { %4130 = vmatprep.subr.bf16.mxu1 %v4733_v17  ;;  %v362_v26 = vmul.f32 %v4915_v9, %v323_v22  ;;  %v603_v49 = vld [vmem:[#allocation2 + $0xe1] sm:$0xff]  ;;  %v604_v50 = vld [vmem:[#allocation2 + $0xf1] sm:$0xff]  ;;  %v605_v51 = vld [vmem:[#allocation2 + $0xf9] sm:$0xff] }
  0x32   : > { %4289 = vmatpush3.bf16.msra.mxu0 %v4729_v40  ;;  %v429_v12 = vmax.f32 %v397_v4, 0.0  ;;  %v435_v40 = vmax.f32 %v403_v36, 0.0  ;;  %v2077_v55 = vld [vmem:[#allocation2 + $0x4a] sm:$0xff]  ;;  %v5117_v56 = vpack.c.bf16 %v605_v51, %v604_v50  ;;  %v2078_v57 = vld [vmem:[#allocation2 + $0x52] sm:$0xff]  ;;  %v2079_v4 = vld [vmem:[#allocation2 + $0x62] sm:$0xff] }
  0x33   : > { %4099 = vmatmul.mubr.msk.bf16.gmra.mrb[4].mxu1 %vm439_vm0, %v619_v43  ;;  %4290 = vmatprep.subr.bf16.mxu0 %v4731_v48  ;;  %v401_v33 = vadd.f32 %v4920_v10, %v362_v26  ;;  %v1765_v43 = vld [vmem:[#allocation2 + $0xc1] sm:$0xff]  ;;  %v606_v59 = vld [vmem:[#allocation2 + $0x109] sm:$0xff]  ;;  %v5123_v60 = vpack.c.bf16 %v2078_v57, %v2077_v55  ;;  %v607_v19 = vld [vmem:[#allocation2 + $0x111] sm:$0xff] }
  0x34   : > { %4102 = vmatprep.mubr.msk.bf16.mxu1 %vm439_vm0, %v1786_v0  ;;  %4131 = vmatpush3.bf16.msra.mxu1 %v4733_v17  ;;  %518 = vst.msk [vmem:[#allocation2 + $0x121] sm:$0xff] %vm439_vm0, %v429_v12  ;;  %524 = vst.msk [vmem:[#allocation2 + $0x169] sm:$0xff] %vm439_vm0, %v435_v40  ;;  %v2073_v17 = vld [vmem:[#allocation2 + $0x1a] sm:$0xff]  ;;  %v5103_v46 = vpack.c.bf16 %v1766_v44, %v1765_v43  ;;  %v4736_v61 = vld [vmem:[%s5621_s3 + $0xc8] sm:$0xff]   ;;  %v5137_v5 = vpack.c.bf16 %v607_v19, %v606_v59 }
  0x35   : > { %4259 = vmatmul.mubr.msk.bf16.gmra.mrb[4].mxu0 %vm439_vm0, %v1786_v0  ;;  %4132 = vmatprep.subr.bf16.mxu1 %v4735_v6  ;;  %v433_v38 = vmax.f32 %v401_v33, 0.0  ;;  %v5107_v47 = vpack.c.bf16 %v2074_v45, %v2073_v17  ;;  %v327_v62 = vld [vmem:[%s4910_s22 + $0xf0] sm:$0xff]  ;;  %v2081_v12 = vld [vmem:[#allocation2 + $0x7a] sm:$0xff]  ;;  %v529_v37 = vld [vmem:[#allocation2 + $0x8] sm:$0xff] }
  0x36   : > { %4262 = vmatprep.mubr.msk.bf16.mxu0 %vm439_vm0, %v621_v3  ;;  %4291 = vmatpush3.bf16.msra.mxu0 %v4731_v48  ;;  %v602_v48 = vld [vmem:[#allocation2 + $0xd9] sm:$0xff]  ;;  %v609_v1 = vld [vmem:[#allocation2 + $0x129] sm:$0xff]  ;;  %v366_v2 = vmul.f32 %v4915_v9, %v327_v62 }
  0x37   : > { %4292 = vmatprep.subr.bf16.mxu0 %v4732_v7  ;;  %522 = vst.msk [vmem:[#allocation2 + $0x151] sm:$0xff] %vm439_vm0, %v433_v38  ;;  %v5113_v53 = vpack.c.bf16 %v603_v49, %v602_v48  ;;  %v4738_v13 = vld [vmem:[%s5621_s3 + $0xd0] sm:$0xff]   ;;  %v610_v18 = vld [vmem:[#allocation2 + $0x139] sm:$0xff]  ;;  %v2087_v39 = vld [vmem:[#allocation2 + $0xc2] sm:$0xff] }
  0x38   : > { %4133 = vmatpush3.bf16.msra.mxu1 %v4735_v6  ;;  %v2080_v6 = vld [vmem:[#allocation2 + $0x6a] sm:$0xff]  ;;  %v4740_v21 = vld [vmem:[%s5621_s3 + $0xd8] sm:$0xff]   ;;  %v5172_v30 = vld [vmem:[%s5621_s3 + $0xe0] sm:$0xff]  }
  0x39   : > { %4166 = vmatprep.subr.bf16.mxu1 %v5093_v42  ;;  %v2083_v22 = vld [vmem:[#allocation2 + $0x92] sm:$0xff]  ;;  %v2085_v26 = vld [vmem:[#allocation2 + $0xaa] sm:$0xff]  ;;  %v528_v36 = vld [vmem:[#allocation2] sm:$0xff] }
  0x3a   : > { %4293 = vmatpush3.bf16.msra.mxu0 %v4732_v7  ;;  %v405_v7 = vadd.f32 %v4920_v10, %v366_v2  ;;  %v613_v24 = vld [vmem:[#allocation2 + $0x159] sm:$0xff]  ;;  %v5174_v31 = vpack.c.bf16 %v2084_v25, %v2083_v22  ;;  %v615_v34 = vld [vmem:[#allocation2 + $0x171] sm:$0xff]  ;;  %v560_v41 = vpack.c.bf16 %v529_v37, %v528_v36  ;;  %v2090_v44 = vld [vmem:[#allocation2 + $0xe2] sm:$0xff] }
  0x3b   : > { %4103 = vmatmul.mubr.msk.bf16.gmra.mrb[8].mxu1 %vm439_vm0, %v621_v3  ;;  %4326 = vmatprep.subr.bf16.mxu0 %v5065_v16  ;;  %v608_v0 = vld [vmem:[#allocation2 + $0x121] sm:$0xff]  ;;  %v367_v3 = vmul.f32 %v4915_v9, %v328_v63  ;;  %v2086_v28 = vld [vmem:[#allocation2 + $0xb2] sm:$0xff]  ;;  %v614_v33 = vld [vmem:[#allocation2 + $0x169] sm:$0xff] }
  0x3c   : > { %4106 = vmatprep.mubr.msk.bf16.mxu1 %vm439_vm0, %v1788_v32  ;;  %v5143_v11 = vpack.c.bf16 %v609_v1, %v608_v0  ;;  %v2082_v9 = vld [vmem:[#allocation2 + $0x82] sm:$0xff]  ;;  %v437_v14 = vmax.f32 %v405_v7, 0.0  ;;  %v5185_v38 = vpack.c.bf16 %v615_v34, %v614_v33  ;;  %v2088_v40 = vld [vmem:[#allocation2 + $0xca] sm:$0xff]  ;;  %v2089_v43 = vld [vmem:[#allocation2 + $0xda] sm:$0xff] }
  0x3d   : > { %4263 = vmatmul.mubr.msk.bf16.gmra.mrb[8].mxu0 %vm439_vm0, %v1788_v32  ;;  %v406_v8 = vadd.f32 %v4920_v10, %v367_v3  ;;  %v5152_v20 = vpack.c.bf16 %v2082_v9, %v2081_v12  ;;  %v611_v10 = vld [vmem:[#allocation2 + $0x141] sm:$0xff]  ;;  %v5178_v32 = vpack.c.bf16 %v2086_v28, %v2085_v26  ;;  %v5189_v17 = vpack.c.bf16 %v2088_v40, %v2087_v39  ;;  %v530_v45 = vld [vmem:[#allocation2 + $0x18] sm:$0xff]  ;;  %v532_v50 = vld [vmem:[#allocation2 + $0x30] sm:$0xff] }
  0x3e   : > { %4266 = vmatprep.mubr.msk.bf16.mxu0 %vm439_vm0, %v5084_v35  ;;  %526 = vst.msk [vmem:[#allocation2 + $0x181] sm:$0xff] %vm439_vm0, %v437_v14  ;;  %v612_v23 = vld [vmem:[#allocation2 + $0x151] sm:$0xff]  ;;  %v5163_v27 = vpack.c.bf16 %v611_v10, %v610_v18  ;;  %v531_v48 = vld [vmem:[#allocation2 + $0x20] sm:$0xff]  ;;  %v5193_v49 = vpack.c.bf16 %v2090_v44, %v2089_v43  ;;  %v4739_v19 = vld [vmem:[%s5621_s3 + $0x48] sm:$0xff]  }
  0x3f   : > { %v438_v15 = vmax.f32 %v406_v8, 0.0  ;;  %v5167_v29 = vpack.c.bf16 %v613_v24, %v612_v23  ;;  %v533_v51 = vld [vmem:[#allocation2 + $0x38] sm:$0xff]  ;;  %v5198_v52 = vpack.c.bf16 %v531_v48, %v530_v45  ;;  %v2093_v59 = vld [vmem:[#allocation2 + $0x10a] sm:$0xff]  ;;  %v536_v2 = vld [vmem:[#allocation2 + $0x60] sm:$0xff] }
  0x40   : > { %v2091_v54 = vld [vmem:[#allocation2 + $0xf2] sm:$0xff]  ;;  %v2092_v55 = vld [vmem:[#allocation2 + $0xfa] sm:$0xff]  ;;  %v5202_v57 = vpack.c.bf16 %v533_v51, %v532_v50  ;;  %v534_v0 = vld [vmem:[#allocation2 + $0x48] sm:$0xff] }
  0x41   : > { %527 = vst.msk [vmem:[#allocation2 + $0x189] sm:$0xff] %vm439_vm0, %v438_v15  ;;  %v5207_v62 = vpack.c.bf16 %v2092_v55, %v2091_v54  ;;  %v535_v1 = vld [vmem:[#allocation2 + $0x50] sm:$0xff]  ;;  %v537_v3 = vld [vmem:[#allocation2 + $0x68] sm:$0xff]  ;;  %v2097_v12 = vld [vmem:[#allocation2 + $0x13a] sm:$0xff] }
  0x42   : > { %v2096_v7 = vld [vmem:[#allocation2 + $0x12a] sm:$0xff]  ;;  %v5225_v8 = vpack.c.bf16 %v537_v3, %v536_v2  ;;  %v2098_v9 = vld [vmem:[#allocation2 + $0x142] sm:$0xff]  ;;  %v538_v18 = vld [vmem:[#allocation2 + $0x78] sm:$0xff] }
  0x43   : > { %4107 = vmatmul.mubr.msk.bf16.gmra.mrb[12].mxu1 %vm439_vm0, %v5084_v35  ;;  %v5234_v15 = vpack.c.bf16 %v2098_v9, %v2097_v12  ;;  %v539_v10 = vld [vmem:[#allocation2 + $0x80] sm:$0xff]  ;;  %v541_v22 = vld [vmem:[#allocation2 + $0x98] sm:$0xff]  ;;  %v2101_v33 = vld [vmem:[#allocation2 + $0x16a] sm:$0xff] }
  0x44   : > { %4110 = vmatprep.mubr.msk.bf16.mxu1 %vm439_vm0, %v5103_v46  ;;  %v5241_v23 = vld [vmem:[%s5621_s3 + $0x60] sm:$0xff]   ;;  %v5245_v24 = vpack.c.bf16 %v539_v10, %v538_v18  ;;  %v2099_v25 = vld [vmem:[#allocation2 + $0x152] sm:$0xff]  ;;  %v542_v39 = vld [vmem:[#allocation2 + $0xa8] sm:$0xff] }
  0x45   : > { %4267 = vmatmul.mubr.msk.bf16.gmra.mrb[12].mxu0 %vm439_vm0, %v5103_v46  ;;  %v2100_v26 = vld [vmem:[#allocation2 + $0x15a] sm:$0xff]  ;;  %v2102_v34 = vld [vmem:[#allocation2 + $0x172] sm:$0xff]  ;;  %v545_v43 = vld [vmem:[#allocation2 + $0xc8] sm:$0xff] }
  0x46   : > { %4294 = vmatprep.mubr.msk.bf16.mxu0 %vm439_vm0, %v5107_v47  ;;  %v5252_v36 = vpack.c.bf16 %v2100_v26, %v2099_v25  ;;  %v5256_v37 = vpack.c.bf16 %v2102_v34, %v2101_v33  ;;  %v543_v40 = vld [vmem:[#allocation2 + $0xb0] sm:$0xff]  ;;  %v546_v54 = vld [vmem:[#allocation2 + $0xd8] sm:$0xff]  ;;  %v547_v55 = vld [vmem:[#allocation2 + $0xe0] sm:$0xff] }
  0x47   : > { %v5262_v44 = vpack.c.bf16 %v543_v40, %v542_v39  ;;  %v551_v2 = vld [vmem:[#allocation2 + $0x110] sm:$0xff]  ;;  %v4744_v3 = vld [vmem:[%s5621_s3 + $0xe8] sm:$0xff]   ;;  %v4748_v18 = vld [vmem:[%s5621_s3 + $0xf8] sm:$0xff]  }
  0x48   : > { %v2103_v45 = vld [vmem:[#allocation2 + $0x182] sm:$0xff]  ;;  %v2104_v48 = vld [vmem:[#allocation2 + $0x18a] sm:$0xff] }
  0x49   : > { %v5268_v51 = vpack.c.bf16 %v2104_v48, %v2103_v45  ;;  %v4746_v9 = vld [vmem:[%s5621_s3 + $0xf0] sm:$0xff]   ;;  %v5319_v26 = vld [vmem:[%s5621_s3 + $0x100] sm:$0xff]   ;;  %v558_v33 = vld [vmem:[#allocation2 + $0x168] sm:$0xff] }
  0x4a   : > { %v556_v10 = vld [vmem:[#allocation2 + $0x150] sm:$0xff]  ;;  %v1107_v39 = vld [vmem:[#allocation2 + $0x2] sm:$0xff] }
  0x4b   : > { %4111 = vmatmul.mubr.msk.bf16.gmra.mrb[16].mxu1 %vm439_vm0, %v5113_v53  ;;  %v559_v34 = vld [vmem:[#allocation2 + $0x170] sm:$0xff]  ;;  %v4747_v45 = vld [vmem:[%s5621_s3 + $0x68] sm:$0xff]  }
  0x4c   : > { %4114 = vmatprep.mubr.msk.bf16.mxu1 %vm439_vm0, %v5117_v56  ;;  %v1108_v40 = vld [vmem:[#allocation2 + $0xa] sm:$0xff] }
  0x4d   : > { %4295 = vmatmul.mubr.msk.bf16.vlgmr.msra.gmra.mrb[0].mxu0 %vm439_vm0, %v5119_v58  ;;  %v4749_v48 = vld [vmem:[%s5621_s3 + $0x70] sm:$0xff]  }
  0x4e   : > { %4327 = vmatpush3.bf16.msra.mxu0 %v5065_v16  ;;  %4298 = vmatprep.mubr.msk.bf16.mxu0 %vm439_vm0, %v5123_v60  ;;  %v5148_v16 = vpack.c.bf16 %v2080_v6, %v2079_v4  ;;  %v4741_v4 = vld [vmem:[%s5621_s3 + $0x50] sm:$0xff]   ;;  %v5221_v6 = vpack.c.bf16 %v535_v1, %v534_v0  ;;  %v550_v1 = vld [vmem:[#allocation2 + $0x108] sm:$0xff] }
  0x4f   : > { %4328 = vmatprep.subr.bf16.mxu0 %v4736_v61 }
  0x52   : > { %4329 = vmatpush3.bf16.msra.mxu0 %v4736_v61  ;;  %v2094_v61 = vld [vmem:[#allocation2 + $0x112] sm:$0xff] }
  0x53   : > { %4115 = vmatmul.mubr.msk.bf16.gmra.mrb[20].mxu1 %vm439_vm0, %v5137_v5  ;;  %4330 = vmatprep.subr.bf16.mxu0 %v4738_v13  ;;  %v5211_v63 = vpack.c.bf16 %v2094_v61, %v2093_v59  ;;  %v548_v59 = vld [vmem:[#allocation2 + $0xf0] sm:$0xff]  ;;  %v549_v61 = vld [vmem:[#allocation2 + $0xf8] sm:$0xff] }
  0x54   : > { %4118 = vmatprep.mubr.msk.bf16.mxu1 %vm439_vm0, %v5143_v11  ;;  %v5280_v0 = vpack.c.bf16 %v549_v61, %v548_v59  ;;  %v2718_v59 = vld [vmem:[#allocation2 + $0x31] sm:$0xff]  ;;  %v2719_v61 = vld [vmem:[#allocation2 + $0x39] sm:$0xff] }
  0x55   : > { %4299 = vmatmul.mubr.msk.bf16.gmra.mrb[4].mxu0 %vm439_vm0, %v5148_v16 }
  0x56   : > { %4302 = vmatprep.mubr.msk.bf16.mxu0 %vm439_vm0, %v5152_v20  ;;  %4331 = vmatpush3.bf16.msra.mxu0 %v4738_v13  ;;  %v4743_v13 = vld [vmem:[%s5621_s3 + $0x58] sm:$0xff]  }
  0x57   : > { %4332 = vmatprep.subr.bf16.mxu0 %v4740_v21 }
  0x5a   : > { %4333 = vmatpush3.bf16.msra.mxu0 %v4740_v21  ;;  %v540_v21 = vld [vmem:[#allocation2 + $0x90] sm:$0xff] }
  0x5b   : > { %4119 = vmatmul.mubr.msk.bf16.gmra.mrb[24].mxu1 %vm439_vm0, %v5163_v27  ;;  %4366 = vmatprep.subr.bf16.mxu0 %v5172_v30  ;;  %v5249_v28 = vpack.c.bf16 %v541_v22, %v540_v21  ;;  %v557_v21 = vld [vmem:[#allocation2 + $0x158] sm:$0xff] }
  0x5c   : > { %4122 = vmatprep.mubr.msk.bf16.mxu1 %vm439_vm0, %v5167_v29  ;;  %v5314_v25 = vpack.c.bf16 %v557_v21, %v556_v10  ;;  %v2724_v10 = vld [vmem:[#allocation2 + $0x79] sm:$0xff]  ;;  %v2725_v21 = vld [vmem:[#allocation2 + $0x81] sm:$0xff] }
  0x5d   : > { %4303 = vmatmul.mubr.msk.bf16.gmra.mrb[8].mxu0 %vm439_vm0, %v5174_v31 }
  0x5e   : > { %4306 = vmatprep.mubr.msk.bf16.mxu0 %vm439_vm0, %v5178_v32 }
  0x63   : > { %4123 = vmatmul.mubr.msk.bf16.gmra.mrb[28].mxu1 %vm439_vm0, %v5185_v38 }
  0x64   : > { %4134 = vmatprep.mubr.msk.bf16.mxu1 %vm439_vm0, %v560_v41  ;;  %v544_v41 = vld [vmem:[#allocation2 + $0xc0] sm:$0xff] }
  0x65   : > { %4307 = vmatmul.mubr.msk.bf16.gmra.mrb[12].mxu0 %vm439_vm0, %v5189_v17  ;;  %v5266_v50 = vpack.c.bf16 %v545_v43, %v544_v41  ;;  %v5328_v41 = vpack.c.bf16 %v559_v34, %v558_v33  ;;  %v1139_v43 = vpack.c.bf16 %v1108_v40, %v1107_v39  ;;  %v2726_v33 = vld [vmem:[#allocation2 + $0x91] sm:$0xff]  ;;  %v2727_v34 = vld [vmem:[#allocation2 + $0x99] sm:$0xff]  ;;  %v2753_v40 = vpack.c.bf16 %v2725_v21, %v2724_v10 }
  0x66   : > { %4310 = vmatprep.mubr.msk.bf16.mxu0 %vm439_vm0, %v5193_v49  ;;  %v4753_v39 = vld [vmem:[%s5621_s3 + $0x110] sm:$0xff]  }
  0x6b   : > { %4135 = vmatmul.mubr.msk.bf16.vlgmr.msra.gmra.mrb[0].mxu1 %vm439_vm0, %v5198_v52 }
  0x6c   : > { %4167 = vmatpush3.bf16.msra.mxu1 %v5093_v42  ;;  %4138 = vmatprep.mubr.msk.bf16.mxu1 %vm439_vm0, %v5202_v57  ;;  %v2095_v42 = vld [vmem:[#allocation2 + $0x122] sm:$0xff] }
  0x6d   : > { %4168 = vmatprep.subr.bf16.mxu1 %v4739_v19  ;;  %4311 = vmatmul.mubr.msk.bf16.gmra.mrb[16].mxu0 %vm439_vm0, %v5207_v62  ;;  %v5230_v14 = vpack.c.bf16 %v2096_v7, %v2095_v42  ;;  %v553_v42 = vld [vmem:[#allocation2 + $0x128] sm:$0xff]  ;;  %v5292_v7 = vpack.c.bf16 %v551_v2, %v550_v1  ;;  %v2750_v2 = vpack.c.bf16 %v2719_v61, %v2718_v59 }
  0x6e   : > { %4314 = vmatprep.mubr.msk.bf16.mxu0 %vm439_vm0, %v5211_v63 }
  0x70   : > { %4169 = vmatpush3.bf16.msra.mxu1 %v4739_v19  ;;  %v5276_v19 = vpack.c.bf16 %v547_v55, %v546_v54  ;;  %v4755_v54 = vld [vmem:[%s5621_s3 + $0x80] sm:$0xff]  }
  0x71   : > { %4170 = vmatprep.subr.bf16.mxu1 %v4741_v4  ;;  %v2427_v55 = vld [vmem:[#allocation2 + $0x1a0] sm:$0xff] }
  0x73   : > { %4139 = vmatmul.mubr.msk.bf16.gmra.mrb[4].mxu1 %vm439_vm0, %v5221_v6 }
  0x74   : > { %4142 = vmatprep.mubr.msk.bf16.mxu1 %vm439_vm0, %v5225_v8  ;;  %4171 = vmatpush3.bf16.msra.mxu1 %v4741_v4  ;;  %v552_v4 = vld [vmem:[#allocation2 + $0x120] sm:$0xff] }
  0x75   : > { %4172 = vmatprep.subr.bf16.mxu1 %v4743_v13  ;;  %4315 = vmatmul.mubr.msk.bf16.gmra.mrb[20].mxu0 %vm439_vm0, %v5230_v14  ;;  %v5296_v12 = vpack.c.bf16 %v553_v42, %v552_v4  ;;  %v2721_v4 = vld [vmem:[#allocation2 + $0x51] sm:$0xff]  ;;  %v2722_v42 = vld [vmem:[#allocation2 + $0x61] sm:$0xff] }
  0x76   : > { %4318 = vmatprep.mubr.msk.bf16.mxu0 %vm439_vm0, %v5234_v15 }
  0x78   : > { %4173 = vmatpush3.bf16.msra.mxu1 %v4743_v13  ;;  %v555_v13 = vld [vmem:[#allocation2 + $0x140] sm:$0xff] }
  0x79   : > { %4206 = vmatprep.subr.bf16.mxu1 %v5241_v23 }
  0x7b   : > { %4143 = vmatmul.mubr.msk.bf16.gmra.mrb[8].mxu1 %vm439_vm0, %v5245_v24 }
  0x7c   : > { %4146 = vmatprep.mubr.msk.bf16.mxu1 %vm439_vm0, %v5249_v28 }
  0x7d   : > { %4319 = vmatmul.mubr.msk.bf16.gmra.mrb[24].mxu0 %vm439_vm0, %v5252_v36 }
  0x7e   : > { %4322 = vmatprep.mubr.msk.bf16.mxu0 %vm439_vm0, %v5256_v37 }
  0x83   : > { %4147 = vmatmul.mubr.msk.bf16.gmra.mrb[12].mxu1 %vm439_vm0, %v5262_v44 }
  0x84   : > { %4150 = vmatprep.mubr.msk.bf16.mxu1 %vm439_vm0, %v5266_v50 }
  0x85   : > { %4323 = vmatmul.mubr.msk.bf16.gmra.mrb[28].mxu0 %vm439_vm0, %v5268_v51 }
  0x86   : > { %4334 = vmatprep.mubr.msk.bf16.mxu0 %vm439_vm0, %v5202_v57 }
  0x8b   : > { %4151 = vmatmul.mubr.msk.bf16.gmra.mrb[16].mxu1 %vm439_vm0, %v5276_v19 }
  0x8c   : > { %4154 = vmatprep.mubr.msk.bf16.mxu1 %vm439_vm0, %v5280_v0 }
  0x8d   : > { %4335 = vmatmul.mubr.msk.bf16.vlgmr.msra.gmra.mrb[0].mxu0 %vm439_vm0, %v5221_v6 }
  0x8e   : > { %4367 = vmatpush3.bf16.msra.mxu0 %v5172_v30  ;;  %4338 = vmatprep.mubr.msk.bf16.mxu0 %vm439_vm0, %v5225_v8  ;;  %v554_v30 = vld [vmem:[#allocation2 + $0x138] sm:$0xff] }
  0x8f   : > { %4368 = vmatprep.subr.bf16.mxu0 %v4744_v3  ;;  %v5310_v22 = vpack.c.bf16 %v555_v13, %v554_v30 }
  0x92   : > { %4369 = vmatpush3.bf16.msra.mxu0 %v4744_v3  ;;  %v2720_v3 = vld [vmem:[#allocation2 + $0x49] sm:$0xff] }
  0x93   : > { %4155 = vmatmul.mubr.msk.bf16.gmra.mrb[20].mxu1 %vm439_vm0, %v5292_v7  ;;  %4370 = vmatprep.subr.bf16.mxu0 %v4746_v9  ;;  %v2751_v30 = vpack.c.bf16 %v2721_v4, %v2720_v3 }
  0x94   : > { %4158 = vmatprep.mubr.msk.bf16.mxu1 %vm439_vm0, %v5296_v12 }
  0x95   : > { %4339 = vmatmul.mubr.msk.bf16.gmra.mrb[4].mxu0 %vm439_vm0, %v5245_v24 }
  0x96   : > { %4342 = vmatprep.mubr.msk.bf16.mxu0 %vm439_vm0, %v5249_v28  ;;  %4371 = vmatpush3.bf16.msra.mxu0 %v4746_v9  ;;  %v2723_v9 = vld [vmem:[#allocation2 + $0x69] sm:$0xff] }
  0x97   : > { %4372 = vmatprep.subr.bf16.mxu0 %v4748_v18  ;;  %v2752_v13 = vpack.c.bf16 %v2723_v9, %v2722_v42 }
  0x9a   : > { %4373 = vmatpush3.bf16.msra.mxu0 %v4748_v18  ;;  %v4752_v18 = vld [vmem:[%s5621_s3 + $0x108] sm:$0xff]  }
  0x9b   : > { %4159 = vmatmul.mubr.msk.bf16.gmra.mrb[24].mxu1 %vm439_vm0, %v5310_v22  ;;  %4406 = vmatprep.subr.bf16.mxu0 %v5319_v26 }
  0x9c   : > { %4162 = vmatprep.mubr.msk.bf16.mxu1 %vm439_vm0, %v5314_v25 }
  0x9d   : > { %4343 = vmatmul.mubr.msk.bf16.gmra.mrb[8].mxu0 %vm439_vm0, %v5262_v44 }
  0x9e   : > { %4346 = vmatprep.mubr.msk.bf16.mxu0 %vm439_vm0, %v5266_v50 }
  0xa3   : > { %4163 = vmatmul.mubr.msk.bf16.gmra.mrb[28].mxu1 %vm439_vm0, %v5328_v41 }
  0xa4   : > { %4174 = vmatprep.mubr.msk.bf16.mxu1 %vm439_vm0, %v1139_v43  ;;  %v2754_v43 = vpack.c.bf16 %v2727_v34, %v2726_v33  ;;  %v5528_v34 = vld [vmem:[%s5622_s4] ss:$0 sm:$0xff] }
  0xa5   : > { %4347 = vmatmul.mubr.msk.bf16.gmra.mrb[12].mxu0 %vm439_vm0, %v5276_v19 }
  0xa6   : > { %4350 = vmatprep.mubr.msk.bf16.mxu0 %vm439_vm0, %v5280_v0 }
  0xab   : > { %4175 = vmatmul.mubr.msk.bf16.vlgmr.msra.gmra.mrb[0].mxu1 %vm439_vm0, %v5107_v47  ;;  %v4751_v47 = vld [vmem:[%s5621_s3 + $0x78] sm:$0xff]  }
  0xac   : > { %4207 = vmatpush3.bf16.msra.mxu1 %v5241_v23  ;;  %4178 = vmatprep.mubr.msk.bf16.mxu1 %vm439_vm0, %v5119_v58  ;;  %v2424_v58 = vld [vmem:[#allocation2 + $0x180] sm:$0xff]  ;;  %v2425_v23 = vld [vmem:[#allocation2 + $0x188] sm:$0xff] }
  0xad   : > { %4208 = vmatprep.subr.bf16.mxu1 %v4747_v45  ;;  %4351 = vmatmul.mubr.msk.bf16.gmra.mrb[16].mxu0 %vm439_vm0, %v5292_v7 }
  0xae   : > { %4354 = vmatprep.mubr.msk.bf16.mxu0 %vm439_vm0, %v5296_v12 }
  0xb0   : > { %4209 = vmatpush3.bf16.msra.mxu1 %v4747_v45 }
  0xb1   : > { %4210 = vmatprep.subr.bf16.mxu1 %v4749_v48 }
  0xb3   : > { %4179 = vmatmul.mubr.msk.bf16.gmra.mrb[4].mxu1 %vm439_vm0, %v5123_v60  ;;  %v5370_v60 = vpack.c.bf16 %v2425_v23, %v2424_v58  ;;  %v1778_v23 = vld [vmem:[#allocation2 + $0x159] sm:$0xff] }
  0xb4   : > { %4182 = vmatprep.mubr.msk.bf16.mxu1 %vm439_vm0, %v5148_v16  ;;  %4211 = vmatpush3.bf16.msra.mxu1 %v4749_v48  ;;  %v2426_v16 = vld [vmem:[#allocation2 + $0x198] sm:$0xff] }
  0xb5   : > { %4212 = vmatprep.subr.bf16.mxu1 %v4751_v47  ;;  %4355 = vmatmul.mubr.msk.bf16.gmra.mrb[20].mxu0 %vm439_vm0, %v5310_v22  ;;  %v2443_v1 = vpack.c.bf16 %v2427_v55, %v2426_v16  ;;  %v3071_v55 = vld [vmem:[#allocation2 + $0x1a2] sm:$0xff] }
  0xb6   : > { %4358 = vmatprep.mubr.msk.bf16.mxu0 %vm439_vm0, %v5314_v25 }
  0xb8   : > { %4213 = vmatpush3.bf16.msra.mxu1 %v4751_v47  ;;  %v1776_v47 = vld [vmem:[#allocation2 + $0x141] sm:$0xff] }
  0xb9   : > { %4446 = vmatprep.subr.bf16.mxu1 %v4755_v54 }
  0xbb   : > { %4183 = vmatmul.mubr.msk.bf16.gmra.mrb[8].mxu1 %vm439_vm0, %v5152_v20 }
  0xbc   : > { %4186 = vmatprep.mubr.msk.bf16.mxu1 %vm439_vm0, %v5174_v31 }
  0xbd   : > { %4359 = vmatmul.mubr.msk.bf16.gmra.mrb[24].mxu0 %vm439_vm0, %v5328_v41 }
  0xbe   : > { %4362 = vmatprep.mubr.msk.bf16.mxu0 %vm439_vm0, %v5370_v60 }
  0xc3   : > { %4187 = vmatmul.mubr.msk.bf16.gmra.mrb[12].mxu1 %vm439_vm0, %v5178_v32 }
  0xc4   : > { %4190 = vmatprep.mubr.msk.bf16.mxu1 %vm439_vm0, %v5189_v17 }
  0xc5   : > { %4363 = vmatmul.mubr.msk.bf16.gmra.mrb[28].mxu0 %vm439_vm0, %v2443_v1 }
  0xc6   : > { %4374 = vmatprep.mubr.msk.bf16.mxu0 %vm439_vm0, %v2750_v2 }
  0xcb   : > { %4191 = vmatmul.mubr.msk.bf16.gmra.mrb[16].mxu1 %vm439_vm0, %v5193_v49 }
  0xcc   : > { %4194 = vmatprep.mubr.msk.bf16.mxu1 %vm439_vm0, %v5207_v62 }
  0xcd   : > { %4375 = vmatmul.mubr.msk.bf16.vlgmr.msra.gmra.mrb[0].mxu0 %vm439_vm0, %v2751_v30 }
  0xce   : > { %4407 = vmatpush3.bf16.msra.mxu0 %v5319_v26  ;;  %4378 = vmatprep.mubr.msk.bf16.mxu0 %vm439_vm0, %v2752_v13  ;;  %v4754_v26 = vld [vmem:[%s5621_s3 + $0x118] sm:$0xff]  }
  0xcf   : > { %4408 = vmatprep.subr.bf16.mxu0 %v4752_v18 }
  0xd2   : > { %4409 = vmatpush3.bf16.msra.mxu0 %v4752_v18 }
  0xd3   : > { %4195 = vmatmul.mubr.msk.bf16.gmra.mrb[20].mxu1 %vm439_vm0, %v5211_v63  ;;  %4410 = vmatprep.subr.bf16.mxu0 %v4753_v39 }
  0xd4   : > { %4198 = vmatprep.mubr.msk.bf16.mxu1 %vm439_vm0, %v5230_v14 }
  0xd5   : > { %4379 = vmatmul.mubr.msk.bf16.gmra.mrb[4].mxu0 %vm439_vm0, %v2753_v40 }
  0xd6   : > { %4382 = vmatprep.mubr.msk.bf16.mxu0 %vm439_vm0, %v2754_v43  ;;  %4411 = vmatpush3.bf16.msra.mxu0 %v4753_v39 }
  0xd7   : > { %4412 = vmatprep.subr.bf16.mxu0 %v4754_v26 }
  0xda   : > { %4413 = vmatpush3.bf16.msra.mxu0 %v4754_v26 }
  0xdb   : > { %4199 = vmatmul.mubr.msk.bf16.gmra.mrb[24].mxu1 %vm439_vm0, %v5234_v15 }
  0xdc   : > { %4202 = vmatprep.mubr.msk.bf16.mxu1 %vm439_vm0, %v5252_v36 }
  0xdd   : > { %4383 = vmatmul.mubr.msk.bf16.gmra.mrb[8].mxu0 %vm439_vm0, %v5084_v35  ;;  %v4756_v35 = vld [vmem:[%s5621_s3 + $0x88] sm:$0xff]  }
  0xde   : > { %4386 = vmatprep.mubr.msk.bf16.mxu0 %vm439_vm0, %v5103_v46  ;;  %v4757_v46 = vld [vmem:[%s5621_s3 + $0x90] sm:$0xff]  }
  0xe3   : > { %4203 = vmatmul.mubr.msk.bf16.gmra.mrb[28].mxu1 %vm439_vm0, %v5256_v37 }
  0xe4   : > { %4214 = vmatprep.mubr.msk.bf16.mxu1 %vm439_vm0, %v5198_v52  ;;  %v2749_v52 = vld [vmem:[#allocation2 + $0x1a1] sm:$0xff] }
  0xe5   : > { %4387 = vmatmul.mubr.msk.bf16.gmra.mrb[12].mxu0 %vm439_vm0, %v5113_v53  ;;  %v4758_v53 = vld [vmem:[%s5621_s3 + $0x98] sm:$0xff]  }
  0xe6   : > { %4390 = vmatprep.mubr.msk.bf16.mxu0 %vm439_vm0, %v5117_v56  ;;  %v2746_v56 = vld [vmem:[#allocation2 + $0x181] sm:$0xff] }
  0xeb   : > { %4215 = vmatmul.mubr.msk.bf16.vlgmr.msra.gmra.mrb[0].mxu1 %vm439_vm0, %v5202_v57  ;;  %v3041_v57 = vld [vmem:[#allocation2 + $0x3a] sm:$0xff] }
  0xec   : > { %4450 = vmatpush3.bf16.msra.mxu1 %v4755_v54  ;;  %4218 = vmatprep.mubr.msk.bf16.mxu1 %vm439_vm0, %v5221_v6  ;;  %v1779_v54 = vld [vmem:[#allocation2 + $0x169] sm:$0xff] }
  0xed   : > { %4447 = vmatprep.subr.bf16.mxu1 %v4756_v35  ;;  %4391 = vmatmul.mubr.msk.bf16.gmra.mrb[16].mxu0 %vm439_vm0, %v5137_v5  ;;  %v2747_v5 = vld [vmem:[#allocation2 + $0x189] sm:$0xff] }
  0xee   : > { %4394 = vmatprep.mubr.msk.bf16.mxu0 %vm439_vm0, %v5143_v11  ;;  %v5449_v11 = vpack.c.bf16 %v2747_v5, %v2746_v56 }
  0xf0   : > { %4451 = vmatpush3.bf16.msra.mxu1 %v4756_v35 }
  0xf1   : > { %4448 = vmatprep.subr.bf16.mxu1 %v4757_v46 }
  0xf3   : > { %4219 = vmatmul.mubr.msk.bf16.gmra.mrb[4].mxu1 %vm439_vm0, %v5225_v8 }
  0xf4   : > { %4222 = vmatprep.mubr.msk.bf16.mxu1 %vm439_vm0, %v5245_v24  ;;  %4452 = vmatpush3.bf16.msra.mxu1 %v4757_v46  ;;  %v3043_v24 = vld [vmem:[#allocation2 + $0x52] sm:$0xff] }
  0xf5   : > { %4449 = vmatprep.subr.bf16.mxu1 %v4758_v53  ;;  %4395 = vmatmul.mubr.msk.bf16.gmra.mrb[20].mxu0 %vm439_vm0, %v5163_v27  ;;  %v2748_v27 = vld [vmem:[#allocation2 + $0x199] sm:$0xff] }
  0xf6   : > { %4398 = vmatprep.mubr.msk.bf16.mxu0 %vm439_vm0, %v5167_v29  ;;  %v3040_v29 = vld [vmem:[#allocation2 + $0x32] sm:$0xff]  ;;  %v2765_v6 = vpack.c.bf16 %v2749_v52, %v2748_v27 }
  0xf7   : > { %v3072_v8 = vpack.c.bf16 %v3041_v57, %v3040_v29 }
  0xf8   : > { %4453 = vmatpush3.bf16.msra.mxu1 %v4758_v53 }
  0xfb   : > { %4223 = vmatmul.mubr.msk.bf16.gmra.mrb[8].mxu1 %vm439_vm0, %v5249_v28  ;;  %v3044_v28 = vld [vmem:[#allocation2 + $0x62] sm:$0xff] }
  0xfc   : > { %4226 = vmatprep.mubr.msk.bf16.mxu1 %vm439_vm0, %v5262_v44  ;;  %v3045_v44 = vld [vmem:[#allocation2 + $0x6a] sm:$0xff] }
  0xfd   : > { %4399 = vmatmul.mubr.msk.bf16.gmra.mrb[24].mxu0 %vm439_vm0, %v5185_v38  ;;  %v3042_v38 = vld [vmem:[#allocation2 + $0x4a] sm:$0xff]  ;;  %v3074_v48 = vpack.c.bf16 %v3045_v44, %v3044_v28 }
  0xfe   : > { %4402 = vmatprep.mubr.msk.bf16.mxu0 %vm439_vm0, %v5449_v11  ;;  %v3073_v45 = vpack.c.bf16 %v3043_v24, %v3042_v38 }
 0x103   : > { %4227 = vmatmul.mubr.msk.bf16.gmra.mrb[12].mxu1 %vm439_vm0, %v5266_v50  ;;  %v1767_v50 = vld [vmem:[#allocation2 + $0xd9] sm:$0xff] }
 0x104   : > { %4230 = vmatprep.mubr.msk.bf16.mxu1 %vm439_vm0, %v5276_v19  ;;  %v1768_v19 = vld [vmem:[#allocation2 + $0xe1] sm:$0xff] }
 0x105   : > { %4403 = vmatmul.mubr.msk.bf16.gmra.mrb[28].mxu0 %vm439_vm0, %v2765_v6 }
 0x106   : > { %4414 = vmatprep.mubr.msk.bf16.mxu0 %vm439_vm0, %v3072_v8 }
 0x10b   : > { %4231 = vmatmul.mubr.msk.bf16.gmra.mrb[16].mxu1 %vm439_vm0, %v5280_v0  ;;  %v1791_v0 = vpack.c.bf16 %v1768_v19, %v1767_v50 }
 0x10c   : > { %4234 = vmatprep.mubr.msk.bf16.mxu1 %vm439_vm0, %v5292_v7  ;;  %v1771_v7 = vld [vmem:[#allocation2 + $0x109] sm:$0xff] }
 0x10d   : > { %4415 = vmatmul.mubr.msk.bf16.vlgmr.msra.gmra.mrb[0].mxu0 %vm439_vm0, %v3073_v45 }
 0x10e   : > { %4418 = vmatprep.mubr.msk.bf16.mxu0 %vm439_vm0, %v3074_v48 }
 0x113   : > { %4235 = vmatmul.mubr.msk.bf16.gmra.mrb[20].mxu1 %vm439_vm0, %v5296_v12  ;;  %v1772_v12 = vld [vmem:[#allocation2 + $0x111] sm:$0xff] }
 0x114   : > { %4238 = vmatprep.mubr.msk.bf16.mxu1 %vm439_vm0, %v5310_v22 }
 0x115   : > { %4419 = vmatmul.mubr.msk.bf16.gmra.mrb[4].mxu0 %vm439_vm0, %v5152_v20  ;;  %v1769_v20 = vld [vmem:[#allocation2 + $0xf1] sm:$0xff] }
 0x116   : > { %4422 = vmatprep.mubr.msk.bf16.mxu0 %vm439_vm0, %v5174_v31  ;;  %v1770_v31 = vld [vmem:[#allocation2 + $0xf9] sm:$0xff] }
 0x117   : > { %v1792_v22 = vpack.c.bf16 %v1770_v31, %v1769_v20 }
 0x11b   : > { %4239 = vmatmul.mubr.msk.bf16.gmra.mrb[24].mxu1 %vm439_vm0, %v5314_v25  ;;  %v1774_v25 = vld [vmem:[#allocation2 + $0x129] sm:$0xff] }
 0x11c   : > { %4242 = vmatprep.mubr.msk.bf16.mxu1 %vm439_vm0, %v5328_v41  ;;  %v1775_v41 = vld [vmem:[#allocation2 + $0x139] sm:$0xff] }
 0x11d   : > { %4423 = vmatmul.mubr.msk.bf16.gmra.mrb[8].mxu0 %vm439_vm0, %v5178_v32  ;;  %v1793_v32 = vpack.c.bf16 %v1772_v12, %v1771_v7 }
 0x11e   : > { %4426 = vmatprep.mubr.msk.bf16.mxu0 %vm439_vm0, %v5189_v17  ;;  %v1773_v17 = vld [vmem:[#allocation2 + $0x121] sm:$0xff] }
 0x11f   : > { %v1794_v58 = vpack.c.bf16 %v1774_v25, %v1773_v17 }
 0x123   : > { %4243 = vmatmul.mubr.msk.bf16.gmra.mrb[28].mxu1 %vm439_vm0, %v5370_v60  ;;  %v1780_v60 = vld [vmem:[#allocation2 + $0x171] sm:$0xff] }
 0x124   : > { %4270 = vmatprep.mubr.msk.bf16.mxu1 %vm439_vm0, %v1791_v0 }
 0x125   : > { %4427 = vmatmul.mubr.msk.bf16.gmra.mrb[12].mxu0 %vm439_vm0, %v5193_v49  ;;  %v1795_v49 = vpack.c.bf16 %v1776_v47, %v1775_v41 }
 0x126   : > { %4430 = vmatprep.mubr.msk.bf16.mxu0 %vm439_vm0, %v5207_v62  ;;  %v1777_v62 = vld [vmem:[#allocation2 + $0x151] sm:$0xff] }
 0x127   : > { %v1796_v16 = vpack.c.bf16 %v1778_v23, %v1777_v62 }
 0x12b   : > { %4271 = vmatmul.mubr.msk.bf16.vlgmr.msra.gmra.mrb[16].mxu1 %vm439_vm0, %v1792_v22 }
 0x12c   : > { %4274 = vmatprep.mubr.msk.bf16.mxu1 %vm439_vm0, %v1793_v32 }
 0x12d   : > { %4431 = vmatmul.mubr.msk.bf16.gmra.mrb[16].mxu0 %vm439_vm0, %v5211_v63  ;;  %v1797_v63 = vpack.c.bf16 %v1780_v60, %v1779_v54 }
 0x12e   : > { %4434 = vmatprep.mubr.msk.bf16.mxu0 %vm439_vm0, %v5230_v14  ;;  %v3070_v14 = vld [vmem:[#allocation2 + $0x19a] sm:$0xff] }
 0x12f   : > { %v3087_v59 = vpack.c.bf16 %v3071_v55, %v3070_v14 }
 0x133   : > { %4275 = vmatmul.mubr.msk.bf16.gmra.mrb[20].mxu1 %vm439_vm0, %v1794_v58 }
 0x134   : > { %4278 = vmatprep.mubr.msk.bf16.mxu1 %vm439_vm0, %v1795_v49 }
 0x135   : > { %4435 = vmatmul.mubr.msk.bf16.gmra.mrb[20].mxu0 %vm439_vm0, %v5234_v15 }
 0x136   : > { %4438 = vmatprep.mubr.msk.bf16.mxu0 %vm439_vm0, %v5252_v36 }
 0x13b   : > { %4279 = vmatmul.mubr.msk.bf16.gmra.mrb[24].mxu1 %vm439_vm0, %v1796_v16 }
 0x13c   : > { %4282 = vmatprep.mubr.msk.bf16.mxu1 %vm439_vm0, %v1797_v63 }
 0x13d   : > { %4439 = vmatmul.mubr.msk.bf16.gmra.mrb[24].mxu0 %vm439_vm0, %v5256_v37 }
 0x13e   : > { %4442 = vmatprep.mubr.msk.bf16.mxu0 %vm439_vm0, %v5268_v51 }
 0x143   : > { %4283 = vmatmul.mubr.msk.bf16.gmra.mrb[28].mxu1 %vm439_vm0, %v5449_v11 }
 0x145   : > { %4443 = vmatmul.mubr.msk.bf16.gmra.mrb[28].mxu0 %vm439_vm0, %v3087_v59 }
 0x1be   : > { %v4216_v15 = vpop.f32.mrb[0].mxu1 }
 0x1bf   : > { %v1592_v36 = vpop.f32.mrb[1].mxu1 }
 0x1c0   : > { %v4217_v61 = vpop.f32.mrb[2].mxu1 }
 0x1c1   : > { %v1595_v1 = vpop.f32.mrb[3].mxu1 }
 0x1c6   : > { %v4220_v2 = vpop.f32.mrb[4].mxu1 }
 0x1c7   : > { %v1608_v3 = vpop.f32.mrb[5].mxu1 }
 0x1c8   : > { %v4221_v4 = vpop.f32.mrb[6].mxu1 }
 0x1c9   : > { %v1611_v37 = vpop.f32.mrb[7].mxu1 }
 0x1ce   : > { %v4224_v42 = vpop.f32.mrb[8].mxu1 }
 0x1cf   : > { %v1624_v9 = vpop.f32.mrb[9].mxu1 }
 0x1d0   : > { %v5513_v51 = vpop.f32.mrb[10].mxu1 }
 0x1d1   : > { %v5515_v30 = vpop.f32.mrb[11].mxu1 }
 0x1d6   : > { %v5517_v13 = vpop.f32.mrb[12].mxu1 }
 0x1d7   : > { %v5519_v18 = vpop.f32.mrb[13].mxu1 }
 0x1d8   : > { %v5521_v10 = vpop.f32.mrb[14].mxu1 }
 0x1d9   : > { %v5523_v21 = vpop.f32.mrb[15].mxu1 }
 0x1e0   : > { %v4416_v33 = vpop.f32.mrb[0].mxu0 }
 0x1e1   : > { %v4454_v39 = vadd.f32 %v4416_v33, %v4216_v15  ;;  %v3203_v40 = vpop.f32.mrb[1].mxu0 }
 0x1e2   : > { %v4455_v43 = vadd.f32 %v3203_v40, %v1592_v36  ;;  %v4417_v26 = vpop.f32.mrb[2].mxu0 }
 0x1e3   : > { %v3371_v35 = vadd.f32 %v4454_v39, %v5528_v34  ;;  %v4456_v46 = vadd.f32 %v4417_v26, %v4217_v61  ;;  %v3206_v53 = vpop.f32.mrb[3].mxu0 }
 0x1e4   : > { %v3369_v56 = vadd.f32 %v4455_v43, %v5528_v34  ;;  %v4457_v5 = vadd.f32 %v3206_v53, %v1595_v1 }
 0x1e5   : > { %3403 = vst [vmem:[%s5535_s14 + $0x10] sm:$0xff] %v3371_v35  ;;  %v3372_v11 = vadd.f32 %v4456_v46, %v5528_v34  ;;  %v3473_v24 = vmul.f32 %v3371_v35, %v3371_v35 }
 0x1e6   : > { %3401 = vst [vmem:[%s5535_s14] sm:$0xff] %v3369_v56  ;;  %v3370_v27 = vadd.f32 %v4457_v5, %v5528_v34  ;;  %v3471_v52 = vmul.f32 %v3369_v56, %v3369_v56 }
 0x1e7   : > { %3404 = vst [vmem:[%s5535_s14 + $0x18] sm:$0xff] %v3372_v11  ;;  %v3474_v50 = vmul.f32 %v3372_v11, %v3372_v11 }
 0x1e8   : > { %3402 = vst [vmem:[%s5535_s14 + $0x8] sm:$0xff] %v3370_v27  ;;  %v3433_v29 = vadd.f32 %v3370_v27, %v3369_v56  ;;  %v3472_v57 = vmul.f32 %v3370_v27, %v3370_v27  ;;  %v4420_v6 = vpop.f32.mrb[4].mxu0 }
 0x1e9   : > { %v4458_v8 = vadd.f32 %v4420_v6, %v4220_v2  ;;  %v3219_v38 = vpop.f32.mrb[5].mxu0 }
 0x1ea   : > { %v3434_v28 = vadd.f32 %v3433_v29, %v3371_v35  ;;  %v3503_v44 = vadd.f32 %v3472_v57, %v3471_v52  ;;  %v4459_v45 = vadd.f32 %v3219_v38, %v1608_v3  ;;  %v4421_v48 = vpop.f32.mrb[6].mxu0 }
 0x1eb   : > { %v3375_v19 = vadd.f32 %v4458_v8, %v5528_v34  ;;  %v4460_v0 = vadd.f32 %v4421_v48, %v4221_v4  ;;  %v3222_v20 = vpop.f32.mrb[7].mxu0 }
 0x1ec   : > { %v3504_v31 = vadd.f32 %v3503_v44, %v3473_v24  ;;  %v3373_v7 = vadd.f32 %v4459_v45, %v5528_v34  ;;  %v3435_v12 = vadd.f32 %v3434_v28, %v3372_v11  ;;  %v4461_v22 = vadd.f32 %v3222_v20, %v1611_v37 }
 0x1ed   : > { %3407 = vst [vmem:[%s5535_s14 + $0x30] sm:$0xff] %v3375_v19  ;;  %v3376_v32 = vadd.f32 %v4460_v0, %v5528_v34  ;;  %v3477_v16 = vmul.f32 %v3375_v19, %v3375_v19 }
 0x1ee   : > { %3405 = vst [vmem:[%s5535_s14 + $0x20] sm:$0xff] %v3373_v7  ;;  %v3436_v17 = vadd.f32 %v3435_v12, %v3373_v7  ;;  %v3475_v25 = vmul.f32 %v3373_v7, %v3373_v7  ;;  %v3505_v41 = vadd.f32 %v3504_v31, %v3474_v50  ;;  %v3374_v47 = vadd.f32 %v4461_v22, %v5528_v34 }
 0x1ef   : > { %3408 = vst [vmem:[%s5535_s14 + $0x38] sm:$0xff] %v3376_v32  ;;  %v3478_v15 = vmul.f32 %v3376_v32, %v3376_v32 }
 0x1f0   : > { %v3506_v58 = vadd.f32 %v3505_v41, %v3475_v25  ;;  %3406 = vst [vmem:[%s5535_s14 + $0x28] sm:$0xff] %v3374_v47  ;;  %v3437_v49 = vadd.f32 %v3436_v17, %v3374_v47  ;;  %v3476_v62 = vmul.f32 %v3374_v47, %v3374_v47  ;;  %v4424_v23 = vpop.f32.mrb[8].mxu0 }
 0x1f1   : > { %v4462_v54 = vadd.f32 %v4424_v23, %v4224_v42  ;;  %v3235_v60 = vpop.f32.mrb[9].mxu0 }
 0x1f2   : > { %v3438_v63 = vadd.f32 %v3437_v49, %v3375_v19  ;;  %v3507_v14 = vadd.f32 %v3506_v58, %v3476_v62  ;;  %v4463_v55 = vadd.f32 %v3235_v60, %v1624_v9  ;;  %v4425_v59 = vpop.f32.mrb[10].mxu0 }
 0x1f3   : > { %v3379_v36 = vadd.f32 %v4462_v54, %v5528_v34  ;;  %v4464_v61 = vadd.f32 %v4425_v59, %v5513_v51  ;;  %v3238_v1 = vpop.f32.mrb[11].mxu0 }
 0x1f4   : > { %v3508_v2 = vadd.f32 %v3507_v14, %v3477_v16  ;;  %v3377_v3 = vadd.f32 %v4463_v55, %v5528_v34  ;;  %v3439_v4 = vadd.f32 %v3438_v63, %v3376_v32  ;;  %v4465_v37 = vadd.f32 %v3238_v1, %v5515_v30 }
 0x1f5   : > { %3411 = vst [vmem:[%s5535_s14 + $0x50] sm:$0xff] %v3379_v36  ;;  %v3380_v42 = vadd.f32 %v4464_v61, %v5528_v34  ;;  %v3481_v30 = vmul.f32 %v3379_v36, %v3379_v36 }
 0x1f6   : > { %3409 = vst [vmem:[%s5535_s14 + $0x40] sm:$0xff] %v3377_v3  ;;  %v3440_v9 = vadd.f32 %v3439_v4, %v3377_v3  ;;  %v3479_v33 = vmul.f32 %v3377_v3, %v3377_v3  ;;  %v3509_v39 = vadd.f32 %v3508_v2, %v3478_v15  ;;  %v3378_v40 = vadd.f32 %v4465_v37, %v5528_v34 }
 0x1f7   : > { %3412 = vst [vmem:[%s5535_s14 + $0x58] sm:$0xff] %v3380_v42  ;;  %v3482_v52 = vmul.f32 %v3380_v42, %v3380_v42 }
 0x1f8   : > { %v3510_v43 = vadd.f32 %v3509_v39, %v3479_v33  ;;  %3410 = vst [vmem:[%s5535_s14 + $0x48] sm:$0xff] %v3378_v40  ;;  %v3441_v51 = vadd.f32 %v3440_v9, %v3378_v40  ;;  %v3480_v26 = vmul.f32 %v3378_v40, %v3378_v40  ;;  %v4428_v35 = vpop.f32.mrb[12].mxu0 }
 0x1f9   : > { %v4466_v46 = vadd.f32 %v4428_v35, %v5517_v13  ;;  %v3251_v53 = vpop.f32.mrb[13].mxu0 }
 0x1fa   : > { %v3442_v56 = vadd.f32 %v3441_v51, %v3379_v36  ;;  %v3511_v5 = vadd.f32 %v3510_v43, %v3480_v26  ;;  %v4467_v11 = vadd.f32 %v3251_v53, %v5519_v18  ;;  %v4429_v27 = vpop.f32.mrb[14].mxu0 }
 0x1fb   : > { %v3383_v29 = vadd.f32 %v4466_v46, %v5528_v34  ;;  %v4468_v57 = vadd.f32 %v4429_v27, %v5521_v10  ;;  %v3254_v6 = vpop.f32.mrb[15].mxu0 }
 0x1fc   : > { %v3512_v8 = vadd.f32 %v3511_v5, %v3481_v30  ;;  %v3381_v38 = vadd.f32 %v4467_v11, %v5528_v34  ;;  %v3443_v13 = vadd.f32 %v3442_v56, %v3380_v42  ;;  %v4469_v24 = vadd.f32 %v3254_v6, %v5523_v21 }
 0x1fd   : > { %3415 = vst [vmem:[%s5535_s14 + $0x70] sm:$0xff] %v3383_v29  ;;  %v3384_v28 = vadd.f32 %v4468_v57, %v5528_v34  ;;  %v3485_v32 = vmul.f32 %v3383_v29, %v3383_v29 }
 0x1fe   : > { %v4272_v44 = vpop.f32.mrb[16].mxu1  ;;  %3413 = vst [vmem:[%s5535_s14 + $0x60] sm:$0xff] %v3381_v38  ;;  %v3444_v18 = vadd.f32 %v3443_v13, %v3381_v38  ;;  %v3483_v45 = vmul.f32 %v3381_v38, %v3381_v38  ;;  %v3513_v48 = vadd.f32 %v3512_v8, %v3482_v52  ;;  %v3382_v50 = vadd.f32 %v4469_v24, %v5528_v34 }
 0x1ff   : > { %v1978_v19 = vpop.f32.mrb[17].mxu1  ;;  %3416 = vst [vmem:[%s5535_s14 + $0x78] sm:$0xff] %v3384_v28  ;;  %v3486_v58 = vmul.f32 %v3384_v28, %v3384_v28 }
 0x200   : > { %v4273_v10 = vpop.f32.mrb[18].mxu1  ;;  %v3514_v0 = vadd.f32 %v3513_v48, %v3483_v45  ;;  %3414 = vst [vmem:[%s5535_s14 + $0x68] sm:$0xff] %v3382_v50  ;;  %v3445_v20 = vadd.f32 %v3444_v18, %v3382_v50  ;;  %v3484_v31 = vmul.f32 %v3382_v50, %v3382_v50  ;;  %v4432_v7 = vpop.f32.mrb[16].mxu0 }
 0x201   : > { %v1981_v12 = vpop.f32.mrb[19].mxu1  ;;  %v4470_v21 = vadd.f32 %v4432_v7, %v4272_v44  ;;  %v3267_v22 = vpop.f32.mrb[17].mxu0 }
 0x202   : > { %v3446_v17 = vadd.f32 %v3445_v20, %v3383_v29  ;;  %v3515_v25 = vadd.f32 %v3514_v0, %v3484_v31  ;;  %v4471_v41 = vadd.f32 %v3267_v22, %v1978_v19  ;;  %v4433_v47 = vpop.f32.mrb[18].mxu0 }
 0x203   : > { %v3387_v49 = vadd.f32 %v4470_v21, %v5528_v34  ;;  %v4472_v62 = vadd.f32 %v4433_v47, %v4273_v10  ;;  %v3270_v23 = vpop.f32.mrb[19].mxu0 }
 0x204   : > { %v3516_v54 = vadd.f32 %v3515_v25, %v3485_v32  ;;  %v3385_v60 = vadd.f32 %v4471_v41, %v5528_v34  ;;  %v3447_v16 = vadd.f32 %v3446_v17, %v3384_v28  ;;  %v4473_v63 = vadd.f32 %v3270_v23, %v1981_v12 }
 0x205   : > { %3419 = vst [vmem:[%s5535_s14 + $0x90] sm:$0xff] %v3387_v49  ;;  %v3388_v14 = vadd.f32 %v4472_v62, %v5528_v34  ;;  %v3489_v40 = vmul.f32 %v3387_v49, %v3387_v49 }
 0x206   : > { %v4276_v55 = vpop.f32.mrb[20].mxu1  ;;  %3417 = vst [vmem:[%s5535_s14 + $0x80] sm:$0xff] %v3385_v60  ;;  %v3448_v59 = vadd.f32 %v3447_v16, %v3385_v60  ;;  %v3487_v15 = vmul.f32 %v3385_v60, %v3385_v60  ;;  %v3517_v36 = vadd.f32 %v3516_v54, %v3486_v58  ;;  %v3386_v61 = vadd.f32 %v4473_v63, %v5528_v34 }
 0x207   : > { %v1994_v1 = vpop.f32.mrb[21].mxu1  ;;  %3420 = vst [vmem:[%s5535_s14 + $0x98] sm:$0xff] %v3388_v14  ;;  %v3490_v46 = vmul.f32 %v3388_v14, %v3388_v14 }
 0x208   : > { %v4277_v2 = vpop.f32.mrb[22].mxu1  ;;  %v3518_v3 = vadd.f32 %v3517_v36, %v3487_v15  ;;  %3418 = vst [vmem:[%s5535_s14 + $0x88] sm:$0xff] %v3386_v61  ;;  %v3449_v4 = vadd.f32 %v3448_v59, %v3386_v61  ;;  %v3488_v37 = vmul.f32 %v3386_v61, %v3386_v61  ;;  %v4436_v42 = vpop.f32.mrb[20].mxu0 }
 0x209   : > { %v1997_v9 = vpop.f32.mrb[23].mxu1  ;;  %v4474_v33 = vadd.f32 %v4436_v42, %v4276_v55  ;;  %v3283_v39 = vpop.f32.mrb[21].mxu0 }
 0x20a   : > { %v3450_v43 = vadd.f32 %v3449_v4, %v3387_v49  ;;  %v3519_v51 = vadd.f32 %v3518_v3, %v3488_v37  ;;  %v4475_v26 = vadd.f32 %v3283_v39, %v1994_v1  ;;  %v4437_v35 = vpop.f32.mrb[22].mxu0 }
 0x20b   : > { %v3391_v53 = vadd.f32 %v4474_v33, %v5528_v34  ;;  %v4476_v30 = vadd.f32 %v4437_v35, %v4277_v2  ;;  %v3286_v56 = vpop.f32.mrb[23].mxu0 }
 0x20c   : > { %v3520_v5 = vadd.f32 %v3519_v51, %v3489_v40  ;;  %v3389_v11 = vadd.f32 %v4475_v26, %v5528_v34  ;;  %v3451_v27 = vadd.f32 %v3450_v43, %v3388_v14  ;;  %v4477_v52 = vadd.f32 %v3286_v56, %v1997_v9 }
 0x20d   : > { %3423 = vst [vmem:[%s5535_s14 + $0xb0] sm:$0xff] %v3391_v53  ;;  %v3392_v29 = vadd.f32 %v4476_v30, %v5528_v34  ;;  %v3493_v0 = vmul.f32 %v3391_v53, %v3391_v53 }
 0x20e   : > { %v4280_v57 = vpop.f32.mrb[24].mxu1  ;;  %3421 = vst [vmem:[%s5535_s14 + $0xa0] sm:$0xff] %v3389_v11  ;;  %v3452_v6 = vadd.f32 %v3451_v27, %v3389_v11  ;;  %v3491_v8 = vmul.f32 %v3389_v11, %v3389_v11  ;;  %v3521_v38 = vadd.f32 %v3520_v5, %v3490_v46  ;;  %v3390_v13 = vadd.f32 %v4477_v52, %v5528_v34 }
 0x20f   : > { %v2010_v24 = vpop.f32.mrb[25].mxu1  ;;  %3424 = vst [vmem:[%s5535_s14 + $0xb8] sm:$0xff] %v3392_v29  ;;  %v3494_v21 = vmul.f32 %v3392_v29, %v3392_v29 }
 0x210   : > { %v4281_v28 = vpop.f32.mrb[26].mxu1  ;;  %v3522_v44 = vadd.f32 %v3521_v38, %v3491_v8  ;;  %3422 = vst [vmem:[%s5535_s14 + $0xa8] sm:$0xff] %v3390_v13  ;;  %v3453_v18 = vadd.f32 %v3452_v6, %v3390_v13  ;;  %v3492_v45 = vmul.f32 %v3390_v13, %v3390_v13  ;;  %v4440_v48 = vpop.f32.mrb[24].mxu0 }
 0x211   : > { %v2013_v50 = vpop.f32.mrb[27].mxu1  ;;  %v4478_v19 = vadd.f32 %v4440_v48, %v4280_v57  ;;  %v3299_v10 = vpop.f32.mrb[25].mxu0 }
 0x212   : > { %v3454_v20 = vadd.f32 %v3453_v18, %v3391_v53  ;;  %v3523_v31 = vadd.f32 %v3522_v44, %v3492_v45  ;;  %v4479_v7 = vadd.f32 %v3299_v10, %v2010_v24  ;;  %v4441_v12 = vpop.f32.mrb[26].mxu0 }
 0x213   : > { %v3395_v22 = vadd.f32 %v4478_v19, %v5528_v34  ;;  %v4480_v32 = vadd.f32 %v4441_v12, %v4281_v28  ;;  %v3302_v17 = vpop.f32.mrb[27].mxu0 }
 0x214   : > { %v3524_v25 = vadd.f32 %v3523_v31, %v3493_v0  ;;  %v3393_v41 = vadd.f32 %v4479_v7, %v5528_v34  ;;  %v3455_v47 = vadd.f32 %v3454_v20, %v3392_v29  ;;  %v4481_v58 = vadd.f32 %v3302_v17, %v2013_v50 }
 0x215   : > { %3427 = vst [vmem:[%s5535_s14 + $0xd0] sm:$0xff] %v3395_v22  ;;  %v3396_v49 = vadd.f32 %v4480_v32, %v5528_v34  ;;  %v3497_v3 = vmul.f32 %v3395_v22, %v3395_v22 }
 0x216   : > { %v4284_v62 = vpop.f32.mrb[28].mxu1  ;;  %3425 = vst [vmem:[%s5535_s14 + $0xc0] sm:$0xff] %v3393_v41  ;;  %v3456_v23 = vadd.f32 %v3455_v47, %v3393_v41  ;;  %v3495_v54 = vmul.f32 %v3393_v41, %v3393_v41  ;;  %v3525_v60 = vadd.f32 %v3524_v25, %v3494_v21  ;;  %v3394_v16 = vadd.f32 %v4481_v58, %v5528_v34 }
 0x217   : > { %v2026_v63 = vpop.f32.mrb[29].mxu1  ;;  %3428 = vst [vmem:[%s5535_s14 + $0xd8] sm:$0xff] %v3396_v49  ;;  %v3498_v33 = vmul.f32 %v3396_v49, %v3396_v49 }
 0x218   : > { %v4285_v14 = vpop.f32.mrb[30].mxu1  ;;  %v3526_v55 = vadd.f32 %v3525_v60, %v3495_v54  ;;  %3426 = vst [vmem:[%s5535_s14 + $0xc8] sm:$0xff] %v3394_v16  ;;  %v3457_v59 = vadd.f32 %v3456_v23, %v3394_v16  ;;  %v3496_v15 = vmul.f32 %v3394_v16, %v3394_v16  ;;  %v4444_v36 = vpop.f32.mrb[28].mxu0 }
 0x219   : > { %v2029_v61 = vpop.f32.mrb[31].mxu1  ;;  %v4482_v1 = vadd.f32 %v4444_v36, %v4284_v62  ;;  %v3315_v2 = vpop.f32.mrb[29].mxu0 }
 0x21a   : > { %v3458_v4 = vadd.f32 %v3457_v59, %v3395_v22  ;;  %v3527_v37 = vadd.f32 %v3526_v55, %v3496_v15  ;;  %v4483_v42 = vadd.f32 %v3315_v2, %v2026_v63  ;;  %v4445_v9 = vpop.f32.mrb[30].mxu0 }
 0x21b   : > { %v3399_v39 = vadd.f32 %v4482_v1, %v5528_v34  ;;  %v4484_v40 = vadd.f32 %v4445_v9, %v4285_v14  ;;  %v3318_v43 = vpop.f32.mrb[31].mxu0 }
 0x21c   : > { %v3528_v51 = vadd.f32 %v3527_v37, %v3497_v3  ;;  %v3397_v26 = vadd.f32 %v4483_v42, %v5528_v34  ;;  %v3459_v35 = vadd.f32 %v3458_v4, %v3396_v49  ;;  %v4485_v46 = vadd.f32 %v3318_v43, %v2029_v61 }
 0x21d   : > { %3431 = vst [vmem:[%s5535_s14 + $0xf0] sm:$0xff] %v3399_v39  ;;  %v3400_v53 = vadd.f32 %v4484_v40, %v5528_v34  ;;  %v3501_v57 = vmul.f32 %v3399_v39, %v3399_v39 }
 0x21e   : > { %3429 = vst [vmem:[%s5535_s14 + $0xe0] sm:$0xff] %v3397_v26  ;;  %v3460_v30 = vadd.f32 %v3459_v35, %v3397_v26  ;;  %v3499_v56 = vmul.f32 %v3397_v26, %v3397_v26  ;;  %v3529_v5 = vadd.f32 %v3528_v51, %v3498_v33  ;;  %v3398_v11 = vadd.f32 %v4485_v46, %v5528_v34 }
 0x21f   : > { %3432 = vst [vmem:[%s5535_s14 + $0xf8] sm:$0xff] %v3400_v53  ;;  %v3502_v38 = vmul.f32 %v3400_v53, %v3400_v53 }
 0x220   : > { %v3530_v27 = vadd.f32 %v3529_v5, %v3499_v56  ;;  %3430 = vst [vmem:[%s5535_s14 + $0xe8] sm:$0xff] %v3398_v11  ;;  %v3461_v52 = vadd.f32 %v3460_v30, %v3398_v11  ;;  %v3500_v29 = vmul.f32 %v3398_v11, %v3398_v11 }
 0x222   : > { %v3462_v6 = vadd.f32 %v3461_v52, %v3399_v39  ;;  %v3531_v8 = vadd.f32 %v3530_v27, %v3500_v29 }
 0x224   : > { %v3463_v13 = vadd.f32 %v3462_v6, %v3400_v53  ;;  %v3532_v24 = vadd.f32 %v3531_v8, %v3501_v57 }
 0x226   : > { %v3464_v28 = vrot.slane %v3463_v13, 4  ;;  %v3533_v44 = vadd.f32 %v3532_v24, %v3502_v38 }
 0x228   : > { %v3465_v18 = vadd.f32 %v3464_v28, %v3463_v13  ;;  %v3534_v45 = vrot.slane %v3533_v44, 4 }
 0x22a   : > { %v3466_v48 = vrot.slane %v3465_v18, 2  ;;  %v3535_v50 = vadd.f32 %v3534_v45, %v3533_v44 }
 0x22c   : > { %v3467_v34 = vadd.f32 %v3466_v48, %v3465_v18  ;;  %v3536_v19 = vrot.slane %v3535_v50, 2 }
 0x22e   : > { %v3468_v10 = vrot.slane %v3467_v34, 1  ;;  %v3537_v0 = vadd.f32 %v3536_v19, %v3535_v50 }
 0x230   : > { %v3469_v20 = vadd.f32 %v3468_v10, %v3467_v34  ;;  %v3538_v31 = vrot.slane %v3537_v0, 1 }
 0x232   : > { %3470 = vst [vmem:[%s292_s16] sm:$0x1] %v3469_v20  ;;  %v3539_v7 = vadd.f32 %v3538_v31, %v3537_v0 }
 0x234   : > { %3540 = vst [vmem:[%s295_s20] sm:$0x1] %v3539_v7 }
 0x235 PF: > { %s18_s24 = sadd.s32 1, %s4765_s24  }
 0x236   : > { %p15_p4 = scmp.ge.s32.totalorder %s18_s24, 4  }
 0x238   :  { %17 = sbr.rel (!%p15_p4) target bundleno = 1 (0x1), region = 104 }

</bundles_post_ra>
